<compile_context>
chip_gen: v6e
topology: v6e:2x2x1
jax: 0.10.0
libtpu: 0.0.40
codegen_flags: <defaults>
</compile_context>

<pallas_src>
import functools
import math

import jax
import jax.numpy as jnp
from jax.experimental import pallas as pl
from jax.experimental.pallas import tpu as pltpu


# ---------------------------------------------------------------------------
# Helper: write `value` (N,H,W,C) into the interior of a padded scratch, zeroing
# ONLY the halo ring (the interior is fully overwritten by the single bulk store).
# ---------------------------------------------------------------------------
def _stage_into_padded(dst_ref, value, H, W, ph, pw):
    N = dst_ref.shape[0]
    C = dst_ref.shape[3]
    Wp = W + 2 * pw
    dt = dst_ref.dtype
    if ph > 0:
        z_h = jnp.zeros((N, ph, Wp, C), dt)
        dst_ref[:, :ph, :, :] = z_h                    # top halo rows
        dst_ref[:, ph + H:, :, :] = z_h                # bottom halo rows
    if pw > 0:
        z_w = jnp.zeros((N, H, pw, C), dt)
        dst_ref[:, ph:ph + H, :pw, :] = z_w            # left halo columns
        dst_ref[:, ph:ph + H, pw + W:, :] = z_w        # right halo columns
    dst_ref[:, ph:ph + H, pw:pw + W, :] = value        # single contiguous interior store


# ---------------------------------------------------------------------------
# Fully fused CNN kernel: conv (+BN) + ReLU + pool blocks, then the FC stack.
# ---------------------------------------------------------------------------
def _cnn_kernel(*refs, cfgs, n_fc, eps, compute_dtype):
    # refs layout (built by cnn_forward):
    #   x_ref,
    #   per conv layer: w_ref (KH*KW, Cin, Cout), b_ref (1, Cout), [g_ref, beta_ref if norm],
    #   fc layer 0:     w1_ref (Hf*Wf, Cf, d1), b1_ref (1, d1),
    #   fc layers 1..:  w_ref (din, dout), b_ref (1, dout),
    #   o_ref,
    #   scratch: per conv layer pad_ref (N, H+2ph, W+2pw, Cin), then final_ref (N, Hf, Wf, Cf)
    it = iter(refs)
    x_ref = next(it)
    conv_p = []
    for cfg in cfgs:
        w_ref = next(it)
        b_ref = next(it)
        g_ref = be_ref = None
        if cfg["norm"]:
            g_ref = next(it)
            be_ref = next(it)
        conv_p.append((w_ref, b_ref, g_ref, be_ref))
    fc_p = [(next(it), next(it)) for _ in range(n_fc)]
    o_ref = next(it)
    pads = [next(it) for _ in range(len(cfgs))]
    final_ref = next(it)

    # Stage the input into the first layer's padded buffer (halo-only zeroing).
    c0 = cfgs[0]
    _stage_into_padded(pads[0], x_ref[...].astype(compute_dtype),
                       c0["H"], c0["W"], c0["ph"], c0["pw"])

    n_layers = len(cfgs)
    for l, cfg in enumerate(cfgs):
        N, H, W = cfg["N"], cfg["H"], cfg["W"]
        Cin, Cout = cfg["Cin"], cfg["Cout"]
        KH, KW, P = cfg["KH"], cfg["KW"], cfg["pool"]
        ph, pw = cfg["ph"], cfg["pw"]
        M = N * H * W
        w_ref, b_ref, g_ref, be_ref = conv_p[l]
        pad_ref = pads[l]

        # ---- conv ('same' padding): accumulate KH*KW small MXU matmuls in f32 ----
        def tap_dot(kh, kw):
            patch = pad_ref[:, kh:kh + H, kw:kw + W, :].reshape(M, Cin)
            return jnp.dot(patch, w_ref[kh * KW + kw],
                           preferred_element_type=jnp.float32)

        taps = [(kh, kw) for kh in range(KH) for kw in range(KW)]
        acc = tap_dot(*taps[0])
        for kh, kw in taps[1:]:
            acc = acc + tap_dot(kh, kw)
        y = acc + b_ref[...]                                         # (M, Cout) f32

        # ---- BatchNorm2d, training-mode batch statistics (centered two-pass) ----
        if cfg["norm"]:
            mean = jnp.mean(y, axis=0, keepdims=True)
            d = y - mean
            var = jnp.mean(d * d, axis=0, keepdims=True)             # biased variance
            y = d * jax.lax.rsqrt(var + eps)
            y = y * g_ref[...] + be_ref[...]

        # ---- ReLU ----
        y = jnp.maximum(y, 0.0)
        y4 = y.reshape(N, H, W, Cout)

        # ---- MaxPool2d(P) (square, stride == size, floor semantics) ----
        if P == 0:
            pooled, Ho, Wo = y4, H, W
        else:
            Ho = (H - P) // P + 1
            Wo = (W - P) // P + 1
            if H != Ho * P or W != Wo * P:                           # drop the tail (floor)
                y4 = y4[:, :Ho * P, :Wo * P, :]
            # H direction: split the (major) H axis, elementwise max over the P slices.
            a5 = y4.reshape(N, Ho, P, Wo * P, Cout)
            hmax = a5[:, :, 0, :, :]
            for p in range(1, P):
                hmax = jnp.maximum(hmax, a5[:, :, p, :, :])
            # W direction: per-column max (reads only), assembled with ONE concatenate —
            # no per-column stores; the writeback below is a single contiguous store.
            cols = []
            for wo in range(Wo):
                col = hmax[:, :, wo * P:wo * P + 1, :]               # (N, Ho, 1, Cout)
                for p in range(1, P):
                    col = jnp.maximum(col, hmax[:, :, wo * P + p:wo * P + p + 1, :])
                cols.append(col)
            pooled = cols[0] if Wo == 1 else jnp.concatenate(cols, axis=2)

        # ---- single bulk writeback: next layer's padded interior, or the final buffer ----
        if l + 1 < n_layers:
            nxt = cfgs[l + 1]
            _stage_into_padded(pads[l + 1], pooled.astype(compute_dtype),
                               nxt["H"], nxt["W"], nxt["ph"], nxt["pw"])
        else:
            final_ref[...] = pooled.astype(compute_dtype)

    # ---- nn.Flatten + FC stack (fused). FC1 weight rows were permuted host-side into
    #      per-spatial-position blocks, so FC1 is a sum of (N,Cf)@(Cf,d1) matmuls and the
    #      kernel never needs a lane-changing flatten reshape. ----
    Nb, Hf, Wf, Cf = final_ref.shape
    w1_ref, b1_ref = fc_p[0]
    h = None
    for s in range(Hf * Wf):
        hf, wf = divmod(s, Wf)
        part = jnp.dot(final_ref[:, hf, wf, :].astype(compute_dtype), w1_ref[s],
                       preferred_element_type=jnp.float32)
        h = part if h is None else h + part
    h = h + b1_ref[...]
    for w_ref, b_ref in fc_p[1:]:                                    # no activation between FCs
        h = jnp.dot(h.astype(compute_dtype), w_ref[...],
                    preferred_element_type=jnp.float32) + b_ref[...]
    o_ref[...] = h.astype(o_ref.dtype)


# ---------------------------------------------------------------------------
# Full CNN forward (mirrors CNN.forward), single pallas_call.
# ---------------------------------------------------------------------------
def cnn_forward(x_nchw, conv_params, fc_params, norm_flags, pools,
                compute_dtype=jnp.float32):
    """x_nchw: (N, C, H, W) f32 (PyTorch layout).
    conv_params: [(w (k,k,cin,f), b (f,), gamma (f,), beta (f,)) ...]
    fc_params:   [(w (din,dout), b (dout,)) ...]; FC1 rows in PyTorch NCHW-flatten order.
    compute_dtype: jnp.float32 (reference numerics) or jnp.bfloat16 (faster MXU on v6e/v7x).
    """
    x = jnp.transpose(x_nchw, (0, 2, 3, 1)).astype(jnp.float32)      # NCHW -> NHWC once
    N, H, W, Cin = x.shape

    cfgs, args, scratch = [], [x], []
    h, w_cur, cin = H, W, Cin
    for (wk, b, g, be), nflag, p in zip(conv_params, norm_flags, pools):
        KH, KW, _, Cout = wk.shape
        assert KH % 2 == 1 and KW % 2 == 1, "padding='same' implemented for odd kernels"
        ph, pw = (KH - 1) // 2, (KW - 1) // 2
        cfgs.append(dict(N=N, H=h, W=w_cur, Cin=cin, Cout=Cout, KH=KH, KW=KW,
                         ph=ph, pw=pw, norm=bool(nflag), pool=int(p)))
        args.append(wk.reshape(KH * KW, cin, Cout).astype(compute_dtype))   # per-tap weights
        args.append(b.reshape(1, Cout).astype(jnp.float32))
        if nflag:
            args.append(g.reshape(1, Cout).astype(jnp.float32))
            args.append(be.reshape(1, Cout).astype(jnp.float32))
        # Padded activation scratch for this layer (halo ring zeroed in-kernel).
        scratch.append(pltpu.VMEM((N, h + 2 * ph, w_cur + 2 * pw, cin), compute_dtype))
        if p != 0:
            h = (h - p) // p + 1
            w_cur = (w_cur - p) // p + 1
        cin = Cout

    Hf, Wf, Cf = h, w_cur, cin
    scratch.append(pltpu.VMEM((N, Hf, Wf, Cf), compute_dtype))        # final conv activation

    # FC1: PyTorch NCHW-flatten row order -> per-spatial-position (Hf*Wf, Cf, d1) blocks.
    (w1, b1), rest = fc_params[0], fc_params[1:]
    assert w1.shape[0] == Hf * Wf * Cf, (w1.shape, Hf, Wf, Cf)
    d1 = w1.shape[1]
    w1_pos = (w1.reshape(Cf, Hf, Wf, d1)
                .transpose(1, 2, 0, 3)
                .reshape(Hf * Wf, Cf, d1))
    args.append(w1_pos.astype(compute_dtype))
    args.append(b1.reshape(1, d1).astype(jnp.float32))
    for wfc, bfc in rest:
        args.append(wfc.astype(compute_dtype))
        args.append(bfc.reshape(1, wfc.shape[1]).astype(jnp.float32))

    classes = fc_params[-1][0].shape[1]
    kern = functools.partial(_cnn_kernel, cfgs=cfgs, n_fc=len(fc_params),
                             eps=1e-5, compute_dtype=compute_dtype)
    return pl.pallas_call(
        kern,
        out_shape=jax.ShapeDtypeStruct((N, classes), jnp.float32),
        in_specs=[pl.BlockSpec(memory_space=pltpu.MemorySpace.VMEM)] * len(args),
        out_specs=pl.BlockSpec(memory_space=pltpu.MemorySpace.VMEM),
        scratch_shapes=scratch,
        compiler_params=pltpu.CompilerParams(vmem_limit_bytes=32 * 1024 * 1024),
    )(*args)


# ---------------------------------------------------------------------------
# Deterministic parameter construction (shapes follow CNN.__init__)
#   conv weights: (k, k, cin, f);  fc weights: (din, dout), FC1 rows in NCHW-flatten order.
# ---------------------------------------------------------------------------
def init_params(key, input_channels, filters, kernel, fc_dims):
    conv_params = []
    cin = input_channels
    for f, k in zip(filters, kernel):
        key, k1, k2 = jax.random.split(key, 3)
        w = jax.random.normal(k1, (k, k, cin, f), jnp.float32) / math.sqrt(cin * k * k)
        b = jax.random.normal(k2, (f,), jnp.float32) * 0.01
        gamma = jnp.ones((f,), jnp.float32)
        beta = jnp.zeros((f,), jnp.float32)
        conv_params.append((w, b, gamma, beta))
        cin = f
    fc_params = []
    for din, dout in zip(fc_dims, fc_dims[1:]):
        key, k1, k2 = jax.random.split(key, 3)
        w = jax.random.normal(k1, (din, dout), jnp.float32) / math.sqrt(din)
        b = jax.random.normal(k2, (dout,), jnp.float32) * 0.01
        fc_params.append((w, b))
    return conv_params, fc_params


if __name__ == "__main__":
    # Module configuration (small, consistent with CNN.__init__ constraints).
    n_conv_layers = 2
    filters = [8, 16]
    kernel = [3, 3]
    activation = ["relu", "relu"]      # only ReLU is supported by the module anyway
    norm = [True, False]
    pool = [2, 2]
    input_channels = 4
    fully_connected = [32]
    input_dims = (16, 16)
    classes = 10

    # Replicate the fc-dimension bookkeeping from CNN.__init__
    fc_dims = list(fully_connected) + [classes]
    dims = input_dims
    for p in pool:
        if p != 0:
            dims = tuple((d - (p - 1) - 1) // p + 1 for d in dims)
    flat_size = int(math.prod(dims) * filters[-1])
    fc_dims.insert(0, flat_size)       # [256, 32, 10]

    key = jax.random.PRNGKey(0)
    key, pkey, xkey = jax.random.split(key, 3)
    conv_params, fc_params = init_params(pkey, input_channels, filters, kernel, fc_dims)

    x = jax.random.normal(xkey, (2, input_channels, *input_dims), jnp.float32)  # NCHW

    out = cnn_forward(x, conv_params, fc_params, norm, pool)
    out = jax.block_until_ready(out)
    assert out.shape == (2, classes), out.shape
    assert bool(jnp.all(jnp.isfinite(out)))
    print("KERNEL_OK")
</pallas_src>

<mosaic_0001>
module attributes {stable_mosaic.version = 11 : i64} {
  func.func @_cnn_kernel(%arg0: memref<2x16x16x4xf32, #tpu.memory_space<vmem>>, %arg1: memref<9x4x8xf32, #tpu.memory_space<vmem>>, %arg2: memref<1x8xf32, #tpu.memory_space<vmem>>, %arg3: memref<1x8xf32, #tpu.memory_space<vmem>>, %arg4: memref<1x8xf32, #tpu.memory_space<vmem>>, %arg5: memref<9x8x16xf32, #tpu.memory_space<vmem>>, %arg6: memref<1x16xf32, #tpu.memory_space<vmem>>, %arg7: memref<16x16x32xf32, #tpu.memory_space<vmem>>, %arg8: memref<1x32xf32, #tpu.memory_space<vmem>>, %arg9: memref<32x10xf32, #tpu.memory_space<vmem>>, %arg10: memref<1x10xf32, #tpu.memory_space<vmem>>, %arg11: memref<2x10xf32, #tpu.memory_space<vmem>>, %arg12: memref<2x18x18x4xf32, #tpu.memory_space<vmem>>, %arg13: memref<2x10x10x8xf32, #tpu.memory_space<vmem>>, %arg14: memref<2x4x4x16xf32, #tpu.memory_space<vmem>>) attributes {dimension_semantics = [], scalar_prefetch = 0 : i64, scratch_operands = 3 : i64, tpu.core_type = #tpu.core_type<tc>} {
    %c0 = arith.constant 0 : index
    %c0_0 = arith.constant 0 : index
    %c0_1 = arith.constant 0 : index
    %c0_2 = arith.constant 0 : index
    %0 = vector.load %arg0[%c0, %c0_0, %c0_1, %c0_2] : memref<2x16x16x4xf32, #tpu.memory_space<vmem>>, vector<2x16x16x4xf32>
    %cst = arith.constant 0.000000e+00 : f32
    %1 = vector.broadcast %cst : f32 to vector<2x1x18x4xf32>
    %c0_3 = arith.constant 0 : index
    %c0_4 = arith.constant 0 : index
    %c0_5 = arith.constant 0 : index
    %c0_6 = arith.constant 0 : index
    %2 = vector.load %arg12[%c0_3, %c0_4, %c0_5, %c0_6] : memref<2x18x18x4xf32, #tpu.memory_space<vmem>>, vector<2x1x18x4xf32>
    tpu.vector_store %arg12[%c0_3, %c0_4, %c0_5, %c0_6], %1 {strides = array<i32>} : memref<2x18x18x4xf32, #tpu.memory_space<vmem>>, vector<2x1x18x4xf32>,
    %c0_7 = arith.constant 0 : index
    %c17 = arith.constant 17 : index
    %c0_8 = arith.constant 0 : index
    %c0_9 = arith.constant 0 : index
    %3 = vector.load %arg12[%c0_7, %c17, %c0_8, %c0_9] : memref<2x18x18x4xf32, #tpu.memory_space<vmem>>, vector<2x1x18x4xf32>
    tpu.vector_store %arg12[%c0_7, %c17, %c0_8, %c0_9], %1 {strides = array<i32>} : memref<2x18x18x4xf32, #tpu.memory_space<vmem>>, vector<2x1x18x4xf32>,
    %cst_10 = arith.constant 0.000000e+00 : f32
    %4 = vector.broadcast %cst_10 : f32 to vector<2x16x1x4xf32>
    %c0_11 = arith.constant 0 : index
    %c1 = arith.constant 1 : index
    %c0_12 = arith.constant 0 : index
    %c0_13 = arith.constant 0 : index
    %5 = vector.load %arg12[%c0_11, %c1, %c0_12, %c0_13] : memref<2x18x18x4xf32, #tpu.memory_space<vmem>>, vector<2x16x1x4xf32>
    tpu.vector_store %arg12[%c0_11, %c1, %c0_12, %c0_13], %4 {strides = array<i32>} : memref<2x18x18x4xf32, #tpu.memory_space<vmem>>, vector<2x16x1x4xf32>,
    %c0_14 = arith.constant 0 : index
    %c1_15 = arith.constant 1 : index
    %c17_16 = arith.constant 17 : index
    %c0_17 = arith.constant 0 : index
    %6 = vector.load %arg12[%c0_14, %c1_15, %c17_16, %c0_17] : memref<2x18x18x4xf32, #tpu.memory_space<vmem>>, vector<2x16x1x4xf32>
    tpu.vector_store %arg12[%c0_14, %c1_15, %c17_16, %c0_17], %4 {strides = array<i32>} : memref<2x18x18x4xf32, #tpu.memory_space<vmem>>, vector<2x16x1x4xf32>,
    %c0_18 = arith.constant 0 : index
    %c1_19 = arith.constant 1 : index
    %c1_20 = arith.constant 1 : index
    %c0_21 = arith.constant 0 : index
    %7 = vector.load %arg12[%c0_18, %c1_19, %c1_20, %c0_21] : memref<2x18x18x4xf32, #tpu.memory_space<vmem>>, vector<2x16x16x4xf32>
    tpu.vector_store %arg12[%c0_18, %c1_19, %c1_20, %c0_21], %0 {strides = array<i32>} : memref<2x18x18x4xf32, #tpu.memory_space<vmem>>, vector<2x16x16x4xf32>,
    %c0_22 = arith.constant 0 : index
    %c0_23 = arith.constant 0 : index
    %c0_24 = arith.constant 0 : index
    %c0_25 = arith.constant 0 : index
    %8 = vector.load %arg12[%c0_22, %c0_23, %c0_24, %c0_25] : memref<2x18x18x4xf32, #tpu.memory_space<vmem>>, vector<2x16x16x4xf32>
    %9 = vector.shape_cast %8 : vector<2x16x16x4xf32> to vector<512x4xf32>
    %c0_26 = arith.constant 0 : index
    %c0_27 = arith.constant 0 : index
    %c0_28 = arith.constant 0 : index
    %10 = vector.load %arg1[%c0_26, %c0_27, %c0_28] : memref<9x4x8xf32, #tpu.memory_space<vmem>>, vector<1x4x8xf32>
    %11 = vector.shape_cast %10 : vector<1x4x8xf32> to vector<4x8xf32>
    %cst_29 = arith.constant dense<0.000000e+00> : vector<512x8xf32>
    %12 = tpu.matmul %9, %11, %cst_29 {dimension_numbers = #tpu.dot_dimension_numbers<[1], [0], [0], [1], [0, 0, 1, 1], [], []>} : vector<512x4xf32>, vector<4x8xf32>, vector<512x8xf32> -> vector<512x8xf32>
    %c0_30 = arith.constant 0 : index
    %c0_31 = arith.constant 0 : index
    %c1_32 = arith.constant 1 : index
    %c0_33 = arith.constant 0 : index
    %13 = vector.load %arg12[%c0_30, %c0_31, %c1_32, %c0_33] : memref<2x18x18x4xf32, #tpu.memory_space<vmem>>, vector<2x16x16x4xf32>
    %14 = vector.shape_cast %13 : vector<2x16x16x4xf32> to vector<512x4xf32>
    %c1_34 = arith.constant 1 : index
    %c0_35 = arith.constant 0 : index
    %c0_36 = arith.constant 0 : index
    %15 = vector.load %arg1[%c1_34, %c0_35, %c0_36] : memref<9x4x8xf32, #tpu.memory_space<vmem>>, vector<1x4x8xf32>
    %16 = vector.shape_cast %15 : vector<1x4x8xf32> to vector<4x8xf32>
    %cst_37 = arith.constant dense<0.000000e+00> : vector<512x8xf32>
    %17 = tpu.matmul %14, %16, %cst_37 {dimension_numbers = #tpu.dot_dimension_numbers<[1], [0], [0], [1], [0, 0, 1, 1], [], []>} : vector<512x4xf32>, vector<4x8xf32>, vector<512x8xf32> -> vector<512x8xf32>
    %18 = arith.addf %12, %17 : vector<512x8xf32>
    %c0_38 = arith.constant 0 : index
    %c0_39 = arith.constant 0 : index
    %c2 = arith.constant 2 : index
    %c0_40 = arith.constant 0 : index
    %19 = vector.load %arg12[%c0_38, %c0_39, %c2, %c0_40] : memref<2x18x18x4xf32, #tpu.memory_space<vmem>>, vector<2x16x16x4xf32>
    %20 = vector.shape_cast %19 : vector<2x16x16x4xf32> to vector<512x4xf32>
    %c2_41 = arith.constant 2 : index
    %c0_42 = arith.constant 0 : index
    %c0_43 = arith.constant 0 : index
    %21 = vector.load %arg1[%c2_41, %c0_42, %c0_43] : memref<9x4x8xf32, #tpu.memory_space<vmem>>, vector<1x4x8xf32>
    %22 = vector.shape_cast %21 : vector<1x4x8xf32> to vector<4x8xf32>
    %cst_44 = arith.constant dense<0.000000e+00> : vector<512x8xf32>
    %23 = tpu.matmul %20, %22, %cst_44 {dimension_numbers = #tpu.dot_dimension_numbers<[1], [0], [0], [1], [0, 0, 1, 1], [], []>} : vector<512x4xf32>, vector<4x8xf32>, vector<512x8xf32> -> vector<512x8xf32>
    %24 = arith.addf %18, %23 : vector<512x8xf32>
    %c0_45 = arith.constant 0 : index
    %c1_46 = arith.constant 1 : index
    %c0_47 = arith.constant 0 : index
    %c0_48 = arith.constant 0 : index
    %25 = vector.load %arg12[%c0_45, %c1_46, %c0_47, %c0_48] : memref<2x18x18x4xf32, #tpu.memory_space<vmem>>, vector<2x16x16x4xf32>
    %26 = vector.shape_cast %25 : vector<2x16x16x4xf32> to vector<512x4xf32>
    %c3 = arith.constant 3 : index
    %c0_49 = arith.constant 0 : index
    %c0_50 = arith.constant 0 : index
    %27 = vector.load %arg1[%c3, %c0_49, %c0_50] : memref<9x4x8xf32, #tpu.memory_space<vmem>>, vector<1x4x8xf32>
    %28 = vector.shape_cast %27 : vector<1x4x8xf32> to vector<4x8xf32>
    %cst_51 = arith.constant dense<0.000000e+00> : vector<512x8xf32>
    %29 = tpu.matmul %26, %28, %cst_51 {dimension_numbers = #tpu.dot_dimension_numbers<[1], [0], [0], [1], [0, 0, 1, 1], [], []>} : vector<512x4xf32>, vector<4x8xf32>, vector<512x8xf32> -> vector<512x8xf32>
    %30 = arith.addf %24, %29 : vector<512x8xf32>
    %c0_52 = arith.constant 0 : index
    %c1_53 = arith.constant 1 : index
    %c1_54 = arith.constant 1 : index
    %c0_55 = arith.constant 0 : index
    %31 = vector.load %arg12[%c0_52, %c1_53, %c1_54, %c0_55] : memref<2x18x18x4xf32, #tpu.memory_space<vmem>>, vector<2x16x16x4xf32>
    %32 = vector.shape_cast %31 : vector<2x16x16x4xf32> to vector<512x4xf32>
    %c4 = arith.constant 4 : index
    %c0_56 = arith.constant 0 : index
    %c0_57 = arith.constant 0 : index
    %33 = vector.load %arg1[%c4, %c0_56, %c0_57] : memref<9x4x8xf32, #tpu.memory_space<vmem>>, vector<1x4x8xf32>
    %34 = vector.shape_cast %33 : vector<1x4x8xf32> to vector<4x8xf32>
    %cst_58 = arith.constant dense<0.000000e+00> : vector<512x8xf32>
    %35 = tpu.matmul %32, %34, %cst_58 {dimension_numbers = #tpu.dot_dimension_numbers<[1], [0], [0], [1], [0, 0, 1, 1], [], []>} : vector<512x4xf32>, vector<4x8xf32>, vector<512x8xf32> -> vector<512x8xf32>
    %36 = arith.addf %30, %35 : vector<512x8xf32>
    %c0_59 = arith.constant 0 : index
    %c1_60 = arith.constant 1 : index
    %c2_61 = arith.constant 2 : index
    %c0_62 = arith.constant 0 : index
    %37 = vector.load %arg12[%c0_59, %c1_60, %c2_61, %c0_62] : memref<2x18x18x4xf32, #tpu.memory_space<vmem>>, vector<2x16x16x4xf32>
    %38 = vector.shape_cast %37 : vector<2x16x16x4xf32> to vector<512x4xf32>
    %c5 = arith.constant 5 : index
    %c0_63 = arith.constant 0 : index
    %c0_64 = arith.constant 0 : index
    %39 = vector.load %arg1[%c5, %c0_63, %c0_64] : memref<9x4x8xf32, #tpu.memory_space<vmem>>, vector<1x4x8xf32>
    %40 = vector.shape_cast %39 : vector<1x4x8xf32> to vector<4x8xf32>
    %cst_65 = arith.constant dense<0.000000e+00> : vector<512x8xf32>
    %41 = tpu.matmul %38, %40, %cst_65 {dimension_numbers = #tpu.dot_dimension_numbers<[1], [0], [0], [1], [0, 0, 1, 1], [], []>} : vector<512x4xf32>, vector<4x8xf32>, vector<512x8xf32> -> vector<512x8xf32>
    %42 = arith.addf %36, %41 : vector<512x8xf32>
    %c0_66 = arith.constant 0 : index
    %c2_67 = arith.constant 2 : index
    %c0_68 = arith.constant 0 : index
    %c0_69 = arith.constant 0 : index
    %43 = vector.load %arg12[%c0_66, %c2_67, %c0_68, %c0_69] : memref<2x18x18x4xf32, #tpu.memory_space<vmem>>, vector<2x16x16x4xf32>
    %44 = vector.shape_cast %43 : vector<2x16x16x4xf32> to vector<512x4xf32>
    %c6 = arith.constant 6 : index
    %c0_70 = arith.constant 0 : index
    %c0_71 = arith.constant 0 : index
    %45 = vector.load %arg1[%c6, %c0_70, %c0_71] : memref<9x4x8xf32, #tpu.memory_space<vmem>>, vector<1x4x8xf32>
    %46 = vector.shape_cast %45 : vector<1x4x8xf32> to vector<4x8xf32>
    %cst_72 = arith.constant dense<0.000000e+00> : vector<512x8xf32>
    %47 = tpu.matmul %44, %46, %cst_72 {dimension_numbers = #tpu.dot_dimension_numbers<[1], [0], [0], [1], [0, 0, 1, 1], [], []>} : vector<512x4xf32>, vector<4x8xf32>, vector<512x8xf32> -> vector<512x8xf32>
    %48 = arith.addf %42, %47 : vector<512x8xf32>
    %c0_73 = arith.constant 0 : index
    %c2_74 = arith.constant 2 : index
    %c1_75 = arith.constant 1 : index
    %c0_76 = arith.constant 0 : index
    %49 = vector.load %arg12[%c0_73, %c2_74, %c1_75, %c0_76] : memref<2x18x18x4xf32, #tpu.memory_space<vmem>>, vector<2x16x16x4xf32>
    %50 = vector.shape_cast %49 : vector<2x16x16x4xf32> to vector<512x4xf32>
    %c7 = arith.constant 7 : index
    %c0_77 = arith.constant 0 : index
    %c0_78 = arith.constant 0 : index
    %51 = vector.load %arg1[%c7, %c0_77, %c0_78] : memref<9x4x8xf32, #tpu.memory_space<vmem>>, vector<1x4x8xf32>
    %52 = vector.shape_cast %51 : vector<1x4x8xf32> to vector<4x8xf32>
    %cst_79 = arith.constant dense<0.000000e+00> : vector<512x8xf32>
    %53 = tpu.matmul %50, %52, %cst_79 {dimension_numbers = #tpu.dot_dimension_numbers<[1], [0], [0], [1], [0, 0, 1, 1], [], []>} : vector<512x4xf32>, vector<4x8xf32>, vector<512x8xf32> -> vector<512x8xf32>
    %54 = arith.addf %48, %53 : vector<512x8xf32>
    %c0_80 = arith.constant 0 : index
    %c2_81 = arith.constant 2 : index
    %c2_82 = arith.constant 2 : index
    %c0_83 = arith.constant 0 : index
    %55 = vector.load %arg12[%c0_80, %c2_81, %c2_82, %c0_83] : memref<2x18x18x4xf32, #tpu.memory_space<vmem>>, vector<2x16x16x4xf32>
    %56 = vector.shape_cast %55 : vector<2x16x16x4xf32> to vector<512x4xf32>
    %c8 = arith.constant 8 : index
    %c0_84 = arith.constant 0 : index
    %c0_85 = arith.constant 0 : index
    %57 = vector.load %arg1[%c8, %c0_84, %c0_85] : memref<9x4x8xf32, #tpu.memory_space<vmem>>, vector<1x4x8xf32>
    %58 = vector.shape_cast %57 : vector<1x4x8xf32> to vector<4x8xf32>
    %cst_86 = arith.constant dense<0.000000e+00> : vector<512x8xf32>
    %59 = tpu.matmul %56, %58, %cst_86 {dimension_numbers = #tpu.dot_dimension_numbers<[1], [0], [0], [1], [0, 0, 1, 1], [], []>} : vector<512x4xf32>, vector<4x8xf32>, vector<512x8xf32> -> vector<512x8xf32>
    %60 = arith.addf %54, %59 : vector<512x8xf32>
    %c0_87 = arith.constant 0 : index
    %c0_88 = arith.constant 0 : index
    %61 = vector.load %arg2[%c0_87, %c0_88] : memref<1x8xf32, #tpu.memory_space<vmem>>, vector<1x8xf32>
    %62 = vector.broadcast %61 : vector<1x8xf32> to vector<512x8xf32>
    %63 = arith.addf %60, %62 : vector<512x8xf32>
    %cst_89 = arith.constant dense<0.000000e+00> : vector<8xf32>
    %64 = vector.multi_reduction <add>, %63, %cst_89 [0] : vector<512x8xf32> to vector<8xf32>
    %65 = vector.shape_cast %64 : vector<8xf32> to vector<1x8xf32>
    %cst_90 = arith.constant 5.120000e+02 : f32
    %66 = vector.broadcast %cst_90 : f32 to vector<1x8xf32>
    %67 = arith.divf %65, %66 : vector<1x8xf32>
    %68 = vector.broadcast %67 : vector<1x8xf32> to vector<512x8xf32>
    %69 = arith.subf %63, %68 : vector<512x8xf32>
    %70 = arith.mulf %69, %69 : vector<512x8xf32>
    %cst_91 = arith.constant dense<0.000000e+00> : vector<8xf32>
    %71 = vector.multi_reduction <add>, %70, %cst_91 [0] : vector<512x8xf32> to vector<8xf32>
    %72 = vector.shape_cast %71 : vector<8xf32> to vector<1x8xf32>
    %cst_92 = arith.constant 5.120000e+02 : f32
    %73 = vector.broadcast %cst_92 : f32 to vector<1x8xf32>
    %74 = arith.divf %72, %73 : vector<1x8xf32>
    %cst_93 = arith.constant 9.99999974E-6 : f32
    %75 = vector.broadcast %cst_93 : f32 to vector<1x8xf32>
    %76 = arith.addf %74, %75 : vector<1x8xf32>
    %77 = math.rsqrt %76 : vector<1x8xf32>
    %78 = vector.broadcast %77 : vector<1x8xf32> to vector<512x8xf32>
    %79 = arith.mulf %69, %78 : vector<512x8xf32>
    %c0_94 = arith.constant 0 : index
    %c0_95 = arith.constant 0 : index
    %80 = vector.load %arg3[%c0_94, %c0_95] : memref<1x8xf32, #tpu.memory_space<vmem>>, vector<1x8xf32>
    %81 = vector.broadcast %80 : vector<1x8xf32> to vector<512x8xf32>
    %82 = arith.mulf %79, %81 : vector<512x8xf32>
    %c0_96 = arith.constant 0 : index
    %c0_97 = arith.constant 0 : index
    %83 = vector.load %arg4[%c0_96, %c0_97] : memref<1x8xf32, #tpu.memory_space<vmem>>, vector<1x8xf32>
    %84 = vector.broadcast %83 : vector<1x8xf32> to vector<512x8xf32>
    %85 = arith.addf %82, %84 : vector<512x8xf32>
    %cst_98 = arith.constant 0.000000e+00 : f32
    %86 = vector.broadcast %cst_98 : f32 to vector<512x8xf32>
    %87 = arith.maximumf %85, %86 : vector<512x8xf32>
    %88 = vector.shape_cast %87 : vector<512x8xf32> to vector<2x16x16x8xf32>
    %89 = vector.shape_cast %88 : vector<2x16x16x8xf32> to vector<2x8x2x16x8xf32>
    %90 = vector.extract_strided_slice %89 {offsets = [0, 0, 0, 0, 0], sizes = [2, 8, 1, 16, 8], strides = [1, 1, 1, 1, 1]} : vector<2x8x2x16x8xf32> to vector<2x8x1x16x8xf32>
    %91 = vector.shape_cast %90 : vector<2x8x1x16x8xf32> to vector<2x8x16x8xf32>
    %92 = vector.extract_strided_slice %89 {offsets = [0, 0, 1, 0, 0], sizes = [2, 8, 1, 16, 8], strides = [1, 1, 1, 1, 1]} : vector<2x8x2x16x8xf32> to vector<2x8x1x16x8xf32>
    %93 = vector.shape_cast %92 : vector<2x8x1x16x8xf32> to vector<2x8x16x8xf32>
    %94 = arith.maximumf %91, %93 : vector<2x8x16x8xf32>
    %95 = vector.extract_strided_slice %94 {offsets = [0, 0, 0, 0], sizes = [2, 8, 1, 8], strides = [1, 1, 1, 1]} : vector<2x8x16x8xf32> to vector<2x8x1x8xf32>
    %96 = vector.extract_strided_slice %94 {offsets = [0, 0, 1, 0], sizes = [2, 8, 1, 8], strides = [1, 1, 1, 1]} : vector<2x8x16x8xf32> to vector<2x8x1x8xf32>
    %97 = arith.maximumf %95, %96 : vector<2x8x1x8xf32>
    %98 = vector.extract_strided_slice %94 {offsets = [0, 0, 2, 0], sizes = [2, 8, 1, 8], strides = [1, 1, 1, 1]} : vector<2x8x16x8xf32> to vector<2x8x1x8xf32>
    %99 = vector.extract_strided_slice %94 {offsets = [0, 0, 3, 0], sizes = [2, 8, 1, 8], strides = [1, 1, 1, 1]} : vector<2x8x16x8xf32> to vector<2x8x1x8xf32>
    %100 = arith.maximumf %98, %99 : vector<2x8x1x8xf32>
    %101 = vector.extract_strided_slice %94 {offsets = [0, 0, 4, 0], sizes = [2, 8, 1, 8], strides = [1, 1, 1, 1]} : vector<2x8x16x8xf32> to vector<2x8x1x8xf32>
    %102 = vector.extract_strided_slice %94 {offsets = [0, 0, 5, 0], sizes = [2, 8, 1, 8], strides = [1, 1, 1, 1]} : vector<2x8x16x8xf32> to vector<2x8x1x8xf32>
    %103 = arith.maximumf %101, %102 : vector<2x8x1x8xf32>
    %104 = vector.extract_strided_slice %94 {offsets = [0, 0, 6, 0], sizes = [2, 8, 1, 8], strides = [1, 1, 1, 1]} : vector<2x8x16x8xf32> to vector<2x8x1x8xf32>
    %105 = vector.extract_strided_slice %94 {offsets = [0, 0, 7, 0], sizes = [2, 8, 1, 8], strides = [1, 1, 1, 1]} : vector<2x8x16x8xf32> to vector<2x8x1x8xf32>
    %106 = arith.maximumf %104, %105 : vector<2x8x1x8xf32>
    %107 = vector.extract_strided_slice %94 {offsets = [0, 0, 8, 0], sizes = [2, 8, 1, 8], strides = [1, 1, 1, 1]} : vector<2x8x16x8xf32> to vector<2x8x1x8xf32>
    %108 = vector.extract_strided_slice %94 {offsets = [0, 0, 9, 0], sizes = [2, 8, 1, 8], strides = [1, 1, 1, 1]} : vector<2x8x16x8xf32> to vector<2x8x1x8xf32>
    %109 = arith.maximumf %107, %108 : vector<2x8x1x8xf32>
    %110 = vector.extract_strided_slice %94 {offsets = [0, 0, 10, 0], sizes = [2, 8, 1, 8], strides = [1, 1, 1, 1]} : vector<2x8x16x8xf32> to vector<2x8x1x8xf32>
    %111 = vector.extract_strided_slice %94 {offsets = [0, 0, 11, 0], sizes = [2, 8, 1, 8], strides = [1, 1, 1, 1]} : vector<2x8x16x8xf32> to vector<2x8x1x8xf32>
    %112 = arith.maximumf %110, %111 : vector<2x8x1x8xf32>
    %113 = vector.extract_strided_slice %94 {offsets = [0, 0, 12, 0], sizes = [2, 8, 1, 8], strides = [1, 1, 1, 1]} : vector<2x8x16x8xf32> to vector<2x8x1x8xf32>
    %114 = vector.extract_strided_slice %94 {offsets = [0, 0, 13, 0], sizes = [2, 8, 1, 8], strides = [1, 1, 1, 1]} : vector<2x8x16x8xf32> to vector<2x8x1x8xf32>
    %115 = arith.maximumf %113, %114 : vector<2x8x1x8xf32>
    %116 = vector.extract_strided_slice %94 {offsets = [0, 0, 14, 0], sizes = [2, 8, 1, 8], strides = [1, 1, 1, 1]} : vector<2x8x16x8xf32> to vector<2x8x1x8xf32>
    %117 = vector.extract_strided_slice %94 {offsets = [0, 0, 15, 0], sizes = [2, 8, 1, 8], strides = [1, 1, 1, 1]} : vector<2x8x16x8xf32> to vector<2x8x1x8xf32>
    %118 = arith.maximumf %116, %117 : vector<2x8x1x8xf32>
    %119 = tpu.concatenate %97, %100, %103, %106, %109, %112, %115, %118 in 2 : vector<2x8x1x8xf32>, vector<2x8x1x8xf32>, vector<2x8x1x8xf32>, vector<2x8x1x8xf32>, vector<2x8x1x8xf32>, vector<2x8x1x8xf32>, vector<2x8x1x8xf32>, vector<2x8x1x8xf32> -> vector<2x8x8x8xf32>
    %cst_99 = arith.constant 0.000000e+00 : f32
    %120 = vector.broadcast %cst_99 : f32 to vector<2x1x10x8xf32>
    %c0_100 = arith.constant 0 : index
    %c0_101 = arith.constant 0 : index
    %c0_102 = arith.constant 0 : index
    %c0_103 = arith.constant 0 : index
    %121 = vector.load %arg13[%c0_100, %c0_101, %c0_102, %c0_103] : memref<2x10x10x8xf32, #tpu.memory_space<vmem>>, vector<2x1x10x8xf32>
    tpu.vector_store %arg13[%c0_100, %c0_101, %c0_102, %c0_103], %120 {strides = array<i32>} : memref<2x10x10x8xf32, #tpu.memory_space<vmem>>, vector<2x1x10x8xf32>,
    %c0_104 = arith.constant 0 : index
    %c9 = arith.constant 9 : index
    %c0_105 = arith.constant 0 : index
    %c0_106 = arith.constant 0 : index
    %122 = vector.load %arg13[%c0_104, %c9, %c0_105, %c0_106] : memref<2x10x10x8xf32, #tpu.memory_space<vmem>>, vector<2x1x10x8xf32>
    tpu.vector_store %arg13[%c0_104, %c9, %c0_105, %c0_106], %120 {strides = array<i32>} : memref<2x10x10x8xf32, #tpu.memory_space<vmem>>, vector<2x1x10x8xf32>,
    %cst_107 = arith.constant 0.000000e+00 : f32
    %123 = vector.broadcast %cst_107 : f32 to vector<2x8x1x8xf32>
    %c0_108 = arith.constant 0 : index
    %c1_109 = arith.constant 1 : index
    %c0_110 = arith.constant 0 : index
    %c0_111 = arith.constant 0 : index
    %124 = vector.load %arg13[%c0_108, %c1_109, %c0_110, %c0_111] : memref<2x10x10x8xf32, #tpu.memory_space<vmem>>, vector<2x8x1x8xf32>
    tpu.vector_store %arg13[%c0_108, %c1_109, %c0_110, %c0_111], %123 {strides = array<i32>} : memref<2x10x10x8xf32, #tpu.memory_space<vmem>>, vector<2x8x1x8xf32>,
    %c0_112 = arith.constant 0 : index
    %c1_113 = arith.constant 1 : index
    %c9_114 = arith.constant 9 : index
    %c0_115 = arith.constant 0 : index
    %125 = vector.load %arg13[%c0_112, %c1_113, %c9_114, %c0_115] : memref<2x10x10x8xf32, #tpu.memory_space<vmem>>, vector<2x8x1x8xf32>
    tpu.vector_store %arg13[%c0_112, %c1_113, %c9_114, %c0_115], %123 {strides = array<i32>} : memref<2x10x10x8xf32, #tpu.memory_space<vmem>>, vector<2x8x1x8xf32>,
    %c0_116 = arith.constant 0 : index
    %c1_117 = arith.constant 1 : index
    %c1_118 = arith.constant 1 : index
    %c0_119 = arith.constant 0 : index
    %126 = vector.load %arg13[%c0_116, %c1_117, %c1_118, %c0_119] : memref<2x10x10x8xf32, #tpu.memory_space<vmem>>, vector<2x8x8x8xf32>
    tpu.vector_store %arg13[%c0_116, %c1_117, %c1_118, %c0_119], %119 {strides = array<i32>} : memref<2x10x10x8xf32, #tpu.memory_space<vmem>>, vector<2x8x8x8xf32>,
    %c0_120 = arith.constant 0 : index
    %c0_121 = arith.constant 0 : index
    %c0_122 = arith.constant 0 : index
    %c0_123 = arith.constant 0 : index
    %127 = vector.load %arg13[%c0_120, %c0_121, %c0_122, %c0_123] : memref<2x10x10x8xf32, #tpu.memory_space<vmem>>, vector<2x8x8x8xf32>
    %128 = vector.shape_cast %127 : vector<2x8x8x8xf32> to vector<128x8xf32>
    %c0_124 = arith.constant 0 : index
    %c0_125 = arith.constant 0 : index
    %c0_126 = arith.constant 0 : index
    %129 = vector.load %arg5[%c0_124, %c0_125, %c0_126] : memref<9x8x16xf32, #tpu.memory_space<vmem>>, vector<1x8x16xf32>
    %130 = vector.shape_cast %129 : vector<1x8x16xf32> to vector<8x16xf32>
    %cst_127 = arith.constant dense<0.000000e+00> : vector<128x16xf32>
    %131 = tpu.matmul %128, %130, %cst_127 {dimension_numbers = #tpu.dot_dimension_numbers<[1], [0], [0], [1], [0, 0, 1, 1], [], []>} : vector<128x8xf32>, vector<8x16xf32>, vector<128x16xf32> -> vector<128x16xf32>
    %c0_128 = arith.constant 0 : index
    %c0_129 = arith.constant 0 : index
    %c1_130 = arith.constant 1 : index
    %c0_131 = arith.constant 0 : index
    %132 = vector.load %arg13[%c0_128, %c0_129, %c1_130, %c0_131] : memref<2x10x10x8xf32, #tpu.memory_space<vmem>>, vector<2x8x8x8xf32>
    %133 = vector.shape_cast %132 : vector<2x8x8x8xf32> to vector<128x8xf32>
    %c1_132 = arith.constant 1 : index
    %c0_133 = arith.constant 0 : index
    %c0_134 = arith.constant 0 : index
    %134 = vector.load %arg5[%c1_132, %c0_133, %c0_134] : memref<9x8x16xf32, #tpu.memory_space<vmem>>, vector<1x8x16xf32>
    %135 = vector.shape_cast %134 : vector<1x8x16xf32> to vector<8x16xf32>
    %cst_135 = arith.constant dense<0.000000e+00> : vector<128x16xf32>
    %136 = tpu.matmul %133, %135, %cst_135 {dimension_numbers = #tpu.dot_dimension_numbers<[1], [0], [0], [1], [0, 0, 1, 1], [], []>} : vector<128x8xf32>, vector<8x16xf32>, vector<128x16xf32> -> vector<128x16xf32>
    %137 = arith.addf %131, %136 : vector<128x16xf32>
    %c0_136 = arith.constant 0 : index
    %c0_137 = arith.constant 0 : index
    %c2_138 = arith.constant 2 : index
    %c0_139 = arith.constant 0 : index
    %138 = vector.load %arg13[%c0_136, %c0_137, %c2_138, %c0_139] : memref<2x10x10x8xf32, #tpu.memory_space<vmem>>, vector<2x8x8x8xf32>
    %139 = vector.shape_cast %138 : vector<2x8x8x8xf32> to vector<128x8xf32>
    %c2_140 = arith.constant 2 : index
    %c0_141 = arith.constant 0 : index
    %c0_142 = arith.constant 0 : index
    %140 = vector.load %arg5[%c2_140, %c0_141, %c0_142] : memref<9x8x16xf32, #tpu.memory_space<vmem>>, vector<1x8x16xf32>
    %141 = vector.shape_cast %140 : vector<1x8x16xf32> to vector<8x16xf32>
    %cst_143 = arith.constant dense<0.000000e+00> : vector<128x16xf32>
    %142 = tpu.matmul %139, %141, %cst_143 {dimension_numbers = #tpu.dot_dimension_numbers<[1], [0], [0], [1], [0, 0, 1, 1], [], []>} : vector<128x8xf32>, vector<8x16xf32>, vector<128x16xf32> -> vector<128x16xf32>
    %143 = arith.addf %137, %142 : vector<128x16xf32>
    %c0_144 = arith.constant 0 : index
    %c1_145 = arith.constant 1 : index
    %c0_146 = arith.constant 0 : index
    %c0_147 = arith.constant 0 : index
    %144 = vector.load %arg13[%c0_144, %c1_145, %c0_146, %c0_147] : memref<2x10x10x8xf32, #tpu.memory_space<vmem>>, vector<2x8x8x8xf32>
    %145 = vector.shape_cast %144 : vector<2x8x8x8xf32> to vector<128x8xf32>
    %c3_148 = arith.constant 3 : index
    %c0_149 = arith.constant 0 : index
    %c0_150 = arith.constant 0 : index
    %146 = vector.load %arg5[%c3_148, %c0_149, %c0_150] : memref<9x8x16xf32, #tpu.memory_space<vmem>>, vector<1x8x16xf32>
    %147 = vector.shape_cast %146 : vector<1x8x16xf32> to vector<8x16xf32>
    %cst_151 = arith.constant dense<0.000000e+00> : vector<128x16xf32>
    %148 = tpu.matmul %145, %147, %cst_151 {dimension_numbers = #tpu.dot_dimension_numbers<[1], [0], [0], [1], [0, 0, 1, 1], [], []>} : vector<128x8xf32>, vector<8x16xf32>, vector<128x16xf32> -> vector<128x16xf32>
    %149 = arith.addf %143, %148 : vector<128x16xf32>
    %c0_152 = arith.constant 0 : index
    %c1_153 = arith.constant 1 : index
    %c1_154 = arith.constant 1 : index
    %c0_155 = arith.constant 0 : index
    %150 = vector.load %arg13[%c0_152, %c1_153, %c1_154, %c0_155] : memref<2x10x10x8xf32, #tpu.memory_space<vmem>>, vector<2x8x8x8xf32>
    %151 = vector.shape_cast %150 : vector<2x8x8x8xf32> to vector<128x8xf32>
    %c4_156 = arith.constant 4 : index
    %c0_157 = arith.constant 0 : index
    %c0_158 = arith.constant 0 : index
    %152 = vector.load %arg5[%c4_156, %c0_157, %c0_158] : memref<9x8x16xf32, #tpu.memory_space<vmem>>, vector<1x8x16xf32>
    %153 = vector.shape_cast %152 : vector<1x8x16xf32> to vector<8x16xf32>
    %cst_159 = arith.constant dense<0.000000e+00> : vector<128x16xf32>
    %154 = tpu.matmul %151, %153, %cst_159 {dimension_numbers = #tpu.dot_dimension_numbers<[1], [0], [0], [1], [0, 0, 1, 1], [], []>} : vector<128x8xf32>, vector<8x16xf32>, vector<128x16xf32> -> vector<128x16xf32>
    %155 = arith.addf %149, %154 : vector<128x16xf32>
    %c0_160 = arith.constant 0 : index
    %c1_161 = arith.constant 1 : index
    %c2_162 = arith.constant 2 : index
    %c0_163 = arith.constant 0 : index
    %156 = vector.load %arg13[%c0_160, %c1_161, %c2_162, %c0_163] : memref<2x10x10x8xf32, #tpu.memory_space<vmem>>, vector<2x8x8x8xf32>
    %157 = vector.shape_cast %156 : vector<2x8x8x8xf32> to vector<128x8xf32>
    %c5_164 = arith.constant 5 : index
    %c0_165 = arith.constant 0 : index
    %c0_166 = arith.constant 0 : index
    %158 = vector.load %arg5[%c5_164, %c0_165, %c0_166] : memref<9x8x16xf32, #tpu.memory_space<vmem>>, vector<1x8x16xf32>
    %159 = vector.shape_cast %158 : vector<1x8x16xf32> to vector<8x16xf32>
    %cst_167 = arith.constant dense<0.000000e+00> : vector<128x16xf32>
    %160 = tpu.matmul %157, %159, %cst_167 {dimension_numbers = #tpu.dot_dimension_numbers<[1], [0], [0], [1], [0, 0, 1, 1], [], []>} : vector<128x8xf32>, vector<8x16xf32>, vector<128x16xf32> -> vector<128x16xf32>
    %161 = arith.addf %155, %160 : vector<128x16xf32>
    %c0_168 = arith.constant 0 : index
    %c2_169 = arith.constant 2 : index
    %c0_170 = arith.constant 0 : index
    %c0_171 = arith.constant 0 : index
    %162 = vector.load %arg13[%c0_168, %c2_169, %c0_170, %c0_171] : memref<2x10x10x8xf32, #tpu.memory_space<vmem>>, vector<2x8x8x8xf32>
    %163 = vector.shape_cast %162 : vector<2x8x8x8xf32> to vector<128x8xf32>
    %c6_172 = arith.constant 6 : index
    %c0_173 = arith.constant 0 : index
    %c0_174 = arith.constant 0 : index
    %164 = vector.load %arg5[%c6_172, %c0_173, %c0_174] : memref<9x8x16xf32, #tpu.memory_space<vmem>>, vector<1x8x16xf32>
    %165 = vector.shape_cast %164 : vector<1x8x16xf32> to vector<8x16xf32>
    %cst_175 = arith.constant dense<0.000000e+00> : vector<128x16xf32>
    %166 = tpu.matmul %163, %165, %cst_175 {dimension_numbers = #tpu.dot_dimension_numbers<[1], [0], [0], [1], [0, 0, 1, 1], [], []>} : vector<128x8xf32>, vector<8x16xf32>, vector<128x16xf32> -> vector<128x16xf32>
    %167 = arith.addf %161, %166 : vector<128x16xf32>
    %c0_176 = arith.constant 0 : index
    %c2_177 = arith.constant 2 : index
    %c1_178 = arith.constant 1 : index
    %c0_179 = arith.constant 0 : index
    %168 = vector.load %arg13[%c0_176, %c2_177, %c1_178, %c0_179] : memref<2x10x10x8xf32, #tpu.memory_space<vmem>>, vector<2x8x8x8xf32>
    %169 = vector.shape_cast %168 : vector<2x8x8x8xf32> to vector<128x8xf32>
    %c7_180 = arith.constant 7 : index
    %c0_181 = arith.constant 0 : index
    %c0_182 = arith.constant 0 : index
    %170 = vector.load %arg5[%c7_180, %c0_181, %c0_182] : memref<9x8x16xf32, #tpu.memory_space<vmem>>, vector<1x8x16xf32>
    %171 = vector.shape_cast %170 : vector<1x8x16xf32> to vector<8x16xf32>
    %cst_183 = arith.constant dense<0.000000e+00> : vector<128x16xf32>
    %172 = tpu.matmul %169, %171, %cst_183 {dimension_numbers = #tpu.dot_dimension_numbers<[1], [0], [0], [1], [0, 0, 1, 1], [], []>} : vector<128x8xf32>, vector<8x16xf32>, vector<128x16xf32> -> vector<128x16xf32>
    %173 = arith.addf %167, %172 : vector<128x16xf32>
    %c0_184 = arith.constant 0 : index
    %c2_185 = arith.constant 2 : index
    %c2_186 = arith.constant 2 : index
    %c0_187 = arith.constant 0 : index
    %174 = vector.load %arg13[%c0_184, %c2_185, %c2_186, %c0_187] : memref<2x10x10x8xf32, #tpu.memory_space<vmem>>, vector<2x8x8x8xf32>
    %175 = vector.shape_cast %174 : vector<2x8x8x8xf32> to vector<128x8xf32>
    %c8_188 = arith.constant 8 : index
    %c0_189 = arith.constant 0 : index
    %c0_190 = arith.constant 0 : index
    %176 = vector.load %arg5[%c8_188, %c0_189, %c0_190] : memref<9x8x16xf32, #tpu.memory_space<vmem>>, vector<1x8x16xf32>
    %177 = vector.shape_cast %176 : vector<1x8x16xf32> to vector<8x16xf32>
    %cst_191 = arith.constant dense<0.000000e+00> : vector<128x16xf32>
    %178 = tpu.matmul %175, %177, %cst_191 {dimension_numbers = #tpu.dot_dimension_numbers<[1], [0], [0], [1], [0, 0, 1, 1], [], []>} : vector<128x8xf32>, vector<8x16xf32>, vector<128x16xf32> -> vector<128x16xf32>
    %179 = arith.addf %173, %178 : vector<128x16xf32>
    %c0_192 = arith.constant 0 : index
    %c0_193 = arith.constant 0 : index
    %180 = vector.load %arg6[%c0_192, %c0_193] : memref<1x16xf32, #tpu.memory_space<vmem>>, vector<1x16xf32>
    %181 = vector.broadcast %180 : vector<1x16xf32> to vector<128x16xf32>
    %182 = arith.addf %179, %181 : vector<128x16xf32>
    %cst_194 = arith.constant 0.000000e+00 : f32
    %183 = vector.broadcast %cst_194 : f32 to vector<128x16xf32>
    %184 = arith.maximumf %182, %183 : vector<128x16xf32>
    %185 = vector.shape_cast %184 : vector<128x16xf32> to vector<2x8x8x16xf32>
    %186 = vector.shape_cast %185 : vector<2x8x8x16xf32> to vector<2x4x2x8x16xf32>
    %187 = vector.extract_strided_slice %186 {offsets = [0, 0, 0, 0, 0], sizes = [2, 4, 1, 8, 16], strides = [1, 1, 1, 1, 1]} : vector<2x4x2x8x16xf32> to vector<2x4x1x8x16xf32>
    %188 = vector.shape_cast %187 : vector<2x4x1x8x16xf32> to vector<2x4x8x16xf32>
    %189 = vector.extract_strided_slice %186 {offsets = [0, 0, 1, 0, 0], sizes = [2, 4, 1, 8, 16], strides = [1, 1, 1, 1, 1]} : vector<2x4x2x8x16xf32> to vector<2x4x1x8x16xf32>
    %190 = vector.shape_cast %189 : vector<2x4x1x8x16xf32> to vector<2x4x8x16xf32>
    %191 = arith.maximumf %188, %190 : vector<2x4x8x16xf32>
    %192 = vector.extract_strided_slice %191 {offsets = [0, 0, 0, 0], sizes = [2, 4, 1, 16], strides = [1, 1, 1, 1]} : vector<2x4x8x16xf32> to vector<2x4x1x16xf32>
    %193 = vector.extract_strided_slice %191 {offsets = [0, 0, 1, 0], sizes = [2, 4, 1, 16], strides = [1, 1, 1, 1]} : vector<2x4x8x16xf32> to vector<2x4x1x16xf32>
    %194 = arith.maximumf %192, %193 : vector<2x4x1x16xf32>
    %195 = vector.extract_strided_slice %191 {offsets = [0, 0, 2, 0], sizes = [2, 4, 1, 16], strides = [1, 1, 1, 1]} : vector<2x4x8x16xf32> to vector<2x4x1x16xf32>
    %196 = vector.extract_strided_slice %191 {offsets = [0, 0, 3, 0], sizes = [2, 4, 1, 16], strides = [1, 1, 1, 1]} : vector<2x4x8x16xf32> to vector<2x4x1x16xf32>
    %197 = arith.maximumf %195, %196 : vector<2x4x1x16xf32>
    %198 = vector.extract_strided_slice %191 {offsets = [0, 0, 4, 0], sizes = [2, 4, 1, 16], strides = [1, 1, 1, 1]} : vector<2x4x8x16xf32> to vector<2x4x1x16xf32>
    %199 = vector.extract_strided_slice %191 {offsets = [0, 0, 5, 0], sizes = [2, 4, 1, 16], strides = [1, 1, 1, 1]} : vector<2x4x8x16xf32> to vector<2x4x1x16xf32>
    %200 = arith.maximumf %198, %199 : vector<2x4x1x16xf32>
    %201 = vector.extract_strided_slice %191 {offsets = [0, 0, 6, 0], sizes = [2, 4, 1, 16], strides = [1, 1, 1, 1]} : vector<2x4x8x16xf32> to vector<2x4x1x16xf32>
    %202 = vector.extract_strided_slice %191 {offsets = [0, 0, 7, 0], sizes = [2, 4, 1, 16], strides = [1, 1, 1, 1]} : vector<2x4x8x16xf32> to vector<2x4x1x16xf32>
    %203 = arith.maximumf %201, %202 : vector<2x4x1x16xf32>
    %204 = tpu.concatenate %194, %197, %200, %203 in 2 : vector<2x4x1x16xf32>, vector<2x4x1x16xf32>, vector<2x4x1x16xf32>, vector<2x4x1x16xf32> -> vector<2x4x4x16xf32>
    %c0_195 = arith.constant 0 : index
    %c0_196 = arith.constant 0 : index
    %c0_197 = arith.constant 0 : index
    %c0_198 = arith.constant 0 : index
    %205 = vector.load %arg14[%c0_195, %c0_196, %c0_197, %c0_198] : memref<2x4x4x16xf32, #tpu.memory_space<vmem>>, vector<2x4x4x16xf32>
    tpu.vector_store %arg14[%c0_195, %c0_196, %c0_197, %c0_198], %204 {strides = array<i32>} : memref<2x4x4x16xf32, #tpu.memory_space<vmem>>, vector<2x4x4x16xf32>,
    %c0_199 = arith.constant 0 : index
    %c0_200 = arith.constant 0 : index
    %c0_201 = arith.constant 0 : index
    %c0_202 = arith.constant 0 : index
    %206 = vector.load %arg14[%c0_199, %c0_200, %c0_201, %c0_202] : memref<2x4x4x16xf32, #tpu.memory_space<vmem>>, vector<2x1x1x16xf32>
    %207 = vector.shape_cast %206 : vector<2x1x1x16xf32> to vector<2x16xf32>
    %c0_203 = arith.constant 0 : index
    %c0_204 = arith.constant 0 : index
    %c0_205 = arith.constant 0 : index
    %208 = vector.load %arg7[%c0_203, %c0_204, %c0_205] : memref<16x16x32xf32, #tpu.memory_space<vmem>>, vector<1x16x32xf32>
    %209 = vector.shape_cast %208 : vector<1x16x32xf32> to vector<16x32xf32>
    %cst_206 = arith.constant dense<0.000000e+00> : vector<2x32xf32>
    %210 = tpu.matmul %207, %209, %cst_206 {dimension_numbers = #tpu.dot_dimension_numbers<[1], [0], [0], [1], [0, 0, 1, 1], [], []>} : vector<2x16xf32>, vector<16x32xf32>, vector<2x32xf32> -> vector<2x32xf32>
    %c0_207 = arith.constant 0 : index
    %c0_208 = arith.constant 0 : index
    %c1_209 = arith.constant 1 : index
    %c0_210 = arith.constant 0 : index
    %211 = vector.load %arg14[%c0_207, %c0_208, %c1_209, %c0_210] : memref<2x4x4x16xf32, #tpu.memory_space<vmem>>, vector<2x1x1x16xf32>
    %212 = vector.shape_cast %211 : vector<2x1x1x16xf32> to vector<2x16xf32>
    %c1_211 = arith.constant 1 : index
    %c0_212 = arith.constant 0 : index
    %c0_213 = arith.constant 0 : index
    %213 = vector.load %arg7[%c1_211, %c0_212, %c0_213] : memref<16x16x32xf32, #tpu.memory_space<vmem>>, vector<1x16x32xf32>
    %214 = vector.shape_cast %213 : vector<1x16x32xf32> to vector<16x32xf32>
    %cst_214 = arith.constant dense<0.000000e+00> : vector<2x32xf32>
    %215 = tpu.matmul %212, %214, %cst_214 {dimension_numbers = #tpu.dot_dimension_numbers<[1], [0], [0], [1], [0, 0, 1, 1], [], []>} : vector<2x16xf32>, vector<16x32xf32>, vector<2x32xf32> -> vector<2x32xf32>
    %216 = arith.addf %210, %215 : vector<2x32xf32>
    %c0_215 = arith.constant 0 : index
    %c0_216 = arith.constant 0 : index
    %c2_217 = arith.constant 2 : index
    %c0_218 = arith.constant 0 : index
    %217 = vector.load %arg14[%c0_215, %c0_216, %c2_217, %c0_218] : memref<2x4x4x16xf32, #tpu.memory_space<vmem>>, vector<2x1x1x16xf32>
    %218 = vector.shape_cast %217 : vector<2x1x1x16xf32> to vector<2x16xf32>
    %c2_219 = arith.constant 2 : index
    %c0_220 = arith.constant 0 : index
    %c0_221 = arith.constant 0 : index
    %219 = vector.load %arg7[%c2_219, %c0_220, %c0_221] : memref<16x16x32xf32, #tpu.memory_space<vmem>>, vector<1x16x32xf32>
    %220 = vector.shape_cast %219 : vector<1x16x32xf32> to vector<16x32xf32>
    %cst_222 = arith.constant dense<0.000000e+00> : vector<2x32xf32>
    %221 = tpu.matmul %218, %220, %cst_222 {dimension_numbers = #tpu.dot_dimension_numbers<[1], [0], [0], [1], [0, 0, 1, 1], [], []>} : vector<2x16xf32>, vector<16x32xf32>, vector<2x32xf32> -> vector<2x32xf32>
    %222 = arith.addf %216, %221 : vector<2x32xf32>
    %c0_223 = arith.constant 0 : index
    %c0_224 = arith.constant 0 : index
    %c3_225 = arith.constant 3 : index
    %c0_226 = arith.constant 0 : index
    %223 = vector.load %arg14[%c0_223, %c0_224, %c3_225, %c0_226] : memref<2x4x4x16xf32, #tpu.memory_space<vmem>>, vector<2x1x1x16xf32>
    %224 = vector.shape_cast %223 : vector<2x1x1x16xf32> to vector<2x16xf32>
    %c3_227 = arith.constant 3 : index
    %c0_228 = arith.constant 0 : index
    %c0_229 = arith.constant 0 : index
    %225 = vector.load %arg7[%c3_227, %c0_228, %c0_229] : memref<16x16x32xf32, #tpu.memory_space<vmem>>, vector<1x16x32xf32>
    %226 = vector.shape_cast %225 : vector<1x16x32xf32> to vector<16x32xf32>
    %cst_230 = arith.constant dense<0.000000e+00> : vector<2x32xf32>
    %227 = tpu.matmul %224, %226, %cst_230 {dimension_numbers = #tpu.dot_dimension_numbers<[1], [0], [0], [1], [0, 0, 1, 1], [], []>} : vector<2x16xf32>, vector<16x32xf32>, vector<2x32xf32> -> vector<2x32xf32>
    %228 = arith.addf %222, %227 : vector<2x32xf32>
    %c0_231 = arith.constant 0 : index
    %c1_232 = arith.constant 1 : index
    %c0_233 = arith.constant 0 : index
    %c0_234 = arith.constant 0 : index
    %229 = vector.load %arg14[%c0_231, %c1_232, %c0_233, %c0_234] : memref<2x4x4x16xf32, #tpu.memory_space<vmem>>, vector<2x1x1x16xf32>
    %230 = vector.shape_cast %229 : vector<2x1x1x16xf32> to vector<2x16xf32>
    %c4_235 = arith.constant 4 : index
    %c0_236 = arith.constant 0 : index
    %c0_237 = arith.constant 0 : index
    %231 = vector.load %arg7[%c4_235, %c0_236, %c0_237] : memref<16x16x32xf32, #tpu.memory_space<vmem>>, vector<1x16x32xf32>
    %232 = vector.shape_cast %231 : vector<1x16x32xf32> to vector<16x32xf32>
    %cst_238 = arith.constant dense<0.000000e+00> : vector<2x32xf32>
    %233 = tpu.matmul %230, %232, %cst_238 {dimension_numbers = #tpu.dot_dimension_numbers<[1], [0], [0], [1], [0, 0, 1, 1], [], []>} : vector<2x16xf32>, vector<16x32xf32>, vector<2x32xf32> -> vector<2x32xf32>
    %234 = arith.addf %228, %233 : vector<2x32xf32>
    %c0_239 = arith.constant 0 : index
    %c1_240 = arith.constant 1 : index
    %c1_241 = arith.constant 1 : index
    %c0_242 = arith.constant 0 : index
    %235 = vector.load %arg14[%c0_239, %c1_240, %c1_241, %c0_242] : memref<2x4x4x16xf32, #tpu.memory_space<vmem>>, vector<2x1x1x16xf32>
    %236 = vector.shape_cast %235 : vector<2x1x1x16xf32> to vector<2x16xf32>
    %c5_243 = arith.constant 5 : index
    %c0_244 = arith.constant 0 : index
    %c0_245 = arith.constant 0 : index
    %237 = vector.load %arg7[%c5_243, %c0_244, %c0_245] : memref<16x16x32xf32, #tpu.memory_space<vmem>>, vector<1x16x32xf32>
    %238 = vector.shape_cast %237 : vector<1x16x32xf32> to vector<16x32xf32>
    %cst_246 = arith.constant dense<0.000000e+00> : vector<2x32xf32>
    %239 = tpu.matmul %236, %238, %cst_246 {dimension_numbers = #tpu.dot_dimension_numbers<[1], [0], [0], [1], [0, 0, 1, 1], [], []>} : vector<2x16xf32>, vector<16x32xf32>, vector<2x32xf32> -> vector<2x32xf32>
    %240 = arith.addf %234, %239 : vector<2x32xf32>
    %c0_247 = arith.constant 0 : index
    %c1_248 = arith.constant 1 : index
    %c2_249 = arith.constant 2 : index
    %c0_250 = arith.constant 0 : index
    %241 = vector.load %arg14[%c0_247, %c1_248, %c2_249, %c0_250] : memref<2x4x4x16xf32, #tpu.memory_space<vmem>>, vector<2x1x1x16xf32>
    %242 = vector.shape_cast %241 : vector<2x1x1x16xf32> to vector<2x16xf32>
    %c6_251 = arith.constant 6 : index
    %c0_252 = arith.constant 0 : index
    %c0_253 = arith.constant 0 : index
    %243 = vector.load %arg7[%c6_251, %c0_252, %c0_253] : memref<16x16x32xf32, #tpu.memory_space<vmem>>, vector<1x16x32xf32>
    %244 = vector.shape_cast %243 : vector<1x16x32xf32> to vector<16x32xf32>
    %cst_254 = arith.constant dense<0.000000e+00> : vector<2x32xf32>
    %245 = tpu.matmul %242, %244, %cst_254 {dimension_numbers = #tpu.dot_dimension_numbers<[1], [0], [0], [1], [0, 0, 1, 1], [], []>} : vector<2x16xf32>, vector<16x32xf32>, vector<2x32xf32> -> vector<2x32xf32>
    %246 = arith.addf %240, %245 : vector<2x32xf32>
    %c0_255 = arith.constant 0 : index
    %c1_256 = arith.constant 1 : index
    %c3_257 = arith.constant 3 : index
    %c0_258 = arith.constant 0 : index
    %247 = vector.load %arg14[%c0_255, %c1_256, %c3_257, %c0_258] : memref<2x4x4x16xf32, #tpu.memory_space<vmem>>, vector<2x1x1x16xf32>
    %248 = vector.shape_cast %247 : vector<2x1x1x16xf32> to vector<2x16xf32>
    %c7_259 = arith.constant 7 : index
    %c0_260 = arith.constant 0 : index
    %c0_261 = arith.constant 0 : index
    %249 = vector.load %arg7[%c7_259, %c0_260, %c0_261] : memref<16x16x32xf32, #tpu.memory_space<vmem>>, vector<1x16x32xf32>
    %250 = vector.shape_cast %249 : vector<1x16x32xf32> to vector<16x32xf32>
    %cst_262 = arith.constant dense<0.000000e+00> : vector<2x32xf32>
    %251 = tpu.matmul %248, %250, %cst_262 {dimension_numbers = #tpu.dot_dimension_numbers<[1], [0], [0], [1], [0, 0, 1, 1], [], []>} : vector<2x16xf32>, vector<16x32xf32>, vector<2x32xf32> -> vector<2x32xf32>
    %252 = arith.addf %246, %251 : vector<2x32xf32>
    %c0_263 = arith.constant 0 : index
    %c2_264 = arith.constant 2 : index
    %c0_265 = arith.constant 0 : index
    %c0_266 = arith.constant 0 : index
    %253 = vector.load %arg14[%c0_263, %c2_264, %c0_265, %c0_266] : memref<2x4x4x16xf32, #tpu.memory_space<vmem>>, vector<2x1x1x16xf32>
    %254 = vector.shape_cast %253 : vector<2x1x1x16xf32> to vector<2x16xf32>
    %c8_267 = arith.constant 8 : index
    %c0_268 = arith.constant 0 : index
    %c0_269 = arith.constant 0 : index
    %255 = vector.load %arg7[%c8_267, %c0_268, %c0_269] : memref<16x16x32xf32, #tpu.memory_space<vmem>>, vector<1x16x32xf32>
    %256 = vector.shape_cast %255 : vector<1x16x32xf32> to vector<16x32xf32>
    %cst_270 = arith.constant dense<0.000000e+00> : vector<2x32xf32>
    %257 = tpu.matmul %254, %256, %cst_270 {dimension_numbers = #tpu.dot_dimension_numbers<[1], [0], [0], [1], [0, 0, 1, 1], [], []>} : vector<2x16xf32>, vector<16x32xf32>, vector<2x32xf32> -> vector<2x32xf32>
    %258 = arith.addf %252, %257 : vector<2x32xf32>
    %c0_271 = arith.constant 0 : index
    %c2_272 = arith.constant 2 : index
    %c1_273 = arith.constant 1 : index
    %c0_274 = arith.constant 0 : index
    %259 = vector.load %arg14[%c0_271, %c2_272, %c1_273, %c0_274] : memref<2x4x4x16xf32, #tpu.memory_space<vmem>>, vector<2x1x1x16xf32>
    %260 = vector.shape_cast %259 : vector<2x1x1x16xf32> to vector<2x16xf32>
    %c9_275 = arith.constant 9 : index
    %c0_276 = arith.constant 0 : index
    %c0_277 = arith.constant 0 : index
    %261 = vector.load %arg7[%c9_275, %c0_276, %c0_277] : memref<16x16x32xf32, #tpu.memory_space<vmem>>, vector<1x16x32xf32>
    %262 = vector.shape_cast %261 : vector<1x16x32xf32> to vector<16x32xf32>
    %cst_278 = arith.constant dense<0.000000e+00> : vector<2x32xf32>
    %263 = tpu.matmul %260, %262, %cst_278 {dimension_numbers = #tpu.dot_dimension_numbers<[1], [0], [0], [1], [0, 0, 1, 1], [], []>} : vector<2x16xf32>, vector<16x32xf32>, vector<2x32xf32> -> vector<2x32xf32>
    %264 = arith.addf %258, %263 : vector<2x32xf32>
    %c0_279 = arith.constant 0 : index
    %c2_280 = arith.constant 2 : index
    %c2_281 = arith.constant 2 : index
    %c0_282 = arith.constant 0 : index
    %265 = vector.load %arg14[%c0_279, %c2_280, %c2_281, %c0_282] : memref<2x4x4x16xf32, #tpu.memory_space<vmem>>, vector<2x1x1x16xf32>
    %266 = vector.shape_cast %265 : vector<2x1x1x16xf32> to vector<2x16xf32>
    %c10 = arith.constant 10 : index
    %c0_283 = arith.constant 0 : index
    %c0_284 = arith.constant 0 : index
    %267 = vector.load %arg7[%c10, %c0_283, %c0_284] : memref<16x16x32xf32, #tpu.memory_space<vmem>>, vector<1x16x32xf32>
    %268 = vector.shape_cast %267 : vector<1x16x32xf32> to vector<16x32xf32>
    %cst_285 = arith.constant dense<0.000000e+00> : vector<2x32xf32>
    %269 = tpu.matmul %266, %268, %cst_285 {dimension_numbers = #tpu.dot_dimension_numbers<[1], [0], [0], [1], [0, 0, 1, 1], [], []>} : vector<2x16xf32>, vector<16x32xf32>, vector<2x32xf32> -> vector<2x32xf32>
    %270 = arith.addf %264, %269 : vector<2x32xf32>
    %c0_286 = arith.constant 0 : index
    %c2_287 = arith.constant 2 : index
    %c3_288 = arith.constant 3 : index
    %c0_289 = arith.constant 0 : index
    %271 = vector.load %arg14[%c0_286, %c2_287, %c3_288, %c0_289] : memref<2x4x4x16xf32, #tpu.memory_space<vmem>>, vector<2x1x1x16xf32>
    %272 = vector.shape_cast %271 : vector<2x1x1x16xf32> to vector<2x16xf32>
    %c11 = arith.constant 11 : index
    %c0_290 = arith.constant 0 : index
    %c0_291 = arith.constant 0 : index
    %273 = vector.load %arg7[%c11, %c0_290, %c0_291] : memref<16x16x32xf32, #tpu.memory_space<vmem>>, vector<1x16x32xf32>
    %274 = vector.shape_cast %273 : vector<1x16x32xf32> to vector<16x32xf32>
    %cst_292 = arith.constant dense<0.000000e+00> : vector<2x32xf32>
    %275 = tpu.matmul %272, %274, %cst_292 {dimension_numbers = #tpu.dot_dimension_numbers<[1], [0], [0], [1], [0, 0, 1, 1], [], []>} : vector<2x16xf32>, vector<16x32xf32>, vector<2x32xf32> -> vector<2x32xf32>
    %276 = arith.addf %270, %275 : vector<2x32xf32>
    %c0_293 = arith.constant 0 : index
    %c3_294 = arith.constant 3 : index
    %c0_295 = arith.constant 0 : index
    %c0_296 = arith.constant 0 : index
    %277 = vector.load %arg14[%c0_293, %c3_294, %c0_295, %c0_296] : memref<2x4x4x16xf32, #tpu.memory_space<vmem>>, vector<2x1x1x16xf32>
    %278 = vector.shape_cast %277 : vector<2x1x1x16xf32> to vector<2x16xf32>
    %c12 = arith.constant 12 : index
    %c0_297 = arith.constant 0 : index
    %c0_298 = arith.constant 0 : index
    %279 = vector.load %arg7[%c12, %c0_297, %c0_298] : memref<16x16x32xf32, #tpu.memory_space<vmem>>, vector<1x16x32xf32>
    %280 = vector.shape_cast %279 : vector<1x16x32xf32> to vector<16x32xf32>
    %cst_299 = arith.constant dense<0.000000e+00> : vector<2x32xf32>
    %281 = tpu.matmul %278, %280, %cst_299 {dimension_numbers = #tpu.dot_dimension_numbers<[1], [0], [0], [1], [0, 0, 1, 1], [], []>} : vector<2x16xf32>, vector<16x32xf32>, vector<2x32xf32> -> vector<2x32xf32>
    %282 = arith.addf %276, %281 : vector<2x32xf32>
    %c0_300 = arith.constant 0 : index
    %c3_301 = arith.constant 3 : index
    %c1_302 = arith.constant 1 : index
    %c0_303 = arith.constant 0 : index
    %283 = vector.load %arg14[%c0_300, %c3_301, %c1_302, %c0_303] : memref<2x4x4x16xf32, #tpu.memory_space<vmem>>, vector<2x1x1x16xf32>
    %284 = vector.shape_cast %283 : vector<2x1x1x16xf32> to vector<2x16xf32>
    %c13 = arith.constant 13 : index
    %c0_304 = arith.constant 0 : index
    %c0_305 = arith.constant 0 : index
    %285 = vector.load %arg7[%c13, %c0_304, %c0_305] : memref<16x16x32xf32, #tpu.memory_space<vmem>>, vector<1x16x32xf32>
    %286 = vector.shape_cast %285 : vector<1x16x32xf32> to vector<16x32xf32>
    %cst_306 = arith.constant dense<0.000000e+00> : vector<2x32xf32>
    %287 = tpu.matmul %284, %286, %cst_306 {dimension_numbers = #tpu.dot_dimension_numbers<[1], [0], [0], [1], [0, 0, 1, 1], [], []>} : vector<2x16xf32>, vector<16x32xf32>, vector<2x32xf32> -> vector<2x32xf32>
    %288 = arith.addf %282, %287 : vector<2x32xf32>
    %c0_307 = arith.constant 0 : index
    %c3_308 = arith.constant 3 : index
    %c2_309 = arith.constant 2 : index
    %c0_310 = arith.constant 0 : index
    %289 = vector.load %arg14[%c0_307, %c3_308, %c2_309, %c0_310] : memref<2x4x4x16xf32, #tpu.memory_space<vmem>>, vector<2x1x1x16xf32>
    %290 = vector.shape_cast %289 : vector<2x1x1x16xf32> to vector<2x16xf32>
    %c14 = arith.constant 14 : index
    %c0_311 = arith.constant 0 : index
    %c0_312 = arith.constant 0 : index
    %291 = vector.load %arg7[%c14, %c0_311, %c0_312] : memref<16x16x32xf32, #tpu.memory_space<vmem>>, vector<1x16x32xf32>
    %292 = vector.shape_cast %291 : vector<1x16x32xf32> to vector<16x32xf32>
    %cst_313 = arith.constant dense<0.000000e+00> : vector<2x32xf32>
    %293 = tpu.matmul %290, %292, %cst_313 {dimension_numbers = #tpu.dot_dimension_numbers<[1], [0], [0], [1], [0, 0, 1, 1], [], []>} : vector<2x16xf32>, vector<16x32xf32>, vector<2x32xf32> -> vector<2x32xf32>
    %294 = arith.addf %288, %293 : vector<2x32xf32>
    %c0_314 = arith.constant 0 : index
    %c3_315 = arith.constant 3 : index
    %c3_316 = arith.constant 3 : index
    %c0_317 = arith.constant 0 : index
    %295 = vector.load %arg14[%c0_314, %c3_315, %c3_316, %c0_317] : memref<2x4x4x16xf32, #tpu.memory_space<vmem>>, vector<2x1x1x16xf32>
    %296 = vector.shape_cast %295 : vector<2x1x1x16xf32> to vector<2x16xf32>
    %c15 = arith.constant 15 : index
    %c0_318 = arith.constant 0 : index
    %c0_319 = arith.constant 0 : index
    %297 = vector.load %arg7[%c15, %c0_318, %c0_319] : memref<16x16x32xf32, #tpu.memory_space<vmem>>, vector<1x16x32xf32>
    %298 = vector.shape_cast %297 : vector<1x16x32xf32> to vector<16x32xf32>
    %cst_320 = arith.constant dense<0.000000e+00> : vector<2x32xf32>
    %299 = tpu.matmul %296, %298, %cst_320 {dimension_numbers = #tpu.dot_dimension_numbers<[1], [0], [0], [1], [0, 0, 1, 1], [], []>} : vector<2x16xf32>, vector<16x32xf32>, vector<2x32xf32> -> vector<2x32xf32>
    %300 = arith.addf %294, %299 : vector<2x32xf32>
    %c0_321 = arith.constant 0 : index
    %c0_322 = arith.constant 0 : index
    %301 = vector.load %arg8[%c0_321, %c0_322] : memref<1x32xf32, #tpu.memory_space<vmem>>, vector<1x32xf32>
    %302 = vector.broadcast %301 : vector<1x32xf32> to vector<2x32xf32>
    %303 = arith.addf %300, %302 : vector<2x32xf32>
    %c0_323 = arith.constant 0 : index
    %c0_324 = arith.constant 0 : index
    %304 = vector.load %arg9[%c0_323, %c0_324] : memref<32x10xf32, #tpu.memory_space<vmem>>, vector<32x10xf32>
    %cst_325 = arith.constant dense<0.000000e+00> : vector<2x10xf32>
    %305 = tpu.matmul %303, %304, %cst_325 {dimension_numbers = #tpu.dot_dimension_numbers<[1], [0], [0], [1], [0, 0, 1, 1], [], []>} : vector<2x32xf32>, vector<32x10xf32>, vector<2x10xf32> -> vector<2x10xf32>
    %c0_326 = arith.constant 0 : index
    %c0_327 = arith.constant 0 : index
    %306 = vector.load %arg10[%c0_326, %c0_327] : memref<1x10xf32, #tpu.memory_space<vmem>>, vector<1x10xf32>
    %307 = vector.broadcast %306 : vector<1x10xf32> to vector<2x10xf32>
    %308 = arith.addf %305, %307 : vector<2x10xf32>
    %c0_328 = arith.constant 0 : index
    %c0_329 = arith.constant 0 : index
    %309 = vector.load %arg11[%c0_328, %c0_329] : memref<2x10xf32, #tpu.memory_space<vmem>>, vector<2x10xf32>
    tpu.vector_store %arg11[%c0_328, %c0_329], %308 {strides = array<i32>} : memref<2x10xf32, #tpu.memory_space<vmem>>, vector<2x10xf32>,
    return
  }
}

</mosaic_0001>

<bundles_post_ra>
// kernel: tpu_custom_call.1
= control target key start
LH: loop header
LB: loop body
LE: loop exit
PB: predicated region body
PF: predicated region fallthrough
CT: control target
= control target key end

     0   :  { %vm571_vm0 = vcmask 1043456   ;;  %vm103_vm1 = vcmask 31744   ;;  %v19781_v2 = vmov 0.0   ;;  %vm106_vm2 = vcmask 25600   ;;  %s19769_s0 = inlined_call_operand.vmem [shape: f32[2,16,16,4], index: 0, kind: input, shape index: {}]   ;;  %s19770_s1 = inlined_call_operand.vmem [shape: f32[9,4,8], index: 1, kind: input, shape index: {}]   ;;  %s19771_s2 = inlined_call_operand.vmem [shape: f32[1,8], index: 2, kind: input, shape index: {}]   ;;  %s19772_s3 = inlined_call_operand.vmem [shape: f32[1,8], index: 3, kind: input, shape index: {}]   ;;  %s19773_s4 = inlined_call_operand.vmem [shape: f32[1,8], index: 4, kind: input, shape index: {}]   ;;  %s19774_s5 = inlined_call_operand.vmem [shape: f32[9,8,16], index: 5, kind: input, shape index: {}]   ;;  %s19775_s6 = inlined_call_operand.vmem [shape: f32[1,16], index: 6, kind: input, shape index: {}]   ;;  %s19776_s7 = inlined_call_operand.vmem [shape: f32[16,16,32], index: 7, kind: input, shape index: {}]   ;;  %s19777_s8 = inlined_call_operand.vmem [shape: f32[1,32], index: 8, kind: input, shape index: {}]   ;;  %s19778_s9 = inlined_call_operand.vmem [shape: f32[32,10], index: 9, kind: input, shape index: {}]   ;;  %s19779_s10 = inlined_call_operand.vmem [shape: f32[1,10], index: 10, kind: input, shape index: {}]   ;;  %s19780_s11 = inlined_call_operand.hbm [shape: f32[2,10], index: 11, kind: output, shape index: {}]  }
   0x1   :  { %v11448_v0 = vld [vmem:[%s19770_s1 + $0x4] sm:$0xf]  ;;  %104 = vst.msk [vmem:[#allocation2] sm:$0xff] %vm103_vm1, %v19781_v2  ;;  %105 = vst.msk [vmem:[#allocation2 + $0x8] sm:$0xff] %vm103_vm1, %v19781_v2  ;;  %v14397_v3 = vld [vmem:[%s19770_s1 + $0x8] sm:$0xf] }
   0x2   :  { %v99_v1 = vld [vmem:[%s19769_s0 + $0x1e0] sm:$0xff]  ;;  %13037 = vmatprep.subr.msk.mxu0 %vm571_vm0, %v11448_v0  ;;  %14276 = vmatprep.subr.msk.mxu1 %vm571_vm0, %v11448_v0  ;;  %108 = vst.msk [vmem:[#allocation2 + $0x1b0] sm:$0xff] %vm103_vm1, %v19781_v2  ;;  %109 = vst.msk [vmem:[#allocation2 + $0x1b8] sm:$0xff] %vm103_vm1, %v19781_v2  ;;  %v100_v4 = vld [vmem:[%s19769_s0 + $0x1e8] sm:$0xff]  ;;  %vm119_vm3 = vcmask 24576  }
   0x3   :  { %112 = vst.msk [vmem:[#allocation2 + $0x198] sm:$0xff] %vm103_vm1, %v19781_v2  ;;  %113 = vst.msk [vmem:[#allocation2 + $0x1a0] sm:$0xff] %vm103_vm1, %v19781_v2  ;;  %v14405_v5 = vld [vmem:[%s19770_s1] sm:$0xf]  ;;  %13038 = vmatpush3.msk.msra.mxu0 %vm571_vm0, %v11448_v0  ;;  %14277 = vmatpush3.msk.msra.mxu1 %vm571_vm0, %v11448_v0  ;;  %v40_v7 = vld [vmem:[%s19769_s0 + $0x8] sm:$0xff] }
   0x4   :  { %115 = vst.msk [vmem:[#allocation2 + $0x348] sm:$0xff] %vm103_vm1, %v19781_v2  ;;  %116 = vst.msk [vmem:[#allocation2 + $0x350] sm:$0xff] %vm103_vm1, %v19781_v2  ;;  %v39_v6 = vld [vmem:[%s19769_s0] sm:$0xff]  ;;  %v41_v8 = vld [vmem:[%s19769_s0 + $0x10] sm:$0xff]  ;;  %13233 = vmatprep.subr.msk.mxu0 %vm571_vm0, %v14397_v3  ;;  %13135 = vmatprep.subr.msk.mxu1 %vm571_vm0, %v14405_v5 }
   0x5   :  { %244 = vst.msk [vmem:[#allocation2 + $0x319] sm:$0xff] %vm103_vm1, %v99_v1  ;;  %245 = vst.msk [vmem:[#allocation2 + $0x321] sm:$0xff] %vm103_vm1, %v100_v4  ;;  %v42_v9 = vld [vmem:[%s19769_s0 + $0x18] sm:$0xff]  ;;  %v43_v10 = vld [vmem:[%s19769_s0 + $0x20] sm:$0xff] }
   0x6   :  { %107 = vst.msk [vmem:[#allocation2 + $0x10] sm:$0x3] %vm106_vm2, %v19781_v2  ;;  %110 = vst.msk [vmem:[#allocation2 + $0x1c0] sm:$0x3] %vm106_vm2, %v19781_v2  ;;  %v44_v11 = vld [vmem:[%s19769_s0 + $0x28] sm:$0xff]  ;;  %v45_v12 = vld [vmem:[%s19769_s0 + $0x30] sm:$0xff] }
   0x7   :  { %114 = vst.msk [vmem:[#allocation2 + $0x1a8] sm:$0x3] %vm106_vm2, %v19781_v2  ;;  %117 = vst.msk [vmem:[#allocation2 + $0x358] sm:$0x3] %vm106_vm2, %v19781_v2  ;;  %v46_v13 = vld [vmem:[%s19769_s0 + $0x38] sm:$0xff]  ;;  %v47_v14 = vld [vmem:[%s19769_s0 + $0x40] sm:$0xff] }
   0x8   :  { %184 = vst.msk [vmem:[#allocation2 + $0x19] sm:$0xff] %vm103_vm1, %v39_v6  ;;  %185 = vst.msk [vmem:[#allocation2 + $0x21] sm:$0xff] %vm103_vm1, %v40_v7  ;;  %v48_v15 = vld [vmem:[%s19769_s0 + $0x48] sm:$0xff]  ;;  %v49_v16 = vld [vmem:[%s19769_s0 + $0x50] sm:$0xff] }
   0x9   :  { %186 = vst.msk [vmem:[#allocation2 + $0x31] sm:$0xff] %vm103_vm1, %v41_v8  ;;  %187 = vst.msk [vmem:[#allocation2 + $0x39] sm:$0xff] %vm103_vm1, %v42_v9  ;;  %v50_v17 = vld [vmem:[%s19769_s0 + $0x58] sm:$0xff]  ;;  %v51_v18 = vld [vmem:[%s19769_s0 + $0x60] sm:$0xff] }
   0xa   :  { %120 = vst.msk [vmem:[#allocation2 + $0x18] sm:$0x1] %vm119_vm3, %v19781_v2  ;;  %121 = vst.msk [vmem:[#allocation2 + $0x30] sm:$0x1] %vm119_vm3, %v19781_v2  ;;  %v52_v19 = vld [vmem:[%s19769_s0 + $0x68] sm:$0xff]  ;;  %v53_v20 = vld [vmem:[%s19769_s0 + $0x70] sm:$0xff] }
   0xb   :  { %122 = vst.msk [vmem:[#allocation2 + $0x48] sm:$0x1] %vm119_vm3, %v19781_v2  ;;  %123 = vst.msk [vmem:[#allocation2 + $0x60] sm:$0x1] %vm119_vm3, %v19781_v2  ;;  %v54_v21 = vld [vmem:[%s19769_s0 + $0x78] sm:$0xff]  ;;  %v55_v22 = vld [vmem:[%s19769_s0 + $0x80] sm:$0xff] }
   0xc   :  { %124 = vst.msk [vmem:[#allocation2 + $0x78] sm:$0x1] %vm119_vm3, %v19781_v2  ;;  %125 = vst.msk [vmem:[#allocation2 + $0x90] sm:$0x1] %vm119_vm3, %v19781_v2  ;;  %v56_v23 = vld [vmem:[%s19769_s0 + $0x88] sm:$0xff]  ;;  %v375_v25 = vld [vmem:[#allocation2 + $0x319] sm:$0xff] }
   0xd   :  { %126 = vst.msk [vmem:[#allocation2 + $0xa8] sm:$0x1] %vm119_vm3, %v19781_v2  ;;  %127 = vst.msk [vmem:[#allocation2 + $0xc0] sm:$0x1] %vm119_vm3, %v19781_v2  ;;  %v313_v24 = vld [vmem:[#allocation2 + $0x1] sm:$0xff]  ;;  %13132 = vmatprep.mubr.msk.f32.mxu1 %vm103_vm1, %v375_v25  ;;  %v314_v26 = vld [vmem:[#allocation2 + $0x9] sm:$0xff] }
   0xe   :  { %128 = vst.msk [vmem:[#allocation2 + $0xd8] sm:$0x1] %vm119_vm3, %v19781_v2  ;;  %129 = vst.msk [vmem:[#allocation2 + $0xf0] sm:$0x1] %vm119_vm3, %v19781_v2  ;;  %13039 = vmatprep.mubr.msk.f32.mxu0 %vm103_vm1, %v313_v24  ;;  %v376_v27 = vld [vmem:[#allocation2 + $0x321] sm:$0xff]  ;;  %v57_v44 = vld [vmem:[%s19769_s0 + $0x90] sm:$0xff] }
   0xf   :  { %130 = vst.msk [vmem:[#allocation2 + $0x108] sm:$0x1] %vm119_vm3, %v19781_v2  ;;  %131 = vst.msk [vmem:[#allocation2 + $0x120] sm:$0x1] %vm119_vm3, %v19781_v2  ;;  %v248_v28 = vld [vmem:[#allocation2] sm:$0xff]  ;;  %13040 = vmatmul.mubr.msk.f32.vlgmr.msra.gmra.mxu0 %vm103_vm1, %v314_v26  ;;  %13133 = vmatmul.mubr.msk.f32.vlgmr.msra.gmra.mxu1 %vm103_vm1, %v376_v27  ;;  %v249_v31 = vld [vmem:[#allocation2 + $0x8] sm:$0xff] }
  0x10   :  { %132 = vst.msk [vmem:[#allocation2 + $0x138] sm:$0x1] %vm119_vm3, %v19781_v2  ;;  %133 = vst.msk [vmem:[#allocation2 + $0x150] sm:$0x1] %vm119_vm3, %v19781_v2  ;;  %v315_v29 = vld [vmem:[#allocation2 + $0x19] sm:$0xff]  ;;  %13234 = vmatpush3.msk.msra.mxu0 %vm571_vm0, %v14397_v3  ;;  %v316_v30 = vld [vmem:[#allocation2 + $0x21] sm:$0xff]  ;;  %13136 = vmatpush3.msk.msra.mxu1 %vm571_vm0, %v14405_v5 }
  0x11   :  { %134 = vst.msk [vmem:[#allocation2 + $0x168] sm:$0x1] %vm119_vm3, %v19781_v2  ;;  %135 = vst.msk [vmem:[#allocation2 + $0x180] sm:$0x1] %vm119_vm3, %v19781_v2  ;;  %13042 = vmatprep.mubr.msk.f32.mxu0 %vm103_vm1, %v315_v29  ;;  %13137 = vmatprep.mubr.msk.f32.mxu1 %vm103_vm1, %v248_v28  ;;  %v317_v32 = vld [vmem:[#allocation2 + $0x31] sm:$0xff]  ;;  %v318_v34 = vld [vmem:[#allocation2 + $0x39] sm:$0xff] }
  0x12   :  { %136 = vst.msk [vmem:[#allocation2 + $0x1c8] sm:$0x1] %vm119_vm3, %v19781_v2  ;;  %137 = vst.msk [vmem:[#allocation2 + $0x1e0] sm:$0x1] %vm119_vm3, %v19781_v2  ;;  %v14628_v33 = vld [vmem:[#allocation2 + $0x18] sm:$0xff]  ;;  %v14635_v35 = vld [vmem:[#allocation2 + $0x20] sm:$0xff] }
  0x13   :  { %138 = vst.msk [vmem:[#allocation2 + $0x1f8] sm:$0x1] %vm119_vm3, %v19781_v2  ;;  %139 = vst.msk [vmem:[#allocation2 + $0x210] sm:$0x1] %vm119_vm3, %v19781_v2  ;;  %13043 = vmatmul.mubr.msk.f32.gmra.mxu0 %vm103_vm1, %v316_v30  ;;  %13138 = vmatmul.mubr.msk.f32.vlgmr.msra.gmra.mxu1 %vm103_vm1, %v249_v31  ;;  %v14637_v37 = vld [vmem:[#allocation2 + $0x30] sm:$0xff]  ;;  %v14645_v39 = vld [vmem:[#allocation2 + $0x38] sm:$0xff] }
  0x14   :  { %140 = vst.msk [vmem:[#allocation2 + $0x228] sm:$0x1] %vm119_vm3, %v19781_v2  ;;  %141 = vst.msk [vmem:[#allocation2 + $0x240] sm:$0x1] %vm119_vm3, %v19781_v2  ;;  %13045 = vmatprep.mubr.msk.f32.mxu0 %vm103_vm1, %v317_v32  ;;  %13140 = vmatprep.mubr.msk.f32.mxu1 %vm103_vm1, %v14628_v33  ;;  %v58_v47 = vld [vmem:[%s19769_s0 + $0x98] sm:$0xff]  ;;  %v59_v48 = vld [vmem:[%s19769_s0 + $0xa0] sm:$0xff] }
  0x15   :  { %142 = vst.msk [vmem:[#allocation2 + $0x258] sm:$0x1] %vm119_vm3, %v19781_v2  ;;  %143 = vst.msk [vmem:[#allocation2 + $0x270] sm:$0x1] %vm119_vm3, %v19781_v2  ;;  %v60_v49 = vld [vmem:[%s19769_s0 + $0xa8] sm:$0xff]  ;;  %v61_v50 = vld [vmem:[%s19769_s0 + $0xb0] sm:$0xff] }
  0x16   :  { %144 = vst.msk [vmem:[#allocation2 + $0x288] sm:$0x1] %vm119_vm3, %v19781_v2  ;;  %145 = vst.msk [vmem:[#allocation2 + $0x2a0] sm:$0x1] %vm119_vm3, %v19781_v2  ;;  %v62_v51 = vld [vmem:[%s19769_s0 + $0xb8] sm:$0xff]  ;;  %v63_v52 = vld [vmem:[%s19769_s0 + $0xc0] sm:$0xff] }
  0x17   :  { %146 = vst.msk [vmem:[#allocation2 + $0x2b8] sm:$0x1] %vm119_vm3, %v19781_v2  ;;  %147 = vst.msk [vmem:[#allocation2 + $0x2d0] sm:$0x1] %vm119_vm3, %v19781_v2  ;;  %13046 = vmatmul.mubr.msk.f32.gmra.mxu0 %vm103_vm1, %v318_v34  ;;  %13141 = vmatmul.mubr.msk.f32.gmra.mxu1 %vm103_vm1, %v14635_v35  ;;  %v64_v53 = vld [vmem:[%s19769_s0 + $0xc8] sm:$0xff]  ;;  %v65_v54 = vld [vmem:[%s19769_s0 + $0xd0] sm:$0xff] }
  0x18   :  { %148 = vst.msk [vmem:[#allocation2 + $0x2e8] sm:$0x1] %vm119_vm3, %v19781_v2  ;;  %149 = vst.msk [vmem:[#allocation2 + $0x300] sm:$0x1] %vm119_vm3, %v19781_v2  ;;  %13143 = vmatprep.mubr.msk.f32.mxu1 %vm103_vm1, %v14637_v37  ;;  %v66_v55 = vld [vmem:[%s19769_s0 + $0xd8] sm:$0xff]  ;;  %v67_v56 = vld [vmem:[%s19769_s0 + $0xe0] sm:$0xff] }
  0x19   :  { %150 = vst.msk [vmem:[#allocation2 + $0x318] sm:$0x1] %vm119_vm3, %v19781_v2  ;;  %151 = vst.msk [vmem:[#allocation2 + $0x330] sm:$0x1] %vm119_vm3, %v19781_v2  ;;  %v68_v57 = vld [vmem:[%s19769_s0 + $0xe8] sm:$0xff]  ;;  %v71_v60 = vld [vmem:[%s19769_s0 + $0x100] sm:$0xff] }
  0x1a   :  { %152 = vst.msk [vmem:[#allocation2 + $0x29] sm:$0x1] %vm119_vm3, %v19781_v2  ;;  %153 = vst.msk [vmem:[#allocation2 + $0x41] sm:$0x1] %vm119_vm3, %v19781_v2  ;;  %v72_v63 = vld [vmem:[%s19769_s0 + $0x108] sm:$0xff]  ;;  %v73_v0 = vld [vmem:[%s19769_s0 + $0x110] sm:$0xff] }
  0x1b   :  { %154 = vst.msk [vmem:[#allocation2 + $0x59] sm:$0x1] %vm119_vm3, %v19781_v2  ;;  %155 = vst.msk [vmem:[#allocation2 + $0x71] sm:$0x1] %vm119_vm3, %v19781_v2  ;;  %13144 = vmatmul.mubr.msk.f32.gmra.mxu1 %vm103_vm1, %v14645_v39  ;;  %v74_v1 = vld [vmem:[%s19769_s0 + $0x118] sm:$0xff]  ;;  %v75_v3 = vld [vmem:[%s19769_s0 + $0x120] sm:$0xff] }
  0x1c   :  { %156 = vst.msk [vmem:[#allocation2 + $0x89] sm:$0x1] %vm119_vm3, %v19781_v2  ;;  %157 = vst.msk [vmem:[#allocation2 + $0xa1] sm:$0x1] %vm119_vm3, %v19781_v2  ;;  %v76_v4 = vld [vmem:[%s19769_s0 + $0x128] sm:$0xff]  ;;  %v81_v25 = vld [vmem:[%s19769_s0 + $0x150] sm:$0xff] }
  0x1d   :  { %158 = vst.msk [vmem:[#allocation2 + $0xb9] sm:$0x1] %vm119_vm3, %v19781_v2  ;;  %159 = vst.msk [vmem:[#allocation2 + $0xd1] sm:$0x1] %vm119_vm3, %v19781_v2  ;;  %v80_v24 = vld [vmem:[%s19769_s0 + $0x148] sm:$0xff]  ;;  %v82_v26 = vld [vmem:[%s19769_s0 + $0x158] sm:$0xff] }
  0x1e   :  { %160 = vst.msk [vmem:[#allocation2 + $0xe9] sm:$0x1] %vm119_vm3, %v19781_v2  ;;  %161 = vst.msk [vmem:[#allocation2 + $0x101] sm:$0x1] %vm119_vm3, %v19781_v2  ;;  %v83_v27 = vld [vmem:[%s19769_s0 + $0x160] sm:$0xff]  ;;  %v84_v28 = vld [vmem:[%s19769_s0 + $0x168] sm:$0xff] }
  0x1f   :  { %162 = vst.msk [vmem:[#allocation2 + $0x119] sm:$0x1] %vm119_vm3, %v19781_v2  ;;  %163 = vst.msk [vmem:[#allocation2 + $0x131] sm:$0x1] %vm119_vm3, %v19781_v2  ;;  %v85_v29 = vld [vmem:[%s19769_s0 + $0x170] sm:$0xff]  ;;  %v86_v30 = vld [vmem:[%s19769_s0 + $0x178] sm:$0xff] }
  0x20   :  { %164 = vst.msk [vmem:[#allocation2 + $0x149] sm:$0x1] %vm119_vm3, %v19781_v2  ;;  %165 = vst.msk [vmem:[#allocation2 + $0x161] sm:$0x1] %vm119_vm3, %v19781_v2  ;;  %v87_v31 = vld [vmem:[%s19769_s0 + $0x180] sm:$0xff] }
  0x21   :  { %166 = vst.msk [vmem:[#allocation2 + $0x179] sm:$0x1] %vm119_vm3, %v19781_v2  ;;  %167 = vst.msk [vmem:[#allocation2 + $0x191] sm:$0x1] %vm119_vm3, %v19781_v2 }
  0x22   :  { %168 = vst.msk [vmem:[#allocation2 + $0x1d9] sm:$0x1] %vm119_vm3, %v19781_v2  ;;  %169 = vst.msk [vmem:[#allocation2 + $0x1f1] sm:$0x1] %vm119_vm3, %v19781_v2 }
  0x23   :  { %170 = vst.msk [vmem:[#allocation2 + $0x209] sm:$0x1] %vm119_vm3, %v19781_v2  ;;  %171 = vst.msk [vmem:[#allocation2 + $0x221] sm:$0x1] %vm119_vm3, %v19781_v2 }
  0x24   :  { %172 = vst.msk [vmem:[#allocation2 + $0x239] sm:$0x1] %vm119_vm3, %v19781_v2  ;;  %173 = vst.msk [vmem:[#allocation2 + $0x251] sm:$0x1] %vm119_vm3, %v19781_v2 }
  0x25   :  { %174 = vst.msk [vmem:[#allocation2 + $0x269] sm:$0x1] %vm119_vm3, %v19781_v2  ;;  %175 = vst.msk [vmem:[#allocation2 + $0x281] sm:$0x1] %vm119_vm3, %v19781_v2 }
  0x26   :  { %176 = vst.msk [vmem:[#allocation2 + $0x299] sm:$0x1] %vm119_vm3, %v19781_v2  ;;  %177 = vst.msk [vmem:[#allocation2 + $0x2b1] sm:$0x1] %vm119_vm3, %v19781_v2 }
  0x27   :  { %178 = vst.msk [vmem:[#allocation2 + $0x2c9] sm:$0x1] %vm119_vm3, %v19781_v2  ;;  %179 = vst.msk [vmem:[#allocation2 + $0x2e1] sm:$0x1] %vm119_vm3, %v19781_v2 }
  0x28   :  { %180 = vst.msk [vmem:[#allocation2 + $0x2f9] sm:$0x1] %vm119_vm3, %v19781_v2  ;;  %181 = vst.msk [vmem:[#allocation2 + $0x311] sm:$0x1] %vm119_vm3, %v19781_v2 }
  0x29   :  { %182 = vst.msk [vmem:[#allocation2 + $0x329] sm:$0x1] %vm119_vm3, %v19781_v2  ;;  %183 = vst.msk [vmem:[#allocation2 + $0x341] sm:$0x1] %vm119_vm3, %v19781_v2 }
  0x2a   :  { %188 = vst.msk [vmem:[#allocation2 + $0x49] sm:$0xff] %vm103_vm1, %v43_v10  ;;  %189 = vst.msk [vmem:[#allocation2 + $0x51] sm:$0xff] %vm103_vm1, %v44_v11 }
  0x2b   :  { %190 = vst.msk [vmem:[#allocation2 + $0x61] sm:$0xff] %vm103_vm1, %v45_v12  ;;  %191 = vst.msk [vmem:[#allocation2 + $0x69] sm:$0xff] %vm103_vm1, %v46_v13 }
  0x2c   :  { %192 = vst.msk [vmem:[#allocation2 + $0x79] sm:$0xff] %vm103_vm1, %v47_v14  ;;  %193 = vst.msk [vmem:[#allocation2 + $0x81] sm:$0xff] %vm103_vm1, %v48_v15 }
  0x2d   :  { %194 = vst.msk [vmem:[#allocation2 + $0x91] sm:$0xff] %vm103_vm1, %v49_v16  ;;  %195 = vst.msk [vmem:[#allocation2 + $0x99] sm:$0xff] %vm103_vm1, %v50_v17  ;;  %v77_v17 = vld [vmem:[%s19769_s0 + $0x130] sm:$0xff] }
  0x2e   :  { %196 = vst.msk [vmem:[#allocation2 + $0xa9] sm:$0xff] %vm103_vm1, %v51_v18  ;;  %197 = vst.msk [vmem:[#allocation2 + $0xb1] sm:$0xff] %vm103_vm1, %v52_v19 }
  0x2f   :  { %198 = vst.msk [vmem:[#allocation2 + $0xc1] sm:$0xff] %vm103_vm1, %v53_v20  ;;  %199 = vst.msk [vmem:[#allocation2 + $0xc9] sm:$0xff] %vm103_vm1, %v54_v21  ;;  %v78_v20 = vld [vmem:[%s19769_s0 + $0x138] sm:$0xff] }
  0x30   :  { %200 = vst.msk [vmem:[#allocation2 + $0xd9] sm:$0xff] %vm103_vm1, %v55_v22  ;;  %201 = vst.msk [vmem:[#allocation2 + $0xe1] sm:$0xff] %vm103_vm1, %v56_v23  ;;  %v79_v23 = vld [vmem:[%s19769_s0 + $0x140] sm:$0xff] }
  0x31   :  { %v319_v36 = vld [vmem:[#allocation2 + $0x49] sm:$0xff]  ;;  %v320_v38 = vld [vmem:[#allocation2 + $0x51] sm:$0xff]  ;;  %202 = vst.msk [vmem:[#allocation2 + $0xf1] sm:$0xff] %vm103_vm1, %v57_v44  ;;  %203 = vst.msk [vmem:[#allocation2 + $0xf9] sm:$0xff] %vm103_vm1, %v58_v47 }
  0x32   :  { %13048 = vmatprep.mubr.msk.f32.mxu0 %vm103_vm1, %v319_v36  ;;  %v321_v40 = vld [vmem:[#allocation2 + $0x61] sm:$0xff]  ;;  %v322_v42 = vld [vmem:[#allocation2 + $0x69] sm:$0xff]  ;;  %204 = vst.msk [vmem:[#allocation2 + $0x109] sm:$0xff] %vm103_vm1, %v59_v48  ;;  %205 = vst.msk [vmem:[#allocation2 + $0x111] sm:$0xff] %vm103_vm1, %v60_v49 }
  0x33   :  { %v14647_v41 = vld [vmem:[#allocation2 + $0x48] sm:$0xff]  ;;  %v14649_v43 = vld [vmem:[#allocation2 + $0x50] sm:$0xff]  ;;  %13049 = vmatmul.mubr.msk.f32.gmra.mxu0 %vm103_vm1, %v320_v38  ;;  %v323_v45 = vld [vmem:[#allocation2 + $0x79] sm:$0xff]  ;;  %206 = vst.msk [vmem:[#allocation2 + $0x121] sm:$0xff] %vm103_vm1, %v61_v50 }
  0x34   :  { %v14657_v46 = vld [vmem:[#allocation2 + $0x60] sm:$0xff]  ;;  %13051 = vmatprep.mubr.msk.f32.mxu0 %vm103_vm1, %v321_v40  ;;  %13146 = vmatprep.mubr.msk.f32.mxu1 %vm103_vm1, %v14647_v41  ;;  %207 = vst.msk [vmem:[#allocation2 + $0x129] sm:$0xff] %vm103_vm1, %v62_v51  ;;  %208 = vst.msk [vmem:[#allocation2 + $0x139] sm:$0xff] %vm103_vm1, %v63_v52  ;;  %v14707_v59 = vld [vmem:[#allocation2 + $0x68] sm:$0xff] }
  0x35   :  { %209 = vst.msk [vmem:[#allocation2 + $0x141] sm:$0xff] %vm103_vm1, %v64_v53  ;;  %210 = vst.msk [vmem:[#allocation2 + $0x151] sm:$0xff] %vm103_vm1, %v65_v54  ;;  %13147 = vmatmul.mubr.msk.f32.gmra.mxu1 %vm103_vm1, %v14649_v43  ;;  %v324_v58 = vld [vmem:[#allocation2 + $0x81] sm:$0xff]  ;;  %v325_v61 = vld [vmem:[#allocation2 + $0x91] sm:$0xff] }
  0x36   :  { %211 = vst.msk [vmem:[#allocation2 + $0x159] sm:$0xff] %vm103_vm1, %v66_v55  ;;  %212 = vst.msk [vmem:[#allocation2 + $0x169] sm:$0xff] %vm103_vm1, %v67_v56  ;;  %13149 = vmatprep.mubr.msk.f32.mxu1 %vm103_vm1, %v14657_v46  ;;  %v14718_v62 = vld [vmem:[#allocation2 + $0x78] sm:$0xff]  ;;  %v14747_v6 = vld [vmem:[#allocation2 + $0x80] sm:$0xff] }
  0x37   :  { %13052 = vmatmul.mubr.msk.f32.gmra.mxu0 %vm103_vm1, %v322_v42  ;;  %213 = vst.msk [vmem:[#allocation2 + $0x171] sm:$0xff] %vm103_vm1, %v68_v57  ;;  %216 = vst.msk [vmem:[#allocation2 + $0x1c9] sm:$0xff] %vm103_vm1, %v71_v60  ;;  %v326_v5 = vld [vmem:[#allocation2 + $0x99] sm:$0xff]  ;;  %v327_v7 = vld [vmem:[#allocation2 + $0xa9] sm:$0xff] }
  0x38   :  { %13054 = vmatprep.mubr.msk.f32.mxu0 %vm103_vm1, %v323_v45  ;;  %217 = vst.msk [vmem:[#allocation2 + $0x1d1] sm:$0xff] %vm103_vm1, %v72_v63  ;;  %218 = vst.msk [vmem:[#allocation2 + $0x1e1] sm:$0xff] %vm103_vm1, %v73_v0  ;;  %v14749_v8 = vld [vmem:[#allocation2 + $0x90] sm:$0xff]  ;;  %v14757_v10 = vld [vmem:[#allocation2 + $0x98] sm:$0xff] }
  0x39   :  { %219 = vst.msk [vmem:[#allocation2 + $0x1e9] sm:$0xff] %vm103_vm1, %v74_v1  ;;  %220 = vst.msk [vmem:[#allocation2 + $0x1f9] sm:$0xff] %vm103_vm1, %v75_v3  ;;  %13150 = vmatmul.mubr.msk.f32.gmra.mxu1 %vm103_vm1, %v14707_v59  ;;  %v328_v9 = vld [vmem:[#allocation2 + $0xb1] sm:$0xff]  ;;  %v329_v11 = vld [vmem:[#allocation2 + $0xc1] sm:$0xff] }
  0x3a   :  { %221 = vst.msk [vmem:[#allocation2 + $0x201] sm:$0xff] %vm103_vm1, %v76_v4  ;;  %13152 = vmatprep.mubr.msk.f32.mxu1 %vm103_vm1, %v14718_v62  ;;  %v14759_v12 = vld [vmem:[#allocation2 + $0xa8] sm:$0xff]  ;;  %v14767_v14 = vld [vmem:[#allocation2 + $0xb0] sm:$0xff]  ;;  %v331_v15 = vld [vmem:[#allocation2 + $0xd9] sm:$0xff] }
  0x3b   :  { %13055 = vmatmul.mubr.msk.f32.gmra.mxu0 %vm103_vm1, %v324_v58  ;;  %v330_v13 = vld [vmem:[#allocation2 + $0xc9] sm:$0xff]  ;;  %v14769_v16 = vld [vmem:[#allocation2 + $0xc0] sm:$0xff]  ;;  %222 = vst.msk [vmem:[#allocation2 + $0x211] sm:$0xff] %vm103_vm1, %v77_v17  ;;  %v333_v21 = vld [vmem:[#allocation2 + $0xf1] sm:$0xff] }
  0x3c   :  { %13057 = vmatprep.mubr.msk.f32.mxu0 %vm103_vm1, %v325_v61  ;;  %v332_v18 = vld [vmem:[#allocation2 + $0xe1] sm:$0xff]  ;;  %v14783_v22 = vld [vmem:[#allocation2 + $0xd8] sm:$0xff]  ;;  %223 = vst.msk [vmem:[#allocation2 + $0x219] sm:$0xff] %vm103_vm1, %v78_v20  ;;  %224 = vst.msk [vmem:[#allocation2 + $0x229] sm:$0xff] %vm103_vm1, %v79_v23 }
  0x3d   :  { %13153 = vmatmul.mubr.msk.f32.gmra.mxu1 %vm103_vm1, %v14747_v6  ;;  %v14774_v19 = vld [vmem:[#allocation2 + $0xc8] sm:$0xff]  ;;  %225 = vst.msk [vmem:[#allocation2 + $0x231] sm:$0xff] %vm103_vm1, %v80_v24  ;;  %226 = vst.msk [vmem:[#allocation2 + $0x241] sm:$0xff] %vm103_vm1, %v81_v25  ;;  %v334_v32 = vld [vmem:[#allocation2 + $0xf9] sm:$0xff] }
  0x3e   :  { %13155 = vmatprep.mubr.msk.f32.mxu1 %vm103_vm1, %v14749_v8  ;;  %227 = vst.msk [vmem:[#allocation2 + $0x249] sm:$0xff] %vm103_vm1, %v82_v26  ;;  %228 = vst.msk [vmem:[#allocation2 + $0x259] sm:$0xff] %vm103_vm1, %v83_v27  ;;  %v14822_v34 = vld [vmem:[#allocation2 + $0xe0] sm:$0xff]  ;;  %v88_v36 = vld [vmem:[%s19769_s0 + $0x188] sm:$0xff] }
  0x3f   :  { %13058 = vmatmul.mubr.msk.f32.gmra.mxu0 %vm103_vm1, %v326_v5  ;;  %229 = vst.msk [vmem:[#allocation2 + $0x261] sm:$0xff] %vm103_vm1, %v84_v28  ;;  %230 = vst.msk [vmem:[#allocation2 + $0x271] sm:$0xff] %vm103_vm1, %v85_v29  ;;  %v89_v38 = vld [vmem:[%s19769_s0 + $0x190] sm:$0xff]  ;;  %v90_v40 = vld [vmem:[%s19769_s0 + $0x198] sm:$0xff] }
  0x40   :  { %13060 = vmatprep.mubr.msk.f32.mxu0 %vm103_vm1, %v327_v7  ;;  %231 = vst.msk [vmem:[#allocation2 + $0x279] sm:$0xff] %vm103_vm1, %v86_v30  ;;  %232 = vst.msk [vmem:[#allocation2 + $0x289] sm:$0xff] %vm103_vm1, %v87_v31  ;;  %v91_v42 = vld [vmem:[%s19769_s0 + $0x1a0] sm:$0xff]  ;;  %v92_v44 = vld [vmem:[%s19769_s0 + $0x1a8] sm:$0xff] }
  0x41   :  { %13156 = vmatmul.mubr.msk.f32.gmra.mxu1 %vm103_vm1, %v14757_v10  ;;  %233 = vst.msk [vmem:[#allocation2 + $0x291] sm:$0xff] %vm103_vm1, %v88_v36  ;;  %234 = vst.msk [vmem:[#allocation2 + $0x2a1] sm:$0xff] %vm103_vm1, %v89_v38  ;;  %v93_v45 = vld [vmem:[%s19769_s0 + $0x1b0] sm:$0xff]  ;;  %v94_v47 = vld [vmem:[%s19769_s0 + $0x1b8] sm:$0xff] }
  0x42   :  { %13158 = vmatprep.mubr.msk.f32.mxu1 %vm103_vm1, %v14759_v12  ;;  %235 = vst.msk [vmem:[#allocation2 + $0x2a9] sm:$0xff] %vm103_vm1, %v90_v40  ;;  %236 = vst.msk [vmem:[#allocation2 + $0x2b9] sm:$0xff] %vm103_vm1, %v91_v42  ;;  %v95_v48 = vld [vmem:[%s19769_s0 + $0x1c0] sm:$0xff]  ;;  %v96_v49 = vld [vmem:[%s19769_s0 + $0x1c8] sm:$0xff] }
  0x43   :  { %13061 = vmatmul.mubr.msk.f32.gmra.mxu0 %vm103_vm1, %v328_v9  ;;  %237 = vst.msk [vmem:[#allocation2 + $0x2c1] sm:$0xff] %vm103_vm1, %v92_v44  ;;  %238 = vst.msk [vmem:[#allocation2 + $0x2d1] sm:$0xff] %vm103_vm1, %v93_v45  ;;  %v335_v50 = vld [vmem:[#allocation2 + $0x109] sm:$0xff]  ;;  %v98_v53 = vld [vmem:[%s19769_s0 + $0x1d8] sm:$0xff] }
  0x44   :  { %13063 = vmatprep.mubr.msk.f32.mxu0 %vm103_vm1, %v329_v11  ;;  %v14866_v51 = vld [vmem:[#allocation2 + $0xf0] sm:$0xff]  ;;  %239 = vst.msk [vmem:[#allocation2 + $0x2d9] sm:$0xff] %vm103_vm1, %v94_v47  ;;  %240 = vst.msk [vmem:[#allocation2 + $0x2e9] sm:$0xff] %vm103_vm1, %v95_v48  ;;  %v14885_v55 = vld [vmem:[#allocation2 + $0xf8] sm:$0xff] }
  0x45   :  { %13159 = vmatmul.mubr.msk.f32.gmra.mxu1 %vm103_vm1, %v14767_v14  ;;  %241 = vst.msk [vmem:[#allocation2 + $0x2f1] sm:$0xff] %vm103_vm1, %v96_v49  ;;  %v97_v52 = vld [vmem:[%s19769_s0 + $0x1d0] sm:$0xff]  ;;  %243 = vst.msk [vmem:[#allocation2 + $0x309] sm:$0xff] %vm103_vm1, %v98_v53  ;;  %v337_v56 = vld [vmem:[#allocation2 + $0x121] sm:$0xff] }
  0x46   :  { %13161 = vmatprep.mubr.msk.f32.mxu1 %vm103_vm1, %v14769_v16  ;;  %242 = vst.msk [vmem:[#allocation2 + $0x301] sm:$0xff] %vm103_vm1, %v97_v52  ;;  %v336_v54 = vld [vmem:[#allocation2 + $0x111] sm:$0xff]  ;;  %v14887_v57 = vld [vmem:[#allocation2 + $0x108] sm:$0xff]  ;;  %v339_v61 = vld [vmem:[#allocation2 + $0x139] sm:$0xff] }
  0x47   :  { %13064 = vmatmul.mubr.msk.f32.gmra.mxu0 %vm103_vm1, %v330_v13  ;;  %v338_v58 = vld [vmem:[#allocation2 + $0x129] sm:$0xff]  ;;  %v14897_v63 = vld [vmem:[#allocation2 + $0x120] sm:$0xff]  ;;  %v341_v3 = vld [vmem:[#allocation2 + $0x151] sm:$0xff] }
  0x48   :  { %13066 = vmatprep.mubr.msk.f32.mxu0 %vm103_vm1, %v331_v15  ;;  %v14895_v60 = vld [vmem:[#allocation2 + $0x110] sm:$0xff]  ;;  %v340_v0 = vld [vmem:[#allocation2 + $0x141] sm:$0xff]  ;;  %v14907_v4 = vld [vmem:[#allocation2 + $0x138] sm:$0xff] }
  0x49   :  { %13162 = vmatmul.mubr.msk.f32.gmra.mxu1 %vm103_vm1, %v14774_v19  ;;  %v14905_v1 = vld [vmem:[#allocation2 + $0x128] sm:$0xff]  ;;  %v342_v7 = vld [vmem:[#allocation2 + $0x159] sm:$0xff]  ;;  %v14923_v11 = vld [vmem:[%s19770_s1 + $0x10] sm:$0xf] }
  0x4a   :  { %13164 = vmatprep.mubr.msk.f32.mxu1 %vm103_vm1, %v14783_v22  ;;  %v11645_v5 = vld [vmem:[%s19770_s1 + $0xc] sm:$0xf]  ;;  %v14918_v9 = vld [vmem:[#allocation2 + $0x140] sm:$0xff]  ;;  %v14925_v15 = vld [vmem:[#allocation2 + $0x150] sm:$0xff]  ;;  %13429 = vmatprep.subr.msk.mxu0 %vm571_vm0, %v14923_v11 }
  0x4b   :  { %13067 = vmatmul.mubr.msk.f32.gmra.mxu0 %vm103_vm1, %v332_v18  ;;  %v343_v13 = vld [vmem:[#allocation2 + $0x169] sm:$0xff]  ;;  %13331 = vmatprep.subr.msk.mxu1 %vm571_vm0, %v11645_v5  ;;  %v344_v17 = vld [vmem:[#allocation2 + $0x171] sm:$0xff]  ;;  %v346_v23 = vld [vmem:[#allocation2 + $0x1b9] sm:$0xff] }
  0x4c   :  { %13069 = vmatprep.mubr.msk.f32.mxu0 %vm103_vm1, %v333_v21  ;;  %13332 = vmatpush3.msk.msra.mxu1 %vm571_vm0, %v11645_v5  ;;  %v14937_v18 = vld [vmem:[#allocation2 + $0x158] sm:$0xff]  ;;  %v14939_v21 = vld [vmem:[#allocation2 + $0x168] sm:$0xff]  ;;  %v14947_v24 = vld [vmem:[#allocation2 + $0x170] sm:$0xff] }
  0x4d   :  { %13165 = vmatmul.mubr.msk.f32.gmra.mxu1 %vm103_vm1, %v14822_v34  ;;  %v345_v20 = vld [vmem:[#allocation2 + $0x1b1] sm:$0xff]  ;;  %v347_v25 = vld [vmem:[#allocation2 + $0x1c9] sm:$0xff]  ;;  %v349_v29 = vld [vmem:[#allocation2 + $0x1e1] sm:$0xff] }
  0x4e   :  { %13167 = vmatprep.mubr.msk.f32.mxu1 %vm103_vm1, %v14866_v51  ;;  %v280_v26 = vld [vmem:[#allocation2 + $0x1b0] sm:$0xff]  ;;  %v281_v28 = vld [vmem:[#allocation2 + $0x1b8] sm:$0xff]  ;;  %v14954_v30 = vld [vmem:[#allocation2 + $0x1c8] sm:$0xff] }
  0x4f   :  { %13070 = vmatmul.mubr.msk.f32.gmra.mxu0 %vm103_vm1, %v334_v32  ;;  %v348_v27 = vld [vmem:[#allocation2 + $0x1d1] sm:$0xff] }
  0x50   :  { %13072 = vmatprep.mubr.msk.f32.mxu0 %vm103_vm1, %v335_v50  ;;  %v69_v31 = vld [vmem:[%s19769_s0 + $0xf0] sm:$0xff]  ;;  %v70_v32 = vld [vmem:[%s19769_s0 + $0xf8] sm:$0xff] }
  0x51   :  { %13168 = vmatmul.mubr.msk.f32.gmra.mxu1 %vm103_vm1, %v14885_v55  ;;  %214 = vst.msk [vmem:[#allocation2 + $0x181] sm:$0xff] %vm103_vm1, %v69_v31  ;;  %215 = vst.msk [vmem:[#allocation2 + $0x189] sm:$0xff] %vm103_vm1, %v70_v32 }
  0x52   :  { %13170 = vmatprep.mubr.msk.f32.mxu1 %vm103_vm1, %v14887_v57 }
  0x53   :  { %13073 = vmatmul.mubr.msk.f32.gmra.mxu0 %vm103_vm1, %v336_v54 }
  0x54   :  { %13075 = vmatprep.mubr.msk.f32.mxu0 %vm103_vm1, %v337_v56 }
  0x55   :  { %13171 = vmatmul.mubr.msk.f32.gmra.mxu1 %vm103_vm1, %v14895_v60 }
  0x56   :  { %13173 = vmatprep.mubr.msk.f32.mxu1 %vm103_vm1, %v14897_v63 }
  0x57   :  { %13076 = vmatmul.mubr.msk.f32.gmra.mxu0 %vm103_vm1, %v338_v58 }
  0x58   :  { %13078 = vmatprep.mubr.msk.f32.mxu0 %vm103_vm1, %v339_v61 }
  0x59   :  { %13174 = vmatmul.mubr.msk.f32.gmra.mxu1 %vm103_vm1, %v14905_v1 }
  0x5a   :  { %13176 = vmatprep.mubr.msk.f32.mxu1 %vm103_vm1, %v14907_v4 }
  0x5b   :  { %13079 = vmatmul.mubr.msk.f32.gmra.mxu0 %vm103_vm1, %v340_v0 }
  0x5c   :  { %13081 = vmatprep.mubr.msk.f32.mxu0 %vm103_vm1, %v341_v3 }
  0x5d   :  { %13177 = vmatmul.mubr.msk.f32.gmra.mxu1 %vm103_vm1, %v14918_v9 }
  0x5e   :  { %13179 = vmatprep.mubr.msk.f32.mxu1 %vm103_vm1, %v14925_v15 }
  0x5f   :  { %13082 = vmatmul.mubr.msk.f32.gmra.mxu0 %vm103_vm1, %v342_v7 }
  0x60   :  { %13084 = vmatprep.mubr.msk.f32.mxu0 %vm103_vm1, %v343_v13 }
  0x61   :  { %13180 = vmatmul.mubr.msk.f32.gmra.mxu1 %vm103_vm1, %v14937_v18 }
  0x62   :  { %13182 = vmatprep.mubr.msk.f32.mxu1 %vm103_vm1, %v14939_v21 }
  0x63   :  { %13085 = vmatmul.mubr.msk.f32.gmra.mxu0 %vm103_vm1, %v344_v17 }
  0x64   :  { %13087 = vmatprep.mubr.msk.f32.mxu0 %vm103_vm1, %v345_v20 }
  0x65   :  { %13183 = vmatmul.mubr.msk.f32.gmra.mxu1 %vm103_vm1, %v14947_v24 }
  0x66   :  { %13185 = vmatprep.mubr.msk.f32.mxu1 %vm103_vm1, %v280_v26 }
  0x67   :  { %13088 = vmatmul.mubr.msk.f32.gmra.mxu0 %vm103_vm1, %v346_v23 }
  0x68   :  { %13090 = vmatprep.mubr.msk.f32.mxu0 %vm103_vm1, %v347_v25 }
  0x69   :  { %13186 = vmatmul.mubr.msk.f32.gmra.mxu1 %vm103_vm1, %v281_v28 }
  0x6b   :  { %13091 = vmatmul.mubr.msk.f32.gmra.mxu0 %vm103_vm1, %v348_v27 }
  0x6c   :  { %16 = vsyncpa [#allocation6], 0  ;;  %13093 = vmatprep.mubr.msk.f32.mxu0 %vm103_vm1, %v349_v29  ;;  %13188 = vmatprep.mubr.msk.f32.mxu1 %vm103_vm1, %v14954_v30  ;;  %v350_v36 = vld [vmem:[#allocation2 + $0x1e9] sm:$0xff]  ;;  %v351_v40 = vld [vmem:[#allocation2 + $0x1f9] sm:$0xff]  ;;  %vm6582_vm4 = vcmask 64512   ;;  %vm7668_vm5 = vcmask 1040384  }
  0x6d   :  { %v14969_v38 = vld [vmem:[#allocation2 + $0x1d0] sm:$0xff]  ;;  %v14971_v42 = vld [vmem:[#allocation2 + $0x1e0] sm:$0xff]  ;;  %v14979_v45 = vld [vmem:[#allocation2 + $0x1e8] sm:$0xff]  ;;  %vm7685_vm6 = vcmask 1041408   ;;  %vm7702_vm7 = vcmask 1042432   ;;  %vm7735_vm8 = vcmask 1044480  }
  0x6e   :  { %13189 = vmatmul.mubr.msk.f32.gmra.mxu1 %vm103_vm1, %v14969_v38  ;;  %v352_v44 = vld [vmem:[#allocation2 + $0x201] sm:$0xff]  ;;  %v353_v47 = vld [vmem:[#allocation2 + $0x211] sm:$0xff]  ;;  %v354_v49 = vld [vmem:[#allocation2 + $0x219] sm:$0xff]  ;;  %vm7752_vm9 = vcmask 1045504   ;;  %vm7769_vm10 = vcmask 1046528   ;;  %vm7787_vm11 = vcmask 58368  }
  0x6f   :  { %13094 = vmatmul.mubr.msk.f32.gmra.mxu0 %vm103_vm1, %v350_v36  ;;  %13191 = vmatprep.mubr.msk.f32.mxu1 %vm103_vm1, %v14971_v42  ;;  %v14981_v48 = vld [vmem:[#allocation2 + $0x1f8] sm:$0xff]  ;;  %v14989_v50 = vld [vmem:[#allocation2 + $0x200] sm:$0xff]  ;;  %v355_v52 = vld [vmem:[#allocation2 + $0x229] sm:$0xff]  ;;  %vm7797_vm12 = vcmask 57344   ;;  %vm14307_vm13 = vmmov 0   ;;  %vm10016_vm14 = vcmask 125952  }
  0x70   :  { %13096 = vmatprep.mubr.msk.f32.mxu0 %vm103_vm1, %v351_v40  ;;  %v14991_v53 = vld [vmem:[#allocation2 + $0x210] sm:$0xff]  ;;  %v14999_v56 = vld [vmem:[#allocation2 + $0x218] sm:$0xff]  ;;  %v357_v58 = vld [vmem:[#allocation2 + $0x241] sm:$0xff]  ;;  %vm10037_vm15 = vcmask 1041409   ;;  %vm11432_vm2 = vcmask 74752  }
  0x71   :  { %v356_v54 = vld [vmem:[#allocation2 + $0x231] sm:$0xff]  ;;  %v15001_v61 = vld [vmem:[#allocation2 + $0x228] sm:$0xff]  ;;  %v359_v5 = vld [vmem:[#allocation2 + $0x259] sm:$0xff] }
  0x72   :  { %13192 = vmatmul.mubr.msk.f32.gmra.mxu1 %vm103_vm1, %v14979_v45  ;;  %v358_v0 = vld [vmem:[#allocation2 + $0x249] sm:$0xff]  ;;  %v15011_v7 = vld [vmem:[#allocation2 + $0x240] sm:$0xff]  ;;  %v361_v20 = vld [vmem:[#allocation2 + $0x271] sm:$0xff] }
  0x73   :  { %13097 = vmatmul.mubr.msk.f32.gmra.mxu0 %vm103_vm1, %v352_v44  ;;  %13194 = vmatprep.mubr.msk.f32.mxu1 %vm103_vm1, %v14981_v48  ;;  %v15009_v3 = vld [vmem:[#allocation2 + $0x230] sm:$0xff]  ;;  %v360_v13 = vld [vmem:[#allocation2 + $0x261] sm:$0xff]  ;;  %v15021_v23 = vld [vmem:[#allocation2 + $0x258] sm:$0xff] }
  0x74   :  { %13099 = vmatprep.mubr.msk.f32.mxu0 %vm103_vm1, %v353_v47  ;;  %v15019_v17 = vld [vmem:[#allocation2 + $0x248] sm:$0xff]  ;;  %v362_v25 = vld [vmem:[#allocation2 + $0x279] sm:$0xff]  ;;  %v15031_v28 = vld [vmem:[#allocation2 + $0x270] sm:$0xff] }
  0x75   :  { %v15029_v26 = vld [vmem:[#allocation2 + $0x260] sm:$0xff]  ;;  %v363_v27 = vld [vmem:[#allocation2 + $0x289] sm:$0xff]  ;;  %v364_v29 = vld [vmem:[#allocation2 + $0x291] sm:$0xff] }
  0x76   :  { %13195 = vmatmul.mubr.msk.f32.gmra.mxu1 %vm103_vm1, %v14989_v50  ;;  %v15039_v31 = vld [vmem:[#allocation2 + $0x278] sm:$0xff]  ;;  %v365_v32 = vld [vmem:[#allocation2 + $0x2a1] sm:$0xff]  ;;  %v366_v40 = vld [vmem:[#allocation2 + $0x2a9] sm:$0xff] }
  0x77   :  { %13100 = vmatmul.mubr.msk.f32.gmra.mxu0 %vm103_vm1, %v354_v49  ;;  %13197 = vmatprep.mubr.msk.f32.mxu1 %vm103_vm1, %v14991_v53  ;;  %v15041_v36 = vld [vmem:[#allocation2 + $0x288] sm:$0xff]  ;;  %v15049_v44 = vld [vmem:[#allocation2 + $0x290] sm:$0xff]  ;;  %v367_v47 = vld [vmem:[#allocation2 + $0x2b9] sm:$0xff] }
  0x78   :  { %13102 = vmatprep.mubr.msk.f32.mxu0 %vm103_vm1, %v355_v52  ;;  %v15051_v49 = vld [vmem:[#allocation2 + $0x2a0] sm:$0xff]  ;;  %v1541_v2 = vld [vmem:[#allocation2 + $0xa] sm:$0xff] }
  0x79   :  { %v368_v52 = vld [vmem:[#allocation2 + $0x2c1] sm:$0xff] }
  0x7a   :  { %13198 = vmatmul.mubr.msk.f32.gmra.mxu1 %vm103_vm1, %v14999_v56 }
  0x7b   :  { %13103 = vmatmul.mubr.msk.f32.gmra.mxu0 %vm103_vm1, %v356_v54  ;;  %13200 = vmatprep.mubr.msk.f32.mxu1 %vm103_vm1, %v15001_v61  ;;  %v15059_v54 = vld [vmem:[#allocation2 + $0x2a8] sm:$0xff] }
  0x7c   :  { %13105 = vmatprep.mubr.msk.f32.mxu0 %vm103_vm1, %v357_v58  ;;  %v369_v58 = vld [vmem:[#allocation2 + $0x2d1] sm:$0xff] }
  0x7e   :  { %13201 = vmatmul.mubr.msk.f32.gmra.mxu1 %vm103_vm1, %v15009_v3 }
  0x7f   :  { %13106 = vmatmul.mubr.msk.f32.gmra.mxu0 %vm103_vm1, %v358_v0  ;;  %13203 = vmatprep.mubr.msk.f32.mxu1 %vm103_vm1, %v15011_v7  ;;  %v15061_v0 = vld [vmem:[#allocation2 + $0x2b8] sm:$0xff] }
  0x80   :  { %13108 = vmatprep.mubr.msk.f32.mxu0 %vm103_vm1, %v359_v5  ;;  %v370_v5 = vld [vmem:[#allocation2 + $0x2d9] sm:$0xff] }
  0x82   :  { %13204 = vmatmul.mubr.msk.f32.gmra.mxu1 %vm103_vm1, %v15019_v17 }
  0x83   :  { %13109 = vmatmul.mubr.msk.f32.gmra.mxu0 %vm103_vm1, %v360_v13  ;;  %13206 = vmatprep.mubr.msk.f32.mxu1 %vm103_vm1, %v15021_v23  ;;  %v15069_v13 = vld [vmem:[#allocation2 + $0x2c0] sm:$0xff] }
  0x84   :  { %13111 = vmatprep.mubr.msk.f32.mxu0 %vm103_vm1, %v361_v20  ;;  %v371_v20 = vld [vmem:[#allocation2 + $0x2e9] sm:$0xff] }
  0x86   :  { %13207 = vmatmul.mubr.msk.f32.gmra.mxu1 %vm103_vm1, %v15029_v26 }
  0x87   :  { %13112 = vmatmul.mubr.msk.f32.gmra.mxu0 %vm103_vm1, %v362_v25  ;;  %13209 = vmatprep.mubr.msk.f32.mxu1 %vm103_vm1, %v15031_v28  ;;  %v15071_v25 = vld [vmem:[#allocation2 + $0x2d0] sm:$0xff] }
  0x88   :  { %13114 = vmatprep.mubr.msk.f32.mxu0 %vm103_vm1, %v363_v27  ;;  %v372_v27 = vld [vmem:[#allocation2 + $0x2f1] sm:$0xff] }
  0x8a   :  { %13210 = vmatmul.mubr.msk.f32.gmra.mxu1 %vm103_vm1, %v15039_v31 }
  0x8b   :  { %13115 = vmatmul.mubr.msk.f32.gmra.mxu0 %vm103_vm1, %v364_v29  ;;  %13212 = vmatprep.mubr.msk.f32.mxu1 %vm103_vm1, %v15041_v36  ;;  %v15079_v29 = vld [vmem:[#allocation2 + $0x2d8] sm:$0xff] }
  0x8c   :  { %13117 = vmatprep.mubr.msk.f32.mxu0 %vm103_vm1, %v365_v32  ;;  %v373_v32 = vld [vmem:[#allocation2 + $0x301] sm:$0xff] }
  0x8e   :  { %13213 = vmatmul.mubr.msk.f32.gmra.mxu1 %vm103_vm1, %v15049_v44 }
  0x8f   :  { %13118 = vmatmul.mubr.msk.f32.gmra.mxu0 %vm103_vm1, %v366_v40  ;;  %13215 = vmatprep.mubr.msk.f32.mxu1 %vm103_vm1, %v15051_v49  ;;  %v15081_v40 = vld [vmem:[#allocation2 + $0x2e8] sm:$0xff] }
  0x90   :  { %13120 = vmatprep.mubr.msk.f32.mxu0 %vm103_vm1, %v367_v47  ;;  %19879 = vst [vmem:[#allocation8_spill] sm:$0xff] %v15081_v40  ;;  %v374_v47 = vld [vmem:[#allocation2 + $0x309] sm:$0xff] }
  0x92   :  { %13216 = vmatmul.mubr.msk.f32.gmra.mxu1 %vm103_vm1, %v15059_v54 }
  0x93   :  { %13121 = vmatmul.mubr.msk.f32.gmra.mxu0 %vm103_vm1, %v368_v52  ;;  %13218 = vmatprep.mubr.msk.f32.mxu1 %vm103_vm1, %v15061_v0  ;;  %v15089_v52 = vld [vmem:[#allocation2 + $0x2f0] sm:$0xff] }
  0x94   :  { %13123 = vmatprep.mubr.msk.f32.mxu0 %vm103_vm1, %v369_v58  ;;  %19880 = vst [vmem:[#allocation9_spill] sm:$0xff] %v15089_v52  ;;  %v15091_v58 = vld [vmem:[#allocation2 + $0x300] sm:$0xff] }
  0x95   :  { %19881 = vst [vmem:[#allocation10_spill] sm:$0xff] %v15091_v58 }
  0x96   :  { %13219 = vmatmul.mubr.msk.f32.gmra.mxu1 %vm103_vm1, %v15069_v13 }
  0x97   :  { %13124 = vmatmul.mubr.msk.f32.gmra.mxu0 %vm103_vm1, %v370_v5  ;;  %13221 = vmatprep.mubr.msk.f32.mxu1 %vm103_vm1, %v15071_v25  ;;  %v1540_v5 = vld [vmem:[#allocation2 + $0x2] sm:$0xff] }
  0x98   :  { %13126 = vmatprep.mubr.msk.f32.mxu0 %vm103_vm1, %v371_v20  ;;  %v101_v20 = vld [vmem:[%s19769_s0 + $0x1f0] sm:$0xff] }
  0x99   :  { %246 = vst.msk [vmem:[#allocation2 + $0x331] sm:$0xff] %vm103_vm1, %v101_v20  ;;  %v11777_v20 = vld [vmem:[%s19770_s1 + $0x14] sm:$0xf] }
  0x9a   :  { %13222 = vmatmul.mubr.msk.f32.gmra.mxu1 %vm103_vm1, %v15079_v29  ;;  %13527 = vmatprep.subr.msk.mxu1 %vm571_vm0, %v11777_v20 }
  0x9b   :  { %13127 = vmatmul.mubr.msk.f32.gmra.mxu0 %vm103_vm1, %v372_v27  ;;  %13224 = vmatprep.mubr.msk.f32.mxu1 %vm103_vm1, %v15081_v40  ;;  %v102_v27 = vld [vmem:[%s19769_s0 + $0x1f8] sm:$0xff] }
  0x9c   :  { %13129 = vmatprep.mubr.msk.f32.mxu0 %vm103_vm1, %v373_v32  ;;  %247 = vst.msk [vmem:[#allocation2 + $0x339] sm:$0xff] %vm103_vm1, %v102_v27  ;;  %v15107_v32 = vld [vmem:[#allocation2 + $0x308] sm:$0xff]  ;;  %v15112_v40 = vld [vmem:[#allocation2 + $0x318] sm:$0xff] }
  0x9d   :  { %v15120_v27 = vld [vmem:[%s19770_s1 + $0x18] sm:$0xf] }
  0x9e   :  { %13225 = vmatmul.mubr.msk.f32.gmra.mxu1 %vm103_vm1, %v15089_v52  ;;  %v15135_v52 = vld [vmem:[#allocation2 + $0x32] sm:$0xff] }
  0x9f   :  { %13130 = vmatmul.mubr.msk.f32.gmra.mxu0 %vm103_vm1, %v374_v47  ;;  %13227 = vmatprep.mubr.msk.f32.mxu1 %vm103_vm1, %v15091_v58  ;;  %v15115_v47 = vld [vmem:[#allocation2 + $0x1a] sm:$0xff]  ;;  %v15131_v58 = vld [vmem:[#allocation2 + $0x22] sm:$0xff]  ;;  %19883 = vst [vmem:[#allocation12_spill] sm:$0xff] %v15135_v52 }
  0xa0   :  { %13235 = vmatprep.mubr.msk.f32.mxu0 %vm103_vm1, %v1540_v5  ;;  %v15129_v5 = vld [vmem:[#allocation2 + $0x320] sm:$0xff]  ;;  %19882 = vst [vmem:[#allocation11_spill] sm:$0xff] %v15131_v58 }
  0xa2   :  { %13228 = vmatmul.mubr.msk.f32.gmra.mxu1 %vm103_vm1, %v15107_v32 }
  0xa3   :  { %13236 = vmatmul.mubr.msk.f32.vlgmr.msra.gmra.mxu0 %vm103_vm1, %v1541_v2  ;;  %13230 = vmatprep.mubr.msk.f32.mxu1 %vm103_vm1, %v15112_v40  ;;  %v15147_v2 = vld [vmem:[#allocation2 + $0x3a] sm:$0xff] }
  0xa4   :  { %13430 = vmatpush3.msk.msra.mxu0 %vm571_vm0, %v14923_v11  ;;  %13238 = vmatprep.mubr.msk.f32.mxu0 %vm103_vm1, %v15115_v47  ;;  %v15149_v11 = vld [vmem:[#allocation2 + $0x4a] sm:$0xff] }
  0xa5   :  { %13625 = vmatprep.subr.msk.mxu0 %vm571_vm0, %v15120_v27 }
  0xa6   :  { %13231 = vmatmul.mubr.msk.f32.gmra.mxu1 %vm103_vm1, %v15129_v5 }
  0xa7   :  { %13239 = vmatmul.mubr.msk.f32.gmra.mxu0 %vm103_vm1, %v15131_v58  ;;  %13333 = vmatprep.mubr.msk.f32.mxu1 %vm103_vm1, %v14628_v33  ;;  %v15161_v58 = vld [vmem:[#allocation2 + $0x62] sm:$0xff]  ;;  %v15172_v33 = vld [vmem:[#allocation2 + $0x6a] sm:$0xff] }
  0xa8   :  { %13241 = vmatprep.mubr.msk.f32.mxu0 %vm103_vm1, %v15135_v52  ;;  %v15159_v52 = vld [vmem:[#allocation2 + $0x52] sm:$0xff] }
  0xaa   :  { %13334 = vmatmul.mubr.msk.f32.vlgmr.msra.gmra.mxu1 %vm103_vm1, %v14635_v35  ;;  %v15174_v35 = vld [vmem:[#allocation2 + $0x7a] sm:$0xff] }
  0xab   :  { %13242 = vmatmul.mubr.msk.f32.gmra.mxu0 %vm103_vm1, %v15147_v2  ;;  %13336 = vmatprep.mubr.msk.f32.mxu1 %vm103_vm1, %v14637_v37  ;;  %v15184_v37 = vld [vmem:[#allocation2 + $0x82] sm:$0xff] }
  0xac   :  { %13244 = vmatprep.mubr.msk.f32.mxu0 %vm103_vm1, %v15149_v11  ;;  %13528 = vmatpush3.msk.msra.mxu1 %vm571_vm0, %v11777_v20  ;;  %v2280_v20 = vld [vmem:[#allocation2 + $0x180] sm:$0xff] }
  0xae   :  { %13337 = vmatmul.mubr.msk.f32.gmra.mxu1 %vm103_vm1, %v14645_v39  ;;  %v15186_v39 = vld [vmem:[#allocation2 + $0x92] sm:$0xff] }
  0xaf   :  { %13245 = vmatmul.mubr.msk.f32.gmra.mxu0 %vm103_vm1, %v15159_v52  ;;  %13339 = vmatprep.mubr.msk.f32.mxu1 %vm103_vm1, %v14647_v41  ;;  %v15196_v41 = vld [vmem:[#allocation2 + $0x9a] sm:$0xff] }
  0xb0   :  { %13247 = vmatprep.mubr.msk.f32.mxu0 %vm103_vm1, %v15161_v58 }
  0xb2   :  { %13340 = vmatmul.mubr.msk.f32.gmra.mxu1 %vm103_vm1, %v14649_v43  ;;  %v15198_v43 = vld [vmem:[#allocation2 + $0xaa] sm:$0xff] }
  0xb3   :  { %13248 = vmatmul.mubr.msk.f32.gmra.mxu0 %vm103_vm1, %v15172_v33  ;;  %13342 = vmatprep.mubr.msk.f32.mxu1 %vm103_vm1, %v14657_v46  ;;  %v15208_v46 = vld [vmem:[#allocation2 + $0xb2] sm:$0xff] }
  0xb4   :  { %13250 = vmatprep.mubr.msk.f32.mxu0 %vm103_vm1, %v15174_v35 }
  0xb6   :  { %13343 = vmatmul.mubr.msk.f32.gmra.mxu1 %vm103_vm1, %v14707_v59  ;;  %v15210_v59 = vld [vmem:[#allocation2 + $0xc2] sm:$0xff] }
  0xb7   :  { %13251 = vmatmul.mubr.msk.f32.gmra.mxu0 %vm103_vm1, %v15184_v37  ;;  %13345 = vmatprep.mubr.msk.f32.mxu1 %vm103_vm1, %v14718_v62  ;;  %v15220_v62 = vld [vmem:[#allocation2 + $0xca] sm:$0xff] }
  0xb8   :  { %13253 = vmatprep.mubr.msk.f32.mxu0 %vm103_vm1, %v15186_v39 }
  0xba   :  { %13346 = vmatmul.mubr.msk.f32.gmra.mxu1 %vm103_vm1, %v14747_v6  ;;  %v15222_v6 = vld [vmem:[#allocation2 + $0xda] sm:$0xff] }
  0xbb   :  { %13254 = vmatmul.mubr.msk.f32.gmra.mxu0 %vm103_vm1, %v15196_v41  ;;  %13348 = vmatprep.mubr.msk.f32.mxu1 %vm103_vm1, %v14749_v8  ;;  %v15232_v8 = vld [vmem:[#allocation2 + $0xe2] sm:$0xff] }
  0xbc   :  { %13256 = vmatprep.mubr.msk.f32.mxu0 %vm103_vm1, %v15198_v43 }
  0xbe   :  { %13349 = vmatmul.mubr.msk.f32.gmra.mxu1 %vm103_vm1, %v14757_v10  ;;  %v15234_v10 = vld [vmem:[#allocation2 + $0xf2] sm:$0xff] }
  0xbf   :  { %13257 = vmatmul.mubr.msk.f32.gmra.mxu0 %vm103_vm1, %v15208_v46  ;;  %13351 = vmatprep.mubr.msk.f32.mxu1 %vm103_vm1, %v14759_v12  ;;  %v15244_v12 = vld [vmem:[#allocation2 + $0xfa] sm:$0xff] }
  0xc0   :  { %13259 = vmatprep.mubr.msk.f32.mxu0 %vm103_vm1, %v15210_v59 }
  0xc2   :  { %13352 = vmatmul.mubr.msk.f32.gmra.mxu1 %vm103_vm1, %v14767_v14  ;;  %v15246_v14 = vld [vmem:[#allocation2 + $0x10a] sm:$0xff] }
  0xc3   :  { %13260 = vmatmul.mubr.msk.f32.gmra.mxu0 %vm103_vm1, %v15220_v62  ;;  %13354 = vmatprep.mubr.msk.f32.mxu1 %vm103_vm1, %v14769_v16  ;;  %v15256_v16 = vld [vmem:[#allocation2 + $0x112] sm:$0xff] }
  0xc4   :  { %13262 = vmatprep.mubr.msk.f32.mxu0 %vm103_vm1, %v15222_v6 }
  0xc6   :  { %13355 = vmatmul.mubr.msk.f32.gmra.mxu1 %vm103_vm1, %v14774_v19  ;;  %v15258_v19 = vld [vmem:[#allocation2 + $0x122] sm:$0xff] }
  0xc7   :  { %13263 = vmatmul.mubr.msk.f32.gmra.mxu0 %vm103_vm1, %v15232_v8  ;;  %13357 = vmatprep.mubr.msk.f32.mxu1 %vm103_vm1, %v14783_v22  ;;  %v15268_v22 = vld [vmem:[#allocation2 + $0x12a] sm:$0xff] }
  0xc8   :  { %13265 = vmatprep.mubr.msk.f32.mxu0 %vm103_vm1, %v15234_v10 }
  0xca   :  { %13358 = vmatmul.mubr.msk.f32.gmra.mxu1 %vm103_vm1, %v14822_v34  ;;  %v15270_v34 = vld [vmem:[#allocation2 + $0x13a] sm:$0xff] }
  0xcb   :  { %13266 = vmatmul.mubr.msk.f32.gmra.mxu0 %vm103_vm1, %v15244_v12  ;;  %13360 = vmatprep.mubr.msk.f32.mxu1 %vm103_vm1, %v14866_v51  ;;  %v15280_v51 = vld [vmem:[#allocation2 + $0x142] sm:$0xff] }
  0xcc   :  { %13268 = vmatprep.mubr.msk.f32.mxu0 %vm103_vm1, %v15246_v14 }
  0xce   :  { %13361 = vmatmul.mubr.msk.f32.gmra.mxu1 %vm103_vm1, %v14885_v55  ;;  %v15282_v55 = vld [vmem:[#allocation2 + $0x152] sm:$0xff] }
  0xcf   :  { %13269 = vmatmul.mubr.msk.f32.gmra.mxu0 %vm103_vm1, %v15256_v16  ;;  %13363 = vmatprep.mubr.msk.f32.mxu1 %vm103_vm1, %v14887_v57  ;;  %19884 = vst [vmem:[#allocation13_spill] sm:$0xff] %v15282_v55  ;;  %v15292_v57 = vld [vmem:[#allocation2 + $0x15a] sm:$0xff] }
  0xd0   :  { %13271 = vmatprep.mubr.msk.f32.mxu0 %vm103_vm1, %v15258_v19  ;;  %19885 = vst [vmem:[#allocation14_spill] sm:$0xff] %v15292_v57 }
  0xd2   :  { %13364 = vmatmul.mubr.msk.f32.gmra.mxu1 %vm103_vm1, %v14895_v60  ;;  %v15294_v60 = vld [vmem:[#allocation2 + $0x16a] sm:$0xff] }
  0xd3   :  { %13272 = vmatmul.mubr.msk.f32.gmra.mxu0 %vm103_vm1, %v15268_v22  ;;  %13366 = vmatprep.mubr.msk.f32.mxu1 %vm103_vm1, %v14897_v63  ;;  %19886 = vst [vmem:[#allocation15_spill] sm:$0xff] %v15294_v60  ;;  %v15304_v63 = vld [vmem:[#allocation2 + $0x172] sm:$0xff] }
  0xd4   :  { %13274 = vmatprep.mubr.msk.f32.mxu0 %vm103_vm1, %v15270_v34  ;;  %19887 = vst [vmem:[#allocation16_spill] sm:$0xff] %v15304_v63 }
  0xd6   :  { %13367 = vmatmul.mubr.msk.f32.gmra.mxu1 %vm103_vm1, %v14905_v1  ;;  %v1572_v1 = vld [vmem:[#allocation2 + $0x1b2] sm:$0xff] }
  0xd7   :  { %13275 = vmatmul.mubr.msk.f32.gmra.mxu0 %vm103_vm1, %v15280_v51  ;;  %13369 = vmatprep.mubr.msk.f32.mxu1 %vm103_vm1, %v14907_v4  ;;  %v1573_v4 = vld [vmem:[#allocation2 + $0x1ba] sm:$0xff] }
  0xd8   :  { %13277 = vmatprep.mubr.msk.f32.mxu0 %vm103_vm1, %v15282_v55 }
  0xda   :  { %13370 = vmatmul.mubr.msk.f32.gmra.mxu1 %vm103_vm1, %v14918_v9  ;;  %v15313_v9 = vld [vmem:[#allocation2 + $0x1ca] sm:$0xff] }
  0xdb   :  { %13278 = vmatmul.mubr.msk.f32.gmra.mxu0 %vm103_vm1, %v15292_v57  ;;  %13372 = vmatprep.mubr.msk.f32.mxu1 %vm103_vm1, %v14925_v15  ;;  %19888 = vst [vmem:[#allocation17_spill] sm:$0xff] %v15313_v9  ;;  %v15321_v15 = vld [vmem:[#allocation2 + $0x1d2] sm:$0xff] }
  0xdc   :  { %13280 = vmatprep.mubr.msk.f32.mxu0 %vm103_vm1, %v15294_v60  ;;  %19889 = vst [vmem:[#allocation18_spill] sm:$0xff] %v15321_v15 }
  0xde   :  { %13373 = vmatmul.mubr.msk.f32.gmra.mxu1 %vm103_vm1, %v14937_v18  ;;  %v2281_v18 = vld [vmem:[#allocation2 + $0x188] sm:$0xff] }
  0xdf   :  { %13281 = vmatmul.mubr.msk.f32.gmra.mxu0 %vm103_vm1, %v15304_v63  ;;  %13375 = vmatprep.mubr.msk.f32.mxu1 %vm103_vm1, %v14939_v21  ;;  %v13041_v21 = vpop.f32.mrf.mxu0  ;;  %v15325_v63 = vpop.f32.mrf.mxu1 }
  0xe0   :  { %13283 = vmatprep.mubr.msk.f32.mxu0 %vm103_vm1, %v1572_v1  ;;  %v15323_v1 = vld [vmem:[#allocation2 + $0x1e2] sm:$0xff]  ;;  %19891 = vst [vmem:[#allocation20_spill] sm:$0xff] %v15325_v63 }
  0xe1   :  { %19890 = vst [vmem:[#allocation19_spill] sm:$0xff] %v15323_v1 }
  0xe2   :  { %13376 = vmatmul.mubr.msk.f32.gmra.mxu1 %vm103_vm1, %v14947_v24  ;;  %v15334_v24 = vld [vmem:[#allocation2 + $0x1ea] sm:$0xff] }
  0xe3   :  { %13284 = vmatmul.mubr.msk.f32.gmra.mxu0 %vm103_vm1, %v1573_v4  ;;  %13378 = vmatprep.mubr.msk.f32.mxu1 %vm103_vm1, %v2280_v20  ;;  %19892 = vst [vmem:[#allocation21_spill] sm:$0xff] %v15334_v24  ;;  %v641_v4 = vpop.f32.mrf.mxu0  ;;  %v15336_v20 = vpop.f32.mrf.mxu1 }
  0xe4   :  { %13286 = vmatprep.mubr.msk.f32.mxu0 %vm103_vm1, %v15313_v9  ;;  %19893 = vst [vmem:[#allocation22_spill] sm:$0xff] %v15336_v20  ;;  %v15338_v9 = vld [vmem:[#allocation2 + $0x1fa] sm:$0xff] }
  0xe5   :  { %19894 = vst [vmem:[#allocation23_spill] sm:$0xff] %v15338_v9  ;;  %v13044_v60 = vpop.f32.mrf.mxu0  ;;  %v13139_v63 = vpop.f32.mrf.mxu1 }
  0xe6   :  { %13379 = vmatmul.mubr.msk.f32.gmra.mxu1 %vm103_vm1, %v2281_v18  ;;  %v15344_v18 = vadd.f32 %v13139_v63, %v13041_v21  ;;  %v15368_v21 = vld [vmem:[#allocation2 + $0x22a] sm:$0xff] }
  0xe7   :  { %13287 = vmatmul.mubr.msk.f32.gmra.mxu0 %vm103_vm1, %v15321_v15  ;;  %13381 = vmatprep.mubr.msk.f32.mxu1 %vm103_vm1, %v14954_v30  ;;  %v15350_v30 = vld [vmem:[#allocation2 + $0x202] sm:$0xff]  ;;  %v651_v20 = vpop.f32.mrf.mxu0  ;;  %v15352_v15 = vld [vmem:[#allocation2 + $0x212] sm:$0xff]  ;;  %19898 = vst [vmem:[#allocation27_spill] sm:$0xff] %v15368_v21 }
  0xe8   :  { %13289 = vmatprep.mubr.msk.f32.mxu0 %vm103_vm1, %v15323_v1  ;;  %19895 = vst [vmem:[#allocation24_spill] sm:$0xff] %v15350_v30  ;;  %v1221_v1 = vpop.f32.mrf.mxu1  ;;  %19896 = vst [vmem:[#allocation25_spill] sm:$0xff] %v15352_v15 }
  0xe9   :  { %v15354_v57 = vadd.f32 %v1221_v1, %v641_v4 }
  0xea   :  { %13382 = vmatmul.mubr.msk.f32.gmra.mxu1 %vm103_vm1, %v14969_v38  ;;  %v13142_v55 = vpop.f32.mrf.mxu1 }
  0xeb   :  { %13290 = vmatmul.mubr.msk.f32.gmra.mxu0 %vm103_vm1, %v15334_v24  ;;  %13384 = vmatprep.mubr.msk.f32.mxu1 %vm103_vm1, %v14971_v42  ;;  %v13047_v24 = vpop.f32.mrf.mxu0  ;;  %v15360_v38 = vadd.f32 %v13142_v55, %v13044_v60  ;;  %v15366_v42 = vld [vmem:[#allocation2 + $0x21a] sm:$0xff] }
  0xec   :  { %13292 = vmatprep.mubr.msk.f32.mxu0 %vm103_vm1, %v15338_v9  ;;  %19897 = vst [vmem:[#allocation26_spill] sm:$0xff] %v15366_v42  ;;  %v1231_v1 = vpop.f32.mrf.mxu1 }
  0xed   :  { %v661_v63 = vpop.f32.mrf.mxu0  ;;  %v15370_v4 = vadd.f32 %v1231_v1, %v651_v20  ;;  %v15384_v20 = vld [vmem:[#allocation2 + $0x242] sm:$0xff] }
  0xee   :  { %13385 = vmatmul.mubr.msk.f32.gmra.mxu1 %vm103_vm1, %v14979_v45  ;;  %v13145_v9 = vpop.f32.mrf.mxu1  ;;  %19900 = vst [vmem:[#allocation29_spill] sm:$0xff] %v15384_v20 }
  0xef   :  { %13293 = vmatmul.mubr.msk.f32.gmra.mxu0 %vm103_vm1, %v15350_v30  ;;  %13387 = vmatprep.mubr.msk.f32.mxu1 %vm103_vm1, %v14981_v48  ;;  %v15376_v45 = vadd.f32 %v13145_v9, %v13047_v24  ;;  %v15382_v48 = vld [vmem:[#allocation2 + $0x232] sm:$0xff] }
  0xf0   :  { %13295 = vmatprep.mubr.msk.f32.mxu0 %vm103_vm1, %v15352_v15  ;;  %19899 = vst [vmem:[#allocation28_spill] sm:$0xff] %v15382_v48  ;;  %v1241_v60 = vpop.f32.mrf.mxu1 }
  0xf1   :  { %v15386_v1 = vadd.f32 %v1241_v60, %v661_v63  ;;  %v15400_v63 = vld [vmem:[#allocation2 + $0x25a] sm:$0xff] }
  0xf2   :  { %13388 = vmatmul.mubr.msk.f32.gmra.mxu1 %vm103_vm1, %v14989_v50  ;;  %19902 = vst [vmem:[#allocation31_spill] sm:$0xff] %v15400_v63 }
  0xf3   :  { %v13050_v30 = vpop.f32.mrf.mxu0  ;;  %13296 = vmatmul.mubr.msk.f32.gmra.mxu0 %vm103_vm1, %v15366_v42  ;;  %13390 = vmatprep.mubr.msk.f32.mxu1 %vm103_vm1, %v14991_v53  ;;  %v15398_v53 = vld [vmem:[#allocation2 + $0x24a] sm:$0xff] }
  0xf4   :  { %13298 = vmatprep.mubr.msk.f32.mxu0 %vm103_vm1, %v15368_v21  ;;  %19901 = vst [vmem:[#allocation30_spill] sm:$0xff] %v15398_v53 }
  0xf5   :  { %v671_v55 = vpop.f32.mrf.mxu0  ;;  %v13148_v15 = vpop.f32.mrf.mxu1 }
  0xf6   :  { %13391 = vmatmul.mubr.msk.f32.gmra.mxu1 %vm103_vm1, %v14999_v56  ;;  %v15392_v50 = vadd.f32 %v13148_v15, %v13050_v30 }
  0xf7   :  { %v13053_v42 = vpop.f32.mrf.mxu0  ;;  %13299 = vmatmul.mubr.msk.f32.gmra.mxu0 %vm103_vm1, %v15382_v48  ;;  %13393 = vmatprep.mubr.msk.f32.mxu1 %vm103_vm1, %v15001_v61  ;;  %v1251_v24 = vpop.f32.mrf.mxu1  ;;  %v15414_v61 = vld [vmem:[#allocation2 + $0x262] sm:$0xff] }
  0xf8   :  { %13301 = vmatprep.mubr.msk.f32.mxu0 %vm103_vm1, %v15384_v20  ;;  %v15402_v60 = vadd.f32 %v1251_v24, %v671_v55  ;;  %19903 = vst [vmem:[#allocation32_spill] sm:$0xff] %v15414_v61  ;;  %v15416_v55 = vld [vmem:[#allocation2 + $0x272] sm:$0xff] }
  0xf9   :  { %v681_v9 = vpop.f32.mrf.mxu0  ;;  %v13151_v21 = vpop.f32.mrf.mxu1  ;;  %19904 = vst [vmem:[#allocation33_spill] sm:$0xff] %v15416_v55 }
  0xfa   :  { %13394 = vmatmul.mubr.msk.f32.gmra.mxu1 %vm103_vm1, %v15009_v3  ;;  %v15408_v56 = vadd.f32 %v13151_v21, %v13053_v42 }
  0xfb   :  { %v13056_v48 = vpop.f32.mrf.mxu0  ;;  %13302 = vmatmul.mubr.msk.f32.gmra.mxu0 %vm103_vm1, %v15398_v53  ;;  %13396 = vmatprep.mubr.msk.f32.mxu1 %vm103_vm1, %v15011_v7  ;;  %v1261_v30 = vpop.f32.mrf.mxu1  ;;  %v15430_v7 = vld [vmem:[#allocation2 + $0x27a] sm:$0xff] }
  0xfc   :  { %13304 = vmatprep.mubr.msk.f32.mxu0 %vm103_vm1, %v15400_v63  ;;  %v15418_v24 = vadd.f32 %v1261_v30, %v681_v9  ;;  %19905 = vst [vmem:[#allocation34_spill] sm:$0xff] %v15430_v7  ;;  %v15432_v9 = vld [vmem:[#allocation2 + $0x28a] sm:$0xff] }
  0xfd   :  { %v691_v15 = vpop.f32.mrf.mxu0  ;;  %v13154_v20 = vpop.f32.mrf.mxu1  ;;  %19906 = vst [vmem:[#allocation35_spill] sm:$0xff] %v15432_v9 }
  0xfe   :  { %13397 = vmatmul.mubr.msk.f32.gmra.mxu1 %vm103_vm1, %v15019_v17  ;;  %v15424_v3 = vadd.f32 %v13154_v20, %v13056_v48 }
  0xff   :  { %v13059_v53 = vpop.f32.mrf.mxu0  ;;  %13305 = vmatmul.mubr.msk.f32.gmra.mxu0 %vm103_vm1, %v15414_v61  ;;  %13399 = vmatprep.mubr.msk.f32.mxu1 %vm103_vm1, %v15021_v23  ;;  %v1271_v21 = vpop.f32.mrf.mxu1  ;;  %v15446_v23 = vld [vmem:[#allocation2 + $0x292] sm:$0xff] }
 0x100   :  { %13307 = vmatprep.mubr.msk.f32.mxu0 %vm103_vm1, %v15416_v55  ;;  %v15434_v30 = vadd.f32 %v1271_v21, %v691_v15  ;;  %19907 = vst [vmem:[#allocation36_spill] sm:$0xff] %v15446_v23  ;;  %v15448_v15 = vld [vmem:[#allocation2 + $0x2a2] sm:$0xff] }
 0x101   :  { %v701_v42 = vpop.f32.mrf.mxu0  ;;  %v13157_v63 = vpop.f32.mrf.mxu1  ;;  %19908 = vst [vmem:[#allocation37_spill] sm:$0xff] %v15448_v15 }
 0x102   :  { %13400 = vmatmul.mubr.msk.f32.gmra.mxu1 %vm103_vm1, %v15029_v26  ;;  %v15440_v17 = vadd.f32 %v13157_v63, %v13059_v53 }
 0x103   :  { %v13062_v61 = vpop.f32.mrf.mxu0  ;;  %13308 = vmatmul.mubr.msk.f32.gmra.mxu0 %vm103_vm1, %v15430_v7  ;;  %13402 = vmatprep.mubr.msk.f32.mxu1 %vm103_vm1, %v15031_v28  ;;  %v1281_v20 = vpop.f32.mrf.mxu1  ;;  %v15462_v28 = vld [vmem:[#allocation2 + $0x2aa] sm:$0xff] }
 0x104   :  { %13310 = vmatprep.mubr.msk.f32.mxu0 %vm103_vm1, %v15432_v9  ;;  %v15450_v21 = vadd.f32 %v1281_v20, %v701_v42  ;;  %19909 = vst [vmem:[#allocation38_spill] sm:$0xff] %v15462_v28  ;;  %v15464_v42 = vld [vmem:[#allocation2 + $0x2ba] sm:$0xff] }
 0x105   :  { %v711_v48 = vpop.f32.mrf.mxu0  ;;  %v13160_v55 = vpop.f32.mrf.mxu1  ;;  %19910 = vst [vmem:[#allocation39_spill] sm:$0xff] %v15464_v42 }
 0x106   :  { %13403 = vmatmul.mubr.msk.f32.gmra.mxu1 %vm103_vm1, %v15039_v31  ;;  %v15456_v26 = vadd.f32 %v13160_v55, %v13062_v61 }
 0x107   :  { %v13065_v7 = vpop.f32.mrf.mxu0  ;;  %13311 = vmatmul.mubr.msk.f32.gmra.mxu0 %vm103_vm1, %v15446_v23  ;;  %13405 = vmatprep.mubr.msk.f32.mxu1 %vm103_vm1, %v15041_v36  ;;  %v1291_v63 = vpop.f32.mrf.mxu1  ;;  %v15478_v36 = vld [vmem:[#allocation2 + $0x2c2] sm:$0xff] }
 0x108   :  { %13313 = vmatprep.mubr.msk.f32.mxu0 %vm103_vm1, %v15448_v15  ;;  %v15466_v20 = vadd.f32 %v1291_v63, %v711_v48  ;;  %19911 = vst [vmem:[#allocation40_spill] sm:$0xff] %v15478_v36  ;;  %v15480_v48 = vld [vmem:[#allocation2 + $0x2d2] sm:$0xff] }
 0x109   :  { %v721_v53 = vpop.f32.mrf.mxu0  ;;  %v13163_v9 = vpop.f32.mrf.mxu1  ;;  %19912 = vst [vmem:[#allocation41_spill] sm:$0xff] %v15480_v48 }
 0x10a   :  { %13406 = vmatmul.mubr.msk.f32.gmra.mxu1 %vm103_vm1, %v15049_v44  ;;  %v15472_v31 = vadd.f32 %v13163_v9, %v13065_v7 }
 0x10b   :  { %v13068_v23 = vpop.f32.mrf.mxu0  ;;  %13314 = vmatmul.mubr.msk.f32.gmra.mxu0 %vm103_vm1, %v15462_v28  ;;  %13408 = vmatprep.mubr.msk.f32.mxu1 %vm103_vm1, %v15051_v49  ;;  %v1301_v55 = vpop.f32.mrf.mxu1  ;;  %v15494_v49 = vld [vmem:[#allocation2 + $0x2da] sm:$0xff] }
 0x10c   :  { %13316 = vmatprep.mubr.msk.f32.mxu0 %vm103_vm1, %v15464_v42  ;;  %v15482_v63 = vadd.f32 %v1301_v55, %v721_v53  ;;  %19913 = vst [vmem:[#allocation42_spill] sm:$0xff] %v15494_v49  ;;  %v15496_v53 = vld [vmem:[#allocation2 + $0x2ea] sm:$0xff] }
 0x10d   :  { %v731_v61 = vpop.f32.mrf.mxu0  ;;  %v13166_v15 = vpop.f32.mrf.mxu1  ;;  %19914 = vst [vmem:[#allocation43_spill] sm:$0xff] %v15496_v53 }
 0x10e   :  { %13409 = vmatmul.mubr.msk.f32.gmra.mxu1 %vm103_vm1, %v15059_v54  ;;  %v15488_v44 = vadd.f32 %v13166_v15, %v13068_v23 }
 0x10f   :  { %v13071_v28 = vpop.f32.mrf.mxu0  ;;  %13317 = vmatmul.mubr.msk.f32.gmra.mxu0 %vm103_vm1, %v15478_v36  ;;  %13411 = vmatprep.mubr.msk.f32.mxu1 %vm103_vm1, %v15061_v0  ;;  %v1311_v9 = vpop.f32.mrf.mxu1  ;;  %v15510_v0 = vld [vmem:[#allocation2 + $0x2f2] sm:$0xff] }
 0x110   :  { %13319 = vmatprep.mubr.msk.f32.mxu0 %vm103_vm1, %v15480_v48  ;;  %v15498_v55 = vadd.f32 %v1311_v9, %v731_v61  ;;  %19915 = vst [vmem:[#allocation44_spill] sm:$0xff] %v15510_v0  ;;  %v15512_v61 = vld [vmem:[#allocation2 + $0x302] sm:$0xff] }
 0x111   :  { %v741_v7 = vpop.f32.mrf.mxu0  ;;  %v13169_v42 = vpop.f32.mrf.mxu1  ;;  %19916 = vst [vmem:[#allocation45_spill] sm:$0xff] %v15512_v61 }
 0x112   :  { %13412 = vmatmul.mubr.msk.f32.gmra.mxu1 %vm103_vm1, %v15069_v13  ;;  %v15504_v54 = vadd.f32 %v13169_v42, %v13071_v28  ;;  %v15526_v28 = vld [vmem:[#allocation2 + $0x30a] sm:$0xff] }
 0x113   :  { %v13074_v36 = vpop.f32.mrf.mxu0  ;;  %13320 = vmatmul.mubr.msk.f32.gmra.mxu0 %vm103_vm1, %v15494_v49  ;;  %13414 = vmatprep.mubr.msk.f32.mxu1 %vm103_vm1, %v15071_v25  ;;  %v1321_v15 = vpop.f32.mrf.mxu1  ;;  %v19919_v25 = vld [vmem:[#allocation8_spill] sm:$0xff] }
 0x114   :  { %13322 = vmatprep.mubr.msk.f32.mxu0 %vm103_vm1, %v15496_v53  ;;  %v15514_v9 = vadd.f32 %v1321_v15, %v741_v7  ;;  %19920 = vst [vmem:[#allocation8_spill] sm:$0xff] %v15526_v28  ;;  %v15528_v15 = vld [vmem:[#allocation2 + $0x31a] sm:$0xff] }
 0x115   :  { %v751_v23 = vpop.f32.mrf.mxu0  ;;  %v13172_v48 = vpop.f32.mrf.mxu1  ;;  %19921 = vst [vmem:[#allocation48_spill] sm:$0xff] %v15528_v15 }
 0x116   :  { %19917 = vst [vmem:[#allocation46_spill] sm:$0xff] %v15514_v9  ;;  %13415 = vmatmul.mubr.msk.f32.gmra.mxu1 %vm103_vm1, %v15079_v29  ;;  %v15520_v13 = vadd.f32 %v13172_v48, %v13074_v36  ;;  %v19923_v29 = vld [vmem:[#allocation9_spill] sm:$0xff]  ;;  %v19924_v48 = vld [vmem:[#allocation10_spill] sm:$0xff] }
 0x117   :  { %v13077_v49 = vpop.f32.mrf.mxu0  ;;  %13323 = vmatmul.mubr.msk.f32.gmra.mxu0 %vm103_vm1, %v15510_v0  ;;  %13417 = vmatprep.mubr.msk.f32.mxu1 %vm103_vm1, %v19919_v25  ;;  %v1331_v7 = vpop.f32.mrf.mxu1  ;;  %v15542_v25 = vld [vmem:[#allocation2 + $0x322] sm:$0xff] }
 0x118   :  { %19918 = vst [vmem:[#allocation47_spill] sm:$0xff] %v15520_v13  ;;  %13325 = vmatprep.mubr.msk.f32.mxu0 %vm103_vm1, %v15512_v61  ;;  %v15530_v53 = vadd.f32 %v1331_v7, %v751_v23  ;;  %19925 = vst [vmem:[#allocation9_spill] sm:$0xff] %v15542_v25  ;;  %v2960_v61 = vld [vmem:[#allocation2 + $0x19] sm:$0xff] }
 0x119   :  { %v761_v42 = vpop.f32.mrf.mxu0  ;;  %v13175_v9 = vpop.f32.mrf.mxu1 }
 0x11a   :  { %19922 = vst [vmem:[#allocation49_spill] sm:$0xff] %v15530_v53  ;;  %13418 = vmatmul.mubr.msk.f32.gmra.mxu1 %vm103_vm1, %v19923_v29  ;;  %v15536_v36 = vadd.f32 %v13175_v9, %v13077_v49  ;;  %v2961_v9 = vld [vmem:[#allocation2 + $0x21] sm:$0xff] }
 0x11b   :  { %v13080_v0 = vpop.f32.mrf.mxu0  ;;  %13326 = vmatmul.mubr.msk.f32.gmra.mxu0 %vm103_vm1, %v15526_v28  ;;  %13420 = vmatprep.mubr.msk.f32.mxu1 %vm103_vm1, %v19924_v48  ;;  %v1341_v7 = vpop.f32.mrf.mxu1 }
 0x11c   :  { %13328 = vmatprep.mubr.msk.f32.mxu0 %vm103_vm1, %v15528_v15  ;;  %v15544_v53 = vadd.f32 %v1341_v7, %v761_v42  ;;  %v11909_v42 = vld [vmem:[%s19770_s1 + $0x1c] sm:$0xf]  ;;  %v2312_v7 = vld [vmem:[#allocation2 + $0x330] sm:$0xff] }
 0x11d   :  { %v771_v23 = vpop.f32.mrf.mxu0  ;;  %v13178_v28 = vpop.f32.mrf.mxu1  ;;  %13723 = vmatprep.subr.msk.mxu1 %vm571_vm0, %v11909_v42 }
 0x11e   :  { %13421 = vmatmul.mubr.msk.f32.gmra.mxu1 %vm103_vm1, %v15107_v32  ;;  %v15550_v49 = vadd.f32 %v13178_v28, %v13080_v0  ;;  %v15561_v32 = vld [vmem:[#allocation2 + $0x31] sm:$0xff] }
 0x11f   :  { %v13083_v13 = vpop.f32.mrf.mxu0  ;;  %13329 = vmatmul.mubr.msk.f32.gmra.mxu0 %vm103_vm1, %v15542_v25  ;;  %13423 = vmatprep.mubr.msk.f32.mxu1 %vm103_vm1, %v15112_v40  ;;  %v1351_v48 = vpop.f32.mrf.mxu1  ;;  %19928 = vst [vmem:[#allocation51_spill] sm:$0xff] %v15561_v32  ;;  %v15566_v40 = vld [vmem:[%s19770_s1 + $0x20] sm:$0xf]  ;;  %s14308_s1 = smov [#allocation5]  }
 0x120   :  { %19926 = vst [vmem:[#allocation10_spill] sm:$0xff] %v15550_v49  ;;  %13431 = vmatprep.mubr.msk.f32.mxu0 %vm103_vm1, %v2960_v61  ;;  %v15559_v25 = vadd.f32 %v1351_v48, %v771_v23  ;;  %19929 = vst [vmem:[#allocation52_spill] sm:$0xff] %v15566_v40  ;;  %v2313_v23 = vld [vmem:[#allocation2 + $0x338] sm:$0xff]  ;;  %v15580_v49 = vld [vmem:[#allocation2 + $0x49] sm:$0xff]  ;;  %s11440_s29 = sshll.u32 %s14308_s1, 4  ;;  %s11441_s29 = int_to_ptr.vmem [resolvable:$true] %s11440_s29 }
 0x121   :  { %v781_v29 = vpop.f32.mrf.mxu0  ;;  %v13181_v61 = vpop.f32.mrf.mxu1  ;;  %v15576_v48 = vld [vmem:[#allocation2 + $0x39] sm:$0xff]  ;;  %19931 = vst [vmem:[#allocation54_spill] sm:$0xff] %v15580_v49  ;;  %p14289_p1 = scmp.lt.s32.totalorder %s11441_s29, %s11441_s29 }
 0x122   :  { %19927 = vst [vmem:[#allocation50_spill] sm:$0xff] %v15559_v25  ;;  %13424 = vmatmul.mubr.msk.f32.gmra.mxu1 %vm103_vm1, %v15129_v5  ;;  %v15571_v28 = vadd.f32 %v13181_v61, %v13083_v13  ;;  %19930 = vst [vmem:[#allocation53_spill] sm:$0xff] %v15576_v48 }
 0x123   :  { %v13086_v0 = vpop.f32.mrf.mxu0  ;;  %13432 = vmatmul.mubr.msk.f32.vlgmr.msra.gmra.mxu0 %vm103_vm1, %v2961_v9  ;;  %13426 = vmatprep.mubr.msk.f32.mxu1 %vm103_vm1, %v2312_v7  ;;  %v1361_v25 = vpop.f32.mrf.mxu1  ;;  %v15595_v7 = vld [vmem:[#allocation2 + $0x51] sm:$0xff] }
 0x124   :  { %13626 = vmatpush3.msk.msra.mxu0 %vm571_vm0, %v15120_v27  ;;  %13434 = vmatprep.mubr.msk.f32.mxu0 %vm103_vm1, %v15561_v32  ;;  %v15584_v5 = vadd.f32 %v1361_v25, %v781_v29  ;;  %19932 = vst [vmem:[#allocation55_spill] sm:$0xff] %v15595_v7  ;;  %v15597_v29 = vld [vmem:[#allocation2 + $0x61] sm:$0xff] }
 0x125   :  { %v791_v15 = vpop.f32.mrf.mxu0  ;;  %13821 = vmatprep.subr.msk.mxu0 %vm571_vm0, %v15566_v40  ;;  %v13184_v9 = vpop.f32.mrf.mxu1  ;;  %19933 = vst [vmem:[#allocation56_spill] sm:$0xff] %v15597_v29 }
 0x126   :  { %13427 = vmatmul.mubr.msk.f32.gmra.mxu1 %vm103_vm1, %v2313_v23  ;;  %v15589_v27 = vadd.f32 %v13184_v9, %v13086_v0  ;;  %v19935_v0 = vld [vmem:[#allocation11_spill] sm:$0xff] }
 0x127   :  { %v13089_v13 = vpop.f32.mrf.mxu0  ;;  %13435 = vmatmul.mubr.msk.f32.gmra.mxu0 %vm103_vm1, %v15576_v48  ;;  %13529 = vmatprep.mubr.msk.f32.mxu1 %vm103_vm1, %v15115_v47  ;;  %v1371_v25 = vpop.f32.mrf.mxu1  ;;  %v19936_v47 = vld [vmem:[#allocation12_spill] sm:$0xff]  ;;  %v15613_v48 = vld [vmem:[#allocation2 + $0x79] sm:$0xff] }
 0x128   :  { %13437 = vmatprep.mubr.msk.f32.mxu0 %vm103_vm1, %v15580_v49  ;;  %v15599_v32 = vadd.f32 %v1371_v25, %v791_v15  ;;  %v15611_v49 = vld [vmem:[#allocation2 + $0x69] sm:$0xff]  ;;  %19938 = vst [vmem:[#allocation12_spill] sm:$0xff] %v15613_v48 }
 0x129   :  { %v801_v61 = vpop.f32.mrf.mxu0  ;;  %v13187_v40 = vpop.f32.mrf.mxu1  ;;  %19937 = vst [vmem:[#allocation11_spill] sm:$0xff] %v15611_v49 }
 0x12a   :  { %19934 = vst [vmem:[#allocation57_spill] sm:$0xff] %v15599_v32  ;;  %13530 = vmatmul.mubr.msk.f32.vlgmr.msra.gmra.mxu1 %vm103_vm1, %v19935_v0  ;;  %v15605_v9 = vadd.f32 %v13187_v40, %v13089_v13  ;;  %v2969_v13 = vld [vmem:[#allocation2 + $0x81] sm:$0xff] }
 0x12b   :  { %v13092_v23 = vpop.f32.mrf.mxu0  ;;  %13438 = vmatmul.mubr.msk.f32.gmra.mxu0 %vm103_vm1, %v15595_v7  ;;  %13532 = vmatprep.mubr.msk.f32.mxu1 %vm103_vm1, %v19936_v47  ;;  %v1381_v25 = vpop.f32.mrf.mxu1  ;;  %v2970_v47 = vld [vmem:[#allocation2 + $0x91] sm:$0xff] }
 0x12c   :  { %13440 = vmatprep.mubr.msk.f32.mxu0 %vm103_vm1, %v15597_v29  ;;  %13724 = vmatpush3.msk.msra.mxu1 %vm571_vm0, %v11909_v42  ;;  %v15616_v7 = vadd.f32 %v1381_v25, %v801_v61 }
 0x12d   :  { %v811_v15 = vpop.f32.mrf.mxu0 }
 0x12e   :  { %19939 = vst [vmem:[#allocation58_spill] sm:$0xff] %v15616_v7  ;;  %v13190_v0 = vpop.f32.mrf.mxu1  ;;  %13533 = vmatmul.mubr.msk.f32.gmra.mxu1 %vm103_vm1, %v15147_v2 }
 0x12f   :  { %v13095_v32 = vpop.f32.mrf.mxu0  ;;  %13441 = vmatmul.mubr.msk.f32.gmra.mxu0 %vm103_vm1, %v15611_v49  ;;  %v15622_v40 = vadd.f32 %v13190_v0, %v13092_v23  ;;  %13535 = vmatprep.mubr.msk.f32.mxu1 %vm103_vm1, %v15149_v11  ;;  %v2971_v11 = vld [vmem:[#allocation2 + $0x99] sm:$0xff] }
 0x130   :  { %13443 = vmatprep.mubr.msk.f32.mxu0 %vm103_vm1, %v15613_v48  ;;  %v1391_v61 = vpop.f32.mrf.mxu1  ;;  %v2972_v48 = vld [vmem:[#allocation2 + $0xa9] sm:$0xff] }
 0x131   :  { %v821_v42 = vpop.f32.mrf.mxu0  ;;  %v15628_v25 = vadd.f32 %v1391_v61, %v811_v15 }
 0x132   :  { %v13193_v7 = vpop.f32.mrf.mxu1  ;;  %13536 = vmatmul.mubr.msk.f32.gmra.mxu1 %vm103_vm1, %v15159_v52 }
 0x133   :  { %v13098_v29 = vpop.f32.mrf.mxu0  ;;  %13444 = vmatmul.mubr.msk.f32.gmra.mxu0 %vm103_vm1, %v2969_v13  ;;  %v15633_v2 = vadd.f32 %v13193_v7, %v13095_v32  ;;  %13538 = vmatprep.mubr.msk.f32.mxu1 %vm103_vm1, %v15161_v58  ;;  %v2973_v58 = vld [vmem:[#allocation2 + $0xb1] sm:$0xff]  ;;  %v2974_v13 = vld [vmem:[#allocation2 + $0xc1] sm:$0xff] }
 0x134   :  { %13446 = vmatprep.mubr.msk.f32.mxu0 %vm103_vm1, %v2970_v47  ;;  %v1401_v0 = vpop.f32.mrf.mxu1 }
 0x135   :  { %v831_v23 = vpop.f32.mrf.mxu0  ;;  %v15638_v15 = vadd.f32 %v1401_v0, %v821_v42 }
 0x136   :  { %v13196_v49 = vpop.f32.mrf.mxu1  ;;  %13539 = vmatmul.mubr.msk.f32.gmra.mxu1 %vm103_vm1, %v15172_v33 }
 0x137   :  { %v13101_v61 = vpop.f32.mrf.mxu0  ;;  %13447 = vmatmul.mubr.msk.f32.gmra.mxu0 %vm103_vm1, %v2971_v11  ;;  %v15643_v52 = vadd.f32 %v13196_v49, %v13098_v29  ;;  %13541 = vmatprep.mubr.msk.f32.mxu1 %vm103_vm1, %v15174_v35  ;;  %v2975_v35 = vld [vmem:[#allocation2 + $0xc9] sm:$0xff]  ;;  %v2976_v29 = vld [vmem:[#allocation2 + $0xd9] sm:$0xff] }
 0x138   :  { %13449 = vmatprep.mubr.msk.f32.mxu0 %vm103_vm1, %v2972_v48  ;;  %v1411_v7 = vpop.f32.mrf.mxu1 }
 0x139   :  { %v841_v32 = vpop.f32.mrf.mxu0  ;;  %v15648_v42 = vadd.f32 %v1411_v7, %v831_v23 }
 0x13a   :  { %v13199_v0 = vpop.f32.mrf.mxu1  ;;  %13542 = vmatmul.mubr.msk.f32.gmra.mxu1 %vm103_vm1, %v15184_v37 }
 0x13b   :  { %v13104_v47 = vpop.f32.mrf.mxu0  ;;  %13450 = vmatmul.mubr.msk.f32.gmra.mxu0 %vm103_vm1, %v2973_v58  ;;  %v15653_v33 = vadd.f32 %v13199_v0, %v13101_v61  ;;  %13544 = vmatprep.mubr.msk.f32.mxu1 %vm103_vm1, %v15186_v39  ;;  %v2977_v39 = vld [vmem:[#allocation2 + $0xe1] sm:$0xff] }
 0x13c   :  { %13452 = vmatprep.mubr.msk.f32.mxu0 %vm103_vm1, %v2974_v13  ;;  %v1421_v48 = vpop.f32.mrf.mxu1  ;;  %v2978_v13 = vld [vmem:[#allocation2 + $0xf1] sm:$0xff] }
 0x13d   :  { %v851_v49 = vpop.f32.mrf.mxu0  ;;  %v15658_v11 = vadd.f32 %v1421_v48, %v841_v32 }
 0x13e   :  { %v13202_v7 = vpop.f32.mrf.mxu1  ;;  %13545 = vmatmul.mubr.msk.f32.gmra.mxu1 %vm103_vm1, %v15196_v41 }
 0x13f   :  { %v13107_v23 = vpop.f32.mrf.mxu0  ;;  %13453 = vmatmul.mubr.msk.f32.gmra.mxu0 %vm103_vm1, %v2975_v35  ;;  %v15663_v37 = vadd.f32 %v13202_v7, %v13104_v47  ;;  %13547 = vmatprep.mubr.msk.f32.mxu1 %vm103_vm1, %v15198_v43  ;;  %v2979_v43 = vld [vmem:[#allocation2 + $0xf9] sm:$0xff] }
 0x140   :  { %13455 = vmatprep.mubr.msk.f32.mxu0 %vm103_vm1, %v2976_v29  ;;  %v1431_v58 = vpop.f32.mrf.mxu1  ;;  %v2980_v29 = vld [vmem:[#allocation2 + $0x109] sm:$0xff] }
 0x141   :  { %v861_v61 = vpop.f32.mrf.mxu0  ;;  %v15668_v32 = vadd.f32 %v1431_v58, %v851_v49 }
 0x142   :  { %v13205_v48 = vpop.f32.mrf.mxu1  ;;  %13548 = vmatmul.mubr.msk.f32.gmra.mxu1 %vm103_vm1, %v15208_v46 }
 0x143   :  { %v13110_v0 = vpop.f32.mrf.mxu0  ;;  %13456 = vmatmul.mubr.msk.f32.gmra.mxu0 %vm103_vm1, %v2977_v39  ;;  %v15673_v41 = vadd.f32 %v13205_v48, %v13107_v23  ;;  %13550 = vmatprep.mubr.msk.f32.mxu1 %vm103_vm1, %v15210_v59  ;;  %v2981_v59 = vld [vmem:[#allocation2 + $0x111] sm:$0xff] }
 0x144   :  { %13458 = vmatprep.mubr.msk.f32.mxu0 %vm103_vm1, %v2978_v13  ;;  %v1441_v35 = vpop.f32.mrf.mxu1  ;;  %v2982_v13 = vld [vmem:[#allocation2 + $0x121] sm:$0xff] }
 0x145   :  { %v871_v47 = vpop.f32.mrf.mxu0  ;;  %v15678_v49 = vadd.f32 %v1441_v35, %v861_v61 }
 0x146   :  { %v13208_v58 = vpop.f32.mrf.mxu1  ;;  %13551 = vmatmul.mubr.msk.f32.gmra.mxu1 %vm103_vm1, %v15220_v62 }
 0x147   :  { %v13113_v7 = vpop.f32.mrf.mxu0  ;;  %13459 = vmatmul.mubr.msk.f32.gmra.mxu0 %vm103_vm1, %v2979_v43  ;;  %v15683_v46 = vadd.f32 %v13208_v58, %v13110_v0  ;;  %13553 = vmatprep.mubr.msk.f32.mxu1 %vm103_vm1, %v15222_v6  ;;  %v2983_v6 = vld [vmem:[#allocation2 + $0x129] sm:$0xff] }
 0x148   :  { %13461 = vmatprep.mubr.msk.f32.mxu0 %vm103_vm1, %v2980_v29  ;;  %v1451_v39 = vpop.f32.mrf.mxu1  ;;  %v2984_v29 = vld [vmem:[#allocation2 + $0x139] sm:$0xff] }
 0x149   :  { %v881_v23 = vpop.f32.mrf.mxu0  ;;  %v15688_v61 = vadd.f32 %v1451_v39, %v871_v47 }
 0x14a   :  { %v13211_v35 = vpop.f32.mrf.mxu1  ;;  %13554 = vmatmul.mubr.msk.f32.gmra.mxu1 %vm103_vm1, %v15232_v8 }
 0x14b   :  { %v13116_v48 = vpop.f32.mrf.mxu0  ;;  %13462 = vmatmul.mubr.msk.f32.gmra.mxu0 %vm103_vm1, %v2981_v59  ;;  %v15693_v62 = vadd.f32 %v13211_v35, %v13113_v7  ;;  %13556 = vmatprep.mubr.msk.f32.mxu1 %vm103_vm1, %v15234_v10  ;;  %v2985_v10 = vld [vmem:[#allocation2 + $0x141] sm:$0xff] }
 0x14c   :  { %13464 = vmatprep.mubr.msk.f32.mxu0 %vm103_vm1, %v2982_v13  ;;  %v1461_v43 = vpop.f32.mrf.mxu1  ;;  %v2986_v13 = vld [vmem:[#allocation2 + $0x151] sm:$0xff] }
 0x14d   :  { %v891_v0 = vpop.f32.mrf.mxu0  ;;  %v15698_v47 = vadd.f32 %v1461_v43, %v881_v23 }
 0x14e   :  { %v13214_v39 = vpop.f32.mrf.mxu1  ;;  %13557 = vmatmul.mubr.msk.f32.gmra.mxu1 %vm103_vm1, %v15244_v12 }
 0x14f   :  { %v13119_v58 = vpop.f32.mrf.mxu0  ;;  %13465 = vmatmul.mubr.msk.f32.gmra.mxu0 %vm103_vm1, %v2983_v6  ;;  %v15703_v8 = vadd.f32 %v13214_v39, %v13116_v48  ;;  %13559 = vmatprep.mubr.msk.f32.mxu1 %vm103_vm1, %v15246_v14  ;;  %v2987_v14 = vld [vmem:[#allocation2 + $0x159] sm:$0xff] }
 0x150   :  { %13467 = vmatprep.mubr.msk.f32.mxu0 %vm103_vm1, %v2984_v29  ;;  %v1471_v59 = vpop.f32.mrf.mxu1  ;;  %v2988_v29 = vld [vmem:[#allocation2 + $0x169] sm:$0xff] }
 0x151   :  { %v901_v7 = vpop.f32.mrf.mxu0  ;;  %v15708_v23 = vadd.f32 %v1471_v59, %v891_v0 }
 0x152   :  { %v13217_v43 = vpop.f32.mrf.mxu1  ;;  %13560 = vmatmul.mubr.msk.f32.gmra.mxu1 %vm103_vm1, %v15256_v16 }
 0x153   :  { %v13122_v35 = vpop.f32.mrf.mxu0  ;;  %13468 = vmatmul.mubr.msk.f32.gmra.mxu0 %vm103_vm1, %v2985_v10  ;;  %v15713_v12 = vadd.f32 %v13217_v43, %v13119_v58  ;;  %13562 = vmatprep.mubr.msk.f32.mxu1 %vm103_vm1, %v15258_v19  ;;  %v2989_v19 = vld [vmem:[#allocation2 + $0x171] sm:$0xff] }
 0x154   :  { %13470 = vmatprep.mubr.msk.f32.mxu0 %vm103_vm1, %v2986_v13  ;;  %v1481_v6 = vpop.f32.mrf.mxu1  ;;  %v2990_v13 = vld [vmem:[#allocation2 + $0x181] sm:$0xff] }
 0x155   :  { %v911_v48 = vpop.f32.mrf.mxu0  ;;  %v15718_v0 = vadd.f32 %v1481_v6, %v901_v7 }
 0x156   :  { %v13220_v59 = vpop.f32.mrf.mxu1  ;;  %13563 = vmatmul.mubr.msk.f32.gmra.mxu1 %vm103_vm1, %v15268_v22 }
 0x157   :  { %v13125_v39 = vpop.f32.mrf.mxu0  ;;  %13471 = vmatmul.mubr.msk.f32.gmra.mxu0 %vm103_vm1, %v2987_v14  ;;  %v15723_v16 = vadd.f32 %v13220_v59, %v13122_v35  ;;  %13565 = vmatprep.mubr.msk.f32.mxu1 %vm103_vm1, %v15270_v34  ;;  %v19943_v35 = vld [vmem:[#allocation13_spill] sm:$0xff] }
 0x158   :  { %13473 = vmatprep.mubr.msk.f32.mxu0 %vm103_vm1, %v2988_v29  ;;  %v1491_v10 = vpop.f32.mrf.mxu1  ;;  %v2991_v34 = vld [vmem:[#allocation2 + $0x189] sm:$0xff] }
 0x159   :  { %19940 = vst [vmem:[#allocation59_spill] sm:$0xff] %v15723_v16  ;;  %v921_v58 = vpop.f32.mrf.mxu0  ;;  %v15728_v7 = vadd.f32 %v1491_v10, %v911_v48  ;;  %v2992_v59 = vld [vmem:[#allocation2 + $0x1c9] sm:$0xff] }
 0x15a   :  { %v13223_v6 = vpop.f32.mrf.mxu1  ;;  %13566 = vmatmul.mubr.msk.f32.gmra.mxu1 %vm103_vm1, %v15280_v51 }
 0x15b   :  { %19941 = vst [vmem:[#allocation60_spill] sm:$0xff] %v15728_v7  ;;  %v13128_v43 = vpop.f32.mrf.mxu0  ;;  %13474 = vmatmul.mubr.msk.f32.gmra.mxu0 %vm103_vm1, %v2989_v19  ;;  %v15733_v22 = vadd.f32 %v13223_v6, %v13125_v39  ;;  %13568 = vmatprep.mubr.msk.f32.mxu1 %vm103_vm1, %v19943_v35  ;;  %v19945_v19 = vld [vmem:[#allocation14_spill] sm:$0xff]  ;;  %v19947_v39 = vld [vmem:[#allocation15_spill] sm:$0xff] }
 0x15c   :  { %13476 = vmatprep.mubr.msk.f32.mxu0 %vm103_vm1, %v2990_v13  ;;  %v1501_v29 = vpop.f32.mrf.mxu1  ;;  %v2993_v13 = vld [vmem:[#allocation2 + $0x1d1] sm:$0xff] }
 0x15d   :  { %19942 = vst [vmem:[#allocation61_spill] sm:$0xff] %v15733_v22  ;;  %v931_v14 = vpop.f32.mrf.mxu0  ;;  %v15738_v48 = vadd.f32 %v1501_v29, %v921_v58  ;;  %v2994_v22 = vld [vmem:[#allocation2 + $0x1e1] sm:$0xff] }
 0x15e   :  { %v13226_v7 = vpop.f32.mrf.mxu1  ;;  %13569 = vmatmul.mubr.msk.f32.gmra.mxu1 %vm103_vm1, %v19945_v19  ;;  %v3700_v58 = vld [vmem:[#allocation2 + $0x182] sm:$0xff]  ;;  %v3701_v19 = vld [vmem:[#allocation2 + $0x18a] sm:$0xff] }
 0x15f   :  { %19944 = vst [vmem:[#allocation13_spill] sm:$0xff] %v15738_v48  ;;  %v13131_v10 = vpop.f32.mrf.mxu0  ;;  %13477 = vmatmul.mubr.msk.f32.gmra.mxu0 %vm103_vm1, %v2991_v34  ;;  %v15743_v51 = vadd.f32 %v13226_v7, %v13128_v43  ;;  %13571 = vmatprep.mubr.msk.f32.mxu1 %vm103_vm1, %v19947_v39  ;;  %v19949_v34 = vld [vmem:[#allocation16_spill] sm:$0xff] }
 0x160   :  { %13479 = vmatprep.mubr.msk.f32.mxu0 %vm103_vm1, %v2992_v59  ;;  %v1511_v35 = vpop.f32.mrf.mxu1  ;;  %v2995_v59 = vld [vmem:[#allocation2 + $0x1e9] sm:$0xff] }
 0x161   :  { %19946 = vst [vmem:[#allocation14_spill] sm:$0xff] %v15743_v51  ;;  %v941_v6 = vpop.f32.mrf.mxu0  ;;  %v15748_v29 = vadd.f32 %v1511_v35, %v931_v14  ;;  %v2996_v35 = vld [vmem:[#allocation2 + $0x1f9] sm:$0xff] }
 0x162   :  { %v13229_v48 = vpop.f32.mrf.mxu1  ;;  %13572 = vmatmul.mubr.msk.f32.gmra.mxu1 %vm103_vm1, %v19949_v34 }
 0x163   :  { %19948 = vst [vmem:[#allocation15_spill] sm:$0xff] %v15748_v29  ;;  %v13237_v16 = vpop.f32.mrf.mxu0  ;;  %13480 = vmatmul.mubr.msk.f32.gmra.mxu0 %vm103_vm1, %v2993_v13  ;;  %v15753_v7 = vadd.f32 %v13229_v48, %v13131_v10  ;;  %13574 = vmatprep.mubr.msk.f32.mxu1 %vm103_vm1, %v3700_v58 }
 0x164   :  { %v2187_v43 = vadd.f32 %v13237_v16, %v15344_v18  ;;  %13482 = vmatprep.mubr.msk.f32.mxu0 %vm103_vm1, %v2994_v22  ;;  %v1521_v39 = vpop.f32.mrf.mxu1  ;;  %v19951_v16 = vld [vmem:[#allocation17_spill] sm:$0xff]  ;;  %v2997_v22 = vld [vmem:[#allocation2 + $0x201] sm:$0xff] }
 0x165   :  { %v1867_v14 = vpop.f32.mrf.mxu0  ;;  %v15758_v29 = vadd.f32 %v1521_v39, %v941_v6  ;;  %v2998_v6 = vld [vmem:[#allocation2 + $0x211] sm:$0xff] }
 0x166   :  { %v2186_v13 = vadd.f32 %v1867_v14, %v15354_v57  ;;  %v15761_v51 = vpop.f32.mrf.mxu1  ;;  %13575 = vmatmul.mubr.msk.f32.gmra.mxu1 %vm103_vm1, %v3701_v19  ;;  %v19954_v14 = vld [vmem:[#allocation19_spill] sm:$0xff] }
 0x167   :  { %19950 = vst [vmem:[#allocation16_spill] sm:$0xff] %v15758_v29  ;;  %v13240_v34 = vpop.f32.mrf.mxu0  ;;  %13483 = vmatmul.mubr.msk.f32.gmra.mxu0 %vm103_vm1, %v2995_v59  ;;  %13577 = vmatprep.mubr.msk.f32.mxu1 %vm103_vm1, %v19951_v16  ;;  %v19953_v59 = vld [vmem:[#allocation18_spill] sm:$0xff] }
 0x168   :  { %v2189_v18 = vadd.f32 %v13240_v34, %v15360_v38  ;;  %13485 = vmatprep.mubr.msk.f32.mxu0 %vm103_vm1, %v2996_v35  ;;  %v15769_v48 = vpop.f32.mrf.mxu1  ;;  %v2999_v35 = vld [vmem:[#allocation2 + $0x219] sm:$0xff] }
 0x169   :  { %19952 = vst [vmem:[#allocation17_spill] sm:$0xff] %v15769_v48  ;;  %v1877_v10 = vpop.f32.mrf.mxu0 }
 0x16a   :  { %v2188_v57 = vadd.f32 %v1877_v10, %v15370_v4  ;;  %v13335_v39 = vpop.f32.mrf.mxu1  ;;  %13578 = vmatmul.mubr.msk.f32.gmra.mxu1 %vm103_vm1, %v19953_v59  ;;  %v3000_v4 = vld [vmem:[#allocation2 + $0x229] sm:$0xff]  ;;  %v3002_v59 = vld [vmem:[#allocation2 + $0x241] sm:$0xff] }
 0x16b   :  { %v13243_v58 = vpop.f32.mrf.mxu0  ;;  %13486 = vmatmul.mubr.msk.f32.gmra.mxu0 %vm103_vm1, %v2997_v22  ;;  %v15776_v19 = vadd.f32 %v13335_v39, %v2187_v43  ;;  %13580 = vmatprep.mubr.msk.f32.mxu1 %vm103_vm1, %v19954_v14  ;;  %v3001_v39 = vld [vmem:[#allocation2 + $0x231] sm:$0xff] }
 0x16c   :  { %v2191_v38 = vadd.f32 %v13243_v58, %v15376_v45  ;;  %13488 = vmatprep.mubr.msk.f32.mxu0 %vm103_vm1, %v2998_v6  ;;  %v2577_v16 = vpop.f32.mrf.mxu1  ;;  %v19955_v45 = vld [vmem:[#allocation21_spill] sm:$0xff]  ;;  %v19956_v58 = vld [vmem:[#allocation23_spill] sm:$0xff] }
 0x16d   :  { %v1887_v34 = vpop.f32.mrf.mxu0  ;;  %v15782_v48 = vadd.f32 %v2577_v16, %v2186_v13 }
 0x16e   :  { %v2190_v10 = vadd.f32 %v1887_v34, %v15386_v1  ;;  %v13338_v29 = vpop.f32.mrf.mxu1  ;;  %13581 = vmatmul.mubr.msk.f32.gmra.mxu1 %vm103_vm1, %v19955_v45  ;;  %v3004_v45 = vld [vmem:[#allocation2 + $0x259] sm:$0xff] }
 0x16f   :  { %v13246_v22 = vpop.f32.mrf.mxu0  ;;  %13489 = vmatmul.mubr.msk.f32.gmra.mxu0 %vm103_vm1, %v2999_v35  ;;  %v15788_v6 = vadd.f32 %v13338_v29, %v2189_v18  ;;  %13583 = vmatprep.mubr.msk.f32.mxu1 %vm103_vm1, %v19956_v58 }
 0x170   :  { %v2193_v43 = vadd.f32 %v13246_v22, %v15392_v50  ;;  %13491 = vmatprep.mubr.msk.f32.mxu0 %vm103_vm1, %v3000_v4  ;;  %v2587_v13 = vpop.f32.mrf.mxu1  ;;  %v19957_v50 = vld [vmem:[#allocation24_spill] sm:$0xff]  ;;  %v19958_v4 = vld [vmem:[#allocation25_spill] sm:$0xff] }
 0x171   :  { %v1897_v1 = vpop.f32.mrf.mxu0  ;;  %v15794_v34 = vadd.f32 %v2587_v13, %v2188_v57  ;;  %v3003_v22 = vld [vmem:[#allocation2 + $0x249] sm:$0xff] }
 0x172   :  { %v2192_v14 = vadd.f32 %v1897_v1, %v15402_v60  ;;  %v13341_v16 = vpop.f32.mrf.mxu1  ;;  %13584 = vmatmul.mubr.msk.f32.gmra.mxu1 %vm103_vm1, %v19957_v50  ;;  %v3006_v50 = vld [vmem:[#allocation2 + $0x271] sm:$0xff] }
 0x173   :  { %v13249_v35 = vpop.f32.mrf.mxu0  ;;  %13492 = vmatmul.mubr.msk.f32.gmra.mxu0 %vm103_vm1, %v3001_v39  ;;  %v15800_v18 = vadd.f32 %v13341_v16, %v2191_v38  ;;  %13586 = vmatprep.mubr.msk.f32.mxu1 %vm103_vm1, %v19958_v4  ;;  %v3005_v16 = vld [vmem:[#allocation2 + $0x261] sm:$0xff] }
 0x174   :  { %v2195_v29 = vadd.f32 %v13249_v35, %v15408_v56  ;;  %13494 = vmatprep.mubr.msk.f32.mxu0 %vm103_vm1, %v3002_v59  ;;  %v2597_v57 = vpop.f32.mrf.mxu1  ;;  %v19959_v56 = vld [vmem:[#allocation26_spill] sm:$0xff]  ;;  %v19960_v35 = vld [vmem:[#allocation27_spill] sm:$0xff] }
 0x175   :  { %v1907_v60 = vpop.f32.mrf.mxu0  ;;  %v15806_v1 = vadd.f32 %v2597_v57, %v2190_v10 }
 0x176   :  { %v2194_v58 = vadd.f32 %v1907_v60, %v15418_v24  ;;  %v13344_v13 = vpop.f32.mrf.mxu1  ;;  %13587 = vmatmul.mubr.msk.f32.gmra.mxu1 %vm103_vm1, %v19959_v56  ;;  %v3008_v56 = vld [vmem:[#allocation2 + $0x289] sm:$0xff] }
 0x177   :  { %v13252_v39 = vpop.f32.mrf.mxu0  ;;  %13495 = vmatmul.mubr.msk.f32.gmra.mxu0 %vm103_vm1, %v3003_v22  ;;  %v15812_v59 = vadd.f32 %v13344_v13, %v2193_v43  ;;  %13589 = vmatprep.mubr.msk.f32.mxu1 %vm103_vm1, %v19960_v35  ;;  %v3007_v13 = vld [vmem:[#allocation2 + $0x279] sm:$0xff] }
 0x178   :  { %v2197_v38 = vadd.f32 %v13252_v39, %v15424_v3  ;;  %13497 = vmatprep.mubr.msk.f32.mxu0 %vm103_vm1, %v3004_v45  ;;  %v2607_v10 = vpop.f32.mrf.mxu1  ;;  %v19961_v3 = vld [vmem:[#allocation28_spill] sm:$0xff]  ;;  %v19962_v39 = vld [vmem:[#allocation29_spill] sm:$0xff] }
 0x179   :  { %v1917_v24 = vpop.f32.mrf.mxu0  ;;  %v15818_v60 = vadd.f32 %v2607_v10, %v2192_v14 }
 0x17a   :  { %v2196_v4 = vadd.f32 %v1917_v24, %v15434_v30  ;;  %v13347_v57 = vpop.f32.mrf.mxu1  ;;  %13590 = vmatmul.mubr.msk.f32.gmra.mxu1 %vm103_vm1, %v19961_v3  ;;  %v3010_v3 = vld [vmem:[#allocation2 + $0x2a1] sm:$0xff] }
 0x17b   :  { %v13255_v22 = vpop.f32.mrf.mxu0  ;;  %13498 = vmatmul.mubr.msk.f32.gmra.mxu0 %vm103_vm1, %v3005_v16  ;;  %v15824_v45 = vadd.f32 %v13347_v57, %v2195_v29  ;;  %13592 = vmatprep.mubr.msk.f32.mxu1 %vm103_vm1, %v19962_v39  ;;  %v3009_v57 = vld [vmem:[#allocation2 + $0x291] sm:$0xff] }
 0x17c   :  { %v2199_v43 = vadd.f32 %v13255_v22, %v15440_v17  ;;  %13500 = vmatprep.mubr.msk.f32.mxu0 %vm103_vm1, %v3006_v50  ;;  %v2617_v14 = vpop.f32.mrf.mxu1  ;;  %v19963_v17 = vld [vmem:[#allocation30_spill] sm:$0xff]  ;;  %v19964_v22 = vld [vmem:[#allocation31_spill] sm:$0xff] }
 0x17d   :  { %v1927_v30 = vpop.f32.mrf.mxu0  ;;  %v15830_v24 = vadd.f32 %v2617_v14, %v2194_v58 }
 0x17e   :  { %v2198_v35 = vadd.f32 %v1927_v30, %v15450_v21  ;;  %v13350_v10 = vpop.f32.mrf.mxu1  ;;  %13593 = vmatmul.mubr.msk.f32.gmra.mxu1 %vm103_vm1, %v19963_v17  ;;  %v3012_v17 = vld [vmem:[#allocation2 + $0x2b9] sm:$0xff] }
 0x17f   :  { %v13258_v16 = vpop.f32.mrf.mxu0  ;;  %13501 = vmatmul.mubr.msk.f32.gmra.mxu0 %vm103_vm1, %v3007_v13  ;;  %v15836_v50 = vadd.f32 %v13350_v10, %v2197_v38  ;;  %13595 = vmatprep.mubr.msk.f32.mxu1 %vm103_vm1, %v19964_v22  ;;  %v3011_v10 = vld [vmem:[#allocation2 + $0x2a9] sm:$0xff] }
 0x180   :  { %v2201_v29 = vadd.f32 %v13258_v16, %v15456_v26  ;;  %13503 = vmatprep.mubr.msk.f32.mxu0 %vm103_vm1, %v3008_v56  ;;  %v2627_v58 = vpop.f32.mrf.mxu1  ;;  %v19965_v26 = vld [vmem:[#allocation32_spill] sm:$0xff]  ;;  %v19966_v16 = vld [vmem:[#allocation33_spill] sm:$0xff] }
 0x181   :  { %v1937_v21 = vpop.f32.mrf.mxu0  ;;  %v15842_v30 = vadd.f32 %v2627_v58, %v2196_v4 }
 0x182   :  { %v2200_v39 = vadd.f32 %v1937_v21, %v15466_v20  ;;  %v13353_v14 = vpop.f32.mrf.mxu1  ;;  %13596 = vmatmul.mubr.msk.f32.gmra.mxu1 %vm103_vm1, %v19965_v26  ;;  %v3014_v26 = vld [vmem:[#allocation2 + $0x2d1] sm:$0xff] }
 0x183   :  { %v13261_v13 = vpop.f32.mrf.mxu0  ;;  %13504 = vmatmul.mubr.msk.f32.gmra.mxu0 %vm103_vm1, %v3009_v57  ;;  %v15848_v56 = vadd.f32 %v13353_v14, %v2199_v43  ;;  %13598 = vmatprep.mubr.msk.f32.mxu1 %vm103_vm1, %v19966_v16  ;;  %v3013_v14 = vld [vmem:[#allocation2 + $0x2c1] sm:$0xff] }
 0x184   :  { %v2203_v38 = vadd.f32 %v13261_v13, %v15472_v31  ;;  %13506 = vmatprep.mubr.msk.f32.mxu0 %vm103_vm1, %v3010_v3  ;;  %v2637_v4 = vpop.f32.mrf.mxu1  ;;  %v19967_v31 = vld [vmem:[#allocation34_spill] sm:$0xff]  ;;  %v19968_v13 = vld [vmem:[#allocation35_spill] sm:$0xff] }
 0x185   :  { %v1947_v20 = vpop.f32.mrf.mxu0  ;;  %v15854_v21 = vadd.f32 %v2637_v4, %v2198_v35 }
 0x186   :  { %v2202_v22 = vadd.f32 %v1947_v20, %v15482_v63  ;;  %v13356_v58 = vpop.f32.mrf.mxu1  ;;  %13599 = vmatmul.mubr.msk.f32.gmra.mxu1 %vm103_vm1, %v19967_v31  ;;  %v3016_v31 = vld [vmem:[#allocation2 + $0x2e9] sm:$0xff] }
 0x187   :  { %v13264_v57 = vpop.f32.mrf.mxu0  ;;  %13507 = vmatmul.mubr.msk.f32.gmra.mxu0 %vm103_vm1, %v3011_v10  ;;  %v15860_v3 = vadd.f32 %v13356_v58, %v2201_v29  ;;  %13601 = vmatprep.mubr.msk.f32.mxu1 %vm103_vm1, %v19968_v13  ;;  %v3015_v58 = vld [vmem:[#allocation2 + $0x2d9] sm:$0xff] }
 0x188   :  { %v2205_v43 = vadd.f32 %v13264_v57, %v15488_v44  ;;  %13509 = vmatprep.mubr.msk.f32.mxu0 %vm103_vm1, %v3012_v17  ;;  %v2647_v35 = vpop.f32.mrf.mxu1  ;;  %v19970_v44 = vld [vmem:[#allocation36_spill] sm:$0xff]  ;;  %v19972_v57 = vld [vmem:[#allocation37_spill] sm:$0xff]  ;;  %v19973_v13 = vld [vmem:[#allocation46_spill] sm:$0xff] }
 0x189   :  { %v1957_v63 = vpop.f32.mrf.mxu0  ;;  %v15866_v20 = vadd.f32 %v2647_v35, %v2200_v39 }
 0x18a   :  { %v2204_v16 = vadd.f32 %v1957_v63, %v15498_v55  ;;  %v13359_v4 = vpop.f32.mrf.mxu1  ;;  %13602 = vmatmul.mubr.msk.f32.gmra.mxu1 %vm103_vm1, %v19970_v44  ;;  %v3017_v44 = vld [vmem:[#allocation2 + $0x2f1] sm:$0xff] }
 0x18b   :  { %19969 = vst [vmem:[#allocation18_spill] sm:$0xff] %v15866_v20  ;;  %v13267_v10 = vpop.f32.mrf.mxu0  ;;  %13510 = vmatmul.mubr.msk.f32.gmra.mxu0 %vm103_vm1, %v3013_v14  ;;  %v15872_v17 = vadd.f32 %v13359_v4, %v2203_v38  ;;  %13604 = vmatprep.mubr.msk.f32.mxu1 %vm103_vm1, %v19972_v57  ;;  %v19976_v38 = vld [vmem:[#allocation47_spill] sm:$0xff] }
 0x18c   :  { %v2207_v29 = vadd.f32 %v13267_v10, %v15504_v54  ;;  %13512 = vmatprep.mubr.msk.f32.mxu0 %vm103_vm1, %v3014_v26  ;;  %v2657_v39 = vpop.f32.mrf.mxu1  ;;  %v19975_v54 = vld [vmem:[#allocation38_spill] sm:$0xff]  ;;  %v19977_v4 = vld [vmem:[#allocation39_spill] sm:$0xff] }
 0x18d   :  { %19971 = vst [vmem:[#allocation19_spill] sm:$0xff] %v15872_v17  ;;  %v1967_v55 = vpop.f32.mrf.mxu0  ;;  %v15878_v35 = vadd.f32 %v2657_v39, %v2202_v22  ;;  %v19978_v39 = vld [vmem:[#allocation49_spill] sm:$0xff] }
 0x18e   :  { %v2206_v63 = vadd.f32 %v1967_v55, %v19973_v13  ;;  %v13362_v20 = vpop.f32.mrf.mxu1  ;;  %13605 = vmatmul.mubr.msk.f32.gmra.mxu1 %vm103_vm1, %v19975_v54  ;;  %v3018_v55 = vld [vmem:[#allocation2 + $0x301] sm:$0xff]  ;;  %v3019_v54 = vld [vmem:[#allocation2 + $0x309] sm:$0xff] }
 0x18f   :  { %19974 = vst [vmem:[#allocation21_spill] sm:$0xff] %v15878_v35  ;;  %v13270_v14 = vpop.f32.mrf.mxu0  ;;  %13513 = vmatmul.mubr.msk.f32.gmra.mxu0 %vm103_vm1, %v3015_v58  ;;  %v15884_v10 = vadd.f32 %v13362_v20, %v2205_v43  ;;  %13607 = vmatprep.mubr.msk.f32.mxu1 %vm103_vm1, %v19977_v4  ;;  %v3020_v4 = vld [vmem:[#allocation2 + $0x319] sm:$0xff] }
 0x190   :  { %v2209_v26 = vadd.f32 %v13270_v14, %v19976_v38  ;;  %13515 = vmatprep.mubr.msk.f32.mxu0 %vm103_vm1, %v3016_v31  ;;  %v2667_v22 = vpop.f32.mrf.mxu1  ;;  %v19979_v14 = vld [vmem:[#allocation40_spill] sm:$0xff]  ;;  %v19981_v31 = vld [vmem:[#allocation41_spill] sm:$0xff] }
 0x191   :  { %v1977_v57 = vpop.f32.mrf.mxu0  ;;  %v15890_v35 = vadd.f32 %v2667_v22, %v2204_v16 }
 0x192   :  { %v2208_v13 = vadd.f32 %v1977_v57, %v19978_v39  ;;  %v13365_v17 = vpop.f32.mrf.mxu1  ;;  %13608 = vmatmul.mubr.msk.f32.gmra.mxu1 %vm103_vm1, %v19979_v14  ;;  %v3021_v14 = vld [vmem:[#allocation2 + $0x321] sm:$0xff] }
 0x193   :  { %v13273_v58 = vpop.f32.mrf.mxu0  ;;  %13516 = vmatmul.mubr.msk.f32.gmra.mxu0 %vm103_vm1, %v3017_v44  ;;  %v15896_v20 = vadd.f32 %v13365_v17, %v2207_v29  ;;  %13610 = vmatprep.mubr.msk.f32.mxu1 %vm103_vm1, %v19981_v31  ;;  %v19984_v29 = vld [vmem:[#allocation10_spill] sm:$0xff] }
 0x194   :  { %v2211_v43 = vadd.f32 %v13273_v58, %v15536_v36  ;;  %13518 = vmatprep.mubr.msk.f32.mxu0 %vm103_vm1, %v3018_v55  ;;  %v2677_v16 = vpop.f32.mrf.mxu1  ;;  %v19983_v36 = vld [vmem:[#allocation42_spill] sm:$0xff]  ;;  %v19985_v58 = vld [vmem:[#allocation43_spill] sm:$0xff] }
 0x195   :  { %19980 = vst [vmem:[#allocation23_spill] sm:$0xff] %v15896_v20  ;;  %v1987_v38 = vpop.f32.mrf.mxu0  ;;  %v15902_v22 = vadd.f32 %v2677_v16, %v2206_v63  ;;  %v3022_v31 = vld [vmem:[#allocation2 + $0x331] sm:$0xff] }
 0x196   :  { %v2210_v57 = vadd.f32 %v1987_v38, %v15544_v53  ;;  %v13368_v39 = vpop.f32.mrf.mxu1  ;;  %13611 = vmatmul.mubr.msk.f32.gmra.mxu1 %vm103_vm1, %v19983_v36  ;;  %v19986_v38 = vld [vmem:[#allocation50_spill] sm:$0xff] }
 0x197   :  { %19982 = vst [vmem:[#allocation24_spill] sm:$0xff] %v15902_v22  ;;  %v13276_v44 = vpop.f32.mrf.mxu0  ;;  %13519 = vmatmul.mubr.msk.f32.gmra.mxu0 %vm103_vm1, %v3019_v54  ;;  %v15908_v55 = vadd.f32 %v13368_v39, %v2209_v26  ;;  %13613 = vmatprep.mubr.msk.f32.mxu1 %vm103_vm1, %v19985_v58  ;;  %v19989_v39 = vld [vmem:[#allocation45_spill] sm:$0xff]  ;;  %v3023_v36 = vld [vmem:[#allocation2 + $0x339] sm:$0xff] }
 0x198   :  { %v2213_v17 = vadd.f32 %v13276_v44, %v19984_v29  ;;  %13521 = vmatprep.mubr.msk.f32.mxu0 %vm103_vm1, %v3020_v4  ;;  %v2687_v63 = vpop.f32.mrf.mxu1  ;;  %v19987_v44 = vld [vmem:[#allocation44_spill] sm:$0xff]  ;;  %v4381_v58 = vld [vmem:[#allocation2 + $0x30] sm:$0xff] }
 0x199   :  { %v1997_v53 = vpop.f32.mrf.mxu0  ;;  %v15914_v22 = vadd.f32 %v2687_v63, %v2208_v13 }
 0x19a   :  { %v2212_v16 = vadd.f32 %v1997_v53, %v19986_v38  ;;  %v13371_v20 = vpop.f32.mrf.mxu1  ;;  %13614 = vmatmul.mubr.msk.f32.gmra.mxu1 %vm103_vm1, %v19987_v44  ;;  %v3732_v44 = vld [vmem:[#allocation2 + $0x332] sm:$0xff] }
 0x19b   :  { %v13279_v54 = vpop.f32.mrf.mxu0  ;;  %13522 = vmatmul.mubr.msk.f32.gmra.mxu0 %vm103_vm1, %v3021_v14  ;;  %v15920_v4 = vadd.f32 %v13371_v20, %v2211_v43  ;;  %13616 = vmatprep.mubr.msk.f32.mxu1 %vm103_vm1, %v19989_v39  ;;  %v19993_v39 = vld [vmem:[#allocation57_spill] sm:$0xff] }
 0x19c   :  { %v2215_v26 = vadd.f32 %v13279_v54, %v15571_v28  ;;  %13524 = vmatprep.mubr.msk.f32.mxu0 %vm103_vm1, %v3022_v31  ;;  %v2697_v13 = vpop.f32.mrf.mxu1  ;;  %v19991_v28 = vld [vmem:[#allocation8_spill] sm:$0xff]  ;;  %v4382_v54 = vld [vmem:[#allocation2 + $0x38] sm:$0xff] }
 0x19d   :  { %19988 = vst [vmem:[#allocation25_spill] sm:$0xff] %v15920_v4  ;;  %v2007_v29 = vpop.f32.mrf.mxu0  ;;  %v15926_v63 = vadd.f32 %v2697_v13, %v2210_v57  ;;  %v19992_v31 = vld [vmem:[#allocation48_spill] sm:$0xff]  ;;  %v19994_v4 = vld [vmem:[#allocation9_spill] sm:$0xff] }
 0x19e   :  { %v2214_v53 = vadd.f32 %v2007_v29, %v15584_v5  ;;  %v13374_v38 = vpop.f32.mrf.mxu1  ;;  %13617 = vmatmul.mubr.msk.f32.gmra.mxu1 %vm103_vm1, %v19991_v28 }
 0x19f   :  { %19990 = vst [vmem:[#allocation26_spill] sm:$0xff] %v15926_v63  ;;  %v13282_v14 = vpop.f32.mrf.mxu0  ;;  %13525 = vmatmul.mubr.msk.f32.gmra.mxu0 %vm103_vm1, %v3023_v36  ;;  %v15932_v20 = vadd.f32 %v13374_v38, %v2213_v17  ;;  %13619 = vmatprep.mubr.msk.f32.mxu1 %vm103_vm1, %v19992_v31  ;;  %v4383_v36 = vld [vmem:[#allocation2 + $0x48] sm:$0xff] }
 0x1a0   :  { %v2217_v43 = vadd.f32 %v13282_v14, %v15589_v27  ;;  %13627 = vmatprep.mubr.msk.f32.mxu0 %vm103_vm1, %v4381_v58  ;;  %v2707_v57 = vpop.f32.mrf.mxu1  ;;  %v19995_v58 = vld [vmem:[#allocation52_spill] sm:$0xff]  ;;  %v3733_v14 = vld [vmem:[#allocation2 + $0x33a] sm:$0xff] }
 0x1a1   :  { %v2017_v5 = vpop.f32.mrf.mxu0  ;;  %v15938_v13 = vadd.f32 %v2707_v57, %v2212_v16  ;;  %v4384_v16 = vld [vmem:[#allocation2 + $0x50] sm:$0xff] }
 0x1a2   :  { %v2216_v29 = vadd.f32 %v2017_v5, %v19993_v39  ;;  %v13377_v28 = vpop.f32.mrf.mxu1  ;;  %13620 = vmatmul.mubr.msk.f32.gmra.mxu1 %vm103_vm1, %v19994_v4  ;;  %v4385_v5 = vld [vmem:[#allocation2 + $0x60] sm:$0xff]  ;;  %v19996_v57 = vld [vmem:[#allocation58_spill] sm:$0xff] }
 0x1a3   :  { %v13285_v63 = vpop.f32.mrf.mxu0  ;;  %13628 = vmatmul.mubr.msk.f32.vlgmr.msra.gmra.mxu0 %vm103_vm1, %v4382_v54  ;;  %v15944_v17 = vadd.f32 %v13377_v28, %v2215_v26  ;;  %13622 = vmatprep.mubr.msk.f32.mxu1 %vm103_vm1, %v3732_v44  ;;  %v19997_v44 = vld [vmem:[#allocation51_spill] sm:$0xff] }
 0x1a4   :  { %v2219_v27 = vadd.f32 %v13285_v63, %v15605_v9  ;;  %13822 = vmatpush3.msk.msra.mxu0 %vm571_vm0, %v19995_v58  ;;  %v2717_v31 = vpop.f32.mrf.mxu1  ;;  %13630 = vmatprep.mubr.msk.f32.mxu0 %vm103_vm1, %v4383_v36  ;;  %v4386_v36 = vld [vmem:[#allocation2 + $0x68] sm:$0xff] }
 0x1a5   :  { %v2027_v38 = vpop.f32.mrf.mxu0  ;;  %v15951_v39 = vadd.f32 %v2717_v31, %v2214_v53  ;;  %v4387_v53 = vld [vmem:[#allocation2 + $0x78] sm:$0xff] }
 0x1a6   :  { %v2218_v4 = vadd.f32 %v2027_v38, %v19996_v57  ;;  %v13380_v9 = vpop.f32.mrf.mxu1  ;;  %13623 = vmatmul.mubr.msk.f32.gmra.mxu1 %vm103_vm1, %v3733_v14 }
 0x1a7   :  { %v13288_v54 = vpop.f32.mrf.mxu0  ;;  %13631 = vmatmul.mubr.msk.f32.gmra.mxu0 %vm103_vm1, %v4384_v16  ;;  %v15956_v63 = vadd.f32 %v13380_v9, %v2217_v43  ;;  %13725 = vmatprep.mubr.msk.f32.mxu1 %vm103_vm1, %v19997_v44  ;;  %v4389_v9 = vld [vmem:[#allocation2 + $0x90] sm:$0xff] }
 0x1a8   :  { %v2221_v26 = vadd.f32 %v13288_v54, %v15622_v40  ;;  %13633 = vmatprep.mubr.msk.f32.mxu0 %vm103_vm1, %v4385_v5  ;;  %v2727_v58 = vpop.f32.mrf.mxu1  ;;  %v19998_v40 = vld [vmem:[#allocation53_spill] sm:$0xff]  ;;  %v19999_v5 = vld [vmem:[#allocation54_spill] sm:$0xff]  ;;  %v4388_v54 = vld [vmem:[#allocation2 + $0x80] sm:$0xff] }
 0x1a9   :  { %v2037_v28 = vpop.f32.mrf.mxu0  ;;  %v15962_v31 = vadd.f32 %v2727_v58, %v2216_v29 }
 0x1aa   :  { %v2220_v38 = vadd.f32 %v2037_v28, %v15628_v25  ;;  %v13383_v57 = vpop.f32.mrf.mxu1  ;;  %13726 = vmatmul.mubr.msk.f32.vlgmr.msra.gmra.mxu1 %vm103_vm1, %v19998_v40  ;;  %v4391_v40 = vld [vmem:[#allocation2 + $0xa8] sm:$0xff] }
 0x1ab   :  { %v13291_v14 = vpop.f32.mrf.mxu0  ;;  %13634 = vmatmul.mubr.msk.f32.gmra.mxu0 %vm103_vm1, %v4386_v36  ;;  %v15968_v16 = vadd.f32 %v13383_v57, %v2219_v27  ;;  %13728 = vmatprep.mubr.msk.f32.mxu1 %vm103_vm1, %v19999_v5  ;;  %v4390_v57 = vld [vmem:[#allocation2 + $0x98] sm:$0xff] }
 0x1ac   :  { %v2223_v43 = vadd.f32 %v13291_v14, %v15633_v2  ;;  %13636 = vmatprep.mubr.msk.f32.mxu0 %vm103_vm1, %v4387_v53  ;;  %v2737_v29 = vpop.f32.mrf.mxu1  ;;  %v20000_v2 = vld [vmem:[#allocation55_spill] sm:$0xff]  ;;  %v20001_v14 = vld [vmem:[#allocation56_spill] sm:$0xff] }
 0x1ad   :  { %v2047_v25 = vpop.f32.mrf.mxu0  ;;  %v15974_v28 = vadd.f32 %v2737_v29, %v2218_v4 }
 0x1ae   :  { %v2222_v44 = vadd.f32 %v2047_v25, %v15638_v15  ;;  %v13386_v58 = vpop.f32.mrf.mxu1  ;;  %13729 = vmatmul.mubr.msk.f32.gmra.mxu1 %vm103_vm1, %v20000_v2 }
 0x1af   :  { %v13294_v36 = vpop.f32.mrf.mxu0  ;;  %13637 = vmatmul.mubr.msk.f32.gmra.mxu0 %vm103_vm1, %v4388_v54  ;;  %v15980_v53 = vadd.f32 %v13386_v58, %v2221_v26  ;;  %13731 = vmatprep.mubr.msk.f32.mxu1 %vm103_vm1, %v20001_v14  ;;  %v4392_v58 = vld [vmem:[#allocation2 + $0xb0] sm:$0xff]  ;;  %v4393_v14 = vld [vmem:[#allocation2 + $0xc0] sm:$0xff] }
 0x1b0   :  { %v2225_v27 = vadd.f32 %v13294_v36, %v15643_v52  ;;  %13639 = vmatprep.mubr.msk.f32.mxu0 %vm103_vm1, %v4389_v9  ;;  %v2747_v4 = vpop.f32.mrf.mxu1  ;;  %v20003_v52 = vld [vmem:[#allocation11_spill] sm:$0xff]  ;;  %v20004_v36 = vld [vmem:[#allocation12_spill] sm:$0xff] }
 0x1b1   :  { %v2057_v15 = vpop.f32.mrf.mxu0  ;;  %v15986_v25 = vadd.f32 %v2747_v4, %v2220_v38 }
 0x1b2   :  { %v2224_v5 = vadd.f32 %v2057_v15, %v15648_v42  ;;  %v13389_v29 = vpop.f32.mrf.mxu1  ;;  %13732 = vmatmul.mubr.msk.f32.gmra.mxu1 %vm103_vm1, %v20003_v52  ;;  %v5098_v42 = vld [vmem:[#allocation2 + $0x81] sm:$0xff]  ;;  %v5099_v15 = vld [vmem:[#allocation2 + $0x91] sm:$0xff] }
 0x1b3   :  { %20002 = vst [vmem:[#allocation27_spill] sm:$0xff] %v15986_v25  ;;  %v13297_v54 = vpop.f32.mrf.mxu0  ;;  %13640 = vmatmul.mubr.msk.f32.gmra.mxu0 %vm103_vm1, %v4390_v57  ;;  %v15992_v9 = vadd.f32 %v13389_v29, %v2223_v43  ;;  %13734 = vmatprep.mubr.msk.f32.mxu1 %vm103_vm1, %v20004_v36  ;;  %v5101_v36 = vld [vmem:[#allocation2 + $0xa9] sm:$0xff] }
 0x1b4   :  { %v2227_v26 = vadd.f32 %v13297_v54, %v15653_v33  ;;  %13642 = vmatprep.mubr.msk.f32.mxu0 %vm103_vm1, %v4391_v40  ;;  %v2757_v2 = vpop.f32.mrf.mxu1  ;;  %v4394_v40 = vld [vmem:[#allocation2 + $0xc8] sm:$0xff]  ;;  %v5100_v54 = vld [vmem:[#allocation2 + $0x99] sm:$0xff] }
 0x1b5   :  { %v2067_v38 = vpop.f32.mrf.mxu0  ;;  %v15998_v4 = vadd.f32 %v2757_v2, %v2222_v44  ;;  %v4395_v44 = vld [vmem:[#allocation2 + $0xd8] sm:$0xff] }
 0x1b6   :  { %v2226_v57 = vadd.f32 %v2067_v38, %v15658_v11  ;;  %v13392_v25 = vpop.f32.mrf.mxu1  ;;  %13735 = vmatmul.mubr.msk.f32.gmra.mxu1 %vm103_vm1, %v5098_v42 }
 0x1b7   :  { %v13300_v52 = vpop.f32.mrf.mxu0  ;;  %13643 = vmatmul.mubr.msk.f32.gmra.mxu0 %vm103_vm1, %v4392_v58  ;;  %v16003_v43 = vadd.f32 %v13392_v25, %v2225_v27  ;;  %13737 = vmatprep.mubr.msk.f32.mxu1 %vm103_vm1, %v5099_v15  ;;  %v4396_v25 = vld [vmem:[#allocation2 + $0xe0] sm:$0xff] }
 0x1b8   :  { %v2229_v33 = vadd.f32 %v13300_v52, %v15663_v37  ;;  %13645 = vmatprep.mubr.msk.f32.mxu0 %vm103_vm1, %v4393_v14  ;;  %v2767_v11 = vpop.f32.mrf.mxu1  ;;  %v5102_v14 = vld [vmem:[#allocation2 + $0xb1] sm:$0xff]  ;;  %v5103_v52 = vld [vmem:[#allocation2 + $0xc1] sm:$0xff] }
 0x1b9   :  { %v2077_v29 = vpop.f32.mrf.mxu0  ;;  %v16008_v2 = vadd.f32 %v2767_v11, %v2224_v5  ;;  %v4397_v5 = vld [vmem:[#allocation2 + $0xf0] sm:$0xff] }
 0x1ba   :  { %v2228_v38 = vadd.f32 %v2077_v29, %v15668_v32  ;;  %v13395_v42 = vpop.f32.mrf.mxu1  ;;  %13738 = vmatmul.mubr.msk.f32.gmra.mxu1 %vm103_vm1, %v5100_v54 }
 0x1bb   :  { %v13303_v58 = vpop.f32.mrf.mxu0  ;;  %13646 = vmatmul.mubr.msk.f32.gmra.mxu0 %vm103_vm1, %v4394_v40  ;;  %v16013_v27 = vadd.f32 %v13395_v42, %v2227_v26  ;;  %13740 = vmatprep.mubr.msk.f32.mxu1 %vm103_vm1, %v5101_v36  ;;  %v5104_v36 = vld [vmem:[#allocation2 + $0xc9] sm:$0xff]  ;;  %v5105_v42 = vld [vmem:[#allocation2 + $0xd9] sm:$0xff] }
 0x1bc   :  { %v2231_v37 = vadd.f32 %v13303_v58, %v15673_v41  ;;  %13648 = vmatprep.mubr.msk.f32.mxu0 %vm103_vm1, %v4395_v44  ;;  %v2777_v32 = vpop.f32.mrf.mxu1  ;;  %v4398_v44 = vld [vmem:[#allocation2 + $0xf8] sm:$0xff] }
 0x1bd   :  { %v2087_v15 = vpop.f32.mrf.mxu0  ;;  %v16018_v11 = vadd.f32 %v2777_v32, %v2226_v57  ;;  %v4399_v57 = vld [vmem:[#allocation2 + $0x108] sm:$0xff] }
 0x1be   :  { %v2230_v29 = vadd.f32 %v2087_v15, %v15678_v49  ;;  %v13398_v54 = vpop.f32.mrf.mxu1  ;;  %13741 = vmatmul.mubr.msk.f32.gmra.mxu1 %vm103_vm1, %v5102_v14 }
 0x1bf   :  { %v13306_v40 = vpop.f32.mrf.mxu0  ;;  %13649 = vmatmul.mubr.msk.f32.gmra.mxu0 %vm103_vm1, %v4396_v25  ;;  %v16023_v26 = vadd.f32 %v13398_v54, %v2229_v33  ;;  %13743 = vmatprep.mubr.msk.f32.mxu1 %vm103_vm1, %v5103_v52  ;;  %v5106_v52 = vld [vmem:[#allocation2 + $0xe1] sm:$0xff]  ;;  %v5107_v54 = vld [vmem:[#allocation2 + $0xf1] sm:$0xff] }
 0x1c0   :  { %v2233_v41 = vadd.f32 %v13306_v40, %v15683_v46  ;;  %13651 = vmatprep.mubr.msk.f32.mxu0 %vm103_vm1, %v4397_v5  ;;  %v2787_v49 = vpop.f32.mrf.mxu1  ;;  %v4400_v5 = vld [vmem:[#allocation2 + $0x110] sm:$0xff] }
 0x1c1   :  { %v2097_v58 = vpop.f32.mrf.mxu0  ;;  %v16028_v32 = vadd.f32 %v2787_v49, %v2228_v38  ;;  %v4401_v38 = vld [vmem:[#allocation2 + $0x120] sm:$0xff] }
 0x1c2   :  { %v2232_v15 = vadd.f32 %v2097_v58, %v15688_v61  ;;  %v13401_v14 = vpop.f32.mrf.mxu1  ;;  %13744 = vmatmul.mubr.msk.f32.gmra.mxu1 %vm103_vm1, %v5104_v36 }
 0x1c3   :  { %v13309_v25 = vpop.f32.mrf.mxu0  ;;  %13652 = vmatmul.mubr.msk.f32.gmra.mxu0 %vm103_vm1, %v4398_v44  ;;  %v16033_v33 = vadd.f32 %v13401_v14, %v2231_v37  ;;  %13746 = vmatprep.mubr.msk.f32.mxu1 %vm103_vm1, %v5105_v42  ;;  %v5108_v42 = vld [vmem:[#allocation2 + $0xf9] sm:$0xff]  ;;  %v5109_v14 = vld [vmem:[#allocation2 + $0x109] sm:$0xff] }
 0x1c4   :  { %v2235_v46 = vadd.f32 %v13309_v25, %v15693_v62  ;;  %13654 = vmatprep.mubr.msk.f32.mxu0 %vm103_vm1, %v4399_v57  ;;  %v2797_v61 = vpop.f32.mrf.mxu1  ;;  %v4402_v57 = vld [vmem:[#allocation2 + $0x128] sm:$0xff] }
 0x1c5   :  { %v2107_v40 = vpop.f32.mrf.mxu0  ;;  %v16038_v49 = vadd.f32 %v2797_v61, %v2230_v29  ;;  %v4403_v29 = vld [vmem:[#allocation2 + $0x138] sm:$0xff] }
 0x1c6   :  { %v2234_v58 = vadd.f32 %v2107_v40, %v15698_v47  ;;  %v13404_v36 = vpop.f32.mrf.mxu1  ;;  %13747 = vmatmul.mubr.msk.f32.gmra.mxu1 %vm103_vm1, %v5106_v52 }
 0x1c7   :  { %v13312_v44 = vpop.f32.mrf.mxu0  ;;  %13655 = vmatmul.mubr.msk.f32.gmra.mxu0 %vm103_vm1, %v4400_v5  ;;  %v16043_v37 = vadd.f32 %v13404_v36, %v2233_v41  ;;  %13749 = vmatprep.mubr.msk.f32.mxu1 %vm103_vm1, %v5107_v54  ;;  %v5110_v54 = vld [vmem:[#allocation2 + $0x111] sm:$0xff]  ;;  %v5111_v36 = vld [vmem:[#allocation2 + $0x121] sm:$0xff] }
 0x1c8   :  { %v2237_v62 = vadd.f32 %v13312_v44, %v15703_v8  ;;  %13657 = vmatprep.mubr.msk.f32.mxu0 %vm103_vm1, %v4401_v38  ;;  %v2807_v47 = vpop.f32.mrf.mxu1  ;;  %v4404_v38 = vld [vmem:[#allocation2 + $0x140] sm:$0xff] }
 0x1c9   :  { %v2117_v25 = vpop.f32.mrf.mxu0  ;;  %v16048_v61 = vadd.f32 %v2807_v47, %v2232_v15  ;;  %v4405_v15 = vld [vmem:[#allocation2 + $0x150] sm:$0xff] }
 0x1ca   :  { %v2236_v40 = vadd.f32 %v2117_v25, %v15708_v23  ;;  %v13407_v52 = vpop.f32.mrf.mxu1  ;;  %13750 = vmatmul.mubr.msk.f32.gmra.mxu1 %vm103_vm1, %v5108_v42 }
 0x1cb   :  { %v13315_v5 = vpop.f32.mrf.mxu0  ;;  %13658 = vmatmul.mubr.msk.f32.gmra.mxu0 %vm103_vm1, %v4402_v57  ;;  %v16053_v41 = vadd.f32 %v13407_v52, %v2235_v46  ;;  %13752 = vmatprep.mubr.msk.f32.mxu1 %vm103_vm1, %v5109_v14  ;;  %v4406_v14 = vld [vmem:[#allocation2 + $0x158] sm:$0xff] }
 0x1cc   :  { %v2239_v8 = vadd.f32 %v13315_v5, %v15713_v12  ;;  %13660 = vmatprep.mubr.msk.f32.mxu0 %vm103_vm1, %v4403_v29  ;;  %v2817_v23 = vpop.f32.mrf.mxu1  ;;  %v20007_v12 = vld [vmem:[#allocation59_spill] sm:$0xff]  ;;  %v5112_v5 = vld [vmem:[#allocation2 + $0x129] sm:$0xff] }
 0x1cd   :  { %20005 = vst [vmem:[#allocation28_spill] sm:$0xff] %v16053_v41  ;;  %v2127_v44 = vpop.f32.mrf.mxu0  ;;  %v16058_v47 = vadd.f32 %v2817_v23, %v2234_v58  ;;  %v4407_v58 = vld [vmem:[#allocation2 + $0x168] sm:$0xff] }
 0x1ce   :  { %v2238_v25 = vadd.f32 %v2127_v44, %v15718_v0  ;;  %v13410_v42 = vpop.f32.mrf.mxu1  ;;  %13753 = vmatmul.mubr.msk.f32.gmra.mxu1 %vm103_vm1, %v5110_v54  ;;  %v5113_v44 = vld [vmem:[#allocation2 + $0x139] sm:$0xff]  ;;  %v20009_v23 = vld [vmem:[#allocation60_spill] sm:$0xff] }
 0x1cf   :  { %20006 = vst [vmem:[#allocation29_spill] sm:$0xff] %v16058_v47  ;;  %v13318_v57 = vpop.f32.mrf.mxu0  ;;  %13661 = vmatmul.mubr.msk.f32.gmra.mxu0 %vm103_vm1, %v4404_v38  ;;  %v16063_v29 = vadd.f32 %v13410_v42, %v2237_v62  ;;  %13755 = vmatprep.mubr.msk.f32.mxu1 %vm103_vm1, %v5111_v36  ;;  %v20011_v62 = vld [vmem:[#allocation61_spill] sm:$0xff]  ;;  %v5114_v42 = vld [vmem:[#allocation2 + $0x141] sm:$0xff] }
 0x1d0   :  { %v2241_v46 = vadd.f32 %v13318_v57, %v20007_v12  ;;  %13663 = vmatprep.mubr.msk.f32.mxu0 %vm103_vm1, %v4405_v15  ;;  %v2827_v0 = vpop.f32.mrf.mxu1  ;;  %v4408_v36 = vld [vmem:[#allocation2 + $0x170] sm:$0xff] }
 0x1d1   :  { %20008 = vst [vmem:[#allocation30_spill] sm:$0xff] %v16063_v29  ;;  %v2137_v52 = vpop.f32.mrf.mxu0  ;;  %v16068_v41 = vadd.f32 %v2827_v0, %v2236_v40  ;;  %v4409_v40 = vld [vmem:[#allocation2 + $0x180] sm:$0xff]  ;;  %v5115_v0 = vld [vmem:[#allocation2 + $0x151] sm:$0xff] }
 0x1d2   :  { %v2240_v47 = vadd.f32 %v2137_v52, %v20009_v23  ;;  %v13413_v54 = vpop.f32.mrf.mxu1  ;;  %13756 = vmatmul.mubr.msk.f32.gmra.mxu1 %vm103_vm1, %v5112_v5  ;;  %v20013_v23 = vld [vmem:[#allocation13_spill] sm:$0xff] }
 0x1d3   :  { %20010 = vst [vmem:[#allocation31_spill] sm:$0xff] %v16068_v41  ;;  %v13321_v38 = vpop.f32.mrf.mxu0  ;;  %13664 = vmatmul.mubr.msk.f32.gmra.mxu0 %vm103_vm1, %v4406_v14  ;;  %v16073_v57 = vadd.f32 %v13413_v54, %v2239_v8  ;;  %13758 = vmatprep.mubr.msk.f32.mxu1 %vm103_vm1, %v5113_v44  ;;  %v20015_v8 = vld [vmem:[#allocation14_spill] sm:$0xff]  ;;  %v4410_v44 = vld [vmem:[#allocation2 + $0x188] sm:$0xff] }
 0x1d4   :  { %v2243_v15 = vadd.f32 %v13321_v38, %v20011_v62  ;;  %13666 = vmatprep.mubr.msk.f32.mxu0 %vm103_vm1, %v4407_v58  ;;  %v2837_v52 = vpop.f32.mrf.mxu1  ;;  %v5116_v54 = vld [vmem:[#allocation2 + $0x159] sm:$0xff] }
 0x1d5   :  { %20012 = vst [vmem:[#allocation32_spill] sm:$0xff] %v16073_v57  ;;  %v2147_v12 = vpop.f32.mrf.mxu0  ;;  %v16078_v29 = vadd.f32 %v2837_v52, %v2238_v25  ;;  %v4411_v25 = vld [vmem:[#allocation2 + $0x198] sm:$0xff]  ;;  %v5117_v52 = vld [vmem:[#allocation2 + $0x169] sm:$0xff] }
 0x1d6   :  { %v2242_v41 = vadd.f32 %v2147_v12, %v20013_v23  ;;  %v13416_v5 = vpop.f32.mrf.mxu1  ;;  %13759 = vmatmul.mubr.msk.f32.gmra.mxu1 %vm103_vm1, %v5114_v42  ;;  %v20017_v23 = vld [vmem:[#allocation15_spill] sm:$0xff] }
 0x1d7   :  { %20014 = vst [vmem:[#allocation33_spill] sm:$0xff] %v16078_v29  ;;  %v13324_v14 = vpop.f32.mrf.mxu0  ;;  %13667 = vmatmul.mubr.msk.f32.gmra.mxu0 %vm103_vm1, %v4408_v36  ;;  %v16083_v38 = vadd.f32 %v13416_v5, %v2241_v46  ;;  %13761 = vmatprep.mubr.msk.f32.mxu1 %vm103_vm1, %v5115_v0  ;;  %v4412_v0 = vld [vmem:[#allocation2 + $0x1a0] sm:$0xff] }
 0x1d8   :  { %v2245_v58 = vadd.f32 %v13324_v14, %v20015_v8  ;;  %13669 = vmatprep.mubr.msk.f32.mxu0 %vm103_vm1, %v4409_v40  ;;  %v2847_v12 = vpop.f32.mrf.mxu1  ;;  %v5118_v14 = vld [vmem:[#allocation2 + $0x171] sm:$0xff] }
 0x1d9   :  { %20016 = vst [vmem:[#allocation34_spill] sm:$0xff] %v16083_v38  ;;  %v2157_v62 = vpop.f32.mrf.mxu0  ;;  %v16088_v57 = vadd.f32 %v2847_v12, %v2240_v47  ;;  %v4413_v47 = vld [vmem:[#allocation2 + $0x1e0] sm:$0xff] }
 0x1da   :  { %v2244_v29 = vadd.f32 %v2157_v62, %v20017_v23  ;;  %v13419_v42 = vpop.f32.mrf.mxu1  ;;  %13762 = vmatmul.mubr.msk.f32.gmra.mxu1 %vm103_vm1, %v5116_v54  ;;  %v5119_v62 = vld [vmem:[#allocation2 + $0x181] sm:$0xff] }
 0x1db   :  { %20018 = vst [vmem:[#allocation35_spill] sm:$0xff] %v16088_v57  ;;  %v13327_v36 = vpop.f32.mrf.mxu0  ;;  %13670 = vmatmul.mubr.msk.f32.gmra.mxu0 %vm103_vm1, %v4410_v44  ;;  %v16093_v40 = vadd.f32 %v13419_v42, %v2243_v15  ;;  %13764 = vmatprep.mubr.msk.f32.mxu1 %vm103_vm1, %v5117_v52  ;;  %v20020_v12 = vld [vmem:[#allocation20_spill] sm:$0xff]  ;;  %v20024_v52 = vld [vmem:[#allocation17_spill] sm:$0xff] }
 0x1dc   :  { %v2247_v46 = vadd.f32 %v13327_v36, %v15753_v7  ;;  %13672 = vmatprep.mubr.msk.f32.mxu0 %vm103_vm1, %v4411_v25  ;;  %v2857_v8 = vpop.f32.mrf.mxu1  ;;  %v1537_v23 = vadd.f32 %v15761_v51, %v20020_v12  ;;  %v20021_v44 = vld [vmem:[#allocation16_spill] sm:$0xff]  ;;  %v20023_v25 = vld [vmem:[#allocation22_spill] sm:$0xff] }
 0x1dd   :  { %20019 = vst [vmem:[#allocation36_spill] sm:$0xff] %v16093_v40  ;;  %v2167_v5 = vpop.f32.mrf.mxu0  ;;  %v16100_v54 = vadd.f32 %v2857_v8, %v2242_v41  ;;  %v1532_v36 = vadd.f32 %v20024_v52, %v20023_v25  ;;  %v4414_v51 = vld [vmem:[#allocation2 + $0x1e8] sm:$0xff]  ;;  %v4415_v12 = vld [vmem:[#allocation2 + $0x1f8] sm:$0xff] }
 0x1de   :  { %v2246_v57 = vadd.f32 %v2167_v5, %v20021_v44  ;;  %v13422_v15 = vpop.f32.mrf.mxu1  ;;  %13765 = vmatmul.mubr.msk.f32.gmra.mxu1 %vm103_vm1, %v5118_v14  ;;  %v5120_v5 = vld [vmem:[#allocation2 + $0x189] sm:$0xff]  ;;  %v5121_v44 = vld [vmem:[#allocation2 + $0x199] sm:$0xff]  ;;  %v5123_v25 = vld [vmem:[#allocation2 + $0x1e1] sm:$0xff] }
 0x1df   :  { %20022 = vst [vmem:[#allocation37_spill] sm:$0xff] %v16100_v54  ;;  %v13330_v7 = vpop.f32.mrf.mxu0  ;;  %13673 = vmatmul.mubr.msk.f32.gmra.mxu0 %vm103_vm1, %v4412_v0  ;;  %v16106_v40 = vadd.f32 %v13422_v15, %v2245_v58  ;;  %13767 = vmatprep.mubr.msk.f32.mxu1 %vm103_vm1, %v5119_v62  ;;  %v4416_v62 = vld [vmem:[#allocation2 + $0x200] sm:$0xff] }
 0x1e0   :  { %v2249_v42 = vadd.f32 %v13330_v7, %v1537_v23  ;;  %13675 = vmatprep.mubr.msk.f32.mxu0 %vm103_vm1, %v4413_v47  ;;  %v2867_v8 = vpop.f32.mrf.mxu1  ;;  %v5122_v23 = vld [vmem:[#allocation2 + $0x1a1] sm:$0xff] }
 0x1e1   :  { %v2177_v41 = vpop.f32.mrf.mxu0  ;;  %v16110_v0 = vadd.f32 %v2867_v8, %v2244_v29  ;;  %v4417_v29 = vld [vmem:[#allocation2 + $0x210] sm:$0xff] }
 0x1e2   :  { %v2248_v54 = vadd.f32 %v2177_v41, %v1532_v36  ;;  %v13425_v14 = vpop.f32.mrf.mxu1  ;;  %13768 = vmatmul.mubr.msk.f32.gmra.mxu1 %vm103_vm1, %v5120_v5  ;;  %v5124_v41 = vld [vmem:[#allocation2 + $0x1e9] sm:$0xff] }
 0x1e3   :  { %v13433_v38 = vpop.f32.mrf.mxu0  ;;  %13676 = vmatmul.mubr.msk.f32.gmra.mxu0 %vm103_vm1, %v4414_v51  ;;  %v16114_v58 = vadd.f32 %v13425_v14, %v2247_v46  ;;  %13770 = vmatprep.mubr.msk.f32.mxu1 %vm103_vm1, %v5121_v44  ;;  %v4418_v46 = vld [vmem:[#allocation2 + $0x218] sm:$0xff] }
 0x1e4   :  { %v3607_v47 = vadd.f32 %v13433_v38, %v15776_v19  ;;  %13678 = vmatprep.mubr.msk.f32.mxu0 %vm103_vm1, %v4415_v12  ;;  %v2877_v7 = vpop.f32.mrf.mxu1  ;;  %v4419_v12 = vld [vmem:[#allocation2 + $0x228] sm:$0xff] }
 0x1e5   :  { %v3287_v15 = vpop.f32.mrf.mxu0  ;;  %v16119_v52 = vadd.f32 %v2877_v7, %v2246_v57  ;;  %v4420_v7 = vld [vmem:[#allocation2 + $0x230] sm:$0xff] }
 0x1e6   :  { %v3606_v36 = vadd.f32 %v3287_v15, %v15782_v48  ;;  %v13428_v51 = vpop.f32.mrf.mxu1  ;;  %13771 = vmatmul.mubr.msk.f32.gmra.mxu1 %vm103_vm1, %v5122_v23  ;;  %v5125_v48 = vld [vmem:[#allocation2 + $0x1f9] sm:$0xff]  ;;  %v5126_v15 = vld [vmem:[#allocation2 + $0x201] sm:$0xff] }
 0x1e7   :  { %v13436_v5 = vpop.f32.mrf.mxu0  ;;  %13679 = vmatmul.mubr.msk.f32.gmra.mxu0 %vm103_vm1, %v4416_v62  ;;  %v16124_v19 = vadd.f32 %v13428_v51, %v2249_v42  ;;  %13773 = vmatprep.mubr.msk.f32.mxu1 %vm103_vm1, %v5123_v25  ;;  %v4421_v25 = vld [vmem:[#allocation2 + $0x240] sm:$0xff] }
 0x1e8   :  { %v3609_v38 = vadd.f32 %v13436_v5, %v15788_v6  ;;  %13681 = vmatprep.mubr.msk.f32.mxu0 %vm103_vm1, %v4417_v29  ;;  %v2887_v57 = vpop.f32.mrf.mxu1 }
 0x1e9   :  { %v3297_v8 = vpop.f32.mrf.mxu0  ;;  %v16129_v44 = vadd.f32 %v2887_v57, %v2248_v54  ;;  %v4422_v57 = vld [vmem:[#allocation2 + $0x248] sm:$0xff] }
 0x1ea   :  { %v3608_v14 = vadd.f32 %v3297_v8, %v15794_v34  ;;  %v13531_v23 = vpop.f32.mrf.mxu1  ;;  %13774 = vmatmul.mubr.msk.f32.gmra.mxu1 %vm103_vm1, %v5124_v41  ;;  %v5127_v34 = vld [vmem:[#allocation2 + $0x211] sm:$0xff]  ;;  %v5128_v8 = vld [vmem:[#allocation2 + $0x219] sm:$0xff] }
 0x1eb   :  { %v13439_v62 = vpop.f32.mrf.mxu0  ;;  %13682 = vmatmul.mubr.msk.f32.gmra.mxu0 %vm103_vm1, %v4418_v46  ;;  %v16135_v42 = vadd.f32 %v13531_v23, %v3607_v47  ;;  %13776 = vmatprep.mubr.msk.f32.mxu1 %vm103_vm1, %v5125_v48  ;;  %v5129_v48 = vld [vmem:[#allocation2 + $0x229] sm:$0xff] }
 0x1ec   :  { %v3611_v6 = vadd.f32 %v13439_v62, %v15800_v18  ;;  %13684 = vmatprep.mubr.msk.f32.mxu0 %vm103_vm1, %v4419_v12  ;;  %v3997_v29 = vpop.f32.mrf.mxu1 }
 0x1ed   :  { %v3307_v54 = vpop.f32.mrf.mxu0  ;;  %v16140_v5 = vadd.f32 %v3997_v29, %v3606_v36  ;;  %v4423_v36 = vld [vmem:[#allocation2 + $0x258] sm:$0xff] }
 0x1ee   :  { %v3610_v51 = vadd.f32 %v3307_v54, %v15806_v1  ;;  %v13534_v41 = vpop.f32.mrf.mxu1  ;;  %13777 = vmatmul.mubr.msk.f32.gmra.mxu1 %vm103_vm1, %v5126_v15  ;;  %v4424_v54 = vld [vmem:[#allocation2 + $0x260] sm:$0xff]  ;;  %v5130_v29 = vld [vmem:[#allocation2 + $0x231] sm:$0xff] }
 0x1ef   :  { %v13442_v46 = vpop.f32.mrf.mxu0  ;;  %13685 = vmatmul.mubr.msk.f32.gmra.mxu0 %vm103_vm1, %v4420_v7  ;;  %v16145_v47 = vadd.f32 %v13534_v41, %v3609_v38  ;;  %13779 = vmatprep.mubr.msk.f32.mxu1 %vm103_vm1, %v5127_v34  ;;  %v5131_v34 = vld [vmem:[#allocation2 + $0x241] sm:$0xff] }
 0x1f0   :  { %v3613_v18 = vadd.f32 %v13442_v46, %v15812_v59  ;;  %13687 = vmatprep.mubr.msk.f32.mxu0 %vm103_vm1, %v4421_v25  ;;  %v4007_v1 = vpop.f32.mrf.mxu1 }
 0x1f1   :  { %v3317_v12 = vpop.f32.mrf.mxu0  ;;  %v16150_v23 = vadd.f32 %v4007_v1, %v3608_v14  ;;  %v4425_v14 = vld [vmem:[#allocation2 + $0x270] sm:$0xff] }
 0x1f2   :  { %v3612_v62 = vadd.f32 %v3317_v12, %v15818_v60  ;;  %v13537_v15 = vpop.f32.mrf.mxu1  ;;  %13780 = vmatmul.mubr.msk.f32.gmra.mxu1 %vm103_vm1, %v5128_v8  ;;  %v4426_v12 = vld [vmem:[#allocation2 + $0x278] sm:$0xff]  ;;  %v5132_v1 = vld [vmem:[#allocation2 + $0x249] sm:$0xff] }
 0x1f3   :  { %v13445_v7 = vpop.f32.mrf.mxu0  ;;  %13688 = vmatmul.mubr.msk.f32.gmra.mxu0 %vm103_vm1, %v4422_v57  ;;  %v16155_v38 = vadd.f32 %v13537_v15, %v3611_v6  ;;  %13782 = vmatprep.mubr.msk.f32.mxu1 %vm103_vm1, %v5129_v48  ;;  %v5133_v48 = vld [vmem:[#allocation2 + $0x259] sm:$0xff] }
 0x1f4   :  { %v3615_v59 = vadd.f32 %v13445_v7, %v15824_v45  ;;  %13690 = vmatprep.mubr.msk.f32.mxu0 %vm103_vm1, %v4423_v36  ;;  %v4017_v60 = vpop.f32.mrf.mxu1 }
 0x1f5   :  { %v3327_v25 = vpop.f32.mrf.mxu0  ;;  %v16160_v41 = vadd.f32 %v4017_v60, %v3610_v51  ;;  %v4427_v51 = vld [vmem:[#allocation2 + $0x288] sm:$0xff] }
 0x1f6   :  { %v3614_v46 = vadd.f32 %v3327_v25, %v15830_v24  ;;  %v13540_v8 = vpop.f32.mrf.mxu1  ;;  %13783 = vmatmul.mubr.msk.f32.gmra.mxu1 %vm103_vm1, %v5130_v29  ;;  %v4428_v25 = vld [vmem:[#allocation2 + $0x290] sm:$0xff]  ;;  %v5134_v60 = vld [vmem:[#allocation2 + $0x261] sm:$0xff] }
 0x1f7   :  { %v13448_v57 = vpop.f32.mrf.mxu0  ;;  %13691 = vmatmul.mubr.msk.f32.gmra.mxu0 %vm103_vm1, %v4424_v54  ;;  %v16165_v6 = vadd.f32 %v13540_v8, %v3613_v18  ;;  %13785 = vmatprep.mubr.msk.f32.mxu1 %vm103_vm1, %v5131_v34  ;;  %v5135_v34 = vld [vmem:[#allocation2 + $0x271] sm:$0xff] }
 0x1f8   :  { %v3617_v45 = vadd.f32 %v13448_v57, %v15836_v50  ;;  %13693 = vmatprep.mubr.msk.f32.mxu0 %vm103_vm1, %v4425_v14  ;;  %v4027_v24 = vpop.f32.mrf.mxu1 }
 0x1f9   :  { %v3337_v36 = vpop.f32.mrf.mxu0  ;;  %v16170_v15 = vadd.f32 %v4027_v24, %v3612_v62  ;;  %v4429_v62 = vld [vmem:[#allocation2 + $0x2a0] sm:$0xff] }
 0x1fa   :  { %v3616_v7 = vadd.f32 %v3337_v36, %v15842_v30  ;;  %v13543_v29 = vpop.f32.mrf.mxu1  ;;  %13786 = vmatmul.mubr.msk.f32.gmra.mxu1 %vm103_vm1, %v5132_v1  ;;  %v4430_v36 = vld [vmem:[#allocation2 + $0x2a8] sm:$0xff]  ;;  %v5136_v24 = vld [vmem:[#allocation2 + $0x279] sm:$0xff] }
 0x1fb   :  { %v13451_v54 = vpop.f32.mrf.mxu0  ;;  %13694 = vmatmul.mubr.msk.f32.gmra.mxu0 %vm103_vm1, %v4426_v12  ;;  %v16175_v18 = vadd.f32 %v13543_v29, %v3615_v59  ;;  %13788 = vmatprep.mubr.msk.f32.mxu1 %vm103_vm1, %v5133_v48  ;;  %v5137_v48 = vld [vmem:[#allocation2 + $0x289] sm:$0xff] }
 0x1fc   :  { %v3619_v50 = vadd.f32 %v13451_v54, %v15848_v56  ;;  %13696 = vmatprep.mubr.msk.f32.mxu0 %vm103_vm1, %v4427_v51  ;;  %v4037_v30 = vpop.f32.mrf.mxu1  ;;  %v20025_v54 = vld [vmem:[#allocation18_spill] sm:$0xff] }
 0x1fd   :  { %v3347_v14 = vpop.f32.mrf.mxu0  ;;  %v16180_v8 = vadd.f32 %v4037_v30, %v3614_v46  ;;  %v4431_v46 = vld [vmem:[#allocation2 + $0x2b8] sm:$0xff] }
 0x1fe   :  { %v3618_v57 = vadd.f32 %v3347_v14, %v15854_v21  ;;  %v13546_v1 = vpop.f32.mrf.mxu1  ;;  %13789 = vmatmul.mubr.msk.f32.gmra.mxu1 %vm103_vm1, %v5134_v60 }
 0x1ff   :  { %v13454_v12 = vpop.f32.mrf.mxu0  ;;  %13697 = vmatmul.mubr.msk.f32.gmra.mxu0 %vm103_vm1, %v4428_v25  ;;  %v16185_v59 = vadd.f32 %v13546_v1, %v3617_v45  ;;  %13791 = vmatprep.mubr.msk.f32.mxu1 %vm103_vm1, %v5135_v34  ;;  %v5138_v34 = vld [vmem:[#allocation2 + $0x291] sm:$0xff] }
 0x200   :  { %v3621_v56 = vadd.f32 %v13454_v12, %v15860_v3  ;;  %13699 = vmatprep.mubr.msk.f32.mxu0 %vm103_vm1, %v4429_v62  ;;  %v4047_v21 = vpop.f32.mrf.mxu1  ;;  %v20027_v3 = vld [vmem:[#allocation19_spill] sm:$0xff] }
 0x201   :  { %v3357_v51 = vpop.f32.mrf.mxu0  ;;  %v16190_v14 = vadd.f32 %v4047_v21, %v3616_v7  ;;  %v4432_v62 = vld [vmem:[#allocation2 + $0x2c0] sm:$0xff]  ;;  %v4433_v7 = vld [vmem:[#allocation2 + $0x2d0] sm:$0xff] }
 0x202   :  { %v3620_v29 = vadd.f32 %v3357_v51, %v20025_v54  ;;  %v13549_v60 = vpop.f32.mrf.mxu1  ;;  %13792 = vmatmul.mubr.msk.f32.gmra.mxu1 %vm103_vm1, %v5136_v24  ;;  %v5139_v51 = vld [vmem:[#allocation2 + $0x2a1] sm:$0xff]  ;;  %v20028_v21 = vld [vmem:[#allocation21_spill] sm:$0xff] }
 0x203   :  { %20026 = vst [vmem:[#allocation46_spill] sm:$0xff] %v16190_v14  ;;  %v13457_v25 = vpop.f32.mrf.mxu0  ;;  %13700 = vmatmul.mubr.msk.f32.gmra.mxu0 %vm103_vm1, %v4430_v36  ;;  %v16195_v30 = vadd.f32 %v13549_v60, %v3619_v50  ;;  %13794 = vmatprep.mubr.msk.f32.mxu1 %vm103_vm1, %v5137_v48  ;;  %v4434_v48 = vld [vmem:[#allocation2 + $0x2d8] sm:$0xff] }
 0x204   :  { %v3623_v45 = vadd.f32 %v13457_v25, %v20027_v3  ;;  %13702 = vmatprep.mubr.msk.f32.mxu0 %vm103_vm1, %v4431_v46  ;;  %v4057_v1 = vpop.f32.mrf.mxu1  ;;  %v5140_v25 = vld [vmem:[#allocation2 + $0x2a9] sm:$0xff] }
 0x205   :  { %v3367_v12 = vpop.f32.mrf.mxu0  ;;  %v16202_v36 = vadd.f32 %v4057_v1, %v3618_v57  ;;  %v4435_v57 = vld [vmem:[#allocation2 + $0x2e8] sm:$0xff] }
 0x206   :  { %v16200_v54 = vadd.f32 %v3367_v12, %v20028_v21  ;;  %v13552_v14 = vpop.f32.mrf.mxu1  ;;  %13795 = vmatmul.mubr.msk.f32.gmra.mxu1 %vm103_vm1, %v5138_v34  ;;  %v5141_v12 = vld [vmem:[#allocation2 + $0x2b9] sm:$0xff] }
 0x207   :  { %v13460_v24 = vpop.f32.mrf.mxu0  ;;  %13703 = vmatmul.mubr.msk.f32.gmra.mxu0 %vm103_vm1, %v4432_v62  ;;  %v16207_v46 = vadd.f32 %v13552_v14, %v3621_v56  ;;  %13797 = vmatprep.mubr.msk.f32.mxu1 %vm103_vm1, %v5139_v51  ;;  %v5142_v51 = vld [vmem:[#allocation2 + $0x2c1] sm:$0xff] }
 0x208   :  { %v3625_v50 = vadd.f32 %v13460_v24, %v15884_v10  ;;  %13705 = vmatprep.mubr.msk.f32.mxu0 %vm103_vm1, %v4433_v7  ;;  %v4067_v3 = vpop.f32.mrf.mxu1  ;;  %v20030_v10 = vld [vmem:[#allocation23_spill] sm:$0xff]  ;;  %v4436_v7 = vld [vmem:[#allocation2 + $0x2f0] sm:$0xff] }
 0x209   :  { %v3377_v60 = vpop.f32.mrf.mxu0  ;;  %v16214_v62 = vadd.f32 %v4067_v3, %v3620_v29  ;;  %v4437_v29 = vld [vmem:[#allocation2 + $0x300] sm:$0xff] }
 0x20a   :  { %v16212_v1 = vadd.f32 %v3377_v60, %v15890_v35  ;;  %v13555_v21 = vpop.f32.mrf.mxu1  ;;  %13798 = vmatmul.mubr.msk.f32.gmra.mxu1 %vm103_vm1, %v5140_v25  ;;  %v5143_v60 = vld [vmem:[#allocation2 + $0x2d1] sm:$0xff]  ;;  %v20032_v3 = vld [vmem:[#allocation24_spill] sm:$0xff] }
 0x20b   :  { %v13463_v34 = vpop.f32.mrf.mxu0  ;;  %13706 = vmatmul.mubr.msk.f32.gmra.mxu0 %vm103_vm1, %v4434_v48  ;;  %v16219_v14 = vadd.f32 %v13555_v21, %v3623_v45  ;;  %13800 = vmatprep.mubr.msk.f32.mxu1 %vm103_vm1, %v5141_v12  ;;  %v4438_v12 = vld [vmem:[#allocation2 + $0x308] sm:$0xff] }
 0x20c   :  { %20029 = vst [vmem:[#allocation38_spill] sm:$0xff] %v16212_v1  ;;  %v3627_v56 = vadd.f32 %v13463_v34, %v20030_v10  ;;  %13708 = vmatprep.mubr.msk.f32.mxu0 %vm103_vm1, %v4435_v57  ;;  %v16223_v24 = vpop.f32.mrf.mxu1  ;;  %v5144_v34 = vld [vmem:[#allocation2 + $0x2d9] sm:$0xff] }
 0x20d   :  { %v3387_v35 = vpop.f32.mrf.mxu0  ;;  %20031 = vst [vmem:[#allocation47_spill] sm:$0xff] %v16223_v24 }
 0x20e   :  { %v16226_v1 = vadd.f32 %v3387_v35, %v20032_v3  ;;  %v13558_v25 = vpop.f32.mrf.mxu1  ;;  %13801 = vmatmul.mubr.msk.f32.gmra.mxu1 %vm103_vm1, %v5142_v51  ;;  %v4439_v35 = vld [vmem:[#allocation2 + $0x318] sm:$0xff]  ;;  %v5145_v3 = vld [vmem:[#allocation2 + $0x2e9] sm:$0xff] }
 0x20f   :  { %v13466_v48 = vpop.f32.mrf.mxu0  ;;  %13709 = vmatmul.mubr.msk.f32.gmra.mxu0 %vm103_vm1, %v4436_v7  ;;  %v16231_v57 = vadd.f32 %v13558_v25, %v3625_v50  ;;  %13803 = vmatprep.mubr.msk.f32.mxu1 %vm103_vm1, %v5143_v60  ;;  %v4440_v60 = vld [vmem:[#allocation2 + $0x320] sm:$0xff] }
 0x210   :  { %20033 = vst [vmem:[#allocation39_spill] sm:$0xff] %v16226_v1  ;;  %v3629_v45 = vadd.f32 %v13466_v48, %v15908_v55  ;;  %13711 = vmatprep.mubr.msk.f32.mxu0 %vm103_vm1, %v4437_v29  ;;  %v16235_v10 = vpop.f32.mrf.mxu1  ;;  %v20036_v55 = vld [vmem:[#allocation25_spill] sm:$0xff] }
 0x211   :  { %v3397_v21 = vpop.f32.mrf.mxu0  ;;  %20034 = vst [vmem:[#allocation49_spill] sm:$0xff] %v16235_v10  ;;  %v5146_v48 = vld [vmem:[#allocation2 + $0x2f1] sm:$0xff] }
 0x212   :  { %v16238_v1 = vadd.f32 %v3397_v21, %v15914_v22  ;;  %v13561_v51 = vpop.f32.mrf.mxu1  ;;  %13804 = vmatmul.mubr.msk.f32.gmra.mxu1 %vm103_vm1, %v5144_v34  ;;  %v4441_v22 = vld [vmem:[#allocation2 + $0x330] sm:$0xff]  ;;  %v5147_v21 = vld [vmem:[#allocation2 + $0x301] sm:$0xff] }
 0x213   :  { %v13469_v7 = vpop.f32.mrf.mxu0  ;;  %13712 = vmatmul.mubr.msk.f32.gmra.mxu0 %vm103_vm1, %v4438_v12  ;;  %v16243_v29 = vadd.f32 %v13561_v51, %v3627_v56  ;;  %13806 = vmatprep.mubr.msk.f32.mxu1 %vm103_vm1, %v5145_v3  ;;  %v4442_v3 = vld [vmem:[#allocation2 + $0x338] sm:$0xff] }
 0x214   :  { %20035 = vst [vmem:[#allocation40_spill] sm:$0xff] %v16238_v1  ;;  %v3631_v50 = vadd.f32 %v13469_v7, %v20036_v55  ;;  %13714 = vmatprep.mubr.msk.f32.mxu0 %vm103_vm1, %v4439_v35  ;;  %v16247_v10 = vpop.f32.mrf.mxu1  ;;  %v20038_v1 = vld [vmem:[#allocation26_spill] sm:$0xff]  ;;  %v5148_v7 = vld [vmem:[#allocation2 + $0x309] sm:$0xff] }
 0x215   :  { %v3407_v25 = vpop.f32.mrf.mxu0  ;;  %20037 = vst [vmem:[#allocation41_spill] sm:$0xff] %v16247_v10 }
 0x216   :  { %v16250_v24 = vadd.f32 %v3407_v25, %v20038_v1  ;;  %v13564_v34 = vpop.f32.mrf.mxu1  ;;  %13807 = vmatmul.mubr.msk.f32.gmra.mxu1 %vm103_vm1, %v5146_v48  ;;  %v4443_v1 = vld [vmem:[#allocation2 + $0x348] sm:$0xff]  ;;  %v5149_v25 = vld [vmem:[#allocation2 + $0x319] sm:$0xff] }
 0x217   :  { %v13472_v12 = vpop.f32.mrf.mxu0  ;;  %13715 = vmatmul.mubr.msk.f32.gmra.mxu0 %vm103_vm1, %v4440_v60  ;;  %v16255_v35 = vadd.f32 %v13564_v34, %v3629_v45  ;;  %13809 = vmatprep.mubr.msk.f32.mxu1 %vm103_vm1, %v5147_v21  ;;  %v5150_v21 = vld [vmem:[#allocation2 + $0x321] sm:$0xff] }
 0x218   :  { %20039 = vst [vmem:[#allocation42_spill] sm:$0xff] %v16250_v24  ;;  %v3633_v56 = vadd.f32 %v13472_v12, %v15932_v20  ;;  %13717 = vmatprep.mubr.msk.f32.mxu0 %vm103_vm1, %v4441_v22  ;;  %v16259_v55 = vpop.f32.mrf.mxu1  ;;  %v4444_v22 = vld [vmem:[#allocation2 + $0x350] sm:$0xff] }
 0x219   :  { %v3417_v51 = vpop.f32.mrf.mxu0  ;;  %20040 = vst [vmem:[#allocation10_spill] sm:$0xff] %v16259_v55 }
 0x21a   :  { %v16262_v24 = vadd.f32 %v3417_v51, %v15938_v13  ;;  %v13567_v48 = vpop.f32.mrf.mxu1  ;;  %13810 = vmatmul.mubr.msk.f32.gmra.mxu1 %vm103_vm1, %v5148_v7  ;;  %v5151_v13 = vld [vmem:[#allocation2 + $0x331] sm:$0xff] }
 0x21b   :  { %v13475_v60 = vpop.f32.mrf.mxu0  ;;  %13718 = vmatmul.mubr.msk.f32.gmra.mxu0 %vm103_vm1, %v4442_v3  ;;  %v16267_v45 = vadd.f32 %v13567_v48, %v3631_v50  ;;  %13812 = vmatprep.mubr.msk.f32.mxu1 %vm103_vm1, %v5149_v25  ;;  %v5801_v51 = vld [vmem:[#allocation2 + $0x32] sm:$0xff]  ;;  %v5802_v25 = vld [vmem:[#allocation2 + $0x3a] sm:$0xff] }
 0x21c   :  { %20041 = vst [vmem:[#allocation43_spill] sm:$0xff] %v16262_v24  ;;  %v3635_v20 = vadd.f32 %v13475_v60, %v15944_v17  ;;  %13720 = vmatprep.mubr.msk.f32.mxu0 %vm103_vm1, %v4443_v1  ;;  %v16271_v34 = vpop.f32.mrf.mxu1  ;;  %v5152_v1 = vld [vmem:[#allocation2 + $0x339] sm:$0xff] }
 0x21d   :  { %v3427_v12 = vpop.f32.mrf.mxu0  ;;  %20042 = vst [vmem:[#allocation50_spill] sm:$0xff] %v16271_v34 }
 0x21e   :  { %v16274_v24 = vadd.f32 %v3427_v12, %v15951_v39  ;;  %v13570_v7 = vpop.f32.mrf.mxu1  ;;  %13813 = vmatmul.mubr.msk.f32.gmra.mxu1 %vm103_vm1, %v5150_v21  ;;  %v5153_v39 = vld [vmem:[#allocation2 + $0x349] sm:$0xff] }
 0x21f   :  { %v13478_v3 = vpop.f32.mrf.mxu0  ;;  %13721 = vmatmul.mubr.msk.f32.gmra.mxu0 %vm103_vm1, %v4444_v22  ;;  %v16279_v50 = vadd.f32 %v13570_v7, %v3633_v56  ;;  %13815 = vmatprep.mubr.msk.f32.mxu1 %vm103_vm1, %v5151_v13  ;;  %v5803_v12 = vld [vmem:[#allocation2 + $0x4a] sm:$0xff] }
 0x220   :  { %20043 = vst [vmem:[#allocation44_spill] sm:$0xff] %v16274_v24  ;;  %v3637_v17 = vadd.f32 %v13478_v3, %v15956_v63  ;;  %13823 = vmatprep.mubr.msk.f32.mxu0 %vm103_vm1, %v5801_v51  ;;  %v16283_v48 = vpop.f32.mrf.mxu1  ;;  %v5154_v13 = vld [vmem:[#allocation2 + $0x351] sm:$0xff] }
 0x221   :  { %v3437_v60 = vpop.f32.mrf.mxu0  ;;  %20044 = vst [vmem:[#allocation45_spill] sm:$0xff] %v16283_v48  ;;  %v5804_v51 = vld [vmem:[#allocation2 + $0x52] sm:$0xff] }
 0x222   :  { %v16286_v24 = vadd.f32 %v3437_v60, %v15962_v31  ;;  %v13573_v21 = vpop.f32.mrf.mxu1  ;;  %13816 = vmatmul.mubr.msk.f32.gmra.mxu1 %vm103_vm1, %v5152_v1  ;;  %v5805_v31 = vld [vmem:[#allocation2 + $0x62] sm:$0xff] }
 0x223   :  { %v13481_v22 = vpop.f32.mrf.mxu0  ;;  %13824 = vmatmul.mubr.msk.f32.vlgmr.msra.gmra.mxu0 %vm103_vm1, %v5802_v25  ;;  %v16291_v56 = vadd.f32 %v13573_v21, %v3635_v20  ;;  %13818 = vmatprep.mubr.msk.f32.mxu1 %vm103_vm1, %v5153_v39  ;;  %v5806_v25 = vld [vmem:[#allocation2 + $0x6a] sm:$0xff]  ;;  %v20049_v21 = vld [vmem:[#allocation27_spill] sm:$0xff] }
 0x224   :  { %20045 = vst [vmem:[#allocation8_spill] sm:$0xff] %v16286_v24  ;;  %v3639_v63 = vadd.f32 %v13481_v22, %v15968_v16  ;;  %13826 = vmatprep.mubr.msk.f32.mxu0 %vm103_vm1, %v5803_v12  ;;  %v16295_v7 = vpop.f32.mrf.mxu1  ;;  %v5807_v22 = vld [vmem:[#allocation2 + $0x7a] sm:$0xff] }
 0x225   :  { %v3447_v3 = vpop.f32.mrf.mxu0  ;;  %20046 = vst [vmem:[#allocation48_spill] sm:$0xff] %v16295_v7 }
 0x226   :  { %v16298_v60 = vadd.f32 %v3447_v3, %v15974_v28  ;;  %v13576_v24 = vpop.f32.mrf.mxu1  ;;  %13819 = vmatmul.mubr.msk.f32.gmra.mxu1 %vm103_vm1, %v5154_v13 }
 0x227   :  { %v13484_v1 = vpop.f32.mrf.mxu0  ;;  %13827 = vmatmul.mubr.msk.f32.gmra.mxu0 %vm103_vm1, %v5804_v51  ;;  %v16303_v20 = vadd.f32 %v13576_v24, %v3637_v17 }
 0x228   :  { %20047 = vst [vmem:[#allocation57_spill] sm:$0xff] %v16298_v60  ;;  %v3641_v16 = vadd.f32 %v13484_v1, %v15980_v53  ;;  %13829 = vmatprep.mubr.msk.f32.mxu0 %vm103_vm1, %v5805_v31  ;;  %v16306_v12 = vpop.f32.mrf.mxu1  ;;  %v5808_v53 = vld [vmem:[#allocation2 + $0x82] sm:$0xff]  ;;  %v5809_v31 = vld [vmem:[#allocation2 + $0x92] sm:$0xff] }
 0x229   :  { %v3457_v39 = vpop.f32.mrf.mxu0  ;;  %20048 = vst [vmem:[#allocation9_spill] sm:$0xff] %v16306_v12 }
 0x22a   :  { %v16309_v28 = vadd.f32 %v3457_v39, %v20049_v21  ;;  %v13579_v60 = vpop.f32.mrf.mxu1 }
 0x22b   :  { %v13487_v3 = vpop.f32.mrf.mxu0  ;;  %13830 = vmatmul.mubr.msk.f32.gmra.mxu0 %vm103_vm1, %v5806_v25  ;;  %v16313_v51 = vadd.f32 %v13579_v60, %v3639_v63 }
 0x22c   :  { %20050 = vst [vmem:[#allocation52_spill] sm:$0xff] %v16309_v28  ;;  %v3643_v13 = vadd.f32 %v13487_v3, %v15992_v9  ;;  %13832 = vmatprep.mubr.msk.f32.mxu0 %vm103_vm1, %v5807_v22  ;;  %v16316_v17 = vpop.f32.mrf.mxu1  ;;  %v5810_v9 = vld [vmem:[#allocation2 + $0x9a] sm:$0xff]  ;;  %v5811_v22 = vld [vmem:[#allocation2 + $0xaa] sm:$0xff] }
 0x22d   :  { %v3467_v24 = vpop.f32.mrf.mxu0  ;;  %20051 = vst [vmem:[#allocation58_spill] sm:$0xff] %v16316_v17 }
 0x22e   :  { %v16319_v1 = vadd.f32 %v3467_v24, %v15998_v4  ;;  %v13582_v21 = vpop.f32.mrf.mxu1 }
 0x22f   :  { %v13490_v39 = vpop.f32.mrf.mxu0  ;;  %13833 = vmatmul.mubr.msk.f32.gmra.mxu0 %vm103_vm1, %v5808_v53  ;;  %v16323_v28 = vadd.f32 %v13582_v21, %v3641_v16 }
 0x230   :  { %20052 = vst [vmem:[#allocation51_spill] sm:$0xff] %v16319_v1  ;;  %v3645_v25 = vadd.f32 %v13490_v39, %v16003_v43  ;;  %13835 = vmatprep.mubr.msk.f32.mxu0 %vm103_vm1, %v5809_v31  ;;  %v16326_v60 = vpop.f32.mrf.mxu1  ;;  %v5812_v43 = vld [vmem:[#allocation2 + $0xb2] sm:$0xff]  ;;  %v5813_v39 = vld [vmem:[#allocation2 + $0xc2] sm:$0xff] }
 0x231   :  { %v3477_v63 = vpop.f32.mrf.mxu0  ;;  %20053 = vst [vmem:[#allocation53_spill] sm:$0xff] %v16326_v60 }
 0x232   :  { %v16329_v3 = vadd.f32 %v3477_v63, %v16008_v2  ;;  %v13585_v24 = vpop.f32.mrf.mxu1 }
 0x233   :  { %v13493_v4 = vpop.f32.mrf.mxu0  ;;  %13836 = vmatmul.mubr.msk.f32.gmra.mxu0 %vm103_vm1, %v5810_v9  ;;  %v16333_v1 = vadd.f32 %v13585_v24, %v3643_v13 }
 0x234   :  { %20054 = vst [vmem:[#allocation54_spill] sm:$0xff] %v16329_v3  ;;  %v3647_v53 = vadd.f32 %v13493_v4, %v16013_v27  ;;  %13838 = vmatprep.mubr.msk.f32.mxu0 %vm103_vm1, %v5811_v22  ;;  %v16336_v31 = vpop.f32.mrf.mxu1  ;;  %v5814_v27 = vld [vmem:[#allocation2 + $0xca] sm:$0xff]  ;;  %v5815_v4 = vld [vmem:[#allocation2 + $0xda] sm:$0xff] }
 0x235   :  { %v3487_v16 = vpop.f32.mrf.mxu0  ;;  %20055 = vst [vmem:[#allocation55_spill] sm:$0xff] %v16336_v31 }
 0x236   :  { %v16339_v21 = vadd.f32 %v3487_v16, %v16018_v11  ;;  %v13588_v63 = vpop.f32.mrf.mxu1 }
 0x237   :  { %v13496_v2 = vpop.f32.mrf.mxu0  ;;  %13839 = vmatmul.mubr.msk.f32.gmra.mxu0 %vm103_vm1, %v5812_v43  ;;  %v16343_v3 = vadd.f32 %v13588_v63, %v3645_v25 }
 0x238   :  { %20056 = vst [vmem:[#allocation56_spill] sm:$0xff] %v16339_v21  ;;  %v3649_v9 = vadd.f32 %v13496_v2, %v16023_v26  ;;  %13841 = vmatprep.mubr.msk.f32.mxu0 %vm103_vm1, %v5813_v39  ;;  %v16346_v22 = vpop.f32.mrf.mxu1  ;;  %v5816_v26 = vld [vmem:[#allocation2 + $0xe2] sm:$0xff]  ;;  %v5817_v2 = vld [vmem:[#allocation2 + $0xf2] sm:$0xff] }
 0x239   :  { %v3497_v13 = vpop.f32.mrf.mxu0  ;;  %20057 = vst [vmem:[#allocation11_spill] sm:$0xff] %v16346_v22 }
 0x23a   :  { %v16349_v24 = vadd.f32 %v3497_v13, %v16028_v32  ;;  %v13591_v16 = vpop.f32.mrf.mxu1 }
 0x23b   :  { %v13499_v11 = vpop.f32.mrf.mxu0  ;;  %13842 = vmatmul.mubr.msk.f32.gmra.mxu0 %vm103_vm1, %v5814_v27  ;;  %v16353_v21 = vadd.f32 %v13591_v16, %v3647_v53 }
 0x23c   :  { %20058 = vst [vmem:[#allocation12_spill] sm:$0xff] %v16349_v24  ;;  %v3651_v43 = vadd.f32 %v13499_v11, %v16033_v33  ;;  %13844 = vmatprep.mubr.msk.f32.mxu0 %vm103_vm1, %v5815_v4  ;;  %v16356_v39 = vpop.f32.mrf.mxu1  ;;  %v5818_v33 = vld [vmem:[#allocation2 + $0xfa] sm:$0xff]  ;;  %v5819_v11 = vld [vmem:[#allocation2 + $0x10a] sm:$0xff] }
 0x23d   :  { %v3507_v25 = vpop.f32.mrf.mxu0  ;;  %20059 = vst [vmem:[#allocation59_spill] sm:$0xff] %v16356_v39 }
 0x23e   :  { %v16359_v63 = vadd.f32 %v3507_v25, %v16038_v49  ;;  %v13594_v13 = vpop.f32.mrf.mxu1 }
 0x23f   :  { %v13502_v32 = vpop.f32.mrf.mxu0  ;;  %13845 = vmatmul.mubr.msk.f32.gmra.mxu0 %vm103_vm1, %v5816_v26  ;;  %v16363_v24 = vadd.f32 %v13594_v13, %v3649_v9  ;;  %v20065_v13 = vld [vmem:[#allocation29_spill] sm:$0xff] }
 0x240   :  { %20060 = vst [vmem:[#allocation60_spill] sm:$0xff] %v16359_v63  ;;  %v3653_v27 = vadd.f32 %v13502_v32, %v16043_v37  ;;  %13847 = vmatprep.mubr.msk.f32.mxu0 %vm103_vm1, %v5817_v2  ;;  %v16366_v4 = vpop.f32.mrf.mxu1  ;;  %v20063_v63 = vld [vmem:[#allocation28_spill] sm:$0xff]  ;;  %v5820_v37 = vld [vmem:[#allocation2 + $0x112] sm:$0xff] }
 0x241   :  { %v3517_v53 = vpop.f32.mrf.mxu0  ;;  %20061 = vst [vmem:[#allocation61_spill] sm:$0xff] %v16366_v4  ;;  %v5821_v32 = vld [vmem:[#allocation2 + $0x122] sm:$0xff] }
 0x242   :  { %v16369_v16 = vadd.f32 %v3517_v53, %v16048_v61  ;;  %v13597_v25 = vpop.f32.mrf.mxu1 }
 0x243   :  { %v13505_v49 = vpop.f32.mrf.mxu0  ;;  %13848 = vmatmul.mubr.msk.f32.gmra.mxu0 %vm103_vm1, %v5818_v33  ;;  %v16373_v39 = vadd.f32 %v13597_v25, %v3651_v43  ;;  %v5822_v43 = vld [vmem:[#allocation2 + $0x12a] sm:$0xff]  ;;  %v20069_v25 = vld [vmem:[#allocation31_spill] sm:$0xff] }
 0x244   :  { %20062 = vst [vmem:[#allocation13_spill] sm:$0xff] %v16369_v16  ;;  %v3655_v26 = vadd.f32 %v13505_v49, %v20063_v63  ;;  %13850 = vmatprep.mubr.msk.f32.mxu0 %vm103_vm1, %v5819_v11  ;;  %v16376_v2 = vpop.f32.mrf.mxu1  ;;  %v20067_v16 = vld [vmem:[#allocation30_spill] sm:$0xff]  ;;  %v5823_v49 = vld [vmem:[#allocation2 + $0x13a] sm:$0xff] }
 0x245   :  { %v3527_v9 = vpop.f32.mrf.mxu0  ;;  %20064 = vst [vmem:[#allocation14_spill] sm:$0xff] %v16376_v2 }
 0x246   :  { %v16379_v4 = vadd.f32 %v3527_v9, %v20065_v13  ;;  %v13600_v53 = vpop.f32.mrf.mxu1 }
 0x247   :  { %v13508_v61 = vpop.f32.mrf.mxu0  ;;  %13851 = vmatmul.mubr.msk.f32.gmra.mxu0 %vm103_vm1, %v5820_v37  ;;  %v16383_v22 = vadd.f32 %v13600_v53, %v3653_v27  ;;  %v5824_v27 = vld [vmem:[#allocation2 + $0x142] sm:$0xff]  ;;  %v20073_v53 = vld [vmem:[#allocation33_spill] sm:$0xff] }
 0x248   :  { %20066 = vst [vmem:[#allocation15_spill] sm:$0xff] %v16379_v4  ;;  %v3657_v33 = vadd.f32 %v13508_v61, %v20067_v16  ;;  %13853 = vmatprep.mubr.msk.f32.mxu0 %vm103_vm1, %v5821_v32  ;;  %v16386_v11 = vpop.f32.mrf.mxu1  ;;  %v20071_v4 = vld [vmem:[#allocation32_spill] sm:$0xff]  ;;  %v5825_v61 = vld [vmem:[#allocation2 + $0x152] sm:$0xff] }
 0x249   :  { %v3537_v63 = vpop.f32.mrf.mxu0  ;;  %20068 = vst [vmem:[#allocation20_spill] sm:$0xff] %v16386_v11 }
 0x24a   :  { %v16389_v2 = vadd.f32 %v3537_v63, %v20069_v25  ;;  %v13603_v13 = vpop.f32.mrf.mxu1 }
 0x24b   :  { %v13511_v9 = vpop.f32.mrf.mxu0  ;;  %13854 = vmatmul.mubr.msk.f32.gmra.mxu0 %vm103_vm1, %v5822_v43  ;;  %v16393_v31 = vadd.f32 %v13603_v13, %v3655_v26  ;;  %v20077_v13 = vld [vmem:[#allocation35_spill] sm:$0xff] }
 0x24c   :  { %20070 = vst [vmem:[#allocation16_spill] sm:$0xff] %v16389_v2  ;;  %v3659_v37 = vadd.f32 %v13511_v9, %v20071_v4  ;;  %13856 = vmatprep.mubr.msk.f32.mxu0 %vm103_vm1, %v5823_v49  ;;  %v16396_v32 = vpop.f32.mrf.mxu1  ;;  %v20075_v2 = vld [vmem:[#allocation34_spill] sm:$0xff]  ;;  %v5826_v4 = vld [vmem:[#allocation2 + $0x15a] sm:$0xff]  ;;  %v5827_v9 = vld [vmem:[#allocation2 + $0x16a] sm:$0xff] }
 0x24d   :  { %v3547_v16 = vpop.f32.mrf.mxu0  ;;  %20072 = vst [vmem:[#allocation22_spill] sm:$0xff] %v16396_v32 }
 0x24e   :  { %v16399_v11 = vadd.f32 %v3547_v16, %v20073_v53  ;;  %v13606_v25 = vpop.f32.mrf.mxu1 }
 0x24f   :  { %v13514_v63 = vpop.f32.mrf.mxu0  ;;  %13857 = vmatmul.mubr.msk.f32.gmra.mxu0 %vm103_vm1, %v5824_v27  ;;  %v16403_v60 = vadd.f32 %v13606_v25, %v3657_v33  ;;  %v20081_v25 = vld [vmem:[#allocation37_spill] sm:$0xff] }
 0x250   :  { %20074 = vst [vmem:[#allocation17_spill] sm:$0xff] %v16399_v11  ;;  %v3661_v43 = vadd.f32 %v13514_v63, %v20075_v2  ;;  %13859 = vmatprep.mubr.msk.f32.mxu0 %vm103_vm1, %v5825_v61  ;;  %v16406_v49 = vpop.f32.mrf.mxu1  ;;  %v20079_v11 = vld [vmem:[#allocation36_spill] sm:$0xff]  ;;  %v5828_v2 = vld [vmem:[#allocation2 + $0x172] sm:$0xff] }
 0x251   :  { %v3557_v26 = vpop.f32.mrf.mxu0  ;;  %20076 = vst [vmem:[#allocation18_spill] sm:$0xff] %v16406_v49  ;;  %v5829_v63 = vld [vmem:[#allocation2 + $0x182] sm:$0xff] }
 0x252   :  { %v16409_v32 = vadd.f32 %v3557_v26, %v20077_v13  ;;  %v13609_v53 = vpop.f32.mrf.mxu1 }
 0x253   :  { %v13517_v16 = vpop.f32.mrf.mxu0  ;;  %13860 = vmatmul.mubr.msk.f32.gmra.mxu0 %vm103_vm1, %v5826_v4  ;;  %v16413_v17 = vadd.f32 %v13609_v53, %v3659_v37 }
 0x254   :  { %20078 = vst [vmem:[#allocation19_spill] sm:$0xff] %v16409_v32  ;;  %v3663_v27 = vadd.f32 %v13517_v16, %v20079_v11  ;;  %13862 = vmatprep.mubr.msk.f32.mxu0 %vm103_vm1, %v5827_v9  ;;  %v16416_v61 = vpop.f32.mrf.mxu1  ;;  %v5830_v11 = vld [vmem:[#allocation2 + $0x18a] sm:$0xff]  ;;  %v5831_v16 = vld [vmem:[#allocation2 + $0x19a] sm:$0xff] }
 0x255   :  { %v3567_v33 = vpop.f32.mrf.mxu0  ;;  %20080 = vst [vmem:[#allocation21_spill] sm:$0xff] %v16416_v61 }
 0x256   :  { %v16419_v49 = vadd.f32 %v3567_v33, %v20081_v25  ;;  %v13612_v13 = vpop.f32.mrf.mxu1 }
 0x257   :  { %v13520_v26 = vpop.f32.mrf.mxu0  ;;  %13863 = vmatmul.mubr.msk.f32.gmra.mxu0 %vm103_vm1, %v5828_v2  ;;  %v16423_v32 = vadd.f32 %v13612_v13, %v3661_v43 }
 0x258   :  { %20082 = vst [vmem:[#allocation23_spill] sm:$0xff] %v16419_v49  ;;  %v3665_v4 = vadd.f32 %v13520_v26, %v16106_v40  ;;  %13865 = vmatprep.mubr.msk.f32.mxu0 %vm103_vm1, %v5829_v63  ;;  %v16426_v9 = vpop.f32.mrf.mxu1  ;;  %v5832_v40 = vld [vmem:[#allocation2 + $0x1a2] sm:$0xff] }
 0x259   :  { %v3577_v37 = vpop.f32.mrf.mxu0  ;;  %20083 = vst [vmem:[#allocation24_spill] sm:$0xff] %v16426_v9  ;;  %v5833_v26 = vld [vmem:[#allocation2 + $0x1e2] sm:$0xff]  ;;  %v20092_v9 = vld [vmem:[#allocation46_spill] sm:$0xff] }
 0x25a   :  { %v16429_v53 = vadd.f32 %v3577_v37, %v16110_v0  ;;  %v13615_v25 = vpop.f32.mrf.mxu1 }
 0x25b   :  { %v13523_v33 = vpop.f32.mrf.mxu0  ;;  %13866 = vmatmul.mubr.msk.f32.gmra.mxu0 %vm103_vm1, %v5830_v11  ;;  %v16433_v49 = vadd.f32 %v13615_v25, %v3663_v27 }
 0x25c   :  { %20084 = vst [vmem:[#allocation25_spill] sm:$0xff] %v16429_v53  ;;  %v3667_v2 = vadd.f32 %v13523_v33, %v16114_v58  ;;  %13868 = vmatprep.mubr.msk.f32.mxu0 %vm103_vm1, %v5831_v16  ;;  %v16436_v63 = vpop.f32.mrf.mxu1  ;;  %v5834_v58 = vld [vmem:[#allocation2 + $0x1ea] sm:$0xff]  ;;  %v5835_v33 = vld [vmem:[#allocation2 + $0x1fa] sm:$0xff] }
 0x25d   :  { %v3587_v43 = vpop.f32.mrf.mxu0  ;;  %20085 = vst [vmem:[#allocation26_spill] sm:$0xff] %v16436_v63 }
 0x25e   :  { %v16439_v13 = vadd.f32 %v3587_v43, %v16119_v52  ;;  %v13618_v37 = vpop.f32.mrf.mxu1 }
 0x25f   :  { %v13526_v0 = vpop.f32.mrf.mxu0  ;;  %13869 = vmatmul.mubr.msk.f32.gmra.mxu0 %vm103_vm1, %v5832_v40  ;;  %v16443_v53 = vadd.f32 %v13618_v37, %v3665_v4  ;;  %v5836_v4 = vld [vmem:[#allocation2 + $0x202] sm:$0xff] }
 0x260   :  { %20086 = vst [vmem:[#allocation27_spill] sm:$0xff] %v16439_v13  ;;  %v3669_v11 = vadd.f32 %v13526_v0, %v16124_v19  ;;  %13871 = vmatprep.mubr.msk.f32.mxu0 %vm103_vm1, %v5833_v26  ;;  %v16446_v16 = vpop.f32.mrf.mxu1  ;;  %v5837_v0 = vld [vmem:[#allocation2 + $0x212] sm:$0xff] }
 0x261   :  { %v3597_v27 = vpop.f32.mrf.mxu0  ;;  %20087 = vst [vmem:[#allocation28_spill] sm:$0xff] %v16446_v16  ;;  %v5845_v16 = vld [vmem:[#allocation2 + $0x272] sm:$0xff] }
 0x262   :  { %v16449_v25 = vadd.f32 %v3597_v27, %v16129_v44  ;;  %v13621_v52 = vpop.f32.mrf.mxu1 }
 0x263   :  { %v13629_v43 = vpop.f32.mrf.mxu0  ;;  %13872 = vmatmul.mubr.msk.f32.gmra.mxu0 %vm103_vm1, %v5834_v58  ;;  %v16452_v13 = vadd.f32 %v13621_v52, %v3667_v2  ;;  %v20090_v2 = vmov 0.0   ;;  %v5838_v58 = vld [vmem:[#allocation2 + $0x21a] sm:$0xff] }
 0x264   :  { %20088 = vst [vmem:[#allocation29_spill] sm:$0xff] %v16449_v25  ;;  %v16455_v19 = vadd.f32 %v13629_v43, %v16135_v42  ;;  %13874 = vmatprep.mubr.msk.f32.mxu0 %vm103_vm1, %v5835_v33  ;;  %v16458_v40 = vpop.f32.mrf.mxu1  ;;  %7786 = vst.msk [vmem:[#allocation3] sm:$0xff] %vm6582_vm4, %v20090_v2  ;;  %v5839_v43 = vld [vmem:[#allocation2 + $0x22a] sm:$0xff] }
 0x265   :  { %20089 = vst [vmem:[#allocation30_spill] sm:$0xff] %v16458_v40  ;;  %v4708_v26 = vpop.f32.mrf.mxu0  ;;  %7789 = vst.msk [vmem:[#allocation3 + $0xa0] sm:$0xff] %vm6582_vm4, %v20090_v2 }
 0x266   :  { %v16461_v37 = vadd.f32 %v4708_v26, %v16140_v5  ;;  %v13624_v44 = vpop.f32.mrf.mxu1  ;;  %7792 = vst.msk [vmem:[#allocation3 + $0x90] sm:$0xff] %vm6582_vm4, %v20090_v2  ;;  %7794 = vst.msk [vmem:[#allocation3 + $0x130] sm:$0xff] %vm6582_vm4, %v20090_v2 }
 0x267   :  { %v13632_v27 = vpop.f32.mrf.mxu0  ;;  %13875 = vmatmul.mubr.msk.f32.gmra.mxu0 %vm103_vm1, %v5836_v4  ;;  %v16472_v42 = vadd.f32 %v13624_v44, %v3669_v11 }
 0x268   :  { %v16475_v5 = vadd.f32 %v13632_v27, %v16145_v47  ;;  %13877 = vmatprep.mubr.msk.f32.mxu0 %vm103_vm1, %v5837_v0  ;;  %v16478_v33 = vpop.f32.mrf.mxu1  ;;  %v5840_v47 = vld [vmem:[#allocation2 + $0x232] sm:$0xff]  ;;  %v5841_v27 = vld [vmem:[#allocation2 + $0x242] sm:$0xff] }
 0x269   :  { %20091 = vst [vmem:[#allocation31_spill] sm:$0xff] %v16478_v33  ;;  %v4718_v52 = vpop.f32.mrf.mxu0  ;;  %v5843_v33 = vld [vmem:[#allocation2 + $0x25a] sm:$0xff] }
 0x26a   :  { %v16481_v4 = vadd.f32 %v4718_v52, %v16150_v23  ;;  %v16483_v25 = vpop.f32.mrf.mxu1 }
 0x26b   :  { %v13635_v26 = vpop.f32.mrf.mxu0  ;;  %13878 = vmatmul.mubr.msk.f32.gmra.mxu0 %vm103_vm1, %v5838_v58 }
 0x26c   :  { %v16487_v11 = vadd.f32 %v13635_v26, %v16155_v38  ;;  %13880 = vmatprep.mubr.msk.f32.mxu0 %vm103_vm1, %v5839_v43  ;;  %v16490_v44 = vpop.f32.mrf.mxu1  ;;  %v5842_v38 = vld [vmem:[#allocation2 + $0x24a] sm:$0xff] }
 0x26d   :  { %v4728_v0 = vpop.f32.mrf.mxu0 }
 0x26e   :  { %v16493_v2 = vadd.f32 %v4728_v0, %v16160_v41  ;;  %v16495_v52 = vpop.f32.mrf.mxu1 }
 0x26f   :  { %v13638_v23 = vpop.f32.mrf.mxu0  ;;  %13881 = vmatmul.mubr.msk.f32.gmra.mxu0 %vm103_vm1, %v5840_v47 }
 0x270   :  { %v16499_v58 = vadd.f32 %v13638_v23, %v16165_v6  ;;  %13883 = vmatprep.mubr.msk.f32.mxu0 %vm103_vm1, %v5841_v27  ;;  %v16502_v26 = vpop.f32.mrf.mxu1  ;;  %v5844_v6 = vld [vmem:[#allocation2 + $0x262] sm:$0xff] }
 0x271   :  { %v4738_v43 = vpop.f32.mrf.mxu0 }
 0x272   :  { %v16505_v40 = vadd.f32 %v4738_v43, %v16170_v15  ;;  %v16507_v0 = vpop.f32.mrf.mxu1 }
 0x273   :  { %v13641_v41 = vpop.f32.mrf.mxu0  ;;  %13884 = vmatmul.mubr.msk.f32.gmra.mxu0 %vm103_vm1, %v5842_v38 }
 0x274   :  { %v16511_v47 = vadd.f32 %v13641_v41, %v16175_v18  ;;  %13886 = vmatprep.mubr.msk.f32.mxu0 %vm103_vm1, %v5843_v33  ;;  %v16514_v23 = vpop.f32.mrf.mxu1  ;;  %v5846_v18 = vld [vmem:[#allocation2 + $0x27a] sm:$0xff]  ;;  %v5847_v41 = vld [vmem:[#allocation2 + $0x28a] sm:$0xff] }
 0x275   :  { %v4748_v27 = vpop.f32.mrf.mxu0 }
 0x276   :  { %v16517_v63 = vadd.f32 %v4748_v27, %v16180_v8  ;;  %v16523_v38 = vpop.f32.mrf.mxu1 }
 0x277   :  { %v13644_v15 = vpop.f32.mrf.mxu0  ;;  %13887 = vmatmul.mubr.msk.f32.gmra.mxu0 %vm103_vm1, %v5844_v6 }
 0x278   :  { %v16521_v43 = vadd.f32 %v13644_v15, %v16185_v59  ;;  %13889 = vmatprep.mubr.msk.f32.mxu0 %vm103_vm1, %v5845_v16  ;;  %v16530_v8 = vpop.f32.mrf.mxu1  ;;  %v5848_v59 = vld [vmem:[#allocation2 + $0x292] sm:$0xff]  ;;  %v5849_v15 = vld [vmem:[#allocation2 + $0x2a2] sm:$0xff] }
 0x279   :  { %v4758_v33 = vpop.f32.mrf.mxu0 }
 0x27a   :  { %v16527_v61 = vadd.f32 %v4758_v33, %v20092_v9  ;;  %v16540_v9 = vpop.f32.mrf.mxu1  ;;  %v5851_v33 = vld [vmem:[#allocation2 + $0x2ba] sm:$0xff] }
 0x27b   :  { %v13647_v12 = vpop.f32.mrf.mxu0  ;;  %13890 = vmatmul.mubr.msk.f32.gmra.mxu0 %vm103_vm1, %v5846_v18 }
 0x27c   :  { %v16533_v6 = vadd.f32 %v13647_v12, %v16195_v30  ;;  %13892 = vmatprep.mubr.msk.f32.mxu0 %vm103_vm1, %v5847_v41  ;;  %v5850_v30 = vld [vmem:[#allocation2 + $0x2aa] sm:$0xff] }
 0x27d   :  { %v4768_v27 = vpop.f32.mrf.mxu0 }
 0x27e   :  { %v16537_v16 = vadd.f32 %v4768_v27, %v16202_v36  ;;  %v16550_v36 = vpop.f32.mrf.mxu1  ;;  %v5853_v27 = vld [vmem:[#allocation2 + $0x2d2] sm:$0xff] }
 0x27f   :  { %v13650_v7 = vpop.f32.mrf.mxu0  ;;  %13893 = vmatmul.mubr.msk.f32.gmra.mxu0 %vm103_vm1, %v5848_v59 }
 0x280   :  { %v16543_v18 = vadd.f32 %v13650_v7, %v16207_v46  ;;  %13895 = vmatprep.mubr.msk.f32.mxu0 %vm103_vm1, %v5849_v15  ;;  %v5852_v46 = vld [vmem:[#allocation2 + $0x2c2] sm:$0xff]  ;;  %v16559_v34 = vpop.f32.mrf.mxu1 }
 0x281   :  { %v4778_v12 = vpop.f32.mrf.mxu0 }
 0x282   :  { %v16547_v41 = vadd.f32 %v4778_v12, %v16214_v62 }
 0x283   :  { %v13653_v48 = vpop.f32.mrf.mxu0  ;;  %13896 = vmatmul.mubr.msk.f32.gmra.mxu0 %vm103_vm1, %v5850_v30  ;;  %v5854_v30 = vld [vmem:[#allocation2 + $0x2da] sm:$0xff] }
 0x284   :  { %v16553_v59 = vadd.f32 %v13653_v48, %v16219_v14  ;;  %13898 = vmatprep.mubr.msk.f32.mxu0 %vm103_vm1, %v5851_v33  ;;  %v5855_v14 = vld [vmem:[#allocation2 + $0x2ea] sm:$0xff]  ;;  %v16568_v33 = vpop.f32.mrf.mxu1 }
 0x285   :  { %v16556_v7 = vpop.f32.mrf.mxu0 }
 0x287   :  { %v13656_v15 = vpop.f32.mrf.mxu0  ;;  %13899 = vmatmul.mubr.msk.f32.gmra.mxu0 %vm103_vm1, %v5852_v46  ;;  %v5856_v46 = vld [vmem:[#allocation2 + $0x2f2] sm:$0xff] }
 0x288   :  { %v16562_v62 = vadd.f32 %v13656_v15, %v16231_v57  ;;  %13901 = vmatprep.mubr.msk.f32.mxu0 %vm103_vm1, %v5853_v27  ;;  %v5857_v57 = vld [vmem:[#allocation2 + $0x302] sm:$0xff]  ;;  %v16577_v27 = vpop.f32.mrf.mxu1 }
 0x289   :  { %v16565_v12 = vpop.f32.mrf.mxu0 }
 0x28a   :  { %20093 = vst [vmem:[#allocation32_spill] sm:$0xff] %v16562_v62  ;;  %20094 = vst [vmem:[#allocation33_spill] sm:$0xff] %v16565_v12 }
 0x28b   :  { %v13659_v48 = vpop.f32.mrf.mxu0  ;;  %13902 = vmatmul.mubr.msk.f32.gmra.mxu0 %vm103_vm1, %v5854_v30  ;;  %v5858_v30 = vld [vmem:[#allocation2 + $0x30a] sm:$0xff] }
 0x28c   :  { %v16571_v55 = vadd.f32 %v13659_v48, %v16243_v29  ;;  %13904 = vmatprep.mubr.msk.f32.mxu0 %vm103_vm1, %v5855_v14  ;;  %v5859_v29 = vld [vmem:[#allocation2 + $0x31a] sm:$0xff]  ;;  %v16586_v14 = vpop.f32.mrf.mxu1 }
 0x28d   :  { %v16574_v10 = vpop.f32.mrf.mxu0 }
 0x28e   :  { %20095 = vst [vmem:[#allocation34_spill] sm:$0xff] %v16571_v55  ;;  %20096 = vst [vmem:[#allocation35_spill] sm:$0xff] %v16574_v10 }
 0x28f   :  { %v13662_v15 = vpop.f32.mrf.mxu0  ;;  %13905 = vmatmul.mubr.msk.f32.gmra.mxu0 %vm103_vm1, %v5856_v46  ;;  %v5860_v46 = vld [vmem:[#allocation2 + $0x322] sm:$0xff] }
 0x290   :  { %v16580_v62 = vadd.f32 %v13662_v15, %v16255_v35  ;;  %13907 = vmatprep.mubr.msk.f32.mxu0 %vm103_vm1, %v5857_v57  ;;  %v5861_v35 = vld [vmem:[#allocation2 + $0x332] sm:$0xff]  ;;  %v16595_v57 = vpop.f32.mrf.mxu1 }
 0x291   :  { %v16583_v12 = vpop.f32.mrf.mxu0 }
 0x292   :  { %20097 = vst [vmem:[#allocation36_spill] sm:$0xff] %v16580_v62  ;;  %20098 = vst [vmem:[#allocation37_spill] sm:$0xff] %v16583_v12 }
 0x293   :  { %v13665_v48 = vpop.f32.mrf.mxu0  ;;  %13908 = vmatmul.mubr.msk.f32.gmra.mxu0 %vm103_vm1, %v5858_v30  ;;  %v5862_v30 = vld [vmem:[#allocation2 + $0x33a] sm:$0xff] }
 0x294   :  { %v16589_v55 = vadd.f32 %v13665_v48, %v16267_v45  ;;  %13910 = vmatprep.mubr.msk.f32.mxu0 %vm103_vm1, %v5859_v29  ;;  %v5863_v45 = vld [vmem:[#allocation2 + $0x34a] sm:$0xff]  ;;  %v16604_v29 = vpop.f32.mrf.mxu1 }
 0x295   :  { %v16592_v10 = vpop.f32.mrf.mxu0 }
 0x296   :  { %20099 = vst [vmem:[#allocation46_spill] sm:$0xff] %v16589_v55  ;;  %20100 = vst [vmem:[#allocation62_spill] sm:$0xff] %v16592_v10 }
 0x297   :  { %v13668_v15 = vpop.f32.mrf.mxu0  ;;  %13911 = vmatmul.mubr.msk.f32.gmra.mxu0 %vm103_vm1, %v5860_v46  ;;  %v5864_v46 = vld [vmem:[#allocation2 + $0x352] sm:$0xff] }
 0x298   :  { %v16598_v62 = vadd.f32 %v13668_v15, %v16279_v50  ;;  %13913 = vmatprep.mubr.msk.f32.mxu0 %vm103_vm1, %v5861_v35  ;;  %v16613_v35 = vpop.f32.mrf.mxu1 }
 0x299   :  { %v16601_v12 = vpop.f32.mrf.mxu0 }
 0x29a   :  { %20101 = vst [vmem:[#allocation63_spill] sm:$0xff] %v16598_v62  ;;  %20102 = vst [vmem:[#allocation64_spill] sm:$0xff] %v16601_v12  ;;  %v16620_v12 = vpop.f32.mrf.mxu1 }
 0x29b   :  { %v13671_v48 = vpop.f32.mrf.mxu0  ;;  %13914 = vmatmul.mubr.msk.f32.gmra.mxu0 %vm103_vm1, %v5862_v30 }
 0x29c   :  { %v16607_v55 = vadd.f32 %v13671_v48, %v16291_v56  ;;  %13916 = vmatprep.mubr.msk.f32.mxu0 %vm103_vm1, %v5863_v45 }
 0x29d   :  { %v16610_v10 = vpop.f32.mrf.mxu0 }
 0x29e   :  { %20103 = vst [vmem:[#allocation65_spill] sm:$0xff] %v16607_v55  ;;  %20104 = vst [vmem:[#allocation66_spill] sm:$0xff] %v16610_v10  ;;  %v16627_v55 = vpop.f32.mrf.mxu1 }
 0x29f   :  { %v13674_v50 = vpop.f32.mrf.mxu0  ;;  %13917 = vmatmul.mubr.msk.f32.gmra.mxu0 %vm103_vm1, %v5864_v46  ;;  %vm11358_vm1 = vcmask 261120  }
 0x2a0   :  { %v16616_v15 = vadd.f32 %v13674_v50, %v16303_v20  ;;  %v16634_v50 = vpop.f32.mrf.mxu1 }
 0x2a1   :  { %v16618_v62 = vpop.f32.mrf.mxu0 }
 0x2a2   :  { %20105 = vst [vmem:[#allocation67_spill] sm:$0xff] %v16616_v15  ;;  %20106 = vst [vmem:[#allocation68_spill] sm:$0xff] %v16618_v62 }
 0x2a3   :  { %v13677_v30 = vpop.f32.mrf.mxu0 }
 0x2a4   :  { %v16623_v56 = vadd.f32 %v13677_v30, %v16313_v51  ;;  %v16641_v30 = vpop.f32.mrf.mxu1 }
 0x2a5   :  { %v16625_v45 = vpop.f32.mrf.mxu0 }
 0x2a6   :  { %20107 = vst [vmem:[#allocation69_spill] sm:$0xff] %v16623_v56  ;;  %20108 = vst [vmem:[#allocation70_spill] sm:$0xff] %v16625_v45 }
 0x2a7   :  { %v13680_v48 = vpop.f32.mrf.mxu0 }
 0x2a8   :  { %v16630_v46 = vadd.f32 %v13680_v48, %v16323_v28  ;;  %v16648_v48 = vpop.f32.mrf.mxu1 }
 0x2a9   :  { %v16632_v10 = vpop.f32.mrf.mxu0 }
 0x2aa   :  { %20109 = vst [vmem:[#allocation71_spill] sm:$0xff] %v16630_v46  ;;  %20110 = vst [vmem:[#allocation72_spill] sm:$0xff] %v16632_v10 }
 0x2ab   :  { %v13683_v20 = vpop.f32.mrf.mxu0 }
 0x2ac   :  { %v16637_v15 = vadd.f32 %v13683_v20, %v16333_v1  ;;  %v16655_v20 = vpop.f32.mrf.mxu1 }
 0x2ad   :  { %v16639_v62 = vpop.f32.mrf.mxu0 }
 0x2ae   :  { %20111 = vst [vmem:[#allocation73_spill] sm:$0xff] %v16637_v15  ;;  %20112 = vst [vmem:[#allocation74_spill] sm:$0xff] %v16639_v62 }
 0x2af   :  { %v13686_v51 = vpop.f32.mrf.mxu0 }
 0x2b0   :  { %v16644_v56 = vadd.f32 %v13686_v51, %v16343_v3  ;;  %v16662_v51 = vpop.f32.mrf.mxu1 }
 0x2b1   :  { %v16646_v45 = vpop.f32.mrf.mxu0 }
 0x2b2   :  { %20113 = vst [vmem:[#allocation75_spill] sm:$0xff] %v16644_v56  ;;  %20114 = vst [vmem:[#allocation76_spill] sm:$0xff] %v16646_v45 }
 0x2b3   :  { %v13689_v28 = vpop.f32.mrf.mxu0 }
 0x2b4   :  { %v16651_v46 = vadd.f32 %v13689_v28, %v16353_v21  ;;  %v16669_v28 = vpop.f32.mrf.mxu1 }
 0x2b5   :  { %v16653_v10 = vpop.f32.mrf.mxu0 }
 0x2b6   :  { %20115 = vst [vmem:[#allocation77_spill] sm:$0xff] %v16651_v46  ;;  %20116 = vst [vmem:[#allocation78_spill] sm:$0xff] %v16653_v10 }
 0x2b7   :  { %v13692_v1 = vpop.f32.mrf.mxu0 }
 0x2b8   :  { %v16658_v15 = vadd.f32 %v13692_v1, %v16363_v24  ;;  %v16676_v1 = vpop.f32.mrf.mxu1 }
 0x2b9   :  { %v16660_v62 = vpop.f32.mrf.mxu0 }
 0x2ba   :  { %20117 = vst [vmem:[#allocation79_spill] sm:$0xff] %v16658_v15  ;;  %20118 = vst [vmem:[#allocation80_spill] sm:$0xff] %v16660_v62 }
 0x2bb   :  { %v13695_v3 = vpop.f32.mrf.mxu0 }
 0x2bc   :  { %v16665_v56 = vadd.f32 %v13695_v3, %v16373_v39  ;;  %v16683_v3 = vpop.f32.mrf.mxu1 }
 0x2bd   :  { %v16667_v45 = vpop.f32.mrf.mxu0 }
 0x2be   :  { %20119 = vst [vmem:[#allocation81_spill] sm:$0xff] %v16665_v56  ;;  %20120 = vst [vmem:[#allocation82_spill] sm:$0xff] %v16667_v45 }
 0x2bf   :  { %v13698_v21 = vpop.f32.mrf.mxu0 }
 0x2c0   :  { %v16672_v46 = vadd.f32 %v13698_v21, %v16383_v22  ;;  %v16690_v21 = vpop.f32.mrf.mxu1 }
 0x2c1   :  { %v16674_v10 = vpop.f32.mrf.mxu0 }
 0x2c2   :  { %20121 = vst [vmem:[#allocation83_spill] sm:$0xff] %v16672_v46  ;;  %20122 = vst [vmem:[#allocation84_spill] sm:$0xff] %v16674_v10 }
 0x2c3   :  { %v13701_v24 = vpop.f32.mrf.mxu0 }
 0x2c4   :  { %v16679_v15 = vadd.f32 %v13701_v24, %v16393_v31  ;;  %v16697_v24 = vpop.f32.mrf.mxu1 }
 0x2c5   :  { %v16681_v62 = vpop.f32.mrf.mxu0 }
 0x2c6   :  { %20123 = vst [vmem:[#allocation85_spill] sm:$0xff] %v16679_v15  ;;  %20124 = vst [vmem:[#allocation86_spill] sm:$0xff] %v16681_v62 }
 0x2c7   :  { %v13704_v39 = vpop.f32.mrf.mxu0 }
 0x2c8   :  { %v16686_v56 = vadd.f32 %v13704_v39, %v16403_v60  ;;  %v16704_v39 = vpop.f32.mrf.mxu1 }
 0x2c9   :  { %v16688_v45 = vpop.f32.mrf.mxu0 }
 0x2ca   :  { %20125 = vst [vmem:[#allocation87_spill] sm:$0xff] %v16686_v56  ;;  %20126 = vst [vmem:[#allocation88_spill] sm:$0xff] %v16688_v45 }
 0x2cb   :  { %v13707_v22 = vpop.f32.mrf.mxu0 }
 0x2cc   :  { %v16693_v46 = vadd.f32 %v13707_v22, %v16413_v17  ;;  %v16711_v22 = vpop.f32.mrf.mxu1 }
 0x2cd   :  { %v16695_v10 = vpop.f32.mrf.mxu0 }
 0x2ce   :  { %20127 = vst [vmem:[#allocation89_spill] sm:$0xff] %v16693_v46  ;;  %20128 = vst [vmem:[#allocation90_spill] sm:$0xff] %v16695_v10 }
 0x2cf   :  { %v13710_v31 = vpop.f32.mrf.mxu0 }
 0x2d0   :  { %v16700_v15 = vadd.f32 %v13710_v31, %v16423_v32  ;;  %v16718_v31 = vpop.f32.mrf.mxu1 }
 0x2d1   :  { %v16702_v62 = vpop.f32.mrf.mxu0 }
 0x2d2   :  { %20129 = vst [vmem:[#allocation91_spill] sm:$0xff] %v16700_v15  ;;  %20130 = vst [vmem:[#allocation92_spill] sm:$0xff] %v16702_v62 }
 0x2d3   :  { %v13713_v60 = vpop.f32.mrf.mxu0 }
 0x2d4   :  { %v16707_v56 = vadd.f32 %v13713_v60, %v16433_v49  ;;  %v16725_v60 = vpop.f32.mrf.mxu1 }
 0x2d5   :  { %v16709_v45 = vpop.f32.mrf.mxu0 }
 0x2d6   :  { %20131 = vst [vmem:[#allocation93_spill] sm:$0xff] %v16707_v56  ;;  %20132 = vst [vmem:[#allocation94_spill] sm:$0xff] %v16709_v45 }
 0x2d7   :  { %v13716_v17 = vpop.f32.mrf.mxu0 }
 0x2d8   :  { %v16714_v46 = vadd.f32 %v13716_v17, %v16443_v53  ;;  %v5738_v53 = vadd.f32 %v16483_v25, %v16455_v19  ;;  %v5739_v25 = vadd.f32 %v16502_v26, %v16481_v4  ;;  %v5741_v4 = vadd.f32 %v16514_v23, %v16493_v2 }
 0x2d9   :  { %v16716_v10 = vpop.f32.mrf.mxu0 }
 0x2da   :  { %20133 = vst [vmem:[#allocation95_spill] sm:$0xff] %v16714_v46  ;;  %20134 = vst [vmem:[#allocation96_spill] sm:$0xff] %v16716_v10  ;;  %v5737_v46 = vadd.f32 %v16490_v44, %v16461_v37  ;;  %v16736_v10 = vpop.f32.mrf.mxu1 }
 0x2db   :  { %v13719_v32 = vpop.f32.mrf.mxu0 }
 0x2dc   :  { %v16721_v15 = vadd.f32 %v13719_v32, %v16452_v13  ;;  %v16741_v32 = vld [vmem:[%s19771_s2] ss:$0 sm:$0xff]  ;;  %v16747_v19 = vpop.f32.mrf.mxu1 }
 0x2dd   :  { %v16723_v62 = vpop.f32.mrf.mxu0 }
 0x2de   :  { %20135 = vst [vmem:[#allocation97_spill] sm:$0xff] %v16721_v15 }
 0x2df   :  { %v13722_v49 = vpop.f32.mrf.mxu0 }
 0x2e0   :  { %v16728_v56 = vadd.f32 %v13722_v49, %v16472_v42  ;;  %v5740_v42 = vadd.f32 %v16495_v52, %v16475_v5 }
 0x2e1   :  { %v16730_v45 = vpop.f32.mrf.mxu0 }
 0x2e2   :  { %20136 = vst [vmem:[#allocation98_spill] sm:$0xff] %v16728_v56  ;;  %20137 = vst [vmem:[#allocation99_spill] sm:$0xff] %v16730_v45  ;;  %v5742_v45 = vadd.f32 %v16507_v0, %v16487_v11 }
 0x2e3   :  { %v13825_v17 = vpop.f32.mrf.mxu0 }
 0x2e4   :  { %v6448_v13 = vadd.f32 %v13825_v17, %v5738_v53 }
 0x2e5   :  { %v6128_v15 = vpop.f32.mrf.mxu0 }
 0x2e6   :  { %v6447_v49 = vadd.f32 %v6128_v15, %v5737_v46  ;;  %v16750_v37 = vadd.f32 %v16741_v32, %v6448_v13  ;;  %v16761_v15 = vpop.f32.mrf.mxu1 }
 0x2e7   :  { %v13828_v56 = vpop.f32.mrf.mxu0 }
 0x2e8   :  { %20138 = vst [vmem:[#allocation100_spill] sm:$0xff] %v16750_v37  ;;  %v16753_v44 = vadd.f32 %v16741_v32, %v6447_v49  ;;  %v6450_v53 = vadd.f32 %v13828_v56, %v5740_v42  ;;  %v6584_v46 = vsel %vm6582_vm4, %v16750_v37, 0.0  ;;  %v5744_v49 = vadd.f32 %v16523_v38, %v16499_v58 }
 0x2e9   :  { %v6138_v17 = vpop.f32.mrf.mxu0 }
 0x2ea   :  { %v6583_v5 = vsel %vm6582_vm4, %v16753_v44, 0.0  ;;  %v6449_v52 = vadd.f32 %v6138_v17, %v5739_v25  ;;  %v16766_v13 = vadd.f32 %v16741_v32, %v6450_v53  ;;  %v5743_v25 = vadd.f32 %v16530_v8, %v16505_v40  ;;  %v16777_v53 = vpop.f32.mrf.mxu1 }
 0x2eb   :  { %v13831_v26 = vpop.f32.mrf.mxu0  ;;  %v6585_v0 = vadd.f32 %v6584_v46, %v6583_v5  ;;  %v5745_v46 = vadd.f32 %v16550_v36, %v16517_v63 }
 0x2ec   :  { %v16769_v56 = vadd.f32 %v16741_v32, %v6449_v52  ;;  %v6452_v11 = vadd.f32 %v13831_v26, %v5742_v45  ;;  %v6588_v52 = vsel %vm6582_vm4, %v16766_v13, 0.0 }
 0x2ed   :  { %v6148_v42 = vpop.f32.mrf.mxu0 }
 0x2ee   :  { %v6586_v2 = vsel %vm6582_vm4, %v16769_v56, 0.0  ;;  %v6451_v23 = vadd.f32 %v6148_v42, %v5741_v4  ;;  %v16782_v45 = vadd.f32 %v16741_v32, %v6452_v11  ;;  %v5746_v4 = vadd.f32 %v16540_v9, %v16511_v47  ;;  %v16793_v11 = vpop.f32.mrf.mxu1 }
 0x2ef   :  { %v6587_v17 = vadd.f32 %v6586_v2, %v6585_v0  ;;  %v13834_v37 = vpop.f32.mrf.mxu0 }
 0x2f0   :  { %v16785_v5 = vadd.f32 %v16741_v32, %v6451_v23  ;;  %v6454_v58 = vadd.f32 %v13834_v37, %v5744_v49  ;;  %v6592_v2 = vsel %vm6582_vm4, %v16782_v45, 0.0 }
 0x2f1   :  { %v6589_v38 = vadd.f32 %v6588_v52, %v6587_v17  ;;  %v6158_v26 = vpop.f32.mrf.mxu0  ;;  %v5747_v17 = vadd.f32 %v16568_v33, %v16527_v61 }
 0x2f2   :  { %v6590_v40 = vsel %vm6582_vm4, %v16785_v5, 0.0  ;;  %v6453_v8 = vadd.f32 %v6158_v26, %v5743_v25  ;;  %v16798_v37 = vadd.f32 %v16741_v32, %v6454_v58  ;;  %v5748_v25 = vadd.f32 %v16559_v34, %v16521_v43  ;;  %v16809_v58 = vpop.f32.mrf.mxu1 }
 0x2f3   :  { %v6591_v0 = vadd.f32 %v6590_v40, %v6589_v38  ;;  %v13837_v42 = vpop.f32.mrf.mxu0 }
 0x2f4   :  { %v16801_v49 = vadd.f32 %v16741_v32, %v6453_v8  ;;  %v6456_v47 = vadd.f32 %v13837_v42, %v5746_v4  ;;  %v6596_v26 = vsel %vm6582_vm4, %v16798_v37, 0.0 }
 0x2f5   :  { %v6593_v9 = vadd.f32 %v6592_v2, %v6591_v0  ;;  %v6168_v23 = vpop.f32.mrf.mxu0  ;;  %v5749_v0 = vadd.f32 %v16586_v14, %v16537_v16 }
 0x2f6   :  { %v6594_v63 = vsel %vm6582_vm4, %v16801_v49, 0.0  ;;  %v6455_v36 = vadd.f32 %v6168_v23, %v5745_v46  ;;  %v16814_v4 = vadd.f32 %v16741_v32, %v6456_v47  ;;  %v5750_v46 = vadd.f32 %v16577_v27, %v16533_v6  ;;  %v16825_v47 = vpop.f32.mrf.mxu1 }
 0x2f7   :  { %v6595_v52 = vadd.f32 %v6594_v63, %v6593_v9  ;;  %v13840_v38 = vpop.f32.mrf.mxu0 }
 0x2f8   :  { %v16817_v40 = vadd.f32 %v16741_v32, %v6455_v36  ;;  %v6458_v34 = vadd.f32 %v13840_v38, %v5748_v25  ;;  %v6600_v9 = vsel %vm6582_vm4, %v16814_v4, 0.0  ;;  %v5752_v36 = vadd.f32 %v16595_v57, %v16543_v18 }
 0x2f9   :  { %v6597_v43 = vadd.f32 %v6596_v26, %v6595_v52  ;;  %v6178_v8 = vpop.f32.mrf.mxu0  ;;  %v5751_v38 = vadd.f32 %v16604_v29, %v16547_v41  ;;  %v5754_v41 = vadd.f32 %v16613_v35, %v16553_v59 }
 0x2fa   :  { %v6598_v61 = vsel %vm6582_vm4, %v16817_v40, 0.0  ;;  %v6457_v33 = vadd.f32 %v6178_v8, %v5747_v17  ;;  %v16830_v23 = vadd.f32 %v16741_v32, %v6458_v34  ;;  %v20139_v17 = vld [vmem:[#allocation47_spill] sm:$0xff] }
 0x2fb   :  { %v6599_v42 = vadd.f32 %v6598_v61, %v6597_v43  ;;  %v13843_v2 = vpop.f32.mrf.mxu0  ;;  %v4332_v52 = vadd.f32 %v20139_v17, %v16200_v54  ;;  %v16843_v43 = vpop.f32.mrf.mxu1 }
 0x2fc   :  { %v16833_v25 = vadd.f32 %v16741_v32, %v6457_v33  ;;  %v6460_v6 = vadd.f32 %v13843_v2, %v5750_v46  ;;  %v6604_v8 = vsel %vm6582_vm4, %v16830_v23, 0.0  ;;  %v20141_v2 = vld [vmem:[#allocation49_spill] sm:$0xff] }
 0x2fd   :  { %v6601_v27 = vadd.f32 %v6600_v9, %v6599_v42  ;;  %v6188_v63 = vpop.f32.mrf.mxu0  ;;  %v5043_v61 = vadd.f32 %v16556_v7, %v4332_v52  ;;  %v20140_v42 = vld [vmem:[#allocation38_spill] sm:$0xff] }
 0x2fe   :  { %v6602_v16 = vsel %vm6582_vm4, %v16833_v25, 0.0  ;;  %v6459_v14 = vadd.f32 %v6188_v63, %v5749_v0  ;;  %v16848_v46 = vadd.f32 %v16741_v32, %v6460_v6  ;;  %v4334_v9 = vadd.f32 %v20141_v2, %v20140_v42 }
 0x2ff   :  { %v6603_v26 = vadd.f32 %v6602_v16, %v6601_v27  ;;  %v13846_v34 = vpop.f32.mrf.mxu0  ;;  %v5753_v6 = vadd.f32 %v16620_v12, %v5043_v61  ;;  %v16861_v16 = vpop.f32.mrf.mxu1  ;;  %v20144_v61 = vld [vmem:[#allocation39_spill] sm:$0xff] }
 0x300   :  { %v16851_v18 = vadd.f32 %v16741_v32, %v6459_v14  ;;  %v6462_v57 = vadd.f32 %v13846_v34, %v5752_v36  ;;  %v6608_v7 = vsel %vm6582_vm4, %v16848_v46, 0.0  ;;  %v20142_v14 = vld [vmem:[#allocation33_spill] sm:$0xff] }
 0x301   :  { %v6605_v54 = vadd.f32 %v6604_v8, %v6603_v26  ;;  %v6198_v33 = vpop.f32.mrf.mxu0  ;;  %v5045_v17 = vadd.f32 %v20142_v14, %v4334_v9  ;;  %v20143_v26 = vld [vmem:[#allocation32_spill] sm:$0xff]  ;;  %v16879_v42 = vpop.f32.mrf.mxu1  ;;  %v20148_v14 = vld [vmem:[#allocation34_spill] sm:$0xff] }
 0x302   :  { %v6606_v29 = vsel %vm6582_vm4, %v16851_v18, 0.0  ;;  %v6461_v0 = vadd.f32 %v6198_v33, %v5751_v38  ;;  %v16866_v36 = vadd.f32 %v16741_v32, %v6462_v57  ;;  %v5756_v12 = vadd.f32 %v16627_v55, %v20143_v26  ;;  %v20150_v26 = vld [vmem:[#allocation10_spill] sm:$0xff] }
 0x303   :  { %v6607_v27 = vadd.f32 %v6606_v29, %v6605_v54  ;;  %v13849_v63 = vpop.f32.mrf.mxu0  ;;  %v20145_v54 = vld [vmem:[#allocation41_spill] sm:$0xff]  ;;  %v5755_v57 = vadd.f32 %v16634_v50, %v5045_v17  ;;  %v5758_v50 = vadd.f32 %v16641_v30, %v20148_v14  ;;  %v20154_v14 = vld [vmem:[#allocation42_spill] sm:$0xff] }
 0x304   :  { %v16869_v59 = vadd.f32 %v16741_v32, %v6461_v0  ;;  %v6464_v35 = vadd.f32 %v13849_v63, %v5754_v41  ;;  %v4336_v33 = vadd.f32 %v20145_v54, %v20144_v61  ;;  %v6612_v41 = vsel %vm6582_vm4, %v16866_v36, 0.0  ;;  %v16897_v54 = vpop.f32.mrf.mxu1 }
 0x305   :  { %v6609_v52 = vadd.f32 %v6608_v7, %v6607_v27  ;;  %v6208_v38 = vpop.f32.mrf.mxu0 }
 0x306   :  { %v6610_v34 = vsel %vm6582_vm4, %v16869_v59, 0.0  ;;  %v6463_v8 = vadd.f32 %v6208_v38, %v5753_v6  ;;  %v16884_v2 = vadd.f32 %v16741_v32, %v6464_v35  ;;  %v20147_v6 = vld [vmem:[#allocation35_spill] sm:$0xff]  ;;  %v20149_v38 = vld [vmem:[#allocation40_spill] sm:$0xff] }
 0x307   :  { %v6611_v29 = vadd.f32 %v6610_v34, %v6609_v52  ;;  %v13852_v0 = vpop.f32.mrf.mxu0  ;;  %v5047_v27 = vadd.f32 %v20147_v6, %v4336_v33  ;;  %v4338_v34 = vadd.f32 %v20150_v26, %v20149_v38 }
 0x308   :  { %20146 = vst [vmem:[#allocation47_spill] sm:$0xff] %v16884_v2  ;;  %v16887_v55 = vadd.f32 %v16741_v32, %v6463_v8  ;;  %v6466_v9 = vadd.f32 %v13852_v0, %v5756_v12  ;;  %v6616_v12 = vsel %vm6582_vm4, %v16884_v2, 0.0  ;;  %v16915_v2 = vpop.f32.mrf.mxu1 }
 0x309   :  { %v6613_v63 = vadd.f32 %v6612_v41, %v6611_v29  ;;  %v6218_v7 = vpop.f32.mrf.mxu0  ;;  %v5757_v35 = vadd.f32 %v16648_v48, %v5047_v27 }
 0x30a   :  { %v6614_v17 = vsel %vm6582_vm4, %v16887_v55, 0.0  ;;  %v6465_v52 = vadd.f32 %v6218_v7, %v5755_v57  ;;  %v16902_v33 = vadd.f32 %v16741_v32, %v6466_v9  ;;  %v20152_v57 = vld [vmem:[#allocation37_spill] sm:$0xff]  ;;  %v20153_v7 = vld [vmem:[#allocation36_spill] sm:$0xff] }
 0x30b   :  { %v6615_v61 = vadd.f32 %v6614_v17, %v6613_v63  ;;  %v13855_v8 = vpop.f32.mrf.mxu0  ;;  %v5049_v0 = vadd.f32 %v20152_v57, %v4338_v34  ;;  %v5760_v48 = vadd.f32 %v16655_v20, %v20153_v7  ;;  %v20155_v17 = vld [vmem:[#allocation50_spill] sm:$0xff]  ;;  %v20159_v7 = vld [vmem:[#allocation43_spill] sm:$0xff] }
 0x30c   :  { %20151 = vst [vmem:[#allocation38_spill] sm:$0xff] %v16902_v33  ;;  %v16905_v30 = vadd.f32 %v16741_v32, %v6465_v52  ;;  %v6468_v29 = vadd.f32 %v13855_v8, %v5758_v50  ;;  %v4340_v38 = vadd.f32 %v20155_v17, %v20154_v14  ;;  %v6620_v50 = vsel %vm6582_vm4, %v16902_v33, 0.0  ;;  %v16933_v33 = vpop.f32.mrf.mxu1 }
 0x30d   :  { %v6617_v41 = vadd.f32 %v6616_v12, %v6615_v61  ;;  %v6228_v6 = vpop.f32.mrf.mxu0  ;;  %v5759_v9 = vadd.f32 %v16662_v51, %v5049_v0 }
 0x30e   :  { %v6618_v27 = vsel %vm6582_vm4, %v16905_v30, 0.0  ;;  %v6467_v63 = vadd.f32 %v6228_v6, %v5757_v35  ;;  %v16920_v34 = vadd.f32 %v16741_v32, %v6468_v29  ;;  %v20157_v35 = vld [vmem:[#allocation62_spill] sm:$0xff] }
 0x30f   :  { %v6619_v26 = vadd.f32 %v6618_v27, %v6617_v41  ;;  %v13858_v52 = vpop.f32.mrf.mxu0  ;;  %v5051_v8 = vadd.f32 %v20157_v35, %v4340_v38  ;;  %v20158_v6 = vld [vmem:[#allocation46_spill] sm:$0xff]  ;;  %v20160_v27 = vld [vmem:[#allocation45_spill] sm:$0xff] }
 0x310   :  { %20156 = vst [vmem:[#allocation49_spill] sm:$0xff] %v16920_v34  ;;  %v16923_v20 = vadd.f32 %v16741_v32, %v6467_v63  ;;  %v6470_v61 = vadd.f32 %v13858_v52, %v5760_v48  ;;  %v5762_v51 = vadd.f32 %v16669_v28, %v20158_v6  ;;  %v4342_v14 = vadd.f32 %v20160_v27, %v20159_v7  ;;  %v20164_v6 = vld [vmem:[#allocation44_spill] sm:$0xff] }
 0x311   :  { %v6621_v12 = vadd.f32 %v6620_v50, %v6619_v26  ;;  %v6238_v57 = vpop.f32.mrf.mxu0  ;;  %v5761_v29 = vadd.f32 %v16676_v1, %v5051_v8  ;;  %v6624_v48 = vsel %vm6582_vm4, %v16920_v34, 0.0  ;;  %v16951_v34 = vpop.f32.mrf.mxu1 }
 0x312   :  { %v6622_v0 = vsel %vm6582_vm4, %v16923_v20, 0.0  ;;  %v6469_v41 = vadd.f32 %v6238_v57, %v5759_v9  ;;  %v16938_v38 = vadd.f32 %v16741_v32, %v6470_v61  ;;  %v20162_v9 = vld [vmem:[#allocation64_spill] sm:$0xff]  ;;  %v20163_v57 = vld [vmem:[#allocation63_spill] sm:$0xff] }
 0x313   :  { %v6623_v17 = vadd.f32 %v6622_v0, %v6621_v12  ;;  %v13861_v63 = vpop.f32.mrf.mxu0  ;;  %v5053_v52 = vadd.f32 %v20162_v9, %v4342_v14  ;;  %v5764_v1 = vadd.f32 %v16683_v3, %v20163_v57  ;;  %v20165_v0 = vld [vmem:[#allocation48_spill] sm:$0xff] }
 0x314   :  { %20161 = vst [vmem:[#allocation33_spill] sm:$0xff] %v16938_v38  ;;  %v16941_v28 = vadd.f32 %v16741_v32, %v6469_v41  ;;  %v6472_v26 = vadd.f32 %v13861_v63, %v5762_v51  ;;  %v4344_v7 = vadd.f32 %v20165_v0, %v20164_v6  ;;  %v6628_v51 = vsel %vm6582_vm4, %v16938_v38, 0.0  ;;  %v20169_v57 = vld [vmem:[#allocation8_spill] sm:$0xff]  ;;  %v16969_v38 = vpop.f32.mrf.mxu1 }
 0x315   :  { %v6625_v50 = vadd.f32 %v6624_v48, %v6623_v17  ;;  %v6248_v35 = vpop.f32.mrf.mxu0  ;;  %v5763_v61 = vadd.f32 %v16690_v21, %v5053_v52 }
 0x316   :  { %v6626_v8 = vsel %vm6582_vm4, %v16941_v28, 0.0  ;;  %v6471_v12 = vadd.f32 %v6248_v35, %v5761_v29  ;;  %v16956_v14 = vadd.f32 %v16741_v32, %v6472_v26  ;;  %v20167_v29 = vld [vmem:[#allocation66_spill] sm:$0xff]  ;;  %v20168_v35 = vld [vmem:[#allocation65_spill] sm:$0xff] }
 0x317   :  { %v6627_v27 = vadd.f32 %v6626_v8, %v6625_v50  ;;  %v13864_v41 = vpop.f32.mrf.mxu0  ;;  %v5055_v63 = vadd.f32 %v20167_v29, %v4344_v7  ;;  %v5766_v21 = vadd.f32 %v16697_v24, %v20168_v35  ;;  %v20170_v8 = vld [vmem:[#allocation9_spill] sm:$0xff] }
 0x318   :  { %20166 = vst [vmem:[#allocation32_spill] sm:$0xff] %v16956_v14  ;;  %v16959_v3 = vadd.f32 %v16741_v32, %v6471_v12  ;;  %v6474_v17 = vadd.f32 %v13864_v41, %v5764_v1  ;;  %v4346_v6 = vadd.f32 %v20170_v8, %v20169_v57  ;;  %v6632_v1 = vsel %vm6582_vm4, %v16956_v14, 0.0  ;;  %v20174_v35 = vld [vmem:[#allocation57_spill] sm:$0xff]  ;;  %v16987_v14 = vpop.f32.mrf.mxu1 }
 0x319   :  { %v6629_v48 = vadd.f32 %v6628_v51, %v6627_v27  ;;  %v6258_v9 = vpop.f32.mrf.mxu0  ;;  %v5765_v26 = vadd.f32 %v16704_v39, %v5055_v63 }
 0x31a   :  { %v6630_v52 = vsel %vm6582_vm4, %v16959_v3, 0.0  ;;  %v6473_v50 = vadd.f32 %v6258_v9, %v5763_v61  ;;  %v16974_v7 = vadd.f32 %v16741_v32, %v6474_v17  ;;  %v20172_v61 = vld [vmem:[#allocation68_spill] sm:$0xff]  ;;  %v20173_v9 = vld [vmem:[#allocation67_spill] sm:$0xff] }
 0x31b   :  { %v6631_v0 = vadd.f32 %v6630_v52, %v6629_v48  ;;  %v13867_v12 = vpop.f32.mrf.mxu0  ;;  %v5057_v41 = vadd.f32 %v20172_v61, %v4346_v6  ;;  %v5768_v39 = vadd.f32 %v16711_v22, %v20173_v9  ;;  %v20175_v52 = vld [vmem:[#allocation58_spill] sm:$0xff]  ;;  %v20179_v9 = vld [vmem:[#allocation52_spill] sm:$0xff] }
 0x31c   :  { %20171 = vst [vmem:[#allocation39_spill] sm:$0xff] %v16974_v7  ;;  %v16977_v24 = vadd.f32 %v16741_v32, %v6473_v50  ;;  %v6476_v27 = vadd.f32 %v13867_v12, %v5766_v21  ;;  %v4348_v57 = vadd.f32 %v20175_v52, %v20174_v35  ;;  %v6636_v21 = vsel %vm6582_vm4, %v16974_v7, 0.0  ;;  %v17005_v7 = vpop.f32.mrf.mxu1 }
 0x31d   :  { %v6633_v51 = vadd.f32 %v6632_v1, %v6631_v0  ;;  %v6268_v29 = vpop.f32.mrf.mxu0  ;;  %v5767_v17 = vadd.f32 %v16718_v31, %v5057_v41 }
 0x31e   :  { %v6634_v63 = vsel %vm6582_vm4, %v16977_v24, 0.0  ;;  %v6475_v48 = vadd.f32 %v6268_v29, %v5765_v26  ;;  %v16992_v6 = vadd.f32 %v16741_v32, %v6476_v27  ;;  %v20177_v26 = vld [vmem:[#allocation70_spill] sm:$0xff]  ;;  %v20178_v29 = vld [vmem:[#allocation69_spill] sm:$0xff] }
 0x31f   :  { %v6635_v8 = vadd.f32 %v6634_v63, %v6633_v51  ;;  %v13870_v50 = vpop.f32.mrf.mxu0  ;;  %v5059_v12 = vadd.f32 %v20177_v26, %v4348_v57  ;;  %v5770_v31 = vadd.f32 %v16725_v60, %v20178_v29  ;;  %v20180_v63 = vld [vmem:[#allocation53_spill] sm:$0xff]  ;;  %v20184_v29 = vld [vmem:[#allocation51_spill] sm:$0xff] }
 0x320   :  { %20176 = vst [vmem:[#allocation41_spill] sm:$0xff] %v16992_v6  ;;  %v16995_v22 = vadd.f32 %v16741_v32, %v6475_v48  ;;  %v6478_v0 = vadd.f32 %v13870_v50, %v5768_v39  ;;  %v4350_v35 = vadd.f32 %v20180_v63, %v20179_v9  ;;  %v6640_v39 = vsel %vm6582_vm4, %v16992_v6, 0.0  ;;  %v17023_v6 = vpop.f32.mrf.mxu1 }
 0x321   :  { %v6637_v1 = vadd.f32 %v6636_v21, %v6635_v8  ;;  %v6278_v61 = vpop.f32.mrf.mxu0  ;;  %v5769_v27 = vadd.f32 %v16736_v10, %v5059_v12 }
 0x322   :  { %v6638_v41 = vsel %vm6582_vm4, %v16995_v22, 0.0  ;;  %v6477_v51 = vadd.f32 %v6278_v61, %v5767_v17  ;;  %v17010_v57 = vadd.f32 %v16741_v32, %v6478_v0  ;;  %v20182_v17 = vld [vmem:[#allocation72_spill] sm:$0xff]  ;;  %v20183_v61 = vld [vmem:[#allocation71_spill] sm:$0xff] }
 0x323   :  { %v6639_v52 = vadd.f32 %v6638_v41, %v6637_v1  ;;  %v13873_v48 = vpop.f32.mrf.mxu0  ;;  %v5061_v50 = vadd.f32 %v20182_v17, %v4350_v35  ;;  %v5772_v10 = vadd.f32 %v16747_v19, %v20183_v61  ;;  %v20185_v41 = vld [vmem:[#allocation55_spill] sm:$0xff]  ;;  %v20189_v61 = vld [vmem:[#allocation54_spill] sm:$0xff] }
 0x324   :  { %20181 = vst [vmem:[#allocation35_spill] sm:$0xff] %v17010_v57  ;;  %v17013_v60 = vadd.f32 %v16741_v32, %v6477_v51  ;;  %v6480_v8 = vadd.f32 %v13873_v48, %v5770_v31  ;;  %v4352_v9 = vadd.f32 %v20185_v41, %v20184_v29  ;;  %v6644_v31 = vsel %vm6582_vm4, %v17010_v57, 0.0  ;;  %v17041_v57 = vpop.f32.mrf.mxu1 }
 0x325   :  { %v6641_v21 = vadd.f32 %v6640_v39, %v6639_v52  ;;  %v6288_v26 = vpop.f32.mrf.mxu0  ;;  %v5771_v0 = vadd.f32 %v16761_v15, %v5061_v50 }
 0x326   :  { %v6642_v12 = vsel %vm6582_vm4, %v17013_v60, 0.0  ;;  %v6479_v1 = vadd.f32 %v6288_v26, %v5769_v27  ;;  %v17028_v35 = vadd.f32 %v16741_v32, %v6480_v8  ;;  %v20187_v27 = vld [vmem:[#allocation74_spill] sm:$0xff]  ;;  %v20188_v26 = vld [vmem:[#allocation73_spill] sm:$0xff] }
 0x327   :  { %v6643_v63 = vadd.f32 %v6642_v12, %v6641_v21  ;;  %v13876_v51 = vpop.f32.mrf.mxu0  ;;  %v5063_v48 = vadd.f32 %v20187_v27, %v4352_v9  ;;  %v5774_v15 = vadd.f32 %v16777_v53, %v20188_v26  ;;  %v20190_v12 = vld [vmem:[#allocation11_spill] sm:$0xff]  ;;  %v20195_v26 = vld [vmem:[#allocation56_spill] sm:$0xff] }
 0x328   :  { %20186 = vst [vmem:[#allocation34_spill] sm:$0xff] %v17028_v35  ;;  %v17031_v19 = vadd.f32 %v16741_v32, %v6479_v1  ;;  %v6482_v52 = vadd.f32 %v13876_v51, %v5772_v10  ;;  %v4354_v29 = vadd.f32 %v20190_v12, %v20189_v61  ;;  %v6648_v10 = vsel %vm6582_vm4, %v17028_v35, 0.0  ;;  %v17059_v35 = vpop.f32.mrf.mxu1 }
 0x329   :  { %v6645_v39 = vadd.f32 %v6644_v31, %v6643_v63  ;;  %v6298_v17 = vpop.f32.mrf.mxu0  ;;  %v5773_v8 = vadd.f32 %v16793_v11, %v5063_v48 }
 0x32a   :  { %v6646_v50 = vsel %vm6582_vm4, %v17031_v19, 0.0  ;;  %v6481_v21 = vadd.f32 %v6298_v17, %v5771_v0  ;;  %v17046_v9 = vadd.f32 %v16741_v32, %v6482_v52  ;;  %v20193_v0 = vld [vmem:[#allocation76_spill] sm:$0xff]  ;;  %v20194_v17 = vld [vmem:[#allocation75_spill] sm:$0xff] }
 0x32b   :  { %v6647_v41 = vadd.f32 %v6646_v50, %v6645_v39  ;;  %v13879_v1 = vpop.f32.mrf.mxu0  ;;  %v5065_v51 = vadd.f32 %v20193_v0, %v4354_v29  ;;  %v5776_v11 = vadd.f32 %v16809_v58, %v20194_v17  ;;  %v20196_v50 = vld [vmem:[#allocation59_spill] sm:$0xff]  ;;  %v20201_v17 = vld [vmem:[#allocation12_spill] sm:$0xff] }
 0x32c   :  { %20191 = vst [vmem:[#allocation40_spill] sm:$0xff] %v17046_v9  ;;  %v17049_v53 = vadd.f32 %v16741_v32, %v6481_v21  ;;  %v6484_v63 = vadd.f32 %v13879_v1, %v5774_v15  ;;  %v4356_v61 = vadd.f32 %v20196_v50, %v20195_v26  ;;  %v6652_v15 = vsel %vm6582_vm4, %v17046_v9, 0.0  ;;  %v17077_v9 = vpop.f32.mrf.mxu1 }
 0x32d   :  { %v6649_v31 = vadd.f32 %v6648_v10, %v6647_v41  ;;  %v6308_v27 = vpop.f32.mrf.mxu0  ;;  %v5775_v52 = vadd.f32 %v16825_v47, %v5065_v51 }
 0x32e   :  { %20192 = vst [vmem:[#allocation10_spill] sm:$0xff] %v17049_v53  ;;  %v6650_v48 = vsel %vm6582_vm4, %v17049_v53, 0.0  ;;  %v6483_v39 = vadd.f32 %v6308_v27, %v5773_v8  ;;  %v17064_v29 = vadd.f32 %v16741_v32, %v6484_v63  ;;  %v20199_v8 = vld [vmem:[#allocation78_spill] sm:$0xff]  ;;  %v20200_v27 = vld [vmem:[#allocation77_spill] sm:$0xff] }
 0x32f   :  { %v6651_v12 = vadd.f32 %v6650_v48, %v6649_v31  ;;  %v13882_v21 = vpop.f32.mrf.mxu0  ;;  %v5067_v1 = vadd.f32 %v20199_v8, %v4356_v61  ;;  %v5778_v47 = vadd.f32 %v16843_v43, %v20200_v27  ;;  %v20202_v48 = vld [vmem:[#allocation61_spill] sm:$0xff]  ;;  %v20207_v27 = vld [vmem:[#allocation60_spill] sm:$0xff] }
 0x330   :  { %20197 = vst [vmem:[#allocation37_spill] sm:$0xff] %v17064_v29  ;;  %v17067_v58 = vadd.f32 %v16741_v32, %v6483_v39  ;;  %v6486_v41 = vadd.f32 %v13882_v21, %v5776_v11  ;;  %v4358_v26 = vadd.f32 %v20202_v48, %v20201_v17  ;;  %v6656_v11 = vsel %vm6582_vm4, %v17064_v29, 0.0  ;;  %v17095_v29 = vpop.f32.mrf.mxu1 }
 0x331   :  { %v6653_v10 = vadd.f32 %v6652_v15, %v6651_v12  ;;  %v6318_v0 = vpop.f32.mrf.mxu0  ;;  %v5777_v63 = vadd.f32 %v16861_v16, %v5067_v1 }
 0x332   :  { %20198 = vst [vmem:[#allocation36_spill] sm:$0xff] %v17067_v58  ;;  %v6654_v51 = vsel %vm6582_vm4, %v17067_v58, 0.0  ;;  %v6485_v31 = vadd.f32 %v6318_v0, %v5775_v52  ;;  %v17082_v61 = vadd.f32 %v16741_v32, %v6486_v41  ;;  %v20205_v52 = vld [vmem:[#allocation80_spill] sm:$0xff]  ;;  %v20206_v0 = vld [vmem:[#allocation79_spill] sm:$0xff] }
 0x333   :  { %v6655_v50 = vadd.f32 %v6654_v51, %v6653_v10  ;;  %v13885_v39 = vpop.f32.mrf.mxu0  ;;  %v5069_v21 = vadd.f32 %v20205_v52, %v4358_v26  ;;  %v5780_v16 = vadd.f32 %v16879_v42, %v20206_v0  ;;  %v20208_v51 = vld [vmem:[#allocation14_spill] sm:$0xff]  ;;  %v20213_v0 = vld [vmem:[#allocation13_spill] sm:$0xff] }
 0x334   :  { %20203 = vst [vmem:[#allocation42_spill] sm:$0xff] %v17082_v61  ;;  %v17085_v43 = vadd.f32 %v16741_v32, %v6485_v31  ;;  %v6488_v12 = vadd.f32 %v13885_v39, %v5778_v47  ;;  %v4360_v17 = vadd.f32 %v20208_v51, %v20207_v27  ;;  %v6660_v47 = vsel %vm6582_vm4, %v17082_v61, 0.0  ;;  %v17113_v61 = vpop.f32.mrf.mxu1 }
 0x335   :  { %v6657_v15 = vadd.f32 %v6656_v11, %v6655_v50  ;;  %v6328_v8 = vpop.f32.mrf.mxu0  ;;  %v5779_v41 = vadd.f32 %v16897_v54, %v5069_v21 }
 0x336   :  { %20204 = vst [vmem:[#allocation50_spill] sm:$0xff] %v17085_v43  ;;  %v6658_v1 = vsel %vm6582_vm4, %v17085_v43, 0.0  ;;  %v6487_v10 = vadd.f32 %v6328_v8, %v5777_v63  ;;  %v17100_v26 = vadd.f32 %v16741_v32, %v6488_v12  ;;  %v20211_v63 = vld [vmem:[#allocation82_spill] sm:$0xff]  ;;  %v20212_v8 = vld [vmem:[#allocation81_spill] sm:$0xff] }
 0x337   :  { %v6659_v48 = vadd.f32 %v6658_v1, %v6657_v15  ;;  %v13888_v31 = vpop.f32.mrf.mxu0  ;;  %v5071_v39 = vadd.f32 %v20211_v63, %v4360_v17  ;;  %v5782_v54 = vadd.f32 %v16915_v2, %v20212_v8  ;;  %v20214_v1 = vld [vmem:[#allocation20_spill] sm:$0xff]  ;;  %v20219_v8 = vld [vmem:[#allocation15_spill] sm:$0xff] }
 0x338   :  { %20209 = vst [vmem:[#allocation62_spill] sm:$0xff] %v17100_v26  ;;  %v17103_v42 = vadd.f32 %v16741_v32, %v6487_v10  ;;  %v6490_v50 = vadd.f32 %v13888_v31, %v5780_v16  ;;  %v4362_v27 = vadd.f32 %v20214_v1, %v20213_v0  ;;  %v6664_v16 = vsel %vm6582_vm4, %v17100_v26, 0.0  ;;  %v17131_v26 = vpop.f32.mrf.mxu1 }
 0x339   :  { %v6661_v11 = vadd.f32 %v6660_v47, %v6659_v48  ;;  %v6338_v52 = vpop.f32.mrf.mxu0  ;;  %v5781_v12 = vadd.f32 %v16933_v33, %v5071_v39 }
 0x33a   :  { %20210 = vst [vmem:[#allocation46_spill] sm:$0xff] %v17103_v42  ;;  %v6662_v21 = vsel %vm6582_vm4, %v17103_v42, 0.0  ;;  %v6489_v15 = vadd.f32 %v6338_v52, %v5779_v41  ;;  %v17118_v17 = vadd.f32 %v16741_v32, %v6490_v50  ;;  %v20217_v41 = vld [vmem:[#allocation84_spill] sm:$0xff]  ;;  %v20218_v52 = vld [vmem:[#allocation83_spill] sm:$0xff] }
 0x33b   :  { %v6663_v51 = vadd.f32 %v6662_v21, %v6661_v11  ;;  %v13891_v10 = vpop.f32.mrf.mxu0  ;;  %v5073_v31 = vadd.f32 %v20217_v41, %v4362_v27  ;;  %v5784_v33 = vadd.f32 %v16951_v34, %v20218_v52  ;;  %v20220_v21 = vld [vmem:[#allocation22_spill] sm:$0xff]  ;;  %v20225_v52 = vld [vmem:[#allocation16_spill] sm:$0xff] }
 0x33c   :  { %20215 = vst [vmem:[#allocation43_spill] sm:$0xff] %v17118_v17  ;;  %v17121_v2 = vadd.f32 %v16741_v32, %v6489_v15  ;;  %v6492_v48 = vadd.f32 %v13891_v10, %v5782_v54  ;;  %v4364_v0 = vadd.f32 %v20220_v21, %v20219_v8  ;;  %v6668_v54 = vsel %vm6582_vm4, %v17118_v17, 0.0  ;;  %v5698_v17 = vpop.f32.mrf.mxu1 }
 0x33d   :  { %v6665_v47 = vadd.f32 %v6664_v16, %v6663_v51  ;;  %v6348_v63 = vpop.f32.mrf.mxu0  ;;  %v5783_v50 = vadd.f32 %v16969_v38, %v5073_v31 }
 0x33e   :  { %20216 = vst [vmem:[#allocation45_spill] sm:$0xff] %v17121_v2  ;;  %v6666_v39 = vsel %vm6582_vm4, %v17121_v2, 0.0  ;;  %v6491_v11 = vadd.f32 %v6348_v63, %v5781_v12  ;;  %v17136_v27 = vadd.f32 %v16741_v32, %v6492_v48  ;;  %v20223_v12 = vld [vmem:[#allocation86_spill] sm:$0xff]  ;;  %v20224_v63 = vld [vmem:[#allocation85_spill] sm:$0xff] }
 0x33f   :  { %v6667_v1 = vadd.f32 %v6666_v39, %v6665_v47  ;;  %v13894_v15 = vpop.f32.mrf.mxu0  ;;  %v5075_v10 = vadd.f32 %v20223_v12, %v4364_v0  ;;  %v5786_v38 = vadd.f32 %v16987_v14, %v20224_v63  ;;  %v20226_v39 = vld [vmem:[#allocation18_spill] sm:$0xff]  ;;  %v20229_v63 = vld [vmem:[#allocation17_spill] sm:$0xff] }
 0x340   :  { %20221 = vst [vmem:[#allocation64_spill] sm:$0xff] %v17136_v27  ;;  %v17139_v34 = vadd.f32 %v16741_v32, %v6491_v11  ;;  %v6494_v51 = vadd.f32 %v13894_v15, %v5784_v33  ;;  %v4366_v8 = vadd.f32 %v20226_v39, %v20225_v52  ;;  %v6672_v33 = vsel %vm6582_vm4, %v17136_v27, 0.0  ;;  %v20227_v15 = vld [vmem:[#allocation88_spill] sm:$0xff]  ;;  %v13814_v27 = vpop.f32.mrf.mxu1 }
 0x341   :  { %v6669_v16 = vadd.f32 %v6668_v54, %v6667_v1  ;;  %v6358_v41 = vpop.f32.mrf.mxu0  ;;  %v5785_v48 = vadd.f32 %v17005_v7, %v5075_v10 }
 0x342   :  { %20222 = vst [vmem:[#allocation63_spill] sm:$0xff] %v17139_v34  ;;  %v6670_v31 = vsel %vm6582_vm4, %v17139_v34, 0.0  ;;  %v6493_v47 = vadd.f32 %v6358_v41, %v5783_v50  ;;  %v17152_v0 = vadd.f32 %v16741_v32, %v6494_v51  ;;  %v5077_v50 = vadd.f32 %v20227_v15, %v4366_v8  ;;  %v20228_v41 = vld [vmem:[#allocation87_spill] sm:$0xff]  ;;  %v5708_v34 = vpop.f32.mrf.mxu1 }
 0x343   :  { %v6671_v21 = vadd.f32 %v6670_v31, %v6669_v16  ;;  %v13897_v11 = vpop.f32.mrf.mxu0  ;;  %v5788_v7 = vadd.f32 %v17023_v6, %v20228_v41  ;;  %v20230_v31 = vld [vmem:[#allocation21_spill] sm:$0xff]  ;;  %v20233_v41 = vld [vmem:[#allocation19_spill] sm:$0xff] }
 0x344   :  { %v17155_v14 = vadd.f32 %v16741_v32, %v6493_v47  ;;  %v6496_v1 = vadd.f32 %v13897_v11, %v5786_v38  ;;  %v4368_v52 = vadd.f32 %v20230_v31, %v20229_v63  ;;  %v5787_v51 = vadd.f32 %v17041_v57, %v5077_v50  ;;  %v20231_v11 = vld [vmem:[#allocation90_spill] sm:$0xff]  ;;  %v13817_v2 = vpop.f32.mrf.mxu1 }
 0x345   :  { %v6673_v54 = vadd.f32 %v6672_v33, %v6671_v21  ;;  %v6368_v12 = vpop.f32.mrf.mxu0  ;;  %v6676_v38 = vsel %vm6582_vm4, %v17152_v0, 0.0 }
 0x346   :  { %v6674_v10 = vsel %vm6582_vm4, %v17155_v14, 0.0  ;;  %v6495_v16 = vadd.f32 %v6368_v12, %v5785_v48  ;;  %v17168_v8 = vadd.f32 %v16741_v32, %v6496_v1  ;;  %v5079_v48 = vadd.f32 %v20231_v11, %v4368_v52  ;;  %v20232_v12 = vld [vmem:[#allocation89_spill] sm:$0xff] }
 0x347   :  { %v6675_v39 = vadd.f32 %v6674_v10, %v6673_v54  ;;  %v13900_v47 = vpop.f32.mrf.mxu0  ;;  %v5790_v57 = vadd.f32 %v17059_v35, %v20232_v12  ;;  %v20234_v10 = vld [vmem:[#allocation24_spill] sm:$0xff]  ;;  %v20237_v12 = vld [vmem:[#allocation23_spill] sm:$0xff] }
 0x348   :  { %v17171_v6 = vadd.f32 %v16741_v32, %v6495_v16  ;;  %v6498_v21 = vadd.f32 %v13900_v47, %v5788_v7  ;;  %v4370_v63 = vadd.f32 %v20234_v10, %v20233_v41  ;;  %v5789_v1 = vadd.f32 %v17077_v9, %v5079_v48  ;;  %v20235_v47 = vld [vmem:[#allocation92_spill] sm:$0xff] }
 0x349   :  { %v6677_v33 = vadd.f32 %v6676_v38, %v6675_v39  ;;  %v6378_v15 = vpop.f32.mrf.mxu0  ;;  %v6680_v7 = vsel %vm6582_vm4, %v17168_v8, 0.0 }
 0x34a   :  { %v6678_v50 = vsel %vm6582_vm4, %v17171_v6, 0.0  ;;  %v6497_v54 = vadd.f32 %v6378_v15, %v5787_v51  ;;  %v17184_v52 = vadd.f32 %v16741_v32, %v6498_v21  ;;  %v5081_v51 = vadd.f32 %v20235_v47, %v4370_v63  ;;  %v20236_v15 = vld [vmem:[#allocation91_spill] sm:$0xff] }
 0x34b   :  { %v6679_v31 = vadd.f32 %v6678_v50, %v6677_v33  ;;  %v13903_v16 = vpop.f32.mrf.mxu0  ;;  %v5792_v9 = vadd.f32 %v17095_v29, %v20236_v15  ;;  %v20238_v50 = vld [vmem:[#allocation26_spill] sm:$0xff]  ;;  %v20241_v15 = vld [vmem:[#allocation25_spill] sm:$0xff] }
 0x34c   :  { %v17187_v35 = vadd.f32 %v16741_v32, %v6497_v54  ;;  %v6500_v39 = vadd.f32 %v13903_v16, %v5790_v57  ;;  %v4372_v41 = vadd.f32 %v20238_v50, %v20237_v12  ;;  %v5791_v21 = vadd.f32 %v17113_v61, %v5081_v51  ;;  %v20239_v16 = vld [vmem:[#allocation94_spill] sm:$0xff] }
 0x34d   :  { %v6681_v38 = vadd.f32 %v6680_v7, %v6679_v31  ;;  %v6388_v11 = vpop.f32.mrf.mxu0  ;;  %v6684_v57 = vsel %vm6582_vm4, %v17184_v52, 0.0 }
 0x34e   :  { %v6682_v48 = vsel %vm6582_vm4, %v17187_v35, 0.0  ;;  %v6499_v33 = vadd.f32 %v6388_v11, %v5789_v1  ;;  %v17200_v63 = vadd.f32 %v16741_v32, %v6500_v39  ;;  %v5083_v1 = vadd.f32 %v20239_v16, %v4372_v41  ;;  %v20240_v11 = vld [vmem:[#allocation93_spill] sm:$0xff] }
 0x34f   :  { %v6683_v10 = vadd.f32 %v6682_v48, %v6681_v38  ;;  %v13906_v54 = vpop.f32.mrf.mxu0  ;;  %v5794_v61 = vadd.f32 %v17131_v26, %v20240_v11  ;;  %v20242_v48 = vld [vmem:[#allocation28_spill] sm:$0xff] }
 0x350   :  { %v17203_v29 = vadd.f32 %v16741_v32, %v6499_v33  ;;  %v6502_v31 = vadd.f32 %v13906_v54, %v5792_v9  ;;  %v4374_v12 = vadd.f32 %v20242_v48, %v20241_v15  ;;  %v5793_v39 = vadd.f32 %v5698_v17, %v5083_v1  ;;  %v5718_v33 = vpop.f32.mrf.mxu1  ;;  %v20243_v54 = vld [vmem:[#allocation96_spill] sm:$0xff] }
 0x351   :  { %v6685_v7 = vadd.f32 %v6684_v57, %v6683_v10  ;;  %v6398_v47 = vpop.f32.mrf.mxu0  ;;  %v6688_v9 = vsel %vm6582_vm4, %v17200_v63, 0.0 }
 0x352   :  { %v6686_v51 = vsel %vm6582_vm4, %v17203_v29, 0.0  ;;  %v6501_v38 = vadd.f32 %v6398_v47, %v5791_v21  ;;  %v17215_v41 = vadd.f32 %v16741_v32, %v6502_v31  ;;  %v5085_v57 = vadd.f32 %v20243_v54, %v4374_v12  ;;  %v20244_v47 = vld [vmem:[#allocation95_spill] sm:$0xff]  ;;  %v13820_v58 = vpop.f32.mrf.mxu1 }
 0x353   :  { %v6687_v50 = vadd.f32 %v6686_v51, %v6685_v7  ;;  %v13909_v42 = vpop.f32.mrf.mxu0  ;;  %v5796_v11 = vadd.f32 %v13814_v27, %v20244_v47  ;;  %v20245_v7 = vld [vmem:[#allocation27_spill] sm:$0xff]  ;;  %v20246_v51 = vld [vmem:[#allocation30_spill] sm:$0xff] }
 0x354   :  { %v17218_v10 = vadd.f32 %v16741_v32, %v6501_v38  ;;  %v6504_v26 = vadd.f32 %v13909_v42, %v5794_v61  ;;  %v4376_v15 = vadd.f32 %v20246_v51, %v20245_v7  ;;  %v5795_v48 = vadd.f32 %v5708_v34, %v5085_v57  ;;  %v20248_v57 = vld [vmem:[#allocation29_spill] sm:$0xff]  ;;  %v5728_v53 = vpop.f32.mrf.mxu1 }
 0x355   :  { %v6689_v21 = vadd.f32 %v6688_v9, %v6687_v50  ;;  %v6408_v16 = vpop.f32.mrf.mxu0  ;;  %v6692_v42 = vsel %vm6582_vm4, %v17215_v41, 0.0 }
 0x356   :  { %v6690_v17 = vsel %vm6582_vm4, %v17218_v10, 0.0  ;;  %v6503_v1 = vadd.f32 %v6408_v16, %v5793_v39  ;;  %v6575_v61 = vadd.f32 %v16741_v32, %v6504_v26  ;;  %v5087_v27 = vadd.f32 %v16723_v62, %v4376_v15  ;;  %v20247_v39 = vld [vmem:[#allocation97_spill] sm:$0xff] }
 0x357   :  { %v6691_v31 = vadd.f32 %v6690_v17, %v6689_v21  ;;  %v13912_v43 = vpop.f32.mrf.mxu0  ;;  %v5798_v54 = vadd.f32 %v13817_v2, %v20247_v39  ;;  %v20249_v21 = vld [vmem:[#allocation31_spill] sm:$0xff] }
 0x358   :  { %v6574_v38 = vadd.f32 %v16741_v32, %v6503_v1  ;;  %v6506_v12 = vadd.f32 %v13912_v43, %v5796_v11  ;;  %v4378_v47 = vadd.f32 %v20249_v21, %v20248_v57  ;;  %v5797_v17 = vadd.f32 %v5718_v33, %v5087_v27  ;;  %v20250_v1 = vld [vmem:[#allocation99_spill] sm:$0xff] }
 0x359   :  { %v6693_v50 = vadd.f32 %v6692_v42, %v6691_v31  ;;  %v6418_v9 = vpop.f32.mrf.mxu0  ;;  %v6696_v26 = vsel %vm6582_vm4, %v6575_v61, 0.0  ;;  %v20251_v42 = vld [vmem:[#allocation98_spill] sm:$0xff] }
 0x35a   :  { %v6694_v16 = vsel %vm6582_vm4, %v6574_v38, 0.0  ;;  %v6505_v34 = vadd.f32 %v6418_v9, %v5795_v48  ;;  %v6577_v43 = vadd.f32 %v16741_v32, %v6506_v12  ;;  %v5089_v15 = vadd.f32 %v20250_v1, %v4378_v47 }
 0x35b   :  { %v6695_v7 = vadd.f32 %v6694_v16, %v6693_v50  ;;  %v13915_v51 = vpop.f32.mrf.mxu0  ;;  %v5800_v48 = vadd.f32 %v13820_v58, %v20251_v42 }
 0x35c   :  { %v6576_v62 = vadd.f32 %v16741_v32, %v6505_v34  ;;  %v6508_v11 = vadd.f32 %v13915_v51, %v5798_v54  ;;  %v5799_v33 = vadd.f32 %v5728_v53, %v5089_v15  ;;  %v6700_v16 = vsel %vm6582_vm4, %v6577_v43, 0.0 }
 0x35d   :  { %v6697_v2 = vadd.f32 %v6696_v26, %v6695_v7  ;;  %v6428_v31 = vpop.f32.mrf.mxu0 }
 0x35e   :  { %v6698_v9 = vsel %vm6582_vm4, %v6576_v62, 0.0  ;;  %v6507_v39 = vadd.f32 %v6428_v31, %v5797_v17  ;;  %v6579_v57 = vadd.f32 %v16741_v32, %v6508_v11 }
 0x35f   :  { %v6699_v27 = vadd.f32 %v6698_v9, %v6697_v2  ;;  %v13918_v50 = vpop.f32.mrf.mxu0 }
 0x360   :  { %v6578_v12 = vadd.f32 %v16741_v32, %v6507_v39  ;;  %v6510_v34 = vadd.f32 %v13918_v50, %v5800_v48  ;;  %v6704_v58 = vsel %vm6582_vm4, %v6579_v57, 0.0 }
 0x361   :  { %v6701_v54 = vadd.f32 %v6700_v16, %v6699_v27  ;;  %v6438_v21 = vpop.f32.mrf.mxu0 }
 0x362   :  { %v6702_v47 = vsel %vm6582_vm4, %v6578_v12, 0.0  ;;  %v6509_v7 = vadd.f32 %v6438_v21, %v5799_v33  ;;  %v6581_v17 = vadd.f32 %v16741_v32, %v6510_v34 }
 0x363   :  { %v6703_v51 = vadd.f32 %v6702_v47, %v6701_v54 }
 0x364   :  { %v6580_v53 = vadd.f32 %v16741_v32, %v6509_v7  ;;  %v6708_v11 = vsel %vm6582_vm4, %v6581_v17, 0.0 }
 0x365   :  { %v6705_v26 = vadd.f32 %v6704_v58, %v6703_v51 }
 0x366   :  { %v6706_v1 = vsel %vm6582_vm4, %v6580_v53, 0.0 }
 0x367   :  { %v6707_v15 = vadd.f32 %v6706_v1, %v6705_v26 }
 0x369   :  { %v6709_v2 = vadd.f32 %v6708_v11, %v6707_v15 }
 0x36b   :  { %v6710_v31 = vrot.slane %v6709_v2, 4 }
 0x36d   :  { %v6711_v42 = vadd.f32 %v6710_v31, %v6709_v2 }
 0x36f   :  { %v6712_v48 = vrot.slane %v6711_v42, 2 }
 0x371   :  { %v6713_v9 = vadd.f32 %v6712_v48, %v6711_v42 }
 0x373   :  { %v6714_v39 = vrot.slane %v6713_v9, 1 }
 0x375   :  { %v6715_v33 = vadd.f32 %v6714_v39, %v6713_v9 }
 0x377   :  { %v17250_v27 = vmul.f32 0.001953125, %v6715_v33 }
 0x379   :  { %v17254_v50 = vsub.f32 %v17155_v14, %v17250_v27  ;;  %v17258_v32 = vsub.f32 %v17152_v0, %v17250_v27  ;;  %v17262_v16 = vsub.f32 %v17171_v6, %v17250_v27  ;;  %v17266_v34 = vsub.f32 %v17168_v8, %v17250_v27 }
 0x37a   :  { %v17270_v54 = vsub.f32 %v17187_v35, %v17250_v27  ;;  %v17274_v14 = vsub.f32 %v17184_v52, %v17250_v27  ;;  %v17278_v0 = vsub.f32 %v17203_v29, %v17250_v27  ;;  %v17282_v6 = vsub.f32 %v17200_v63, %v17250_v27 }
 0x37b   :  { %v17286_v8 = vsub.f32 %v17218_v10, %v17250_v27  ;;  %v17290_v35 = vsub.f32 %v17215_v41, %v17250_v27  ;;  %v17293_v21 = vsub.f32 %v6574_v38, %v17250_v27  ;;  %v17296_v52 = vsub.f32 %v6575_v61, %v17250_v27 }
 0x37c   :  { %v17299_v29 = vsub.f32 %v6576_v62, %v17250_v27  ;;  %v17302_v63 = vsub.f32 %v6577_v43, %v17250_v27  ;;  %v17305_v47 = vsub.f32 %v6578_v12, %v17250_v27  ;;  %v17308_v10 = vsub.f32 %v6579_v57, %v17250_v27  ;;  %v20256_v62 = vld [vmem:[#allocation100_spill] sm:$0xff] }
 0x37d   :  { %20252 = vst [vmem:[#allocation44_spill] sm:$0xff] %v17293_v21  ;;  %20253 = vst [vmem:[#allocation48_spill] sm:$0xff] %v17296_v52  ;;  %v17311_v41 = vsub.f32 %v6580_v53, %v17250_v27  ;;  %v17314_v38 = vsub.f32 %v6581_v17, %v17250_v27  ;;  %v17318_v61 = vsub.f32 %v16753_v44, %v17250_v27 }
 0x37e   :  { %20254 = vst [vmem:[#allocation66_spill] sm:$0xff] %v17299_v29  ;;  %20255 = vst [vmem:[#allocation65_spill] sm:$0xff] %v17302_v63  ;;  %v17322_v43 = vsub.f32 %v20256_v62, %v17250_v27  ;;  %v17326_v12 = vsub.f32 %v16769_v56, %v17250_v27  ;;  %v17330_v57 = vsub.f32 %v16766_v13, %v17250_v27 }
 0x37f   :  { %v6782_v7 = vmul.f32 %v17318_v61, %v17318_v61  ;;  %v17338_v44 = vsub.f32 %v16785_v5, %v17250_v27  ;;  %v17344_v56 = vsub.f32 %v16782_v45, %v17250_v27  ;;  %v17352_v1 = vsub.f32 %v16801_v49, %v17250_v27 }
 0x380   :  { %v6783_v51 = vmul.f32 %v17322_v43, %v17322_v43  ;;  %v6784_v58 = vmul.f32 %v17326_v12, %v17326_v12  ;;  %v6785_v13 = vmul.f32 %v17330_v57, %v17330_v57  ;;  %v17359_v45 = vsub.f32 %v16798_v37, %v17250_v27 }
 0x381   :  { %v6846_v17 = vsel %vm6582_vm4, %v6782_v7, 0.0  ;;  %v6786_v5 = vmul.f32 %v17338_v44, %v17338_v44  ;;  %v6787_v2 = vmul.f32 %v17344_v56, %v17344_v56  ;;  %v17366_v49 = vsub.f32 %v16817_v40, %v17250_v27 }
 0x382   :  { %v6847_v53 = vsel %vm6582_vm4, %v6783_v51, 0.0  ;;  %v6849_v15 = vsel %vm6582_vm4, %v6784_v58, 0.0  ;;  %v6851_v31 = vsel %vm6582_vm4, %v6785_v13, 0.0  ;;  %v6788_v48 = vmul.f32 %v17352_v1, %v17352_v1 }
 0x383   :  { %v6848_v26 = vadd.f32 %v6847_v53, %v6846_v17  ;;  %v6853_v9 = vsel %vm6582_vm4, %v6786_v5, 0.0  ;;  %v17373_v37 = vsub.f32 %v16814_v4, %v17250_v27  ;;  %v6789_v33 = vmul.f32 %v17359_v45, %v17359_v45 }
 0x384   :  { %v6855_v62 = vsel %vm6582_vm4, %v6787_v2, 0.0  ;;  %v17380_v40 = vsub.f32 %v16833_v25, %v17250_v27  ;;  %v6790_v51 = vmul.f32 %v17366_v49, %v17366_v49  ;;  %v6857_v58 = vsel %vm6582_vm4, %v6788_v48, 0.0 }
 0x385   :  { %v6850_v11 = vadd.f32 %v6849_v15, %v6848_v26  ;;  %v17387_v4 = vsub.f32 %v16830_v23, %v17250_v27  ;;  %v6791_v17 = vmul.f32 %v17373_v37, %v17373_v37  ;;  %v6859_v53 = vsel %vm6582_vm4, %v6789_v33, 0.0 }
 0x386   :  { %v17394_v25 = vsub.f32 %v16851_v18, %v17250_v27  ;;  %v6792_v5 = vmul.f32 %v17380_v40, %v17380_v40  ;;  %v6861_v15 = vsel %vm6582_vm4, %v6790_v51, 0.0  ;;  %v17401_v23 = vsub.f32 %v16848_v46, %v17250_v27 }
 0x387   :  { %v6852_v42 = vadd.f32 %v6851_v31, %v6850_v11  ;;  %v6793_v2 = vmul.f32 %v17387_v4, %v17387_v4  ;;  %v6863_v31 = vsel %vm6582_vm4, %v6791_v17, 0.0  ;;  %v17408_v18 = vsub.f32 %v16869_v59, %v17250_v27  ;;  %v20257_v17 = vld [vmem:[#allocation47_spill] sm:$0xff] }
 0x388   :  { %v6794_v48 = vmul.f32 %v17394_v25, %v17394_v25  ;;  %v17415_v46 = vsub.f32 %v16866_v36, %v17250_v27  ;;  %v6795_v33 = vmul.f32 %v17401_v23, %v17401_v23  ;;  %v17422_v59 = vsub.f32 %v16887_v55, %v17250_v27 }
 0x389   :  { %v6854_v39 = vadd.f32 %v6853_v9, %v6852_v42  ;;  %v6865_v9 = vsel %vm6582_vm4, %v6792_v5, 0.0  ;;  %v6796_v51 = vmul.f32 %v17408_v18, %v17408_v18  ;;  %v17429_v36 = vsub.f32 %v20257_v17, %v17250_v27 }
 0x38a   :  { %v17436_v55 = vsub.f32 %v16905_v30, %v17250_v27  ;;  %v17450_v30 = vsub.f32 %v16923_v20, %v17250_v27  ;;  %v17464_v20 = vsub.f32 %v16941_v28, %v17250_v27  ;;  %v17478_v28 = vsub.f32 %v16959_v3, %v17250_v27 }
 0x38b   :  { %v6856_v7 = vadd.f32 %v6855_v62, %v6854_v39  ;;  %v6867_v62 = vsel %vm6582_vm4, %v6793_v2, 0.0  ;;  %v17492_v3 = vsub.f32 %v16977_v24, %v17250_v27  ;;  %v17506_v24 = vsub.f32 %v16995_v22, %v17250_v27 }
 0x38c   :  { %v17520_v22 = vsub.f32 %v17013_v60, %v17250_v27  ;;  %v17534_v60 = vsub.f32 %v17031_v19, %v17250_v27 }
 0x38d   :  { %v6858_v13 = vadd.f32 %v6857_v58, %v6856_v7  ;;  %v6869_v58 = vsel %vm6582_vm4, %v6794_v48, 0.0  ;;  %v6799_v48 = vmul.f32 %v17429_v36, %v17429_v36  ;;  %20263 = vst [vmem:[#allocation8_spill] sm:$0xff] %v17506_v24 }
 0x38e   :  { %20266 = vst [vmem:[#allocation68_spill] sm:$0xff] %v17520_v22  ;;  %20269 = vst [vmem:[#allocation57_spill] sm:$0xff] %v17534_v60 }
 0x38f   :  { %v6860_v26 = vadd.f32 %v6859_v53, %v6858_v13  ;;  %v6797_v53 = vmul.f32 %v17415_v46, %v17415_v46  ;;  %v6879_v17 = vsel %vm6582_vm4, %v6799_v48, 0.0 }
 0x391   :  { %v6862_v11 = vadd.f32 %v6861_v15, %v6860_v26  ;;  %v6871_v26 = vsel %vm6582_vm4, %v6795_v33, 0.0  ;;  %v6798_v15 = vmul.f32 %v17422_v59, %v17422_v59  ;;  %v6800_v33 = vmul.f32 %v17436_v55, %v17436_v55 }
 0x393   :  { %v6864_v42 = vadd.f32 %v6863_v31, %v6862_v11  ;;  %v6873_v11 = vsel %vm6582_vm4, %v6796_v51, 0.0  ;;  %v20258_v31 = vld [vmem:[#allocation38_spill] sm:$0xff]  ;;  %v20259_v51 = vld [vmem:[#allocation49_spill] sm:$0xff] }
 0x395   :  { %v6866_v39 = vadd.f32 %v6865_v9, %v6864_v42  ;;  %v17443_v42 = vsub.f32 %v20258_v31, %v17250_v27  ;;  %v6875_v9 = vsel %vm6582_vm4, %v6797_v53, 0.0 }
 0x397   :  { %v6868_v7 = vadd.f32 %v6867_v62, %v6866_v39  ;;  %v6877_v62 = vsel %vm6582_vm4, %v6798_v15, 0.0 }
 0x399   :  { %v6870_v13 = vadd.f32 %v6869_v58, %v6868_v7  ;;  %v17457_v58 = vsub.f32 %v20259_v51, %v17250_v27 }
 0x39b   :  { %v6872_v5 = vadd.f32 %v6871_v26, %v6870_v13  ;;  %v6801_v13 = vmul.f32 %v17443_v42, %v17443_v42  ;;  %v6802_v26 = vmul.f32 %v17450_v30, %v17450_v30  ;;  %v6803_v31 = vmul.f32 %v17457_v58, %v17457_v58 }
 0x39d   :  { %v6874_v2 = vadd.f32 %v6873_v11, %v6872_v5  ;;  %v6881_v5 = vsel %vm6582_vm4, %v6800_v33, 0.0  ;;  %v20260_v11 = vld [vmem:[#allocation33_spill] sm:$0xff]  ;;  %v6883_v48 = vsel %vm6582_vm4, %v6801_v13, 0.0  ;;  %v6885_v33 = vsel %vm6582_vm4, %v6802_v26, 0.0 }
 0x39e   :  { %v6887_v13 = vsel %vm6582_vm4, %v6803_v31, 0.0 }
 0x39f   :  { %v6876_v39 = vadd.f32 %v6875_v9, %v6874_v2  ;;  %v17471_v2 = vsub.f32 %v20260_v11, %v17250_v27  ;;  %v20262_v11 = vld [vmem:[#allocation39_spill] sm:$0xff] }
 0x3a1   :  { %v6878_v7 = vadd.f32 %v6877_v62, %v6876_v39  ;;  %v6804_v39 = vmul.f32 %v17464_v20, %v17464_v20 }
 0x3a3   :  { %v6880_v53 = vadd.f32 %v6879_v17, %v6878_v7  ;;  %v20261_v7 = vld [vmem:[#allocation32_spill] sm:$0xff]  ;;  %v6805_v17 = vmul.f32 %v17471_v2, %v17471_v2  ;;  %v6889_v26 = vsel %vm6582_vm4, %v6804_v39, 0.0 }
 0x3a4   :  { %v17485_v51 = vsub.f32 %v20261_v7, %v17250_v27 }
 0x3a5   :  { %v6882_v15 = vadd.f32 %v6881_v5, %v6880_v53  ;;  %v6806_v5 = vmul.f32 %v17478_v28, %v17478_v28  ;;  %v6891_v31 = vsel %vm6582_vm4, %v6805_v17, 0.0 }
 0x3a7   :  { %v6884_v9 = vadd.f32 %v6883_v48, %v6882_v15  ;;  %v17499_v48 = vsub.f32 %v20262_v11, %v17250_v27  ;;  %v6893_v39 = vsel %vm6582_vm4, %v6806_v5, 0.0  ;;  %v6810_v11 = vmul.f32 %v17506_v24, %v17506_v24 }
 0x3a9   :  { %v6886_v62 = vadd.f32 %v6885_v33, %v6884_v9  ;;  %v6807_v9 = vmul.f32 %v17485_v51, %v17485_v51 }
 0x3ab   :  { %v6888_v53 = vadd.f32 %v6887_v13, %v6886_v62  ;;  %v6808_v62 = vmul.f32 %v17492_v3, %v17492_v3  ;;  %v20264_v13 = vld [vmem:[#allocation41_spill] sm:$0xff]  ;;  %v6895_v17 = vsel %vm6582_vm4, %v6807_v9, 0.0 }
 0x3ad   :  { %v6890_v15 = vadd.f32 %v6889_v26, %v6888_v53  ;;  %v17513_v53 = vsub.f32 %v20264_v13, %v17250_v27  ;;  %v6809_v26 = vmul.f32 %v17499_v48, %v17499_v48  ;;  %v6897_v5 = vsel %vm6582_vm4, %v6808_v62, 0.0 }
 0x3ae   :  { %v6901_v62 = vsel %vm6582_vm4, %v6810_v11, 0.0 }
 0x3af   :  { %v6892_v33 = vadd.f32 %v6891_v31, %v6890_v15  ;;  %20265 = vst [vmem:[#allocation9_spill] sm:$0xff] %v17513_v53  ;;  %v6811_v13 = vmul.f32 %v17513_v53, %v17513_v53  ;;  %v6899_v9 = vsel %vm6582_vm4, %v6809_v26, 0.0 }
 0x3b1   :  { %v6894_v7 = vadd.f32 %v6893_v39, %v6892_v33  ;;  %v20267_v33 = vld [vmem:[#allocation35_spill] sm:$0xff]  ;;  %v6903_v26 = vsel %vm6582_vm4, %v6811_v13, 0.0 }
 0x3b2   :  { %v17527_v39 = vsub.f32 %v20267_v33, %v17250_v27 }
 0x3b3   :  { %v6896_v15 = vadd.f32 %v6895_v17, %v6894_v7  ;;  %v6812_v17 = vmul.f32 %v17520_v22, %v17520_v22  ;;  %v6814_v22 = vmul.f32 %v17534_v60, %v17534_v60 }
 0x3b4   :  { %20268 = vst [vmem:[#allocation67_spill] sm:$0xff] %v17527_v39  ;;  %v6813_v53 = vmul.f32 %v17527_v39, %v17527_v39 }
 0x3b5   :  { %v6898_v31 = vadd.f32 %v6897_v5, %v6896_v15  ;;  %v20270_v5 = vld [vmem:[#allocation34_spill] sm:$0xff]  ;;  %v6905_v11 = vsel %vm6582_vm4, %v6812_v17, 0.0  ;;  %v6909_v17 = vsel %vm6582_vm4, %v6814_v22, 0.0 }
 0x3b6   :  { %v17541_v33 = vsub.f32 %v20270_v5, %v17250_v27  ;;  %v6907_v13 = vsel %vm6582_vm4, %v6813_v53, 0.0 }
 0x3b7   :  { %v6900_v7 = vadd.f32 %v6899_v9, %v6898_v31  ;;  %v20272_v9 = vld [vmem:[#allocation10_spill] sm:$0xff] }
 0x3b8   :  { %20271 = vst [vmem:[#allocation58_spill] sm:$0xff] %v17541_v33  ;;  %v17548_v19 = vsub.f32 %v20272_v9, %v17250_v27  ;;  %v6815_v39 = vmul.f32 %v17541_v33, %v17541_v33 }
 0x3b9   :  { %v6902_v15 = vadd.f32 %v6901_v62, %v6900_v7  ;;  %v20274_v62 = vld [vmem:[#allocation40_spill] sm:$0xff] }
 0x3ba   :  { %20273 = vst [vmem:[#allocation70_spill] sm:$0xff] %v17548_v19  ;;  %v17555_v5 = vsub.f32 %v20274_v62, %v17250_v27  ;;  %v6816_v60 = vmul.f32 %v17548_v19, %v17548_v19  ;;  %v6911_v53 = vsel %vm6582_vm4, %v6815_v39, 0.0 }
 0x3bb   :  { %v6904_v31 = vadd.f32 %v6903_v26, %v6902_v15  ;;  %v20276_v26 = vld [vmem:[#allocation36_spill] sm:$0xff] }
 0x3bc   :  { %20275 = vst [vmem:[#allocation69_spill] sm:$0xff] %v17555_v5  ;;  %v17562_v9 = vsub.f32 %v20276_v26, %v17250_v27  ;;  %v6817_v33 = vmul.f32 %v17555_v5, %v17555_v5  ;;  %v6913_v22 = vsel %vm6582_vm4, %v6816_v60, 0.0 }
 0x3bd   :  { %v6906_v7 = vadd.f32 %v6905_v11, %v6904_v31  ;;  %v20278_v11 = vld [vmem:[#allocation37_spill] sm:$0xff] }
 0x3be   :  { %20277 = vst [vmem:[#allocation52_spill] sm:$0xff] %v17562_v9  ;;  %v17569_v62 = vsub.f32 %v20278_v11, %v17250_v27  ;;  %v6818_v19 = vmul.f32 %v17562_v9, %v17562_v9  ;;  %v6915_v39 = vsel %vm6582_vm4, %v6817_v33, 0.0 }
 0x3bf   :  { %v6908_v15 = vadd.f32 %v6907_v13, %v6906_v7  ;;  %v20280_v13 = vld [vmem:[#allocation50_spill] sm:$0xff] }
 0x3c0   :  { %20279 = vst [vmem:[#allocation53_spill] sm:$0xff] %v17569_v62  ;;  %v17576_v26 = vsub.f32 %v20280_v13, %v17250_v27  ;;  %v6819_v5 = vmul.f32 %v17569_v62, %v17569_v62  ;;  %v6917_v60 = vsel %vm6582_vm4, %v6818_v19, 0.0 }
 0x3c1   :  { %v6910_v31 = vadd.f32 %v6909_v17, %v6908_v15  ;;  %v20282_v17 = vld [vmem:[#allocation42_spill] sm:$0xff] }
 0x3c2   :  { %20281 = vst [vmem:[#allocation72_spill] sm:$0xff] %v17576_v26  ;;  %v17583_v11 = vsub.f32 %v20282_v17, %v17250_v27  ;;  %v6820_v9 = vmul.f32 %v17576_v26, %v17576_v26  ;;  %v6919_v33 = vsel %vm6582_vm4, %v6819_v5, 0.0 }
 0x3c3   :  { %v6912_v7 = vadd.f32 %v6911_v53, %v6910_v31  ;;  %v20284_v53 = vld [vmem:[#allocation46_spill] sm:$0xff] }
 0x3c4   :  { %20283 = vst [vmem:[#allocation71_spill] sm:$0xff] %v17583_v11  ;;  %v17590_v13 = vsub.f32 %v20284_v53, %v17250_v27  ;;  %v6821_v62 = vmul.f32 %v17583_v11, %v17583_v11  ;;  %v6921_v19 = vsel %vm6582_vm4, %v6820_v9, 0.0 }
 0x3c5   :  { %v6914_v15 = vadd.f32 %v6913_v22, %v6912_v7  ;;  %v20286_v22 = vld [vmem:[#allocation62_spill] sm:$0xff] }
 0x3c6   :  { %20285 = vst [vmem:[#allocation51_spill] sm:$0xff] %v17590_v13  ;;  %v17597_v17 = vsub.f32 %v20286_v22, %v17250_v27  ;;  %v6822_v26 = vmul.f32 %v17590_v13, %v17590_v13  ;;  %v6923_v5 = vsel %vm6582_vm4, %v6821_v62, 0.0 }
 0x3c7   :  { %v6916_v31 = vadd.f32 %v6915_v39, %v6914_v15  ;;  %v20288_v39 = vld [vmem:[#allocation45_spill] sm:$0xff] }
 0x3c8   :  { %20287 = vst [vmem:[#allocation55_spill] sm:$0xff] %v17597_v17  ;;  %v17604_v53 = vsub.f32 %v20288_v39, %v17250_v27  ;;  %v6823_v11 = vmul.f32 %v17597_v17, %v17597_v17  ;;  %v6925_v9 = vsel %vm6582_vm4, %v6822_v26, 0.0 }
 0x3c9   :  { %v6918_v7 = vadd.f32 %v6917_v60, %v6916_v31  ;;  %v20289_v60 = vld [vmem:[#allocation43_spill] sm:$0xff] }
 0x3ca   :  { %v17611_v22 = vsub.f32 %v20289_v60, %v17250_v27  ;;  %v6824_v13 = vmul.f32 %v17604_v53, %v17604_v53  ;;  %v6927_v62 = vsel %vm6582_vm4, %v6823_v11, 0.0  ;;  %v6829_v11 = vmul.f32 %v17258_v32, %v17258_v32 }
 0x3cb   :  { %v6920_v15 = vadd.f32 %v6919_v33, %v6918_v7  ;;  %v20291_v33 = vld [vmem:[#allocation63_spill] sm:$0xff] }
 0x3cc   :  { %20290 = vst [vmem:[#allocation74_spill] sm:$0xff] %v17611_v22  ;;  %v17618_v39 = vsub.f32 %v20291_v33, %v17250_v27  ;;  %v6825_v17 = vmul.f32 %v17611_v22, %v17611_v22  ;;  %v6929_v33 = vsel %vm6582_vm4, %v6824_v13, 0.0  ;;  %v6830_v13 = vmul.f32 %v17262_v16, %v17262_v16 }
 0x3cd   :  { %v6922_v31 = vadd.f32 %v6921_v19, %v6920_v15  ;;  %v20292_v19 = vld [vmem:[#allocation64_spill] sm:$0xff] }
 0x3ce   :  { %v17625_v60 = vsub.f32 %v20292_v19, %v17250_v27  ;;  %v6828_v27 = vmul.f32 %v17254_v50, %v17254_v50 }
 0x3cf   :  { %v6924_v7 = vadd.f32 %v6923_v5, %v6922_v31  ;;  %v6826_v5 = vmul.f32 %v17618_v39, %v17618_v39 }
 0x3d0   :  { %v6827_v26 = vmul.f32 %v17625_v60, %v17625_v60 }
 0x3d1   :  { %v6926_v15 = vadd.f32 %v6925_v9, %v6924_v7  ;;  %v6931_v7 = vsel %vm6582_vm4, %v6825_v17, 0.0  ;;  %v6933_v19 = vsel %vm6582_vm4, %v6826_v5, 0.0  ;;  %v6939_v17 = vsel %vm6582_vm4, %v6829_v11, 0.0 }
 0x3d2   :  { %v6832_v5 = vmul.f32 %v17270_v54, %v17270_v54  ;;  %v6835_v11 = vmul.f32 %v17282_v6, %v17282_v6 }
 0x3d3   :  { %v6928_v31 = vadd.f32 %v6927_v62, %v6926_v15  ;;  %v6935_v15 = vsel %vm6582_vm4, %v6827_v26, 0.0 }
 0x3d5   :  { %v6930_v24 = vadd.f32 %v6929_v33, %v6928_v31  ;;  %v6937_v31 = vsel %vm6582_vm4, %v6828_v27, 0.0  ;;  %v6834_v27 = vmul.f32 %v17278_v0, %v17278_v0 }
 0x3d7   :  { %v6932_v9 = vadd.f32 %v6931_v7, %v6930_v24  ;;  %v6831_v24 = vmul.f32 %v17266_v34, %v17266_v34 }
 0x3d9   :  { %v6934_v22 = vadd.f32 %v6933_v19, %v6932_v9  ;;  %v6941_v9 = vsel %vm6582_vm4, %v6830_v13, 0.0  ;;  %v6943_v26 = vsel %vm6582_vm4, %v6831_v24, 0.0  ;;  %v6836_v13 = vmul.f32 %v17286_v8, %v17286_v8 }
 0x3da   :  { %v6837_v24 = vmul.f32 %v17290_v35, %v17290_v35 }
 0x3db   :  { %v6936_v62 = vadd.f32 %v6935_v15, %v6934_v22  ;;  %v6833_v22 = vmul.f32 %v17274_v14, %v17274_v14 }
 0x3dd   :  { %v6938_v33 = vadd.f32 %v6937_v31, %v6936_v62  ;;  %v6945_v62 = vsel %vm6582_vm4, %v6832_v5, 0.0  ;;  %v6838_v5 = vmul.f32 %v17293_v21, %v17293_v21 }
 0x3df   :  { %v6940_v7 = vadd.f32 %v6939_v17, %v6938_v33  ;;  %v6947_v33 = vsel %vm6582_vm4, %v6833_v22, 0.0  ;;  %v6839_v22 = vmul.f32 %v17296_v52, %v17296_v52 }
 0x3e1   :  { %v6942_v19 = vadd.f32 %v6941_v9, %v6940_v7  ;;  %v6949_v7 = vsel %vm6582_vm4, %v6834_v27, 0.0  ;;  %v6840_v27 = vmul.f32 %v17299_v29, %v17299_v29 }
 0x3e3   :  { %v6944_v15 = vadd.f32 %v6943_v26, %v6942_v19  ;;  %v6951_v19 = vsel %vm6582_vm4, %v6835_v11, 0.0  ;;  %v6841_v11 = vmul.f32 %v17302_v63, %v17302_v63 }
 0x3e5   :  { %v6946_v31 = vadd.f32 %v6945_v62, %v6944_v15  ;;  %v6953_v15 = vsel %vm6582_vm4, %v6836_v13, 0.0  ;;  %v6842_v13 = vmul.f32 %v17305_v47, %v17305_v47 }
 0x3e7   :  { %v6948_v17 = vadd.f32 %v6947_v33, %v6946_v31  ;;  %v6955_v31 = vsel %vm6582_vm4, %v6837_v24, 0.0  ;;  %v6843_v24 = vmul.f32 %v17308_v10, %v17308_v10 }
 0x3e9   :  { %v6950_v9 = vadd.f32 %v6949_v7, %v6948_v17  ;;  %v6957_v17 = vsel %vm6582_vm4, %v6838_v5, 0.0  ;;  %v6844_v5 = vmul.f32 %v17311_v41, %v17311_v41 }
 0x3eb   :  { %v6952_v26 = vadd.f32 %v6951_v19, %v6950_v9  ;;  %v6959_v9 = vsel %vm6582_vm4, %v6839_v22, 0.0  ;;  %v6845_v22 = vmul.f32 %v17314_v38, %v17314_v38 }
 0x3ed   :  { %v6954_v62 = vadd.f32 %v6953_v15, %v6952_v26  ;;  %v6961_v26 = vsel %vm6582_vm4, %v6840_v27, 0.0  ;;  %v6969_v27 = vsel %vm6582_vm4, %v6844_v5, 0.0 }
 0x3ef   :  { %v6956_v33 = vadd.f32 %v6955_v31, %v6954_v62  ;;  %v6963_v62 = vsel %vm6582_vm4, %v6841_v11, 0.0 }
 0x3f1   :  { %v6958_v7 = vadd.f32 %v6957_v17, %v6956_v33  ;;  %v6965_v33 = vsel %vm6582_vm4, %v6842_v13, 0.0 }
 0x3f3   :  { %v6960_v19 = vadd.f32 %v6959_v9, %v6958_v7  ;;  %v6967_v7 = vsel %vm6582_vm4, %v6843_v24, 0.0  ;;  %v17697_v24 = vld [vmem:[%s19772_s3] ss:$0 sm:$0xff] }
 0x3f5   :  { %v6962_v15 = vadd.f32 %v6961_v26, %v6960_v19  ;;  %v6971_v26 = vsel %vm6582_vm4, %v6845_v22, 0.0 }
 0x3f7   :  { %v6964_v31 = vadd.f32 %v6963_v62, %v6962_v15 }
 0x3f9   :  { %v6966_v17 = vadd.f32 %v6965_v33, %v6964_v31 }
 0x3fb   :  { %v6968_v9 = vadd.f32 %v6967_v7, %v6966_v17 }
 0x3fd   :  { %v6970_v19 = vadd.f32 %v6969_v27, %v6968_v9 }
 0x3ff   :  { %v6972_v63 = vadd.f32 %v6971_v26, %v6970_v19 }
 0x401   :  { %v6973_v11 = vrot.slane %v6972_v63, 4 }
 0x403   :  { %v6974_v15 = vadd.f32 %v6973_v11, %v6972_v63 }
 0x405   :  { %v6975_v62 = vrot.slane %v6974_v15, 2 }
 0x407   :  { %v6976_v29 = vadd.f32 %v6975_v62, %v6974_v15 }
 0x409   :  { %v6977_v52 = vrot.slane %v6976_v29, 1 }
 0x40b   :  { %v6978_v21 = vadd.f32 %v6977_v52, %v6976_v29  ;;  %v17710_v52 = vld [vmem:[%s19773_s4] ss:$0 sm:$0xff] }
 0x40c   :  { %20293 = vst [vmem:[#allocation73_spill] sm:$0xff] %v17710_v52 }
 0x40d   :  { %v6979_v13 = vmul.f32 0.001953125, %v6978_v21 }
 0x40f   :  { %v6980_v31 = vadd.f32 1e-05, %v6979_v13 }
 0x411   :  { %14281 = vrsqrt.f32 %v6980_v31 }
 0x41e   :  { %v17692_v33 = vpop.eup %14281 }
 0x41f   :  { %v7042_v5 = vmul.f32 %v17692_v33, %v17305_v47  ;;  %v7043_v63 = vmul.f32 %v17692_v33, %v17308_v10  ;;  %v7044_v17 = vmul.f32 %v17692_v33, %v17311_v41  ;;  %v7045_v21 = vmul.f32 %v17692_v33, %v17314_v38 }
 0x420   :  { %v17714_v29 = vmul.f32 %v17692_v33, %v17318_v61  ;;  %v17718_v47 = vmul.f32 %v17692_v33, %v17322_v43  ;;  %v17722_v10 = vmul.f32 %v17692_v33, %v17326_v12  ;;  %v17726_v41 = vmul.f32 %v17692_v33, %v17330_v57 }
 0x421   :  { %v7113_v38 = vmul.f32 %v17697_v24, %v7042_v5  ;;  %v7114_v22 = vmul.f32 %v17697_v24, %v7043_v63  ;;  %v7115_v7 = vmul.f32 %v17697_v24, %v7044_v17  ;;  %v7116_v61 = vmul.f32 %v17697_v24, %v7045_v21 }
 0x422   :  { %v17734_v43 = vmul.f32 %v17692_v33, %v17338_v44  ;;  %v17738_v12 = vmul.f32 %v17692_v33, %v17344_v56  ;;  %v17742_v57 = vmul.f32 %v17692_v33, %v17352_v1  ;;  %v17746_v9 = vmul.f32 %v17692_v33, %v17359_v45 }
 0x423   :  { %v7184_v27 = vadd.f32 %v17710_v52, %v7113_v38  ;;  %v7185_v19 = vadd.f32 %v17710_v52, %v7114_v22  ;;  %v7186_v26 = vadd.f32 %v17710_v52, %v7115_v7  ;;  %v7187_v44 = vadd.f32 %v17710_v52, %v7116_v61  ;;  %v20294_v7 = vld [vmem:[#allocation8_spill] sm:$0xff]  ;;  %v20306_v52 = vld [vmem:[#allocation69_spill] sm:$0xff] }
 0x424   :  { %v17754_v56 = vmul.f32 %v17692_v33, %v17366_v49  ;;  %v17758_v1 = vmul.f32 %v17692_v33, %v17373_v37  ;;  %v17762_v45 = vmul.f32 %v17692_v33, %v17380_v40  ;;  %v17766_v11 = vmul.f32 %v17692_v33, %v17387_v4 }
 0x425   :  { %v7248_v15 = vmax.f32 %v7184_v27, 0.0  ;;  %v7249_v62 = vmax.f32 %v7185_v19, 0.0  ;;  %v7250_v13 = vmax.f32 %v7186_v26, 0.0  ;;  %v7251_v31 = vmax.f32 %v7187_v44, 0.0 }
 0x426   :  { %v17770_v49 = vmul.f32 %v17692_v33, %v17394_v25  ;;  %v17774_v37 = vmul.f32 %v17692_v33, %v17401_v23  ;;  %v17778_v40 = vmul.f32 %v17692_v33, %v17408_v18  ;;  %v17782_v4 = vmul.f32 %v17692_v33, %v17415_v46 }
 0x427   :  { %v7282_v5 = vmax.f32 %v7248_v15, %v7250_v13  ;;  %v7283_v63 = vmax.f32 %v7249_v62, %v7251_v31  ;;  %v17786_v17 = vmul.f32 %v17692_v33, %v17422_v59  ;;  %v17790_v25 = vmul.f32 %v17692_v33, %v17429_v36  ;;  %v20303_v15 = vld [vmem:[#allocation58_spill] sm:$0xff]  ;;  %v12044_v13 = vld [vmem:[%s19774_s5 + $0x8] sm:$0xff]  ;;  %v12111_v31 = vld [vmem:[%s19774_s5 + $0x20] sm:$0xff] }
 0x428   :  { %v17794_v23 = vmul.f32 %v17692_v33, %v17436_v55  ;;  %v17798_v18 = vmul.f32 %v17692_v33, %v17443_v42  ;;  %v17802_v46 = vmul.f32 %v17692_v33, %v17450_v30  ;;  %v17806_v59 = vmul.f32 %v17692_v33, %v17457_v58  ;;  %13919 = vmatprep.subr.mxu1 %v12044_v13 }
 0x429   :  { %v7315_v36 = vrot.slane %v7282_v5, 1  ;;  %v7379_v21 = vrot.slane %v7283_v63, 1  ;;  %v17810_v38 = vmul.f32 %v17692_v33, %v17464_v20  ;;  %v17814_v55 = vmul.f32 %v17692_v33, %v17471_v2  ;;  %14023 = vmatprep.subr.mxu0 %v12111_v31  ;;  %13920 = vmatpush3.msra.mxu1 %v12044_v13 }
 0x42a   :  { %v17818_v42 = vmul.f32 %v17692_v33, %v17478_v28  ;;  %v17822_v30 = vmul.f32 %v17692_v33, %v17485_v51  ;;  %v17826_v58 = vmul.f32 %v17692_v33, %v17492_v3  ;;  %v17830_v20 = vmul.f32 %v17692_v33, %v17499_v48  ;;  %v20295_v28 = vld [vmem:[#allocation9_spill] sm:$0xff]  ;;  %v20297_v51 = vld [vmem:[#allocation68_spill] sm:$0xff]  ;;  %v20299_v3 = vld [vmem:[#allocation67_spill] sm:$0xff]  ;;  %14024 = vmatpush3.msra.mxu0 %v12111_v31 }
 0x42b   :  { %v7347_v22 = vmax.f32 %v7282_v5, %v7315_v36  ;;  %v7411_v2 = vmax.f32 %v7283_v63, %v7379_v21  ;;  %v17834_v61 = vmul.f32 %v17692_v33, %v20294_v7  ;;  %v17838_v27 = vmul.f32 %v17692_v33, %v20295_v28  ;;  %v20301_v48 = vld [vmem:[#allocation57_spill] sm:$0xff]  ;;  %v20311_v31 = vld [vmem:[#allocation71_spill] sm:$0xff] }
 0x42c   :  { %v17842_v19 = vmul.f32 %v17692_v33, %v20297_v51  ;;  %v17846_v26 = vmul.f32 %v17692_v33, %v20299_v3  ;;  %v17850_v44 = vmul.f32 %v17692_v33, %v20301_v48  ;;  %v17854_v62 = vmul.f32 %v17692_v33, %v20303_v15  ;;  %v20305_v3 = vld [vmem:[#allocation70_spill] sm:$0xff] }
 0x42d   :  { %20296 = vst [vmem:[#allocation54_spill] sm:$0xff] %v17838_v27  ;;  %v7443_v5 = vrot.slane %v7347_v22, 1  ;;  %v7475_v63 = vrot.slane %v7347_v22, 2  ;;  %v7507_v36 = vrot.slane %v7347_v22, 3  ;;  %v7555_v21 = vrot.slane %v7411_v2, 4 }
 0x42e   :  { %20298 = vst [vmem:[#allocation11_spill] sm:$0xff] %v17842_v19  ;;  %20300 = vst [vmem:[#allocation76_spill] sm:$0xff] %v17846_v26  ;;  %v7587_v7 = vrot.slane %v7411_v2, 5  ;;  %v7619_v28 = vrot.slane %v7411_v2, 6  ;;  %v7651_v51 = vrot.slane %v7411_v2, 7  ;;  %v17864_v48 = vmul.f32 %v17692_v33, %v20305_v3  ;;  %v20309_v19 = vld [vmem:[#allocation53_spill] sm:$0xff] }
 0x42f   :  { %20302 = vst [vmem:[#allocation75_spill] sm:$0xff] %v17850_v44  ;;  %20304 = vst [vmem:[#allocation56_spill] sm:$0xff] %v17854_v62  ;;  %v7684_v15 = vsel %vm7668_vm5, %v7347_v22, %v7443_v5  ;;  %v17869_v62 = vmul.f32 %v17692_v33, %v20306_v52  ;;  %v20307_v44 = vld [vmem:[#allocation52_spill] sm:$0xff]  ;;  %v17877_v27 = vmul.f32 %v17692_v33, %v20309_v19  ;;  %v20312_v52 = vld [vmem:[#allocation51_spill] sm:$0xff] }
 0x430   :  { %v17873_v26 = vmul.f32 %v17692_v33, %v20307_v44  ;;  %v7701_v2 = vsel %vm7685_vm6, %v7684_v15, %v7475_v63  ;;  %v20310_v3 = vld [vmem:[#allocation72_spill] sm:$0xff]  ;;  %v17886_v22 = vmul.f32 %v17692_v33, %v20311_v31  ;;  %v17890_v5 = vmul.f32 %v17692_v33, %v20312_v52  ;;  %v20314_v15 = vld [vmem:[#allocation74_spill] sm:$0xff] }
 0x431   :  { %v17882_v13 = vmul.f32 %v17692_v33, %v20310_v3  ;;  %v7718_v44 = vsel %vm7702_vm7, %v7701_v2, %v7507_v36  ;;  %v17899_v63 = vmul.f32 %v17692_v33, %v17604_v53  ;;  %v17903_v3 = vmul.f32 %v17692_v33, %v20314_v15  ;;  %v20320_v15 = vld [vmem:[#allocation48_spill] sm:$0xff] }
 0x432   :  { %20308 = vst [vmem:[#allocation59_spill] sm:$0xff] %v17873_v26  ;;  %v20313_v26 = vld [vmem:[#allocation55_spill] sm:$0xff]  ;;  %v7734_v31 = vsel %vm571_vm0, %v7718_v44, %v7555_v21  ;;  %v17908_v52 = vmul.f32 %v17692_v33, %v17618_v39  ;;  %v17912_v36 = vmul.f32 %v17692_v33, %v17625_v60  ;;  %v17921_v2 = vmul.f32 %v17692_v33, %v17258_v32 }
 0x433   :  { %v17895_v19 = vmul.f32 %v17692_v33, %v20313_v26  ;;  %v17916_v26 = vmul.f32 %v17692_v33, %v17254_v50  ;;  %v7751_v53 = vsel %vm7735_vm8, %v7734_v31, %v7587_v7  ;;  %v17925_v21 = vmul.f32 %v17692_v33, %v17262_v16  ;;  %v7862_v16 = vld [vmem:[%s19774_s5] sm:$0xff] }
 0x434   :  { %v17929_v39 = vmul.f32 %v17692_v33, %v17266_v34  ;;  %v7768_v60 = vsel %vm7752_vm9, %v7751_v53, %v7619_v28  ;;  %v17934_v50 = vmul.f32 %v17692_v33, %v17270_v54  ;;  %v17938_v7 = vmul.f32 %v17692_v33, %v17274_v14  ;;  %13945 = vmatprep.subr.mxu1 %v7862_v16  ;;  %v20321_v53 = vld [vmem:[#allocation66_spill] sm:$0xff] }
 0x435   :  { %v17942_v32 = vmul.f32 %v17692_v33, %v17278_v0  ;;  %v7785_v34 = vsel %vm7769_vm10, %v7768_v60, %v7651_v51  ;;  %v7035_v28 = vmul.f32 %v17692_v33, %v17282_v6  ;;  %v7036_v54 = vmul.f32 %v17692_v33, %v17286_v8  ;;  %v20319_v0 = vld [vmem:[#allocation44_spill] sm:$0xff]  ;;  %v20322_v60 = vld [vmem:[#allocation65_spill] sm:$0xff] }
 0x436   :  { %20315 = vst [vmem:[#allocation78_spill] sm:$0xff] %v17929_v39  ;;  %20316 = vst [vmem:[#allocation77_spill] sm:$0xff] %v17934_v50  ;;  %v7037_v14 = vmul.f32 %v17692_v33, %v17290_v35  ;;  %v7038_v44 = vmul.f32 %v17692_v33, %v20319_v0  ;;  %v7039_v31 = vmul.f32 %v17692_v33, %v20320_v15  ;;  %v20327_v50 = vld [vmem:[#allocation56_spill] sm:$0xff] }
 0x437   :  { %20317 = vst [vmem:[#allocation12_spill] sm:$0xff] %v17938_v7  ;;  %20318 = vst [vmem:[#allocation61_spill] sm:$0xff] %v17942_v32  ;;  %v7040_v51 = vmul.f32 %v17692_v33, %v20321_v53  ;;  %v7041_v6 = vmul.f32 %v17692_v33, %v20322_v60  ;;  %v7053_v8 = vmul.f32 %v17697_v24, %v17714_v29  ;;  %v20323_v53 = vld [vmem:[#allocation54_spill] sm:$0xff]  ;;  %v20324_v60 = vld [vmem:[#allocation11_spill] sm:$0xff] }
 0x438   :  { %7845 = vst.msk [vmem:[#allocation3 + $0x121] sm:$0xff] %vm6582_vm4, %v7785_v34  ;;  %v7054_v35 = vmul.f32 %v17697_v24, %v17718_v47  ;;  %v7055_v16 = vmul.f32 %v17697_v24, %v17722_v10  ;;  %v7056_v34 = vmul.f32 %v17697_v24, %v17726_v41  ;;  %v7057_v0 = vmul.f32 %v17697_v24, %v17734_v43  ;;  %v20325_v32 = vld [vmem:[#allocation76_spill] sm:$0xff]  ;;  %v20326_v7 = vld [vmem:[#allocation75_spill] sm:$0xff] }
 0x439   :  { %v7058_v15 = vmul.f32 %v17697_v24, %v17738_v12  ;;  %v7059_v33 = vmul.f32 %v17697_v24, %v17742_v57  ;;  %v7060_v29 = vmul.f32 %v17697_v24, %v17746_v9  ;;  %v7061_v47 = vmul.f32 %v17697_v24, %v17754_v56  ;;  %v20328_v39 = vld [vmem:[#allocation59_spill] sm:$0xff] }
 0x43a   :  { %v7062_v10 = vmul.f32 %v17697_v24, %v17758_v1  ;;  %v7063_v41 = vmul.f32 %v17697_v24, %v17762_v45  ;;  %v7064_v43 = vmul.f32 %v17697_v24, %v17766_v11  ;;  %v7065_v12 = vmul.f32 %v17697_v24, %v17770_v49 }
 0x43b   :  { %v7066_v57 = vmul.f32 %v17697_v24, %v17774_v37  ;;  %v7067_v9 = vmul.f32 %v17697_v24, %v17778_v40  ;;  %v7068_v56 = vmul.f32 %v17697_v24, %v17782_v4  ;;  %v7069_v1 = vmul.f32 %v17697_v24, %v17786_v17 }
 0x43c   :  { %v7070_v45 = vmul.f32 %v17697_v24, %v17790_v25  ;;  %v7071_v11 = vmul.f32 %v17697_v24, %v17794_v23  ;;  %v7072_v49 = vmul.f32 %v17697_v24, %v17798_v18  ;;  %v7073_v37 = vmul.f32 %v17697_v24, %v17802_v46 }
 0x43d   :  { %v7074_v40 = vmul.f32 %v17697_v24, %v17806_v59  ;;  %v7075_v4 = vmul.f32 %v17697_v24, %v17810_v38  ;;  %v7076_v17 = vmul.f32 %v17697_v24, %v17814_v55  ;;  %v7077_v25 = vmul.f32 %v17697_v24, %v17818_v42 }
 0x43e   :  { %v7078_v23 = vmul.f32 %v17697_v24, %v17822_v30  ;;  %v7079_v18 = vmul.f32 %v17697_v24, %v17826_v58  ;;  %v7080_v46 = vmul.f32 %v17697_v24, %v17830_v20  ;;  %v7081_v59 = vmul.f32 %v17697_v24, %v17834_v61 }
 0x43f   :  { %v7082_v38 = vmul.f32 %v17697_v24, %v20323_v53  ;;  %v7083_v55 = vmul.f32 %v17697_v24, %v20324_v60  ;;  %v7084_v42 = vmul.f32 %v17697_v24, %v20325_v32  ;;  %v7085_v30 = vmul.f32 %v17697_v24, %v20326_v7 }
 0x440   :  { %v7086_v58 = vmul.f32 %v17697_v24, %v20327_v50  ;;  %v7087_v20 = vmul.f32 %v17697_v24, %v17864_v48  ;;  %v7088_v61 = vmul.f32 %v17697_v24, %v17869_v62  ;;  %v7089_v53 = vmul.f32 %v17697_v24, %v20328_v39 }
 0x441   :  { %v7090_v60 = vmul.f32 %v17697_v24, %v17877_v27  ;;  %v7091_v32 = vmul.f32 %v17697_v24, %v17882_v13  ;;  %v7092_v7 = vmul.f32 %v17697_v24, %v17886_v22  ;;  %v7093_v50 = vmul.f32 %v17697_v24, %v17890_v5 }
 0x442   :  { %v7094_v48 = vmul.f32 %v17697_v24, %v17895_v19  ;;  %v7095_v62 = vmul.f32 %v17697_v24, %v17899_v63  ;;  %v7096_v39 = vmul.f32 %v17697_v24, %v17903_v3  ;;  %v7097_v27 = vmul.f32 %v17697_v24, %v17908_v52  ;;  %v20329_v63 = vld [vmem:[#allocation78_spill] sm:$0xff]  ;;  %v20330_v52 = vld [vmem:[#allocation77_spill] sm:$0xff] }
 0x443   :  { %v7098_v13 = vmul.f32 %v17697_v24, %v17912_v36  ;;  %v7099_v22 = vmul.f32 %v17697_v24, %v17916_v26  ;;  %v7100_v5 = vmul.f32 %v17697_v24, %v17921_v2  ;;  %v7101_v19 = vmul.f32 %v17697_v24, %v17925_v21  ;;  %v20331_v26 = vld [vmem:[#allocation12_spill] sm:$0xff]  ;;  %v20332_v21 = vld [vmem:[#allocation61_spill] sm:$0xff] }
 0x444   :  { %v7102_v3 = vmul.f32 %v17697_v24, %v20329_v63  ;;  %v7103_v36 = vmul.f32 %v17697_v24, %v20330_v52  ;;  %v7104_v2 = vmul.f32 %v17697_v24, %v20331_v26  ;;  %v7105_v63 = vmul.f32 %v17697_v24, %v20332_v21 }
 0x445   :  { %v7106_v52 = vmul.f32 %v17697_v24, %v7035_v28  ;;  %v7107_v26 = vmul.f32 %v17697_v24, %v7036_v54  ;;  %v7108_v21 = vmul.f32 %v17697_v24, %v7037_v14  ;;  %v7109_v28 = vmul.f32 %v17697_v24, %v7038_v44 }
 0x446   :  { %v7110_v54 = vmul.f32 %v17697_v24, %v7039_v31  ;;  %v7111_v14 = vmul.f32 %v17697_v24, %v7040_v51  ;;  %v7112_v44 = vmul.f32 %v17697_v24, %v7041_v6  ;;  %v20333_v31 = vld [vmem:[#allocation73_spill] sm:$0xff] }
 0x447   :  { %v18077_v51 = vadd.f32 %v20333_v31, %v7053_v8  ;;  %v18080_v6 = vadd.f32 %v20333_v31, %v7054_v35  ;;  %v18083_v24 = vadd.f32 %v20333_v31, %v7055_v16  ;;  %v18086_v8 = vadd.f32 %v20333_v31, %v7056_v34 }
 0x448   :  { %v18092_v35 = vadd.f32 %v20333_v31, %v7058_v15  ;;  %v18098_v16 = vadd.f32 %v20333_v31, %v7060_v29  ;;  %v18104_v34 = vadd.f32 %v20333_v31, %v7062_v10  ;;  %v18113_v15 = vadd.f32 %v20333_v31, %v7065_v12 }
 0x449   :  { %20334 = vst [vmem:[#allocation80_spill] sm:$0xff] %v18077_v51  ;;  %20335 = vst [vmem:[#allocation79_spill] sm:$0xff] %v18080_v6  ;;  %v18089_v51 = vadd.f32 %v20333_v31, %v7057_v0  ;;  %v18095_v6 = vadd.f32 %v20333_v31, %v7059_v33  ;;  %v18110_v0 = vadd.f32 %v20333_v31, %v7064_v43 }
 0x44a   :  { %20336 = vst [vmem:[#allocation60_spill] sm:$0xff] %v18083_v24  ;;  %20337 = vst [vmem:[#allocation14_spill] sm:$0xff] %v18086_v8  ;;  %v18101_v24 = vadd.f32 %v20333_v31, %v7061_v47  ;;  %v18107_v8 = vadd.f32 %v20333_v31, %v7063_v41  ;;  %v18116_v33 = vadd.f32 %v20333_v31, %v7066_v57 }
 0x44b   :  { %v18119_v29 = vadd.f32 %v20333_v31, %v7067_v9  ;;  %v18122_v47 = vadd.f32 %v20333_v31, %v7068_v56  ;;  %v18125_v10 = vadd.f32 %v20333_v31, %v7069_v1  ;;  %v18128_v41 = vadd.f32 %v20333_v31, %v7070_v45 }
 0x44c   :  { %v18131_v43 = vadd.f32 %v20333_v31, %v7071_v11  ;;  %v18134_v12 = vadd.f32 %v20333_v31, %v7072_v49  ;;  %v18137_v57 = vadd.f32 %v20333_v31, %v7073_v37  ;;  %v18140_v9 = vadd.f32 %v20333_v31, %v7074_v40 }
 0x44d   :  { %v18143_v56 = vadd.f32 %v20333_v31, %v7075_v4  ;;  %v18146_v1 = vadd.f32 %v20333_v31, %v7076_v17  ;;  %v18149_v45 = vadd.f32 %v20333_v31, %v7077_v25  ;;  %v18152_v11 = vadd.f32 %v20333_v31, %v7078_v23 }
 0x44e   :  { %v18155_v49 = vadd.f32 %v20333_v31, %v7079_v18  ;;  %v18158_v37 = vadd.f32 %v20333_v31, %v7080_v46  ;;  %v18161_v40 = vadd.f32 %v20333_v31, %v7081_v59  ;;  %v18164_v4 = vadd.f32 %v20333_v31, %v7082_v38 }
 0x44f   :  { %v18167_v17 = vadd.f32 %v20333_v31, %v7083_v55  ;;  %v18170_v25 = vadd.f32 %v20333_v31, %v7084_v42  ;;  %v18173_v23 = vadd.f32 %v20333_v31, %v7085_v30  ;;  %v18176_v18 = vadd.f32 %v20333_v31, %v7086_v58 }
 0x450   :  { %v18179_v46 = vadd.f32 %v20333_v31, %v7087_v20  ;;  %v18182_v59 = vadd.f32 %v20333_v31, %v7088_v61  ;;  %v18185_v38 = vadd.f32 %v20333_v31, %v7089_v53  ;;  %v18188_v55 = vadd.f32 %v20333_v31, %v7090_v60 }
 0x451   :  { %v18191_v42 = vadd.f32 %v20333_v31, %v7091_v32  ;;  %v18194_v30 = vadd.f32 %v20333_v31, %v7092_v7  ;;  %v18197_v58 = vadd.f32 %v20333_v31, %v7093_v50  ;;  %v18200_v20 = vadd.f32 %v20333_v31, %v7094_v48 }
 0x452   :  { %v18203_v61 = vadd.f32 %v20333_v31, %v7095_v62  ;;  %v18206_v53 = vadd.f32 %v20333_v31, %v7096_v39  ;;  %v18209_v60 = vadd.f32 %v20333_v31, %v7097_v27  ;;  %v18212_v32 = vadd.f32 %v20333_v31, %v7098_v13  ;;  %v18235_v13 = vld [vmem:[%s19774_s5 + $0x30] sm:$0xff] }
 0x453   :  { %v18215_v7 = vadd.f32 %v20333_v31, %v7099_v22  ;;  %v18218_v50 = vadd.f32 %v20333_v31, %v7100_v5  ;;  %v18221_v48 = vadd.f32 %v20333_v31, %v7101_v19  ;;  %v18224_v62 = vadd.f32 %v20333_v31, %v7102_v3  ;;  %20339 = vst [vmem:[#allocation81_spill] sm:$0xff] %v18235_v13 }
 0x454   :  { %v18227_v39 = vadd.f32 %v20333_v31, %v7103_v36  ;;  %v18230_v27 = vadd.f32 %v20333_v31, %v7104_v2  ;;  %v18238_v22 = vadd.f32 %v20333_v31, %v7105_v63  ;;  %v18241_v5 = vadd.f32 %v20333_v31, %v7106_v52  ;;  %14075 = vmatprep.subr.mxu0 %v18235_v13 }
 0x455   :  { %v18244_v19 = vadd.f32 %v20333_v31, %v7107_v26  ;;  %v18247_v3 = vadd.f32 %v20333_v31, %v7108_v21  ;;  %v18251_v36 = vadd.f32 %v20333_v31, %v7109_v28  ;;  %v18254_v2 = vadd.f32 %v20333_v31, %v7110_v54  ;;  %v20350_v21 = vld [vmem:[#allocation60_spill] sm:$0xff] }
 0x456   :  { %20338 = vst [vmem:[#allocation82_spill] sm:$0xff] %v18230_v27  ;;  %20340 = vst [vmem:[#allocation13_spill] sm:$0xff] %v18238_v22  ;;  %v18257_v63 = vadd.f32 %v20333_v31, %v7111_v14  ;;  %v18260_v52 = vadd.f32 %v20333_v31, %v7112_v44  ;;  %v20351_v27 = vld [vmem:[#allocation14_spill] sm:$0xff]  ;;  %v7192_v28 = vmax.f32 %v18089_v51, 0.0  ;;  %v7194_v54 = vmax.f32 %v18095_v6, 0.0 }
 0x457   :  { %20341 = vst [vmem:[#allocation20_spill] sm:$0xff] %v18241_v5  ;;  %20342 = vst [vmem:[#allocation84_spill] sm:$0xff] %v18244_v19  ;;  %v20348_v5 = vld [vmem:[#allocation80_spill] sm:$0xff]  ;;  %v20349_v19 = vld [vmem:[#allocation79_spill] sm:$0xff]  ;;  %v7191_v13 = vmax.f32 %v20351_v27, 0.0  ;;  %v7195_v14 = vmax.f32 %v18098_v16, 0.0 }
 0x458   :  { %20343 = vst [vmem:[#allocation83_spill] sm:$0xff] %v18247_v3  ;;  %20344 = vst [vmem:[#allocation15_spill] sm:$0xff] %v18251_v36  ;;  %v7188_v26 = vmax.f32 %v20348_v5, 0.0  ;;  %v7189_v22 = vmax.f32 %v20349_v19, 0.0  ;;  %v7190_v3 = vmax.f32 %v20350_v21, 0.0  ;;  %v7193_v36 = vmax.f32 %v18092_v35, 0.0 }
 0x459   :  { %20345 = vst [vmem:[#allocation22_spill] sm:$0xff] %v18254_v2  ;;  %20346 = vst [vmem:[#allocation86_spill] sm:$0xff] %v18257_v63  ;;  %v7196_v63 = vmax.f32 %v18101_v24, 0.0  ;;  %v7197_v44 = vmax.f32 %v18104_v34, 0.0  ;;  %v7198_v31 = vmax.f32 %v18107_v8, 0.0  ;;  %v7199_v5 = vmax.f32 %v18110_v0, 0.0 }
 0x45a   :  { %20347 = vst [vmem:[#allocation85_spill] sm:$0xff] %v18260_v52  ;;  %v7200_v19 = vmax.f32 %v18113_v15, 0.0  ;;  %v7201_v27 = vmax.f32 %v18116_v33, 0.0  ;;  %v7202_v51 = vmax.f32 %v18119_v29, 0.0  ;;  %v7203_v35 = vmax.f32 %v18122_v47, 0.0 }
 0x45b   :  { %v7204_v6 = vmax.f32 %v18125_v10, 0.0  ;;  %v7205_v16 = vmax.f32 %v18128_v41, 0.0  ;;  %v7206_v24 = vmax.f32 %v18131_v43, 0.0  ;;  %v7207_v34 = vmax.f32 %v18134_v12, 0.0 }
 0x45c   :  { %v7208_v8 = vmax.f32 %v18137_v57, 0.0  ;;  %v7209_v0 = vmax.f32 %v18140_v9, 0.0  ;;  %v7210_v15 = vmax.f32 %v18143_v56, 0.0  ;;  %v7211_v33 = vmax.f32 %v18146_v1, 0.0 }
 0x45d   :  { %v7212_v29 = vmax.f32 %v18149_v45, 0.0  ;;  %v7213_v47 = vmax.f32 %v18152_v11, 0.0  ;;  %v7214_v10 = vmax.f32 %v18155_v49, 0.0  ;;  %v7215_v41 = vmax.f32 %v18158_v37, 0.0  ;;  %v20352_v21 = vld [vmem:[#allocation82_spill] sm:$0xff]  ;;  %v20353_v52 = vld [vmem:[#allocation13_spill] sm:$0xff] }
 0x45e   :  { %v7216_v43 = vmax.f32 %v18161_v40, 0.0  ;;  %v7217_v12 = vmax.f32 %v18164_v4, 0.0  ;;  %v7218_v57 = vmax.f32 %v18167_v17, 0.0  ;;  %v7219_v9 = vmax.f32 %v18170_v25, 0.0  ;;  %v20354_v2 = vld [vmem:[#allocation20_spill] sm:$0xff] }
 0x45f   :  { %v7220_v56 = vmax.f32 %v18173_v23, 0.0  ;;  %v7221_v1 = vmax.f32 %v18176_v18, 0.0  ;;  %v7222_v45 = vmax.f32 %v18179_v46, 0.0  ;;  %v7223_v11 = vmax.f32 %v18182_v59, 0.0 }
 0x460   :  { %v7224_v49 = vmax.f32 %v18185_v38, 0.0  ;;  %v7225_v37 = vmax.f32 %v18188_v55, 0.0  ;;  %v7226_v40 = vmax.f32 %v18191_v42, 0.0  ;;  %v7227_v4 = vmax.f32 %v18194_v30, 0.0 }
 0x461   :  { %v7228_v17 = vmax.f32 %v18197_v58, 0.0  ;;  %v7229_v25 = vmax.f32 %v18200_v20, 0.0  ;;  %v7230_v23 = vmax.f32 %v18203_v61, 0.0  ;;  %v7231_v18 = vmax.f32 %v18206_v53, 0.0 }
 0x462   :  { %v7232_v46 = vmax.f32 %v18209_v60, 0.0  ;;  %v7233_v59 = vmax.f32 %v18212_v32, 0.0  ;;  %v7234_v38 = vmax.f32 %v18215_v7, 0.0  ;;  %v7235_v55 = vmax.f32 %v18218_v50, 0.0  ;;  %v20355_v60 = vld [vmem:[#allocation84_spill] sm:$0xff]  ;;  %v20356_v7 = vld [vmem:[#allocation83_spill] sm:$0xff] }
 0x463   :  { %v7236_v42 = vmax.f32 %v18221_v48, 0.0  ;;  %v7237_v30 = vmax.f32 %v18224_v62, 0.0  ;;  %v7238_v58 = vmax.f32 %v18227_v39, 0.0  ;;  %v7239_v20 = vmax.f32 %v20352_v21, 0.0  ;;  %v20357_v48 = vld [vmem:[#allocation15_spill] sm:$0xff]  ;;  %v20358_v39 = vld [vmem:[#allocation22_spill] sm:$0xff] }
 0x464   :  { %v7240_v61 = vmax.f32 %v20353_v52, 0.0  ;;  %v7241_v53 = vmax.f32 %v20354_v2, 0.0  ;;  %v7242_v32 = vmax.f32 %v20355_v60, 0.0  ;;  %v7243_v50 = vmax.f32 %v20356_v7, 0.0  ;;  %v20359_v52 = vld [vmem:[#allocation86_spill] sm:$0xff]  ;;  %v20360_v60 = vld [vmem:[#allocation85_spill] sm:$0xff] }
 0x465   :  { %v7244_v62 = vmax.f32 %v20357_v48, 0.0  ;;  %v7245_v21 = vmax.f32 %v20358_v39, 0.0  ;;  %v7246_v2 = vmax.f32 %v20359_v52, 0.0  ;;  %v7247_v7 = vmax.f32 %v20360_v60, 0.0 }
 0x466   :  { %v7252_v48 = vmax.f32 %v7188_v26, %v7190_v3  ;;  %v18322_v39 = vmax.f32 %v7189_v22, %v7191_v13  ;;  %v7254_v52 = vmax.f32 %v7192_v28, %v7194_v54  ;;  %v18324_v60 = vmax.f32 %v7193_v36, %v7195_v14 }
 0x467   :  { %v7256_v3 = vmax.f32 %v7196_v63, %v7198_v31  ;;  %v18326_v26 = vmax.f32 %v7197_v44, %v7199_v5  ;;  %v7258_v13 = vmax.f32 %v7200_v19, %v7202_v51  ;;  %v18328_v22 = vmax.f32 %v7201_v27, %v7203_v35 }
 0x468   :  { %20361 = vst [vmem:[#allocation16_spill] sm:$0xff] %v18322_v39  ;;  %20362 = vst [vmem:[#allocation18_spill] sm:$0xff] %v18324_v60  ;;  %v7260_v39 = vmax.f32 %v7204_v6, %v7206_v24  ;;  %v18330_v28 = vmax.f32 %v7205_v16, %v7207_v34  ;;  %v7262_v54 = vmax.f32 %v7208_v8, %v7210_v15 }
 0x469   :  { %20363 = vst [vmem:[#allocation88_spill] sm:$0xff] %v18326_v26  ;;  %v18332_v14 = vmax.f32 %v7209_v0, %v7211_v33  ;;  %v7264_v36 = vmax.f32 %v7212_v29, %v7214_v10  ;;  %v18334_v60 = vmax.f32 %v7213_v47, %v7215_v41  ;;  %v7266_v31 = vmax.f32 %v7216_v43, %v7218_v57 }
 0x46a   :  { %v18336_v63 = vmax.f32 %v7217_v12, %v7219_v9  ;;  %v7268_v5 = vmax.f32 %v7220_v56, %v7222_v45  ;;  %v18338_v44 = vmax.f32 %v7221_v1, %v7223_v11  ;;  %v7270_v26 = vmax.f32 %v7224_v49, %v7226_v40 }
 0x46b   :  { %v18340_v19 = vmax.f32 %v7225_v37, %v7227_v4  ;;  %v7272_v27 = vmax.f32 %v7228_v17, %v7230_v23  ;;  %v18342_v51 = vmax.f32 %v7229_v25, %v7231_v18  ;;  %v7274_v35 = vmax.f32 %v7232_v46, %v7234_v38 }
 0x46c   :  { %v18344_v6 = vmax.f32 %v7233_v59, %v7235_v55  ;;  %v7276_v16 = vmax.f32 %v7236_v42, %v7238_v58  ;;  %v7277_v24 = vmax.f32 %v7237_v30, %v7239_v20  ;;  %v7278_v34 = vmax.f32 %v7240_v61, %v7242_v32 }
 0x46d   :  { %v7279_v8 = vmax.f32 %v7241_v53, %v7243_v50  ;;  %v7280_v0 = vmax.f32 %v7244_v62, %v7246_v2  ;;  %v7281_v15 = vmax.f32 %v7245_v21, %v7247_v7  ;;  %v7300_v33 = vrot.slane %v7252_v48, 1 }
 0x46e   :  { %v7301_v29 = vrot.slane %v7254_v52, 1  ;;  %v7302_v47 = vrot.slane %v7256_v3, 1  ;;  %v7303_v10 = vrot.slane %v7258_v13, 1  ;;  %v7304_v41 = vrot.slane %v7260_v39, 1 }
 0x46f   :  { %v7305_v43 = vrot.slane %v7262_v54, 1  ;;  %v7306_v12 = vrot.slane %v7264_v36, 1  ;;  %v7307_v57 = vrot.slane %v7266_v31, 1  ;;  %v7308_v9 = vrot.slane %v7268_v5, 1  ;;  %v20364_v53 = vld [vmem:[#allocation16_spill] sm:$0xff]  ;;  %v20365_v50 = vld [vmem:[#allocation18_spill] sm:$0xff] }
 0x470   :  { %v7309_v56 = vrot.slane %v7270_v26, 1  ;;  %v7310_v1 = vrot.slane %v7272_v27, 1  ;;  %v7311_v45 = vrot.slane %v7274_v35, 1  ;;  %v7312_v11 = vrot.slane %v7276_v16, 1  ;;  %v20366_v21 = vld [vmem:[#allocation88_spill] sm:$0xff] }
 0x471   :  { %v7313_v49 = vrot.slane %v7278_v34, 1  ;;  %v7314_v37 = vrot.slane %v7280_v0, 1  ;;  %v18346_v40 = vmax.f32 %v7252_v48, %v7300_v33  ;;  %v18348_v4 = vmax.f32 %v7254_v52, %v7301_v29 }
 0x472   :  { %v18350_v17 = vmax.f32 %v7256_v3, %v7302_v47  ;;  %v18352_v25 = vmax.f32 %v7258_v13, %v7303_v10  ;;  %v18354_v23 = vmax.f32 %v7260_v39, %v7304_v41  ;;  %v18356_v18 = vmax.f32 %v7262_v54, %v7305_v43 }
 0x473   :  { %v18358_v46 = vmax.f32 %v7264_v36, %v7306_v12  ;;  %v18360_v59 = vmax.f32 %v7266_v31, %v7307_v57  ;;  %v18362_v38 = vmax.f32 %v7268_v5, %v7308_v9  ;;  %v18364_v55 = vmax.f32 %v7270_v26, %v7309_v56 }
 0x474   :  { %v18366_v42 = vmax.f32 %v7272_v27, %v7310_v1  ;;  %v18368_v30 = vmax.f32 %v7274_v35, %v7311_v45  ;;  %v18370_v58 = vmax.f32 %v7276_v16, %v7312_v11  ;;  %v18372_v20 = vmax.f32 %v7278_v34, %v7313_v49 }
 0x475   :  { %v18374_v61 = vmax.f32 %v7280_v0, %v7314_v37  ;;  %v7364_v32 = vrot.slane %v20364_v53, 1  ;;  %v7365_v62 = vrot.slane %v20365_v50, 1  ;;  %v7366_v2 = vrot.slane %v20366_v21, 1 }
 0x476   :  { %v7367_v7 = vrot.slane %v18328_v22, 1  ;;  %v7368_v48 = vrot.slane %v18330_v28, 1  ;;  %v7369_v39 = vrot.slane %v18332_v14, 1  ;;  %v7370_v52 = vrot.slane %v18334_v60, 1 }
 0x477   :  { %v7371_v3 = vrot.slane %v18336_v63, 1  ;;  %v7372_v26 = vrot.slane %v18338_v44, 1  ;;  %v7373_v13 = vrot.slane %v18340_v19, 1  ;;  %v7374_v54 = vrot.slane %v18342_v51, 1 }
 0x478   :  { %v7375_v36 = vrot.slane %v18344_v6, 1  ;;  %v7376_v31 = vrot.slane %v7277_v24, 1  ;;  %v7377_v5 = vrot.slane %v7279_v8, 1  ;;  %v7378_v27 = vrot.slane %v7281_v15, 1 }
 0x479   :  { %v18389_v35 = vmax.f32 %v20364_v53, %v7364_v32  ;;  %v18392_v16 = vmax.f32 %v20365_v50, %v7365_v62  ;;  %v18395_v34 = vmax.f32 %v20366_v21, %v7366_v2  ;;  %v18398_v0 = vmax.f32 %v18328_v22, %v7367_v7 }
 0x47a   :  { %v18401_v33 = vmax.f32 %v18330_v28, %v7368_v48  ;;  %v18404_v29 = vmax.f32 %v18332_v14, %v7369_v39  ;;  %v18407_v47 = vmax.f32 %v18334_v60, %v7370_v52  ;;  %v18410_v10 = vmax.f32 %v18336_v63, %v7371_v3 }
 0x47b   :  { %v18413_v41 = vmax.f32 %v18338_v44, %v7372_v26  ;;  %v18416_v43 = vmax.f32 %v18340_v19, %v7373_v13  ;;  %v18419_v22 = vmax.f32 %v18342_v51, %v7374_v54  ;;  %v18422_v28 = vmax.f32 %v18344_v6, %v7375_v36 }
 0x47c   :  { %v18424_v14 = vmax.f32 %v7277_v24, %v7376_v31  ;;  %v18426_v12 = vmax.f32 %v7279_v8, %v7377_v5  ;;  %v18428_v60 = vmax.f32 %v7281_v15, %v7378_v27  ;;  %v7428_v63 = vrot.slane %v18346_v40, 1 }
 0x47d   :  { %v7429_v44 = vrot.slane %v18348_v4, 1  ;;  %v7430_v57 = vrot.slane %v18350_v17, 1  ;;  %v7431_v19 = vrot.slane %v18352_v25, 1  ;;  %v7432_v51 = vrot.slane %v18354_v23, 1 }
 0x47e   :  { %v7433_v9 = vrot.slane %v18356_v18, 1  ;;  %v7434_v6 = vrot.slane %v18358_v46, 1  ;;  %v7435_v24 = vrot.slane %v18360_v59, 1  ;;  %v7436_v8 = vrot.slane %v18362_v38, 1 }
 0x47f   :  { %v7437_v15 = vrot.slane %v18364_v55, 1  ;;  %v7438_v56 = vrot.slane %v18366_v42, 1  ;;  %v7439_v1 = vrot.slane %v18368_v30, 1  ;;  %v7440_v45 = vrot.slane %v18370_v58, 1 }
 0x480   :  { %v7441_v11 = vrot.slane %v18372_v20, 1  ;;  %v7442_v49 = vrot.slane %v18374_v61, 1  ;;  %v7460_v37 = vrot.slane %v18346_v40, 2  ;;  %v7461_v53 = vrot.slane %v18348_v4, 2 }
 0x481   :  { %v7462_v32 = vrot.slane %v18350_v17, 2  ;;  %v7463_v50 = vrot.slane %v18352_v25, 2  ;;  %v7464_v62 = vrot.slane %v18354_v23, 2  ;;  %v7465_v21 = vrot.slane %v18356_v18, 2 }
 0x482   :  { %v7466_v2 = vrot.slane %v18358_v46, 2  ;;  %v7467_v7 = vrot.slane %v18360_v59, 2  ;;  %v7468_v48 = vrot.slane %v18362_v38, 2  ;;  %v7641_v52 = vrot.slane %v18404_v29, 7 }
 0x483   :  { %v7643_v26 = vrot.slane %v18410_v10, 7  ;;  %v7644_v13 = vrot.slane %v18413_v41, 7  ;;  %v7646_v36 = vrot.slane %v18419_v22, 7  ;;  %v7648_v5 = vrot.slane %v18424_v14, 7 }
 0x484   :  { %v7669_v3 = vsel %vm7668_vm5, %v18346_v40, %v7428_v63  ;;  %v7670_v54 = vsel %vm7668_vm5, %v18348_v4, %v7429_v44  ;;  %v7671_v31 = vsel %vm7668_vm5, %v18350_v17, %v7430_v57  ;;  %v7672_v39 = vsel %vm7668_vm5, %v18352_v25, %v7431_v19 }
 0x485   :  { %v7673_v63 = vsel %vm7668_vm5, %v18354_v23, %v7432_v51  ;;  %v7674_v44 = vsel %vm7668_vm5, %v18356_v18, %v7433_v9  ;;  %v7675_v57 = vsel %vm7668_vm5, %v18358_v46, %v7434_v6  ;;  %v7676_v19 = vsel %vm7668_vm5, %v18360_v59, %v7435_v24 }
 0x486   :  { %v7677_v51 = vsel %vm7668_vm5, %v18362_v38, %v7436_v8  ;;  %v7678_v9 = vsel %vm7668_vm5, %v18364_v55, %v7437_v15  ;;  %v7679_v6 = vsel %vm7668_vm5, %v18366_v42, %v7438_v56  ;;  %v7680_v24 = vsel %vm7668_vm5, %v18368_v30, %v7439_v1 }
 0x487   :  { %v7681_v8 = vsel %vm7668_vm5, %v18370_v58, %v7440_v45  ;;  %v7682_v15 = vsel %vm7668_vm5, %v18372_v20, %v7441_v11  ;;  %v7683_v56 = vsel %vm7668_vm5, %v18374_v61, %v7442_v49  ;;  %v7686_v27 = vsel %vm7685_vm6, %v7669_v3, %v7460_v37 }
 0x488   :  { %v7687_v1 = vsel %vm7685_vm6, %v7670_v54, %v7461_v53  ;;  %v7688_v45 = vsel %vm7685_vm6, %v7671_v31, %v7462_v32  ;;  %v7689_v11 = vsel %vm7685_vm6, %v7672_v39, %v7463_v50  ;;  %v7690_v49 = vsel %vm7685_vm6, %v7673_v63, %v7464_v62 }
 0x489   :  { %v7691_v37 = vsel %vm7685_vm6, %v7674_v44, %v7465_v21  ;;  %v7692_v53 = vsel %vm7685_vm6, %v7675_v57, %v7466_v2  ;;  %v7693_v32 = vsel %vm7685_vm6, %v7676_v19, %v7467_v7  ;;  %v7694_v50 = vsel %vm7685_vm6, %v7677_v51, %v7468_v48 }
 0x48a   :  { %v20367_v39 = vrot.slane %v18364_v55, 2  ;;  %v20368_v3 = vrot.slane %v18366_v42, 2  ;;  %v20369_v54 = vrot.slane %v18368_v30, 2  ;;  %v20370_v31 = vrot.slane %v18370_v58, 2 }
 0x48b   :  { %v20371_v63 = vrot.slane %v18372_v20, 2  ;;  %v20372_v44 = vrot.slane %v18374_v61, 2  ;;  %v20373_v19 = vrot.slane %v18346_v40, 3  ;;  %v20378_v40 = vrot.slane %v18356_v18, 3 }
 0x48c   :  { %v7695_v62 = vsel %vm7685_vm6, %v7678_v9, %v20367_v39  ;;  %v7696_v21 = vsel %vm7685_vm6, %v7679_v6, %v20368_v3  ;;  %v7697_v2 = vsel %vm7685_vm6, %v7680_v24, %v20369_v54  ;;  %v7698_v7 = vsel %vm7685_vm6, %v7681_v8, %v20370_v31 }
 0x48d   :  { %v7699_v48 = vsel %vm7685_vm6, %v7682_v15, %v20371_v63  ;;  %v7700_v57 = vsel %vm7685_vm6, %v7683_v56, %v20372_v44  ;;  %v7703_v51 = vsel %vm7702_vm7, %v7686_v27, %v20373_v19  ;;  %v20374_v9 = vrot.slane %v18348_v4, 3 }
 0x48e   :  { %v20375_v24 = vrot.slane %v18350_v17, 3  ;;  %v20376_v39 = vrot.slane %v18352_v25, 3  ;;  %v20377_v3 = vrot.slane %v18354_v23, 3  ;;  %v7708_v27 = vsel %vm7702_vm7, %v7691_v37, %v20378_v40 }
 0x48f   :  { %v7704_v6 = vsel %vm7702_vm7, %v7687_v1, %v20374_v9  ;;  %v20379_v4 = vrot.slane %v18358_v46, 3  ;;  %v20380_v17 = vrot.slane %v18360_v59, 3  ;;  %v20381_v25 = vrot.slane %v18362_v38, 3 }
 0x490   :  { %v7705_v8 = vsel %vm7702_vm7, %v7688_v45, %v20375_v24  ;;  %v7706_v15 = vsel %vm7702_vm7, %v7689_v11, %v20376_v39  ;;  %v7707_v56 = vsel %vm7702_vm7, %v7690_v49, %v20377_v3  ;;  %v20382_v23 = vrot.slane %v18364_v55, 3 }
 0x491   :  { %v7709_v1 = vsel %vm7702_vm7, %v7692_v53, %v20379_v4  ;;  %v7710_v45 = vsel %vm7702_vm7, %v7693_v32, %v20380_v17  ;;  %v7711_v11 = vsel %vm7702_vm7, %v7694_v50, %v20381_v25  ;;  %v20383_v18 = vrot.slane %v18366_v42, 3 }
 0x492   :  { %v7712_v49 = vsel %vm7702_vm7, %v7695_v62, %v20382_v23  ;;  %v20384_v46 = vrot.slane %v18368_v30, 3  ;;  %v20385_v59 = vrot.slane %v18370_v58, 3  ;;  %v20386_v38 = vrot.slane %v18372_v20, 3 }
 0x493   :  { %v7713_v37 = vsel %vm7702_vm7, %v7696_v21, %v20383_v18  ;;  %v20387_v55 = vrot.slane %v18374_v61, 3  ;;  %v20388_v42 = vrot.slane %v18389_v35, 4  ;;  %v20389_v30 = vrot.slane %v18392_v16, 4 }
 0x494   :  { %v7714_v53 = vsel %vm7702_vm7, %v7697_v2, %v20384_v46  ;;  %v7715_v32 = vsel %vm7702_vm7, %v7698_v7, %v20385_v59  ;;  %v7716_v50 = vsel %vm7702_vm7, %v7699_v48, %v20386_v38  ;;  %v20390_v58 = vrot.slane %v18395_v34, 4 }
 0x495   :  { %v7717_v62 = vsel %vm7702_vm7, %v7700_v57, %v20387_v55  ;;  %v7719_v21 = vsel %vm571_vm0, %v7703_v51, %v20388_v42  ;;  %v7720_v54 = vsel %vm571_vm0, %v7704_v6, %v20389_v30  ;;  %v20391_v20 = vrot.slane %v18398_v0, 4 }
 0x496   :  { %v7721_v2 = vsel %vm571_vm0, %v7705_v8, %v20390_v58  ;;  %v20392_v61 = vrot.slane %v18401_v33, 4  ;;  %v20393_v63 = vrot.slane %v18404_v29, 4  ;;  %v20394_v44 = vrot.slane %v18407_v47, 4 }
 0x497   :  { %v7722_v31 = vsel %vm571_vm0, %v7706_v15, %v20391_v20  ;;  %v20395_v19 = vrot.slane %v18410_v10, 4  ;;  %v20396_v9 = vrot.slane %v18413_v41, 4  ;;  %v20397_v24 = vrot.slane %v18416_v43, 4 }
 0x498   :  { %v7723_v7 = vsel %vm571_vm0, %v7707_v56, %v20392_v61  ;;  %v7724_v48 = vsel %vm571_vm0, %v7708_v27, %v20393_v63  ;;  %v7725_v57 = vsel %vm571_vm0, %v7709_v1, %v20394_v44  ;;  %v20398_v39 = vrot.slane %v18419_v22, 4 }
 0x499   :  { %v7726_v51 = vsel %vm571_vm0, %v7710_v45, %v20395_v19  ;;  %v7727_v6 = vsel %vm571_vm0, %v7711_v11, %v20396_v9  ;;  %v7728_v8 = vsel %vm571_vm0, %v7712_v49, %v20397_v24  ;;  %v20399_v3 = vrot.slane %v18422_v28, 4 }
 0x49a   :  { %v7729_v15 = vsel %vm571_vm0, %v7713_v37, %v20398_v39  ;;  %v20400_v40 = vrot.slane %v18424_v14, 4  ;;  %v20401_v4 = vrot.slane %v18426_v12, 4  ;;  %v20402_v17 = vrot.slane %v18428_v60, 4 }
 0x49b   :  { %v7730_v56 = vsel %vm571_vm0, %v7714_v53, %v20399_v3  ;;  %v20403_v25 = vrot.slane %v18389_v35, 5  ;;  %v20404_v23 = vrot.slane %v18392_v16, 5  ;;  %v20405_v18 = vrot.slane %v18395_v34, 5 }
 0x49c   :  { %v7731_v27 = vsel %vm571_vm0, %v7715_v32, %v20400_v40  ;;  %v7732_v1 = vsel %vm571_vm0, %v7716_v50, %v20401_v4  ;;  %v7733_v45 = vsel %vm571_vm0, %v7717_v62, %v20402_v17  ;;  %v20406_v46 = vrot.slane %v18398_v0, 5 }
 0x49d   :  { %v7736_v11 = vsel %vm7735_vm8, %v7719_v21, %v20403_v25  ;;  %v7737_v49 = vsel %vm7735_vm8, %v7720_v54, %v20404_v23  ;;  %v7738_v37 = vsel %vm7735_vm8, %v7721_v2, %v20405_v18  ;;  %v20407_v59 = vrot.slane %v18401_v33, 5 }
 0x49e   :  { %v7739_v53 = vsel %vm7735_vm8, %v7722_v31, %v20406_v46  ;;  %v20408_v38 = vrot.slane %v18404_v29, 5  ;;  %v20409_v55 = vrot.slane %v18407_v47, 5  ;;  %v20410_v42 = vrot.slane %v18410_v10, 5 }
 0x49f   :  { %v7740_v32 = vsel %vm7735_vm8, %v7723_v7, %v20407_v59  ;;  %v20411_v30 = vrot.slane %v18413_v41, 5  ;;  %v20412_v58 = vrot.slane %v18416_v43, 5  ;;  %v20413_v20 = vrot.slane %v18419_v22, 5 }
 0x4a0   :  { %v7741_v50 = vsel %vm7735_vm8, %v7724_v48, %v20408_v38  ;;  %v7742_v62 = vsel %vm7735_vm8, %v7725_v57, %v20409_v55  ;;  %v7743_v21 = vsel %vm7735_vm8, %v7726_v51, %v20410_v42  ;;  %v20414_v61 = vrot.slane %v18422_v28, 5 }
 0x4a1   :  { %v7744_v54 = vsel %vm7735_vm8, %v7727_v6, %v20411_v30  ;;  %v7745_v2 = vsel %vm7735_vm8, %v7728_v8, %v20412_v58  ;;  %v7746_v31 = vsel %vm7735_vm8, %v7729_v15, %v20413_v20  ;;  %v20415_v63 = vrot.slane %v18424_v14, 5 }
 0x4a2   :  { %v7747_v7 = vsel %vm7735_vm8, %v7730_v56, %v20414_v61  ;;  %v20416_v44 = vrot.slane %v18426_v12, 5  ;;  %v20417_v19 = vrot.slane %v18428_v60, 5  ;;  %v20418_v9 = vrot.slane %v18389_v35, 6 }
 0x4a3   :  { %v7748_v48 = vsel %vm7735_vm8, %v7731_v27, %v20415_v63  ;;  %v20419_v24 = vrot.slane %v18392_v16, 6  ;;  %v20420_v39 = vrot.slane %v18395_v34, 6  ;;  %v20421_v3 = vrot.slane %v18398_v0, 6 }
 0x4a4   :  { %v7749_v57 = vsel %vm7735_vm8, %v7732_v1, %v20416_v44  ;;  %v7750_v51 = vsel %vm7735_vm8, %v7733_v45, %v20417_v19  ;;  %v7753_v6 = vsel %vm7752_vm9, %v7736_v11, %v20418_v9  ;;  %v20422_v40 = vrot.slane %v18401_v33, 6  ;;  %v12179_v9 = vld [vmem:[%s19774_s5 + $0x40] sm:$0xff] }
 0x4a5   :  { %v7754_v8 = vsel %vm7752_vm9, %v7737_v49, %v20419_v24  ;;  %v7755_v15 = vsel %vm7752_vm9, %v7738_v37, %v20420_v39  ;;  %v7756_v56 = vsel %vm7752_vm9, %v7739_v53, %v20421_v3  ;;  %v20423_v4 = vrot.slane %v18404_v29, 6 }
 0x4a6   :  { %v7757_v27 = vsel %vm7752_vm9, %v7740_v32, %v20422_v40  ;;  %v20424_v17 = vrot.slane %v18407_v47, 6  ;;  %v20425_v25 = vrot.slane %v18410_v10, 6  ;;  %v20426_v23 = vrot.slane %v18413_v41, 6 }
 0x4a7   :  { %v7758_v1 = vsel %vm7752_vm9, %v7741_v50, %v20423_v4  ;;  %v20427_v18 = vrot.slane %v18416_v43, 6  ;;  %v20428_v46 = vrot.slane %v18419_v22, 6  ;;  %v20429_v59 = vrot.slane %v18422_v28, 6 }
 0x4a8   :  { %v7759_v45 = vsel %vm7752_vm9, %v7742_v62, %v20424_v17  ;;  %v7760_v11 = vsel %vm7752_vm9, %v7743_v21, %v20425_v25  ;;  %v7761_v49 = vsel %vm7752_vm9, %v7744_v54, %v20426_v23  ;;  %v20430_v38 = vrot.slane %v18424_v14, 6  ;;  %v19038_v25 = vld [vmem:[#allocation3 + $0x121] sm:$0xff] }
 0x4a9   :  { %v7762_v37 = vsel %vm7752_vm9, %v7745_v2, %v20427_v18  ;;  %v7763_v53 = vsel %vm7752_vm9, %v7746_v31, %v20428_v46  ;;  %v7764_v32 = vsel %vm7752_vm9, %v7747_v7, %v20429_v59  ;;  %v20431_v55 = vrot.slane %v18426_v12, 6  ;;  %v12094_v18 = vld [vmem:[%s19774_s5 + $0x18] sm:$0xff] }
 0x4aa   :  { %v7765_v50 = vsel %vm7752_vm9, %v7748_v48, %v20430_v38  ;;  %v20432_v42 = vrot.slane %v18428_v60, 6  ;;  %v20433_v30 = vrot.slane %v18389_v35, 7  ;;  %v7777_v58 = vsel %vm7769_vm10, %v7760_v11, %v7643_v26  ;;  %v9183_v38 = vld [vmem:[#allocation3 + $0x90] sm:$0xff] }
 0x4ab   :  { %v7766_v62 = vsel %vm7752_vm9, %v7749_v57, %v20431_v55  ;;  %7837 = vst.msk [vmem:[#allocation3 + $0x81] sm:$0xff] %vm6582_vm4, %v7777_v58  ;;  %v20434_v2 = vmov 0.0   ;;  %v20435_v35 = vrot.slane %v18392_v16, 7  ;;  %v20436_v10 = vrot.slane %v18395_v34, 7 }
 0x4ac   :  { %v7767_v21 = vsel %vm7752_vm9, %v7750_v51, %v20432_v42  ;;  %v7770_v54 = vsel %vm7769_vm10, %v7753_v6, %v20433_v30  ;;  %7788 = vst.msk [vmem:[#allocation3 + $0x8] sm:$0x3] %vm7787_vm11, %v20434_v2  ;;  %7790 = vst.msk [vmem:[#allocation3 + $0xa8] sm:$0x3] %vm7787_vm11, %v20434_v2  ;;  %v20437_v31 = vrot.slane %v18398_v0, 7  ;;  %v20438_v7 = vrot.slane %v18401_v33, 7 }
 0x4ad   :  { %7830 = vst.msk [vmem:[#allocation3 + $0x11] sm:$0xff] %vm6582_vm4, %v7770_v54  ;;  %v7771_v20 = vsel %vm7769_vm10, %v7754_v8, %v20435_v35  ;;  %v7772_v26 = vsel %vm7769_vm10, %v7755_v15, %v20436_v10  ;;  %v7775_v16 = vsel %vm7769_vm10, %v7758_v1, %v7641_v52  ;;  %v20439_v34 = vrot.slane %v18407_v47, 7  ;;  %v20444_v51 = vld [vmem:[#allocation81_spill] sm:$0xff] }
 0x4ae   :  { %7793 = vst.msk [vmem:[#allocation3 + $0x98] sm:$0x3] %vm7787_vm11, %v20434_v2  ;;  %7795 = vst.msk [vmem:[#allocation3 + $0x138] sm:$0x3] %vm7787_vm11, %v20434_v2  ;;  %v7773_v61 = vsel %vm7769_vm10, %v7756_v56, %v20437_v31  ;;  %v7774_v63 = vsel %vm7769_vm10, %v7757_v27, %v20438_v7  ;;  %v7778_v33 = vsel %vm7769_vm10, %v7761_v49, %v7644_v13  ;;  %v20440_v48 = vrot.slane %v18416_v43, 7  ;;  %v12128_v7 = vld [vmem:[%s19774_s5 + $0x28] sm:$0xff] }
 0x4af   :  { %7831 = vst.msk [vmem:[#allocation3 + $0x21] sm:$0xff] %vm6582_vm4, %v7771_v20  ;;  %7832 = vst.msk [vmem:[#allocation3 + $0x31] sm:$0xff] %vm6582_vm4, %v7772_v26  ;;  %v7776_v0 = vsel %vm7769_vm10, %v7759_v45, %v20439_v34  ;;  %v7780_v29 = vsel %vm7769_vm10, %v7763_v53, %v7646_v36  ;;  %v20441_v47 = vrot.slane %v18422_v28, 7  ;;  %v7782_v43 = vsel %vm7769_vm10, %v7765_v50, %v7648_v5  ;;  %v12077_v36 = vld [vmem:[%s19774_s5 + $0x10] sm:$0xff]  ;;  %v14283_v5 = vld [vmem:[%s19774_s5] sm:$0xff] }
 0x4b0   :  { %7833 = vst.msk [vmem:[#allocation3 + $0x41] sm:$0xff] %vm6582_vm4, %v7773_v61  ;;  %7834 = vst.msk [vmem:[#allocation3 + $0x51] sm:$0xff] %vm6582_vm4, %v7774_v63  ;;  %v7779_v44 = vsel %vm7769_vm10, %v7762_v37, %v20440_v48  ;;  %v20442_v52 = vrot.slane %v18426_v12, 7  ;;  %v20443_v22 = vrot.slane %v18428_v60, 7  ;;  %v7846_v45 = vld [vmem:[#allocation3] sm:$0xff]  ;;  %v9191_v20 = vld [vmem:[#allocation3 + $0x130] sm:$0xff] }
 0x4b1   :  { %7835 = vst.msk [vmem:[#allocation3 + $0x61] sm:$0xff] %vm6582_vm4, %v7775_v16  ;;  %7836 = vst.msk [vmem:[#allocation3 + $0x71] sm:$0xff] %vm6582_vm4, %v7776_v0  ;;  %v7781_v41 = vsel %vm7769_vm10, %v7764_v32, %v20441_v47  ;;  %v7854_v50 = vld [vmem:[#allocation3 + $0xa0] sm:$0xff]  ;;  %vm10039_vm0 = vcmask 130048  }
 0x4b2   :  { %7838 = vst.msk [vmem:[#allocation3 + $0xb1] sm:$0xff] %vm6582_vm4, %v7778_v33  ;;  %7839 = vst.msk [vmem:[#allocation3 + $0xc1] sm:$0xff] %vm6582_vm4, %v7779_v44  ;;  %v7783_v13 = vsel %vm7769_vm10, %v7766_v62, %v20442_v52  ;;  %v7784_v28 = vsel %vm7769_vm10, %v7767_v21, %v20443_v22  ;;  %v18995_v15 = vld [vmem:[#allocation3 + $0x81] sm:$0xff] }
 0x4b3   :  { %7840 = vst.msk [vmem:[#allocation3 + $0xd1] sm:$0xff] %vm6582_vm4, %v7780_v29  ;;  %7841 = vst.msk [vmem:[#allocation3 + $0xe1] sm:$0xff] %vm6582_vm4, %v7781_v41  ;;  %v7863_v14 = vld [vmem:[#allocation3 + $0x1] sm:$0xff] }
 0x4b4   :  { %7842 = vst.msk [vmem:[#allocation3 + $0xf1] sm:$0xff] %vm6582_vm4, %v7782_v43  ;;  %7843 = vst.msk [vmem:[#allocation3 + $0x101] sm:$0xff] %vm6582_vm4, %v7783_v13  ;;  %v7864_v12 = vld [vmem:[#allocation3 + $0x11] sm:$0xff]  ;;  %13921 = vmatprep.mubr.msk.f32.mxu1 %vm6582_vm4, %v7863_v14  ;;  %v7871_v39 = vld [vmem:[#allocation3 + $0xa1] sm:$0xff] }
 0x4b5   :  { %7844 = vst.msk [vmem:[#allocation3 + $0x111] sm:$0xff] %vm6582_vm4, %v7784_v28  ;;  %14025 = vmatprep.mubr.msk.f32.mxu0 %vm6582_vm4, %v7864_v12  ;;  %13922 = vmatmul.mubr.msk.f32.vlgmr.msra.gmra.mxu1 %vm6582_vm4, %v7864_v12  ;;  %v8267_v10 = vld [vmem:[#allocation3 + $0x2] sm:$0xff]  ;;  %v9637_v48 = vld [vmem:[#allocation3 + $0x92] sm:$0xff] }
 0x4b6   :  { %7799 = vst.msk [vmem:[#allocation3 + $0x20] sm:$0x1] %vm7797_vm12, %v20434_v2  ;;  %7798 = vst.msk [vmem:[#allocation3 + $0x10] sm:$0x1] %vm7797_vm12, %v20434_v2  ;;  %v18950_v60 = vld [vmem:[#allocation3 + $0x21] sm:$0xff]  ;;  %13946 = vmatpush3.msra.mxu1 %v14283_v5  ;;  %v18963_v57 = vld [vmem:[#allocation3 + $0x31] sm:$0xff] }
 0x4b7   :  { %7800 = vst.msk [vmem:[#allocation3 + $0x30] sm:$0x1] %vm7797_vm12, %v20434_v2  ;;  %7801 = vst.msk [vmem:[#allocation3 + $0x40] sm:$0x1] %vm7797_vm12, %v20434_v2  ;;  %14026 = vmatmul.mubr.msk.f32.vlgmr.msra.gmra.mxu0 %vm6582_vm4, %v18950_v60  ;;  %13924 = vmatprep.mubr.msk.f32.mxu1 %vm6582_vm4, %v18950_v60  ;;  %v18967_v19 = vld [vmem:[#allocation3 + $0x41] sm:$0xff]  ;;  %v18977_v6 = vld [vmem:[#allocation3 + $0x51] sm:$0xff] }
 0x4b8   :  { %7802 = vst.msk [vmem:[#allocation3 + $0x50] sm:$0x1] %vm7797_vm12, %v20434_v2  ;;  %7803 = vst.msk [vmem:[#allocation3 + $0x60] sm:$0x1] %vm7797_vm12, %v20434_v2  ;;  %14028 = vmatprep.mubr.msk.f32.mxu0 %vm6582_vm4, %v18963_v57  ;;  %13971 = vmatprep.subr.mxu1 %v12077_v36  ;;  %v18983_v24 = vld [vmem:[#allocation3 + $0x61] sm:$0xff]  ;;  %v18989_v8 = vld [vmem:[#allocation3 + $0x71] sm:$0xff] }
 0x4b9   :  { %7804 = vst.msk [vmem:[#allocation3 + $0x70] sm:$0x1] %vm7797_vm12, %v20434_v2  ;;  %7805 = vst.msk [vmem:[#allocation3 + $0x80] sm:$0x1] %vm7797_vm12, %v20434_v2  ;;  %14076 = vmatpush3.msra.mxu0 %v20444_v51  ;;  %13925 = vmatmul.mubr.msk.f32.gmra.mxu1 %vm6582_vm4, %v18963_v57  ;;  %v8729_v3 = vld [vmem:[#allocation3 + $0xb1] sm:$0xff]  ;;  %v19003_v56 = vld [vmem:[#allocation3 + $0xc1] sm:$0xff] }
 0x4ba   :  { %7806 = vst.msk [vmem:[#allocation3 + $0xb0] sm:$0x1] %vm7797_vm12, %v20434_v2  ;;  %7807 = vst.msk [vmem:[#allocation3 + $0xc0] sm:$0x1] %vm7797_vm12, %v20434_v2  ;;  %13927 = vmatprep.mubr.msk.f32.mxu1 %vm6582_vm4, %v18967_v19  ;;  %14127 = vmatprep.subr.mxu0 %v12179_v9  ;;  %v19008_v40 = vld [vmem:[#allocation3 + $0xd1] sm:$0xff]  ;;  %v19014_v27 = vld [vmem:[#allocation3 + $0xe1] sm:$0xff] }
 0x4bb   :  { %7808 = vst.msk [vmem:[#allocation3 + $0xd0] sm:$0x1] %vm7797_vm12, %v20434_v2  ;;  %7809 = vst.msk [vmem:[#allocation3 + $0xe0] sm:$0x1] %vm7797_vm12, %v20434_v2  ;;  %14029 = vmatmul.mubr.msk.f32.gmra.mxu0 %vm6582_vm4, %v18967_v19  ;;  %v19020_v4 = vld [vmem:[#allocation3 + $0xf1] sm:$0xff]  ;;  %v19026_v1 = vld [vmem:[#allocation3 + $0x101] sm:$0xff] }
 0x4bc   :  { %7810 = vst.msk [vmem:[#allocation3 + $0xf0] sm:$0x1] %vm7797_vm12, %v20434_v2  ;;  %7811 = vst.msk [vmem:[#allocation3 + $0x100] sm:$0x1] %vm7797_vm12, %v20434_v2  ;;  %14031 = vmatprep.mubr.msk.f32.mxu0 %vm6582_vm4, %v18977_v6  ;;  %v19032_v17 = vld [vmem:[#allocation3 + $0x111] sm:$0xff]  ;;  %v8275_v44 = vld [vmem:[#allocation3 + $0xa2] sm:$0xff] }
 0x4bd   :  { %7812 = vst.msk [vmem:[#allocation3 + $0x110] sm:$0x1] %vm7797_vm12, %v20434_v2  ;;  %7813 = vst.msk [vmem:[#allocation3 + $0x120] sm:$0x1] %vm7797_vm12, %v20434_v2  ;;  %13928 = vmatmul.mubr.msk.f32.gmra.mxu1 %vm6582_vm4, %v18977_v6  ;;  %v19044_v11 = vld [vmem:[#allocation3 + $0x20] sm:$0xff]  ;;  %v19049_v23 = vld [vmem:[#allocation3 + $0x10] sm:$0xff] }
 0x4be   :  { %7814 = vst.msk [vmem:[#allocation3 + $0x19] sm:$0x1] %vm7797_vm12, %v20434_v2  ;;  %7815 = vst.msk [vmem:[#allocation3 + $0x29] sm:$0x1] %vm7797_vm12, %v20434_v2  ;;  %13930 = vmatprep.mubr.msk.f32.mxu1 %vm6582_vm4, %v18983_v24  ;;  %v19051_v49 = vld [vmem:[#allocation3 + $0x30] sm:$0xff]  ;;  %v19062_v37 = vld [vmem:[#allocation3 + $0x40] sm:$0xff] }
 0x4bf   :  { %7816 = vst.msk [vmem:[#allocation3 + $0x39] sm:$0x1] %vm7797_vm12, %v20434_v2  ;;  %7817 = vst.msk [vmem:[#allocation3 + $0x49] sm:$0x1] %vm7797_vm12, %v20434_v2  ;;  %14032 = vmatmul.mubr.msk.f32.gmra.mxu0 %vm6582_vm4, %v18983_v24  ;;  %v19066_v46 = vld [vmem:[#allocation3 + $0x50] sm:$0xff]  ;;  %v19072_v53 = vld [vmem:[#allocation3 + $0x60] sm:$0xff] }
 0x4c0   :  { %7818 = vst.msk [vmem:[#allocation3 + $0x59] sm:$0x1] %vm7797_vm12, %v20434_v2  ;;  %7819 = vst.msk [vmem:[#allocation3 + $0x69] sm:$0x1] %vm7797_vm12, %v20434_v2  ;;  %14034 = vmatprep.mubr.msk.f32.mxu0 %vm6582_vm4, %v18989_v8  ;;  %v19079_v59 = vld [vmem:[#allocation3 + $0x70] sm:$0xff]  ;;  %v19085_v32 = vld [vmem:[#allocation3 + $0x80] sm:$0xff] }
 0x4c1   :  { %7820 = vst.msk [vmem:[#allocation3 + $0x79] sm:$0x1] %vm7797_vm12, %v20434_v2  ;;  %7821 = vst.msk [vmem:[#allocation3 + $0x89] sm:$0x1] %vm7797_vm12, %v20434_v2  ;;  %13931 = vmatmul.mubr.msk.f32.gmra.mxu1 %vm6582_vm4, %v18989_v8  ;;  %v19094_v55 = vld [vmem:[#allocation3 + $0xc0] sm:$0xff]  ;;  %v19099_v62 = vld [vmem:[#allocation3 + $0xb0] sm:$0xff] }
 0x4c2   :  { %7822 = vst.msk [vmem:[#allocation3 + $0xb9] sm:$0x1] %vm7797_vm12, %v20434_v2  ;;  %7823 = vst.msk [vmem:[#allocation3 + $0xc9] sm:$0x1] %vm7797_vm12, %v20434_v2  ;;  %13933 = vmatprep.mubr.msk.f32.mxu1 %vm6582_vm4, %v7871_v39  ;;  %v19101_v42 = vld [vmem:[#allocation3 + $0xd0] sm:$0xff]  ;;  %v19107_v21 = vld [vmem:[#allocation3 + $0xe0] sm:$0xff] }
 0x4c3   :  { %7824 = vst.msk [vmem:[#allocation3 + $0xd9] sm:$0x1] %vm7797_vm12, %v20434_v2  ;;  %7825 = vst.msk [vmem:[#allocation3 + $0xe9] sm:$0x1] %vm7797_vm12, %v20434_v2  ;;  %14035 = vmatmul.mubr.msk.f32.gmra.mxu0 %vm6582_vm4, %v18995_v15  ;;  %v19113_v30 = vld [vmem:[#allocation3 + $0xf0] sm:$0xff]  ;;  %v19119_v54 = vld [vmem:[#allocation3 + $0x100] sm:$0xff] }
 0x4c4   :  { %7826 = vst.msk [vmem:[#allocation3 + $0xf9] sm:$0x1] %vm7797_vm12, %v20434_v2  ;;  %7827 = vst.msk [vmem:[#allocation3 + $0x109] sm:$0x1] %vm7797_vm12, %v20434_v2  ;;  %14037 = vmatprep.mubr.msk.f32.mxu0 %vm6582_vm4, %v8729_v3  ;;  %v19125_v58 = vld [vmem:[#allocation3 + $0x110] sm:$0xff]  ;;  %v19131_v35 = vld [vmem:[#allocation3 + $0x120] sm:$0xff] }
 0x4c5   :  { %7828 = vst.msk [vmem:[#allocation3 + $0x119] sm:$0x1] %vm7797_vm12, %v20434_v2  ;;  %7829 = vst.msk [vmem:[#allocation3 + $0x129] sm:$0x1] %vm7797_vm12, %v20434_v2  ;;  %13934 = vmatmul.mubr.msk.f32.gmra.mxu1 %vm6582_vm4, %v8729_v3  ;;  %v19140_v26 = vld [vmem:[#allocation3 + $0x22] sm:$0xff]  ;;  %v19145_v31 = vld [vmem:[#allocation3 + $0x12] sm:$0xff] }
 0x4c6   :  { %13936 = vmatprep.mubr.msk.f32.mxu1 %vm6582_vm4, %v19003_v56  ;;  %v19147_v61 = vld [vmem:[#allocation3 + $0x32] sm:$0xff]  ;;  %v19158_v63 = vld [vmem:[#allocation3 + $0x42] sm:$0xff] }
 0x4c7   :  { %14038 = vmatmul.mubr.msk.f32.gmra.mxu0 %vm6582_vm4, %v19003_v56  ;;  %v19162_v16 = vld [vmem:[#allocation3 + $0x52] sm:$0xff]  ;;  %v19168_v34 = vld [vmem:[#allocation3 + $0x62] sm:$0xff] }
 0x4c8   :  { %14040 = vmatprep.mubr.msk.f32.mxu0 %vm6582_vm4, %v19008_v40  ;;  %v9635_v0 = vld [vmem:[#allocation3 + $0x72] sm:$0xff]  ;;  %v9636_v33 = vld [vmem:[#allocation3 + $0x82] sm:$0xff] }
 0x4c9   :  { %13937 = vmatmul.mubr.msk.f32.gmra.mxu1 %vm6582_vm4, %v19008_v40  ;;  %v9638_v29 = vld [vmem:[#allocation3 + $0xc2] sm:$0xff]  ;;  %v8276_v47 = vld [vmem:[#allocation3 + $0xb2] sm:$0xff] }
 0x4ca   :  { %13939 = vmatprep.mubr.msk.f32.mxu1 %vm6582_vm4, %v19014_v27  ;;  %v9639_v41 = vld [vmem:[#allocation3 + $0xd2] sm:$0xff]  ;;  %v9640_v43 = vld [vmem:[#allocation3 + $0xe2] sm:$0xff] }
 0x4cb   :  { %14041 = vmatmul.mubr.msk.f32.gmra.mxu0 %vm6582_vm4, %v19014_v27  ;;  %v9641_v52 = vld [vmem:[#allocation3 + $0xf2] sm:$0xff]  ;;  %v9642_v13 = vld [vmem:[#allocation3 + $0x102] sm:$0xff] }
 0x4cc   :  { %14043 = vmatprep.mubr.msk.f32.mxu0 %vm6582_vm4, %v19020_v4  ;;  %v9643_v22 = vld [vmem:[#allocation3 + $0x112] sm:$0xff]  ;;  %v9644_v28 = vld [vmem:[#allocation3 + $0x122] sm:$0xff] }
 0x4cd   :  { %13940 = vmatmul.mubr.msk.f32.gmra.mxu1 %vm6582_vm4, %v19020_v4  ;;  %v9645_v14 = vld [vmem:[#allocation3 + $0x132] sm:$0xff] }
 0x4ce   :  { %13942 = vmatprep.mubr.msk.f32.mxu1 %vm6582_vm4, %v19026_v1  ;;  %v12162_v12 = vld [vmem:[%s19774_s5 + $0x38] sm:$0xff]  ;;  %s14284_s5 = scalar_lea.vmem %s11441_s29, 32 }
 0x4cf   :  { %14044 = vmatmul.mubr.msk.f32.gmra.mxu0 %vm6582_vm4, %v19026_v1  ;;  %p14285_p0 = scmp.ne.s32.totalorder %s11441_s29, %s14284_s5  ;;  %p14290_p2 = scmp.lt.s32.totalorder %s14284_s5, %s14284_s5 }
 0x4d0   :  { %14046 = vmatprep.mubr.msk.f32.mxu0 %vm6582_vm4, %v19032_v17 }
 0x4d1   :  { %13943 = vmatmul.mubr.msk.f32.gmra.mxu1 %vm6582_vm4, %v19032_v17  ;;  %p14291_p3 = por %p14290_p2, %p14289_p1 }
 0x4d2   :  { %13947 = vmatprep.mubr.msk.f32.mxu1 %vm6582_vm4, %v7846_v45 }
 0x4d3   :  { %14047 = vmatmul.mubr.msk.f32.gmra.mxu0 %vm6582_vm4, %v19038_v25  ;;  %p14292_p4 = pnand %p14291_p3, %p14285_p0 }
 0x4d4   :  { %14077 = vmatprep.mubr.msk.f32.mxu0 %vm6582_vm4, %v19044_v11 }
 0x4d5   :  { %13948 = vmatmul.mubr.msk.f32.vlgmr.msra.gmra.mxu1 %vm6582_vm4, %v19049_v23 }
 0x4d6   :  { %13972 = vmatpush3.msra.mxu1 %v12077_v36  ;;  %13950 = vmatprep.mubr.msk.f32.mxu1 %vm6582_vm4, %v19044_v11  ;;  %v9410_v36 = vld [vmem:[#allocation3 + $0x91] sm:$0xff] }
 0x4d7   :  { %14078 = vmatmul.mubr.msk.f32.vlgmr.msra.gmra.mxu0 %vm6582_vm4, %v19051_v49  ;;  %13997 = vmatprep.subr.mxu1 %v12094_v18 }
 0x4d8   :  { %14080 = vmatprep.mubr.msk.f32.mxu0 %vm6582_vm4, %v19062_v37  ;;  %14128 = vmatpush3.msra.mxu0 %v12179_v9 }
 0x4d9   :  { %13951 = vmatmul.mubr.msk.f32.gmra.mxu1 %vm6582_vm4, %v19051_v49  ;;  %14209 = vmatprep.subr.mxu0 %v20434_v2 }
 0x4da   :  { %13953 = vmatprep.mubr.msk.f32.mxu1 %vm6582_vm4, %v19062_v37 }
 0x4db   :  { %14081 = vmatmul.mubr.msk.f32.gmra.mxu0 %vm6582_vm4, %v19066_v46 }
 0x4dc   :  { %14083 = vmatprep.mubr.msk.f32.mxu0 %vm6582_vm4, %v19072_v53 }
 0x4dd   :  { %13954 = vmatmul.mubr.msk.f32.gmra.mxu1 %vm6582_vm4, %v19066_v46 }
 0x4de   :  { %13956 = vmatprep.mubr.msk.f32.mxu1 %vm6582_vm4, %v19072_v53 }
 0x4df   :  { %14084 = vmatmul.mubr.msk.f32.gmra.mxu0 %vm6582_vm4, %v19079_v59 }
 0x4e0   :  { %14086 = vmatprep.mubr.msk.f32.mxu0 %vm6582_vm4, %v19085_v32 }
 0x4e1   :  { %13957 = vmatmul.mubr.msk.f32.gmra.mxu1 %vm6582_vm4, %v19079_v59 }
 0x4e2   :  { %13959 = vmatprep.mubr.msk.f32.mxu1 %vm6582_vm4, %v7854_v50 }
 0x4e3   :  { %14087 = vmatmul.mubr.msk.f32.gmra.mxu0 %vm6582_vm4, %v9183_v38 }
 0x4e4   :  { %14089 = vmatprep.mubr.msk.f32.mxu0 %vm6582_vm4, %v19094_v55 }
 0x4e5   :  { %13960 = vmatmul.mubr.msk.f32.gmra.mxu1 %vm6582_vm4, %v19099_v62 }
 0x4e6   :  { %13962 = vmatprep.mubr.msk.f32.mxu1 %vm6582_vm4, %v19094_v55 }
 0x4e7   :  { %14090 = vmatmul.mubr.msk.f32.gmra.mxu0 %vm6582_vm4, %v19101_v42 }
 0x4e8   :  { %14092 = vmatprep.mubr.msk.f32.mxu0 %vm6582_vm4, %v19107_v21 }
 0x4e9   :  { %13963 = vmatmul.mubr.msk.f32.gmra.mxu1 %vm6582_vm4, %v19101_v42 }
 0x4ea   :  { %13965 = vmatprep.mubr.msk.f32.mxu1 %vm6582_vm4, %v19107_v21 }
 0x4eb   :  { %14093 = vmatmul.mubr.msk.f32.gmra.mxu0 %vm6582_vm4, %v19113_v30 }
 0x4ec   :  { %14095 = vmatprep.mubr.msk.f32.mxu0 %vm6582_vm4, %v19119_v54 }
 0x4ed   :  { %13966 = vmatmul.mubr.msk.f32.gmra.mxu1 %vm6582_vm4, %v19113_v30 }
 0x4ee   :  { %13968 = vmatprep.mubr.msk.f32.mxu1 %vm6582_vm4, %v19119_v54 }
 0x4ef   :  { %14096 = vmatmul.mubr.msk.f32.gmra.mxu0 %vm6582_vm4, %v19125_v58 }
 0x4f0   :  { %14098 = vmatprep.mubr.msk.f32.mxu0 %vm6582_vm4, %v19131_v35 }
 0x4f1   :  { %13969 = vmatmul.mubr.msk.f32.gmra.mxu1 %vm6582_vm4, %v19125_v58 }
 0x4f2   :  { %13973 = vmatprep.mubr.msk.f32.mxu1 %vm6582_vm4, %v8267_v10 }
 0x4f3   :  { %14099 = vmatmul.mubr.msk.f32.gmra.mxu0 %vm6582_vm4, %v9191_v20 }
 0x4f4   :  { %14129 = vmatprep.mubr.msk.f32.mxu0 %vm6582_vm4, %v19140_v26 }
 0x4f5   :  { %13974 = vmatmul.mubr.msk.f32.vlgmr.msra.gmra.mxu1 %vm6582_vm4, %v19145_v31 }
 0x4f6   :  { %13998 = vmatpush3.msra.mxu1 %v12094_v18  ;;  %13976 = vmatprep.mubr.msk.f32.mxu1 %vm6582_vm4, %v19140_v26 }
 0x4f7   :  { %14130 = vmatmul.mubr.msk.f32.vlgmr.msra.gmra.mxu0 %vm6582_vm4, %v19147_v61  ;;  %14049 = vmatprep.subr.mxu1 %v12128_v7 }
 0x4f8   :  { %14132 = vmatprep.mubr.msk.f32.mxu0 %vm6582_vm4, %v19158_v63 }
 0x4f9   :  { %13977 = vmatmul.mubr.msk.f32.gmra.mxu1 %vm6582_vm4, %v19147_v61 }
 0x4fa   :  { %13979 = vmatprep.mubr.msk.f32.mxu1 %vm6582_vm4, %v19158_v63 }
 0x4fb   :  { %14133 = vmatmul.mubr.msk.f32.gmra.mxu0 %vm6582_vm4, %v19162_v16 }
 0x4fc   :  { %14135 = vmatprep.mubr.msk.f32.mxu0 %vm6582_vm4, %v19168_v34 }
 0x4fd   :  { %13980 = vmatmul.mubr.msk.f32.gmra.mxu1 %vm6582_vm4, %v19162_v16 }
 0x4fe   :  { %13982 = vmatprep.mubr.msk.f32.mxu1 %vm6582_vm4, %v19168_v34 }
 0x4ff   :  { %14136 = vmatmul.mubr.msk.f32.gmra.mxu0 %vm6582_vm4, %v9635_v0 }
 0x500   :  { %14138 = vmatprep.mubr.msk.f32.mxu0 %vm6582_vm4, %v9636_v33 }
 0x501   :  { %13983 = vmatmul.mubr.msk.f32.gmra.mxu1 %vm6582_vm4, %v9635_v0 }
 0x502   :  { %13985 = vmatprep.mubr.msk.f32.mxu1 %vm6582_vm4, %v8275_v44 }
 0x503   :  { %14139 = vmatmul.mubr.msk.f32.gmra.mxu0 %vm6582_vm4, %v9637_v48 }
 0x504   :  { %14141 = vmatprep.mubr.msk.f32.mxu0 %vm6582_vm4, %v9638_v29 }
 0x505   :  { %13986 = vmatmul.mubr.msk.f32.gmra.mxu1 %vm6582_vm4, %v8276_v47 }
 0x506   :  { %13988 = vmatprep.mubr.msk.f32.mxu1 %vm6582_vm4, %v9638_v29 }
 0x507   :  { %14142 = vmatmul.mubr.msk.f32.gmra.mxu0 %vm6582_vm4, %v9639_v41 }
 0x508   :  { %14144 = vmatprep.mubr.msk.f32.mxu0 %vm6582_vm4, %v9640_v43 }
 0x509   :  { %13989 = vmatmul.mubr.msk.f32.gmra.mxu1 %vm6582_vm4, %v9639_v41 }
 0x50a   :  { %13991 = vmatprep.mubr.msk.f32.mxu1 %vm6582_vm4, %v9640_v43 }
 0x50b   :  { %14145 = vmatmul.mubr.msk.f32.gmra.mxu0 %vm6582_vm4, %v9641_v52 }
 0x50c   :  { %14147 = vmatprep.mubr.msk.f32.mxu0 %vm6582_vm4, %v9642_v13 }
 0x50d   :  { %13992 = vmatmul.mubr.msk.f32.gmra.mxu1 %vm6582_vm4, %v9641_v52 }
 0x50e   :  { %13994 = vmatprep.mubr.msk.f32.mxu1 %vm6582_vm4, %v9642_v13 }
 0x50f   :  { %14148 = vmatmul.mubr.msk.f32.gmra.mxu0 %vm6582_vm4, %v9643_v22 }
 0x510   :  { %14150 = vmatprep.mubr.msk.f32.mxu0 %vm6582_vm4, %v9644_v28 }
 0x511   :  { %13995 = vmatmul.mubr.msk.f32.gmra.mxu1 %vm6582_vm4, %v9643_v22 }
 0x512   :  { %13999 = vmatprep.mubr.msk.f32.mxu1 %vm6582_vm4, %v19049_v23 }
 0x513   :  { %14151 = vmatmul.mubr.msk.f32.gmra.mxu0 %vm6582_vm4, %v9645_v14 }
 0x514   :  { %14213 = vmatprep.mubr.msk.f32.mxu0 %vm14307_vm13, %v20434_v2 }
 0x515   :  { %14000 = vmatmul.mubr.msk.f32.vlgmr.msra.gmra.mxu1 %vm6582_vm4, %v19044_v11 }
 0x516   :  { %14050 = vmatpush3.msra.mxu1 %v12128_v7  ;;  %14002 = vmatprep.mubr.msk.f32.mxu1 %vm6582_vm4, %v19051_v49 }
 0x517   :  { %14101 = vmatprep.subr.mxu1 %v12162_v12 }
 0x519   :  { %14003 = vmatmul.mubr.msk.f32.gmra.mxu1 %vm6582_vm4, %v19062_v37 }
 0x51a   :  { %14005 = vmatprep.mubr.msk.f32.mxu1 %vm6582_vm4, %v19066_v46 }
 0x51d   :  { %14006 = vmatmul.mubr.msk.f32.gmra.mxu1 %vm6582_vm4, %v19072_v53 }
 0x51e   :  { %14008 = vmatprep.mubr.msk.f32.mxu1 %vm6582_vm4, %v19079_v59 }
 0x521   :  { %14009 = vmatmul.mubr.msk.f32.gmra.mxu1 %vm6582_vm4, %v19085_v32 }
 0x522   :  { %14011 = vmatprep.mubr.msk.f32.mxu1 %vm6582_vm4, %v19099_v62 }
 0x525   :  { %14012 = vmatmul.mubr.msk.f32.gmra.mxu1 %vm6582_vm4, %v19094_v55 }
 0x526   :  { %14014 = vmatprep.mubr.msk.f32.mxu1 %vm6582_vm4, %v19101_v42 }
 0x529   :  { %14015 = vmatmul.mubr.msk.f32.gmra.mxu1 %vm6582_vm4, %v19107_v21 }
 0x52a   :  { %14017 = vmatprep.mubr.msk.f32.mxu1 %vm6582_vm4, %v19113_v30 }
 0x52d   :  { %14018 = vmatmul.mubr.msk.f32.gmra.mxu1 %vm6582_vm4, %v19119_v54 }
 0x52e   :  { %14020 = vmatprep.mubr.msk.f32.mxu1 %vm6582_vm4, %v19125_v58 }
 0x531   :  { %14021 = vmatmul.mubr.msk.f32.gmra.mxu1 %vm6582_vm4, %v19131_v35 }
 0x532   :  { %14051 = vmatprep.mubr.msk.f32.mxu1 %vm6582_vm4, %v19145_v31 }
 0x535   :  { %14052 = vmatmul.mubr.msk.f32.vlgmr.msra.gmra.mxu1 %vm6582_vm4, %v19140_v26 }
 0x536   :  { %14102 = vmatpush3.msra.mxu1 %v12162_v12  ;;  %14054 = vmatprep.mubr.msk.f32.mxu1 %vm6582_vm4, %v19147_v61 }
 0x537   :  { %14153 = vmatprep.subr.mxu1 %v20434_v2 }
 0x539   :  { %14055 = vmatmul.mubr.msk.f32.gmra.mxu1 %vm6582_vm4, %v19158_v63 }
 0x53a   :  { %14057 = vmatprep.mubr.msk.f32.mxu1 %vm6582_vm4, %v19162_v16 }
 0x53d   :  { %14058 = vmatmul.mubr.msk.f32.gmra.mxu1 %vm6582_vm4, %v19168_v34 }
 0x53e   :  { %14060 = vmatprep.mubr.msk.f32.mxu1 %vm6582_vm4, %v9635_v0 }
 0x541   :  { %14061 = vmatmul.mubr.msk.f32.gmra.mxu1 %vm6582_vm4, %v9636_v33 }
 0x542   :  { %14063 = vmatprep.mubr.msk.f32.mxu1 %vm6582_vm4, %v8276_v47 }
 0x545   :  { %14064 = vmatmul.mubr.msk.f32.gmra.mxu1 %vm6582_vm4, %v9638_v29 }
 0x546   :  { %14066 = vmatprep.mubr.msk.f32.mxu1 %vm6582_vm4, %v9639_v41 }
 0x549   :  { %14067 = vmatmul.mubr.msk.f32.gmra.mxu1 %vm6582_vm4, %v9640_v43 }
 0x54a   :  { %14069 = vmatprep.mubr.msk.f32.mxu1 %vm6582_vm4, %v9641_v52 }
 0x54d   :  { %14070 = vmatmul.mubr.msk.f32.gmra.mxu1 %vm6582_vm4, %v9642_v13 }
 0x54e   :  { %14072 = vmatprep.mubr.msk.f32.mxu1 %vm6582_vm4, %v9643_v22 }
 0x551   :  { %14073 = vmatmul.mubr.msk.f32.gmra.mxu1 %vm6582_vm4, %v9644_v28 }
 0x552   :  { %14103 = vmatprep.mubr.msk.f32.mxu1 %vm6582_vm4, %v18950_v60  ;;  %v9418_v60 = vld [vmem:[#allocation3 + $0x131] sm:$0xff] }
 0x555   :  { %14104 = vmatmul.mubr.msk.f32.vlgmr.msra.gmra.mxu1 %vm6582_vm4, %v18963_v57 }
 0x556   :  { %14106 = vmatprep.mubr.msk.f32.mxu1 %vm6582_vm4, %v18967_v19 }
 0x559   :  { %14107 = vmatmul.mubr.msk.f32.gmra.mxu1 %vm6582_vm4, %v18977_v6 }
 0x55a   :  { %14109 = vmatprep.mubr.msk.f32.mxu1 %vm6582_vm4, %v18983_v24 }
 0x55d   :  { %14110 = vmatmul.mubr.msk.f32.gmra.mxu1 %vm6582_vm4, %v18989_v8 }
 0x55e   :  { %14112 = vmatprep.mubr.msk.f32.mxu1 %vm6582_vm4, %v18995_v15 }
 0x561   :  { %14113 = vmatmul.mubr.msk.f32.gmra.mxu1 %vm6582_vm4, %v9410_v36 }
 0x562   :  { %14115 = vmatprep.mubr.msk.f32.mxu1 %vm6582_vm4, %v19003_v56 }
 0x565   :  { %14116 = vmatmul.mubr.msk.f32.gmra.mxu1 %vm6582_vm4, %v19008_v40 }
 0x566   :  { %14118 = vmatprep.mubr.msk.f32.mxu1 %vm6582_vm4, %v19014_v27 }
 0x569   :  { %14119 = vmatmul.mubr.msk.f32.gmra.mxu1 %vm6582_vm4, %v19020_v4 }
 0x56a   :  { %14121 = vmatprep.mubr.msk.f32.mxu1 %vm6582_vm4, %v19026_v1 }
 0x56d   :  { %14122 = vmatmul.mubr.msk.f32.gmra.mxu1 %vm6582_vm4, %v19032_v17 }
 0x56e   :  { %14124 = vmatprep.mubr.msk.f32.mxu1 %vm6582_vm4, %v19038_v25 }
 0x571   :  { %14125 = vmatmul.mubr.msk.f32.gmra.mxu1 %vm6582_vm4, %v9418_v60 }
 0x572   :  { %14157 = vmatprep.mubr.msk.f32.mxu1 %vm14307_vm13, %v20434_v2 }
 0x575   :  { %v13923_v5 = vpop.f32.mrf.mxu1 }
 0x577   :  { %v7995_v57 = vpop.f32.mrf.mxu1  ;;  %v19286_v51 = vpop.f32.mrf.mxu0 }
 0x579   :  { %v13926_v19 = vpop.f32.mrf.mxu1  ;;  %v19290_v24 = vpop.f32.mrf.mxu0 }
 0x57b   :  { %v19288_v9 = vpop.f32.mrf.mxu1  ;;  %v19294_v15 = vpop.f32.mrf.mxu0 }
 0x57d   :  { %v13929_v6 = vpop.f32.mrf.mxu1  ;;  %v19298_v40 = vpop.f32.mrf.mxu0 }
 0x57f   :  { %v19292_v8 = vpop.f32.mrf.mxu1  ;;  %v19300_v1 = vpop.f32.mrf.mxu0 }
 0x581   :  { %v13932_v39 = vpop.f32.mrf.mxu1  ;;  %v19302_v25 = vpop.f32.mrf.mxu0 }
 0x583   :  { %v19296_v3 = vpop.f32.mrf.mxu1  ;;  %v19304_v49 = vpop.f32.mrf.mxu0 }
 0x585   :  { %v13935_v56 = vpop.f32.mrf.mxu1  ;;  %v19306_v46 = vpop.f32.mrf.mxu0 }
 0x587   :  { %v8035_v27 = vpop.f32.mrf.mxu1  ;;  %v19308_v38 = vpop.f32.mrf.mxu0 }
 0x589   :  { %v13938_v4 = vpop.f32.mrf.mxu1  ;;  %v19310_v42 = vpop.f32.mrf.mxu0 }
 0x58b   :  { %v8045_v17 = vpop.f32.mrf.mxu1  ;;  %v19312_v58 = vpop.f32.mrf.mxu0 }
 0x58d   :  { %v13941_v45 = vpop.f32.mrf.mxu1  ;;  %v19314_v26 = vpop.f32.mrf.mxu0 }
 0x58e   :  { %20445 = vst [vmem:[#allocation87_spill] sm:$0xff] %v19314_v26 }
 0x58f   :  { %v8055_v11 = vpop.f32.mrf.mxu1  ;;  %v19316_v16 = vpop.f32.mrf.mxu0 }
 0x590   :  { %20446 = vst [vmem:[#allocation17_spill] sm:$0xff] %v19316_v16 }
 0x591   :  { %v13944_v23 = vpop.f32.mrf.mxu1  ;;  %v19318_v44 = vpop.f32.mrf.mxu0 }
 0x592   :  { %20447 = vst [vmem:[#allocation21_spill] sm:$0xff] %v19318_v44 }
 0x593   :  { %v8065_v18 = vpop.f32.mrf.mxu1  ;;  %v19320_v52 = vpop.f32.mrf.mxu0 }
 0x594   :  { %20448 = vst [vmem:[#allocation90_spill] sm:$0xff] %v19320_v52 }
 0x595   :  { %v13949_v37 = vpop.f32.mrf.mxu1  ;;  %v19322_v12 = vpop.f32.mrf.mxu0 }
 0x596   :  { %v8194_v53 = vadd.f32 %v13949_v37, %v13923_v5  ;;  %20449 = vst [vmem:[#allocation89_spill] sm:$0xff] %v19322_v12 }
 0x597   :  { %v8188_v59 = vpop.f32.mrf.mxu1 }
 0x598   :  { %v8189_v36 = vadd.f32 %v8188_v59, %v7995_v57 }
 0x599   :  { %v13952_v32 = vpop.f32.mrf.mxu1 }
 0x59a   :  { %v8204_v50 = vadd.f32 %v13952_v32, %v13926_v19 }
 0x59b   :  { %v8198_v55 = vpop.f32.mrf.mxu1 }
 0x59d   :  { %v13955_v62 = vpop.f32.mrf.mxu1 }
 0x59e   :  { %v8214_v21 = vadd.f32 %v13955_v62, %v13929_v6  ;;  %v12198_v6 = vld [vmem:[%s19776_s7 + $0x18] sm:$0xff] }
 0x59f   :  { %v8208_v30 = vpop.f32.mrf.mxu1  ;;  %14154 = vmatpush3.msra.mxu1 %v12198_v6 }
 0x5a0   :  { %14155 = vmatprep.subr.mxu1 %v20434_v2 }
 0x5a1   :  { %v13958_v54 = vpop.f32.mrf.mxu1 }
 0x5a2   :  { %v8224_v35 = vadd.f32 %v13958_v54, %v13932_v39 }
 0x5a3   :  { %v8218_v20 = vpop.f32.mrf.mxu1 }
 0x5a5   :  { %v13961_v10 = vpop.f32.mrf.mxu1 }
 0x5a6   :  { %v8234_v31 = vadd.f32 %v13961_v10, %v13935_v56  ;;  %v19331_v56 = vpop.f32.mrf.mxu0 }
 0x5a7   :  { %v8228_v61 = vpop.f32.mrf.mxu1 }
 0x5a8   :  { %v8229_v7 = vadd.f32 %v8228_v61, %v8035_v27  ;;  %v8199_v27 = vadd.f32 %v8198_v55, %v19288_v9  ;;  %v8219_v9 = vadd.f32 %v8218_v20, %v19296_v3  ;;  %v12220_v3 = vld [vmem:[%s19776_s7 + $0x88] sm:$0xff] }
 0x5a9   :  { %v13964_v63 = vpop.f32.mrf.mxu1  ;;  %14210 = vmatpush3.msra.mxu0 %v12220_v3 }
 0x5aa   :  { %v8244_v34 = vadd.f32 %v13964_v63, %v13938_v4  ;;  %14211 = vmatprep.subr.mxu0 %v20434_v2 }
 0x5ab   :  { %v8238_v0 = vpop.f32.mrf.mxu1 }
 0x5ac   :  { %v8239_v33 = vadd.f32 %v8238_v0, %v8045_v17 }
 0x5ad   :  { %v13967_v48 = vpop.f32.mrf.mxu1 }
 0x5ae   :  { %v8254_v29 = vadd.f32 %v13967_v48, %v13941_v45 }
 0x5af   :  { %v8248_v47 = vpop.f32.mrf.mxu1 }
 0x5b0   :  { %v8249_v41 = vadd.f32 %v8248_v47, %v8055_v11  ;;  %v19339_v11 = vpop.f32.mrf.mxu0 }
 0x5b1   :  { %v13970_v43 = vpop.f32.mrf.mxu1 }
 0x5b2   :  { %v8264_v13 = vadd.f32 %v13970_v43, %v13944_v23  ;;  %v8209_v23 = vadd.f32 %v8208_v30, %v19292_v8  ;;  %v19346_v32 = vpop.f32.mrf.mxu0  ;;  %v12197_v30 = vld [vmem:[%s19776_s7 + $0x10] sm:$0xff] }
 0x5b3   :  { %v8258_v22 = vpop.f32.mrf.mxu1  ;;  %20450 = vst [vmem:[#allocation19_spill] sm:$0xff] %v19346_v32  ;;  %14156 = vmatpush3.msra.mxu1 %v12197_v30 }
 0x5b4   :  { %v8259_v28 = vadd.f32 %v8258_v22, %v8065_v18  ;;  %v19353_v10 = vpop.f32.mrf.mxu0  ;;  %14160 = vmatprep.subr.mxu1 %v20434_v2  ;;  %v12219_v22 = vld [vmem:[%s19776_s7 + $0x80] sm:$0xff] }
 0x5b5   :  { %v13975_v14 = vpop.f32.mrf.mxu1  ;;  %20451 = vst [vmem:[#allocation24_spill] sm:$0xff] %v19353_v10  ;;  %14212 = vmatpush3.msra.mxu0 %v12219_v22 }
 0x5b6   :  { %v19324_v60 = vadd.f32 %v13975_v14, %v8194_v53  ;;  %v19365_v20 = vpop.f32.mrf.mxu0  ;;  %14223 = vmatprep.subr.mxu0 %v20434_v2 }
 0x5b7   :  { %v8399_v5 = vpop.f32.mrf.mxu1  ;;  %20452 = vst [vmem:[#allocation92_spill] sm:$0xff] %v19365_v20 }
 0x5b8   :  { %v19326_v19 = vadd.f32 %v8399_v5, %v8189_v36  ;;  %v19377_v48 = vpop.f32.mrf.mxu0 }
 0x5b9   :  { %v13978_v39 = vpop.f32.mrf.mxu1  ;;  %20453 = vst [vmem:[#allocation91_spill] sm:$0xff] %v19377_v48 }
 0x5ba   :  { %v19334_v4 = vadd.f32 %v13978_v39, %v8204_v50  ;;  %v19386_v36 = vpop.f32.mrf.mxu0 }
 0x5bb   :  { %v8409_v57 = vpop.f32.mrf.mxu1  ;;  %20454 = vst [vmem:[#allocation23_spill] sm:$0xff] %v19386_v36 }
 0x5bc   :  { %v19337_v17 = vadd.f32 %v8409_v57, %v8199_v27  ;;  %v19393_v39 = vpop.f32.mrf.mxu0 }
 0x5bd   :  { %v13981_v45 = vpop.f32.mrf.mxu1  ;;  %20455 = vst [vmem:[#allocation26_spill] sm:$0xff] %v19393_v39 }
 0x5be   :  { %v19342_v18 = vadd.f32 %v13981_v45, %v8214_v21  ;;  %v19395_v57 = vpop.f32.mrf.mxu0 }
 0x5bf   :  { %v8419_v37 = vpop.f32.mrf.mxu1  ;;  %20456 = vst [vmem:[#allocation94_spill] sm:$0xff] %v19395_v57 }
 0x5c0   :  { %v19344_v53 = vadd.f32 %v8419_v37, %v8209_v23  ;;  %v19397_v37 = vpop.f32.mrf.mxu0 }
 0x5c1   :  { %v13984_v59 = vpop.f32.mrf.mxu1  ;;  %20457 = vst [vmem:[#allocation93_spill] sm:$0xff] %v19397_v37 }
 0x5c2   :  { %v19349_v50 = vadd.f32 %v13984_v59, %v8224_v35 }
 0x5c3   :  { %v8429_v55 = vpop.f32.mrf.mxu1 }
 0x5c4   :  { %v19351_v62 = vadd.f32 %v8429_v55, %v8219_v9 }
 0x5c5   :  { %v13987_v54 = vpop.f32.mrf.mxu1 }
 0x5c6   :  { %v19355_v61 = vadd.f32 %v13987_v54, %v8234_v31 }
 0x5c7   :  { %v8439_v8 = vpop.f32.mrf.mxu1 }
 0x5c8   :  { %v19357_v21 = vadd.f32 %v8439_v8, %v8229_v7 }
 0x5c9   :  { %v13990_v35 = vpop.f32.mrf.mxu1 }
 0x5ca   :  { %v19367_v63 = vadd.f32 %v13990_v35, %v8244_v34 }
 0x5cb   :  { %v8449_v31 = vpop.f32.mrf.mxu1 }
 0x5cc   :  { %v19375_v7 = vadd.f32 %v8449_v31, %v8239_v33 }
 0x5cd   :  { %v13993_v0 = vpop.f32.mrf.mxu1 }
 0x5ce   :  { %v19379_v47 = vadd.f32 %v13993_v0, %v8254_v29 }
 0x5cf   :  { %v8459_v34 = vpop.f32.mrf.mxu1 }
 0x5d0   :  { %v19381_v43 = vadd.f32 %v8459_v34, %v8249_v41 }
 0x5d1   :  { %v13996_v14 = vpop.f32.mrf.mxu1 }
 0x5d2   :  { %v19388_v5 = vadd.f32 %v13996_v14, %v8264_v13  ;;  %v19399_v13 = vpop.f32.mrf.mxu0 }
 0x5d3   :  { %v8469_v33 = vpop.f32.mrf.mxu1  ;;  %20458 = vst [vmem:[#allocation25_spill] sm:$0xff] %v19399_v13 }
 0x5d4   :  { %v19391_v6 = vadd.f32 %v8469_v33, %v8259_v28  ;;  %v19401_v8 = vpop.f32.mrf.mxu0 }
 0x5d5   :  { %v14001_v29 = vpop.f32.mrf.mxu1  ;;  %20459 = vst [vmem:[#allocation28_spill] sm:$0xff] %v19401_v8 }
 0x5d6   :  { %v19403_v3 = vpop.f32.mrf.mxu0  ;;  %v8706_v16 = vadd.f32 %v14001_v29, %v19324_v60 }
 0x5d7   :  { %v8626_v41 = vpop.f32.mrf.mxu1  ;;  %20460 = vst [vmem:[#allocation96_spill] sm:$0xff] %v19403_v3 }
 0x5d8   :  { %v19405_v0 = vpop.f32.mrf.mxu0 }
 0x5d9   :  { %v14004_v27 = vpop.f32.mrf.mxu1  ;;  %20461 = vst [vmem:[#allocation95_spill] sm:$0xff] %v19405_v0 }
 0x5da   :  { %v19407_v14 = vpop.f32.mrf.mxu0 }
 0x5db   :  { %v8636_v45 = vpop.f32.mrf.mxu1  ;;  %20462 = vst [vmem:[#allocation27_spill] sm:$0xff] %v19407_v14 }
 0x5dc   :  { %v19409_v37 = vpop.f32.mrf.mxu0 }
 0x5dd   :  { %v14007_v23 = vpop.f32.mrf.mxu1  ;;  %20463 = vst [vmem:[#allocation30_spill] sm:$0xff] %v19409_v37 }
 0x5de   :  { %v14131_v39 = vpop.f32.mrf.mxu0 }
 0x5df   :  { %v8646_v59 = vpop.f32.mrf.mxu1 }
 0x5e0   :  { %v19411_v48 = vpop.f32.mrf.mxu0 }
 0x5e1   :  { %v14010_v9 = vpop.f32.mrf.mxu1  ;;  %20464 = vst [vmem:[#allocation97_spill] sm:$0xff] %v19411_v48  ;;  %v8705_v48 = vadd.f32 %v8626_v41, %v19326_v19 }
 0x5e2   :  { %v19413_v12 = vpop.f32.mrf.mxu0  ;;  %v8712_v60 = vadd.f32 %v14010_v9, %v19349_v50 }
 0x5e3   :  { %v8656_v55 = vpop.f32.mrf.mxu1  ;;  %20465 = vst [vmem:[#allocation29_spill] sm:$0xff] %v19413_v12  ;;  %v8932_v19 = vadd.f32 %v19290_v24, %v8705_v48 }
 0x5e4   :  { %v19419_v14 = vpop.f32.mrf.mxu0  ;;  %v8711_v41 = vadd.f32 %v8656_v55, %v19351_v62 }
 0x5e5   :  { %v14013_v54 = vpop.f32.mrf.mxu1  ;;  %20468 = vst [vmem:[#allocation98_spill] sm:$0xff] %v19419_v14  ;;  %v8933_v14 = vadd.f32 %v19286_v51, %v8706_v16 }
 0x5e6   :  { %v19425_v44 = vpop.f32.mrf.mxu0 }
 0x5e7   :  { %v8666_v28 = vpop.f32.mrf.mxu1  ;;  %20471 = vst [vmem:[#allocation38_spill] sm:$0xff] %v19425_v44  ;;  %v8709_v44 = vadd.f32 %v8646_v59, %v19344_v53 }
 0x5e8   :  { %v19433_v12 = vpop.f32.mrf.mxu0  ;;  %v8713_v16 = vadd.f32 %v8666_v28, %v19357_v21 }
 0x5e9   :  { %v14016_v30 = vpop.f32.mrf.mxu1  ;;  %20472 = vst [vmem:[#allocation49_spill] sm:$0xff] %v19433_v12  ;;  %v8714_v12 = vadd.f32 %v14013_v54, %v19355_v61  ;;  %v8936_v24 = vadd.f32 %v19302_v25, %v8709_v44 }
 0x5ea   :  { %v19448_v51 = vpop.f32.mrf.mxu0  ;;  %v8716_v53 = vadd.f32 %v14016_v30, %v19367_v63  ;;  %v8940_v44 = vadd.f32 %v19310_v42, %v8713_v16 }
 0x5eb   :  { %v8676_v35 = vpop.f32.mrf.mxu1 }
 0x5ec   :  { %v8715_v61 = vadd.f32 %v8676_v35, %v19375_v7  ;;  %v20478_v35 = vld [vmem:[#allocation24_spill] sm:$0xff] }
 0x5ed   :  { %v14019_v31 = vpop.f32.mrf.mxu1 }
 0x5ef   :  { %v8686_v34 = vpop.f32.mrf.mxu1 }
 0x5f1   :  { %v14022_v22 = vpop.f32.mrf.mxu1 }
 0x5f3   :  { %v8696_v33 = vpop.f32.mrf.mxu1 }
 0x5f5   :  { %v14053_v2 = vpop.f32.mrf.mxu1 }
 0x5f6   :  { %v9160_v29 = vadd.f32 %v14053_v2, %v8933_v14 }
 0x5f7   :  { %v9080_v13 = vpop.f32.mrf.mxu1 }
 0x5f8   :  { %v9388_v21 = vadd.f32 %v19331_v56, %v9160_v29  ;;  %v8719_v56 = vadd.f32 %v8696_v33, %v19391_v6  ;;  %v20476_v6 = vld [vmem:[#allocation21_spill] sm:$0xff] }
 0x5f9   :  { %v14056_v57 = vpop.f32.mrf.mxu1 }
 0x5fb   :  { %v9090_v8 = vpop.f32.mrf.mxu1 }
 0x5fd   :  { %v14059_v36 = vpop.f32.mrf.mxu1 }
 0x5ff   :  { %v9100_v3 = vpop.f32.mrf.mxu1 }
 0x601   :  { %v14062_v20 = vpop.f32.mrf.mxu1 }
 0x603   :  { %v19415_v0 = vpop.f32.mrf.mxu1 }
 0x604   :  { %20466 = vst [vmem:[#allocation31_spill] sm:$0xff] %v19415_v0 }
 0x605   :  { %v19417_v52 = vpop.f32.mrf.mxu1 }
 0x606   :  { %20467 = vst [vmem:[#allocation99_spill] sm:$0xff] %v19417_v52  ;;  %v8708_v52 = vadd.f32 %v14004_v27, %v19334_v4  ;;  %v8939_v27 = vadd.f32 %v19304_v49, %v8712_v60  ;;  %v8720_v49 = vadd.f32 %v14022_v22, %v19388_v5  ;;  %v20475_v5 = vld [vmem:[#allocation17_spill] sm:$0xff]  ;;  %v20480_v22 = vld [vmem:[#allocation90_spill] sm:$0xff]  ;;  %v20482_v60 = vld [vmem:[#allocation92_spill] sm:$0xff] }
 0x607   :  { %v19421_v10 = vpop.f32.mrf.mxu1 }
 0x608   :  { %20469 = vst [vmem:[#allocation100_spill] sm:$0xff] %v19421_v10  ;;  %v8707_v10 = vadd.f32 %v8636_v45, %v19337_v17  ;;  %v9159_v17 = vadd.f32 %v9080_v13, %v8932_v19  ;;  %v8718_v45 = vadd.f32 %v14019_v31, %v19379_v47  ;;  %v9166_v9 = vadd.f32 %v14062_v20, %v8939_v27 }
 0x609   :  { %v19423_v37 = vpop.f32.mrf.mxu1  ;;  %v8947_v14 = vadd.f32 %v20480_v22, %v8720_v49  ;;  %v20496_v22 = vld [vmem:[#allocation28_spill] sm:$0xff] }
 0x60a   :  { %20470 = vst [vmem:[#allocation47_spill] sm:$0xff] %v19423_v37  ;;  %v8710_v37 = vadd.f32 %v14007_v23, %v19342_v18  ;;  %v8935_v18 = vadd.f32 %v19294_v15, %v8708_v52  ;;  %v8934_v50 = vadd.f32 %v19298_v40, %v8707_v10  ;;  %v8717_v15 = vadd.f32 %v8686_v34, %v19381_v43  ;;  %v19465_v10 = vpop.f32.mrf.mxu0 }
 0x60b   :  { %v19428_v32 = vpop.f32.mrf.mxu1  ;;  %v8938_v52 = vadd.f32 %v19306_v46, %v8711_v41  ;;  %v8941_v40 = vadd.f32 %v19308_v38, %v8714_v12  ;;  %v9387_v7 = vadd.f32 %v19339_v11, %v9159_v17  ;;  %v8943_v43 = vadd.f32 %v19312_v58, %v8716_v53  ;;  %v19475_v46 = vld [vmem:[%s19775_s6] ss:$0 sm:$0xff]  ;;  %v20484_v17 = vld [vmem:[#allocation29_spill] sm:$0xff] }
 0x60c   :  { %v8937_v2 = vadd.f32 %v19300_v1, %v8710_v37  ;;  %v9162_v48 = vadd.f32 %v14056_v57, %v8935_v18  ;;  %v9161_v25 = vadd.f32 %v9090_v8, %v8934_v50  ;;  %v20473_v12 = vld [vmem:[#allocation87_spill] sm:$0xff]  ;;  %v9163_v11 = vadd.f32 %v9100_v3, %v8936_v24  ;;  %v19481_v58 = vpop.f32.mrf.mxu0  ;;  %v20477_v8 = vld [vmem:[#allocation97_spill] sm:$0xff] }
 0x60d   :  { %v19431_v26 = vpop.f32.mrf.mxu1  ;;  %v8942_v57 = vadd.f32 %v20473_v12, %v8715_v61  ;;  %v20474_v37 = vld [vmem:[#allocation19_spill] sm:$0xff]  ;;  %v8945_v13 = vadd.f32 %v20475_v5, %v8718_v45  ;;  %v20481_v3 = vld [vmem:[#allocation89_spill] sm:$0xff] }
 0x60e   :  { %v9164_v47 = vadd.f32 %v14059_v36, %v8937_v2  ;;  %v9390_v59 = vadd.f32 %v20474_v37, %v9162_v48  ;;  %v8944_v36 = vadd.f32 %v20476_v6, %v8717_v15  ;;  %v9389_v31 = vadd.f32 %v20478_v35, %v9161_v25  ;;  %v20483_v19 = vld [vmem:[#allocation99_spill] sm:$0xff]  ;;  %v19496_v15 = vpop.f32.mrf.mxu0  ;;  %v20488_v25 = vld [vmem:[#allocation98_spill] sm:$0xff] }
 0x60f   :  { %v19440_v0 = vpop.f32.mrf.mxu1  ;;  %v8946_v20 = vadd.f32 %v20481_v3, %v8719_v56  ;;  %v9168_v41 = vadd.f32 %v20483_v19, %v8941_v40  ;;  %v20485_v50 = vld [vmem:[#allocation100_spill] sm:$0xff]  ;;  %v20486_v48 = vld [vmem:[#allocation91_spill] sm:$0xff]  ;;  %v9169_v56 = vadd.f32 %v19428_v32, %v8942_v57  ;;  %v20491_v37 = vld [vmem:[#allocation38_spill] sm:$0xff] }
 0x610   :  { %v9392_v29 = vadd.f32 %v20482_v60, %v9164_v47  ;;  %v9167_v2 = vadd.f32 %v20485_v50, %v8940_v44  ;;  %v9391_v27 = vadd.f32 %v20486_v48, %v9163_v11  ;;  %v9172_v44 = vadd.f32 %v19431_v26, %v8945_v13  ;;  %v20492_v11 = vld [vmem:[#allocation94_spill] sm:$0xff]  ;;  %v14146_v57 = vpop.f32.mrf.mxu0 }
 0x611   :  { %v19446_v4 = vpop.f32.mrf.mxu1  ;;  %v9171_v5 = vadd.f32 %v19440_v0, %v8944_v36  ;;  %v9397_v3 = vadd.f32 %v20496_v22, %v9169_v56 }
 0x612   :  { %v9174_v36 = vadd.f32 %v19446_v4, %v8947_v14 }
 0x613   :  { %v19456_v62 = vpop.f32.mrf.mxu1 }
 0x615   :  { %v14105_v1 = vpop.f32.mrf.mxu1 }
 0x616   :  { %v9615_v63 = vadd.f32 %v14105_v1, %v9388_v21  ;;  %v20487_v21 = vld [vmem:[#allocation23_spill] sm:$0xff] }
 0x617   :  { %v9535_v38 = vpop.f32.mrf.mxu1  ;;  %v9394_v45 = vadd.f32 %v20487_v21, %v9166_v9  ;;  %v9396_v9 = vadd.f32 %v20492_v11, %v9168_v41  ;;  %v19519_v41 = vadd.f32 %v19456_v62, %v8946_v20 }
 0x618   :  { %v9842_v23 = vadd.f32 %v14131_v39, %v9615_v63  ;;  %v9614_v42 = vadd.f32 %v9535_v38, %v9387_v7  ;;  %v20479_v39 = vld [vmem:[#allocation31_spill] sm:$0xff]  ;;  %v20490_v38 = vld [vmem:[#allocation26_spill] sm:$0xff] }
 0x619   :  { %v14108_v55 = vpop.f32.mrf.mxu1  ;;  %v9165_v34 = vadd.f32 %v20479_v39, %v8938_v52  ;;  %v20489_v7 = vld [vmem:[#allocation47_spill] sm:$0xff]  ;;  %v20495_v39 = vld [vmem:[#allocation25_spill] sm:$0xff] }
 0x61a   :  { %v9865_v54 = vadd.f32 %v19475_v46, %v9842_v23  ;;  %v9841_v28 = vadd.f32 %v20477_v8, %v9614_v42  ;;  %v9617_v30 = vadd.f32 %v14108_v55, %v9390_v59  ;;  %v9170_v49 = vadd.f32 %v20489_v7, %v8943_v43 }
 0x61b   :  { %v9545_v33 = vpop.f32.mrf.mxu1  ;;  %v9393_v12 = vadd.f32 %v20490_v38, %v9165_v34 }
 0x61c   :  { %v9864_v16 = vadd.f32 %v19475_v46, %v9841_v28  ;;  %v9844_v18 = vadd.f32 %v20484_v17, %v9617_v30  ;;  %v9616_v53 = vadd.f32 %v9545_v33, %v9389_v31  ;;  %v9881_v24 = vmax.f32 %v9865_v54, 0.0  ;;  %v20493_v54 = vld [vmem:[#allocation93_spill] sm:$0xff]  ;;  %v20497_v33 = vld [vmem:[#allocation96_spill] sm:$0xff] }
 0x61d   :  { %v14111_v61 = vpop.f32.mrf.mxu1  ;;  %v9395_v32 = vadd.f32 %v20493_v54, %v9167_v2  ;;  %v20494_v30 = vld [vmem:[#allocation49_spill] sm:$0xff]  ;;  %v9398_v34 = vadd.f32 %v20495_v39, %v9170_v49  ;;  %v19514_v0 = vadd.f32 %v20497_v33, %v9172_v44  ;;  %v9812_v2 = vpop.f32.mrf.mxu0  ;;  %v20499_v49 = vld [vmem:[#allocation27_spill] sm:$0xff] }
 0x61e   :  { %v9880_v52 = vmax.f32 %v9864_v16, 0.0  ;;  %v9867_v1 = vadd.f32 %v19475_v46, %v9844_v18  ;;  %v9843_v40 = vadd.f32 %v20488_v25, %v9616_v53  ;;  %v9619_v63 = vadd.f32 %v14111_v61, %v9392_v29  ;;  %v20498_v53 = vld [vmem:[#allocation95_spill] sm:$0xff] }
 0x61f   :  { %v9555_v47 = vpop.f32.mrf.mxu1  ;;  %v9399_v50 = vadd.f32 %v20498_v53, %v9171_v5  ;;  %v9402_v56 = vadd.f32 %v20499_v49, %v9174_v36  ;;  %v14149_v44 = vpop.f32.mrf.mxu0 }
 0x620   :  { %v9896_v23 = vmax.f32 %v9880_v52, %v9881_v24  ;;  %v9866_v42 = vadd.f32 %v19475_v46, %v9843_v40  ;;  %v9846_v59 = vadd.f32 %v20491_v37, %v9619_v63  ;;  %v9883_v6 = vmax.f32 %v9867_v1, 0.0 }
 0x621   :  { %v9618_v55 = vadd.f32 %v9555_v47, %v9391_v27  ;;  %v14114_v43 = vpop.f32.mrf.mxu1 }
 0x622   :  { %v9912_v26 = vrot.slane %v9896_v23, 1  ;;  %v9882_v13 = vmax.f32 %v9866_v42, 0.0  ;;  %v9869_v8 = vadd.f32 %v19475_v46, %v9846_v59  ;;  %v9621_v28 = vadd.f32 %v14114_v43, %v9394_v45 }
 0x623   :  { %v9845_v35 = vadd.f32 %v20494_v30, %v9618_v55  ;;  %v9565_v31 = vpop.f32.mrf.mxu1 }
 0x624   :  { %v9928_v60 = vmax.f32 %v9896_v23, %v9912_v26  ;;  %v9897_v29 = vmax.f32 %v9882_v13, %v9883_v6  ;;  %v9848_v19 = vadd.f32 %v19448_v51, %v9621_v28  ;;  %v9620_v17 = vadd.f32 %v9565_v31, %v9393_v12 }
 0x625   :  { %v9868_v16 = vadd.f32 %v19475_v46, %v9845_v35  ;;  %v14117_v18 = vpop.f32.mrf.mxu1  ;;  %v9885_v27 = vmax.f32 %v9869_v8, 0.0  ;;  %v9822_v8 = vpop.f32.mrf.mxu0 }
 0x626   :  { %v9944_v24 = vrot.slane %v9928_v60, 1  ;;  %v9960_v61 = vrot.slane %v9928_v60, 2  ;;  %v9913_v48 = vrot.slane %v9897_v29, 1  ;;  %v9871_v4 = vadd.f32 %v19475_v46, %v9848_v19 }
 0x627   :  { %v9884_v21 = vmax.f32 %v9868_v16, 0.0  ;;  %v9847_v14 = vadd.f32 %v19465_v10, %v9620_v17  ;;  %v9623_v51 = vadd.f32 %v14117_v18, %v9396_v9  ;;  %v9575_v45 = vpop.f32.mrf.mxu1  ;;  %v9976_v62 = vrot.slane %v9928_v60, 3 }
 0x628   :  { %v9992_v20 = vsel %vm7668_vm5, %v9928_v60, %v9944_v24  ;;  %v9929_v52 = vmax.f32 %v9897_v29, %v9913_v48  ;;  %v9622_v1 = vadd.f32 %v9575_v45, %v9395_v32  ;;  %v9887_v12 = vmax.f32 %v9871_v4, 0.0  ;;  %v14152_v29 = vpop.f32.mrf.mxu0  ;;  %v20500_v4 = vld [vmem:[#allocation30_spill] sm:$0xff] }
 0x629   :  { %v10000_v25 = vsel %vm7685_vm6, %v9992_v20, %v9960_v61  ;;  %v9898_v40 = vmax.f32 %v9884_v21, %v9885_v27  ;;  %v9870_v63 = vadd.f32 %v19475_v46, %v9847_v14  ;;  %v14120_v7 = vpop.f32.mrf.mxu1  ;;  %v9850_v37 = vadd.f32 %v19481_v58, %v9623_v51 }
 0x62a   :  { %v10008_v47 = vsel %vm7702_vm7, %v10000_v25, %v9976_v62  ;;  %v9945_v38 = vrot.slane %v9929_v52, 1  ;;  %v9961_v10 = vrot.slane %v9929_v52, 2  ;;  %v9849_v59 = vadd.f32 %v19496_v15, %v9622_v1  ;;  %v9832_v20 = vpop.f32.mrf.mxu0 }
 0x62b   :  { %10017 = vst.msk [vmem:[#allocation4] sm:$0xf] %vm10016_vm14, %v10008_v47  ;;  %v9914_v23 = vrot.slane %v9898_v40, 1  ;;  %v9886_v42 = vmax.f32 %v9870_v63, 0.0  ;;  %v9585_v11 = vpop.f32.mrf.mxu1  ;;  %v9977_v9 = vrot.slane %v9929_v52, 3  ;;  %v9625_v6 = vadd.f32 %v14120_v7, %v9398_v34 }
 0x62c   :  { %v9993_v5 = vsel %vm7668_vm5, %v9929_v52, %v9945_v38  ;;  %v9624_v55 = vadd.f32 %v9585_v11, %v9397_v3  ;;  %v9873_v26 = vadd.f32 %v19475_v46, %v9850_v37  ;;  %v9872_v58 = vadd.f32 %v19475_v46, %v9849_v59 }
 0x62d   :  { %v10001_v43 = vsel %vm7685_vm6, %v9993_v5, %v9961_v10  ;;  %v9930_v54 = vmax.f32 %v9898_v40, %v9914_v23  ;;  %v9899_v32 = vmax.f32 %v9886_v42, %v9887_v12  ;;  %v14123_v13 = vpop.f32.mrf.mxu1  ;;  %v9852_v30 = vadd.f32 %v14146_v57, %v9625_v6 }
 0x62e   :  { %v10009_v28 = vsel %vm7702_vm7, %v10001_v43, %v9977_v9  ;;  %v9851_v15 = vadd.f32 %v9812_v2, %v9624_v55  ;;  %v9889_v3 = vmax.f32 %v9873_v26, 0.0  ;;  %v9888_v33 = vmax.f32 %v9872_v58, 0.0 }
 0x62f   :  { %10018 = vst.msk [vmem:[#allocation4 + $0x4] sm:$0xf] %vm10016_vm14, %v10009_v28  ;;  %v9946_v35 = vrot.slane %v9930_v54, 1  ;;  %v9962_v31 = vrot.slane %v9930_v54, 2  ;;  %v9978_v39 = vrot.slane %v9930_v54, 3  ;;  %v9915_v34 = vrot.slane %v9899_v32, 1  ;;  %v9595_v22 = vpop.f32.mrf.mxu1 }
 0x630   :  { %v9875_v36 = vadd.f32 %v19475_v46, %v9852_v30  ;;  %v9874_v60 = vadd.f32 %v19475_v46, %v9851_v15  ;;  %v9627_v57 = vadd.f32 %v14123_v13, %v19514_v0  ;;  %v9626_v17 = vadd.f32 %v9595_v22, %v9399_v50 }
 0x631   :  { %v9994_v19 = vsel %vm7668_vm5, %v9930_v54, %v9946_v35  ;;  %v9931_v16 = vmax.f32 %v9899_v32, %v9915_v34  ;;  %v14126_v18 = vpop.f32.mrf.mxu1  ;;  %v9900_v2 = vmax.f32 %v9888_v33, %v9889_v3  ;;  %v9401_v14 = vadd.f32 %v20500_v4, %v19519_v41  ;;  %v10027_v4 = vld [vmem:[%s19776_s7] sm:$0xff] }
 0x632   :  { %v10002_v53 = vsel %vm7685_vm6, %v9994_v19, %v9962_v31  ;;  %v9891_v24 = vmax.f32 %v9875_v36, 0.0  ;;  %v9890_v61 = vmax.f32 %v9874_v60, 0.0  ;;  %v9854_v0 = vadd.f32 %v14149_v44, %v9627_v57 }
 0x633   :  { %v10010_v48 = vsel %vm7702_vm7, %v10002_v53, %v9978_v39  ;;  %v9947_v27 = vrot.slane %v9931_v16, 1  ;;  %v9963_v21 = vrot.slane %v9931_v16, 2  ;;  %v9605_v51 = vpop.f32.mrf.mxu1  ;;  %v9916_v45 = vrot.slane %v9900_v2, 1 }
 0x634   :  { %10019 = vst.msk [vmem:[#allocation4 + $0x8] sm:$0xf] %vm10016_vm14, %v10010_v48  ;;  %v9901_v62 = vmax.f32 %v9890_v61, %v9891_v24  ;;  %v9853_v50 = vadd.f32 %v9822_v8, %v9626_v17  ;;  %v9979_v52 = vrot.slane %v9931_v16, 3  ;;  %v9629_v25 = vadd.f32 %v14126_v18, %v9402_v56  ;;  %v10029_v24 = vld [vmem:[#allocation4 + $0x1] sm:$0x1]  ;;  %v10028_v61 = vld [vmem:[%s19776_s7 + $0x8] sm:$0xff] }
 0x635   :  { %v9995_v1 = vsel %vm7668_vm5, %v9931_v16, %v9947_v27  ;;  %v9628_v40 = vadd.f32 %v9605_v51, %v9401_v14  ;;  %v9932_v7 = vmax.f32 %v9900_v2, %v9916_v45  ;;  %v9877_v47 = vadd.f32 %v19475_v46, %v9854_v0  ;;  %v10025_v45 = vld [vmem:[#allocation4] sm:$0x1] }
 0x636   :  { %v10003_v63 = vsel %vm7685_vm6, %v9995_v1, %v9963_v21  ;;  %v9917_v49 = vrot.slane %v9901_v62, 1  ;;  %v9876_v38 = vadd.f32 %v19475_v46, %v9853_v50  ;;  %v9856_v10 = vadd.f32 %v14152_v29, %v9629_v25  ;;  %v12205_v25 = vld [vmem:[%s19776_s7 + $0x38] sm:$0xff] }
 0x637   :  { %v10011_v41 = vsel %vm7702_vm7, %v10003_v63, %v9979_v52  ;;  %v9855_v12 = vadd.f32 %v9832_v20, %v9628_v40  ;;  %v9948_v44 = vrot.slane %v9932_v7, 1  ;;  %v9964_v23 = vrot.slane %v9932_v7, 2  ;;  %v12201_v20 = vld [vmem:[%s19776_s7 + $0x20] sm:$0xff] }
 0x638   :  { %10020 = vst.msk [vmem:[#allocation4 + $0xc] sm:$0xf] %vm10016_vm14, %v10011_v41  ;;  %v9933_v42 = vmax.f32 %v9901_v62, %v9917_v49  ;;  %v9893_v37 = vmax.f32 %v9877_v47, 0.0  ;;  %v9892_v56 = vmax.f32 %v9876_v38, 0.0  ;;  %v9879_v59 = vadd.f32 %v19475_v46, %v9856_v10  ;;  %v12202_v62 = vld [vmem:[%s19776_s7 + $0x28] sm:$0xff]  ;;  %v12204_v10 = vld [vmem:[%s19776_s7 + $0x30] sm:$0xff] }
 0x639   :  { %v9878_v11 = vadd.f32 %v19475_v46, %v9855_v12  ;;  %v9980_v9 = vrot.slane %v9932_v7, 3  ;;  %v9996_v5 = vsel %vm7668_vm5, %v9932_v7, %v9948_v44  ;;  %v20501_v51 = vmov 0.0   ;;  %v10188_v52 = vld [vmem:[#allocation4 + $0x2] sm:$0x1]  ;;  %v12226_v41 = vld [vmem:[%s19776_s7 + $0xa8] sm:$0xff] }
 0x63a   :  { %v9949_v6 = vrot.slane %v9933_v42, 1  ;;  %v9965_v55 = vrot.slane %v9933_v42, 2  ;;  %v10004_v43 = vsel %vm7685_vm6, %v9996_v5, %v9964_v23  ;;  %v9902_v54 = vmax.f32 %v9892_v56, %v9893_v37  ;;  %v12225_v23 = vld [vmem:[%s19776_s7 + $0xa0] sm:$0xff]  ;;  %v12208_v37 = vld [vmem:[%s19776_s7 + $0x48] sm:$0xff] }
 0x63b   :  { %v9895_v32 = vmax.f32 %v9879_v59, 0.0  ;;  %v9894_v26 = vmax.f32 %v9878_v11, 0.0  ;;  %v10012_v13 = vsel %vm7702_vm7, %v10004_v43, %v9980_v9  ;;  %v9981_v8 = vrot.slane %v9933_v42, 3  ;;  %v10682_v47 = vld [vmem:[#allocation4 + $0x8] sm:$0x1] }
 0x63c   :  { %v9997_v28 = vsel %vm7668_vm5, %v9933_v42, %v9949_v6  ;;  %10021 = vst.msk [vmem:[#allocation4 + $0x10] sm:$0xf] %vm10016_vm14, %v10012_v13  ;;  %v9918_v46 = vrot.slane %v9902_v54, 1  ;;  %v10270_v42 = vld [vmem:[#allocation4 + $0x3] sm:$0x1]  ;;  %v12232_v6 = vld [vmem:[%s19776_s7 + $0xc8] sm:$0xff] }
 0x63d   :  { %v10005_v58 = vsel %vm7685_vm6, %v9997_v28, %v9965_v55  ;;  %v9903_v30 = vmax.f32 %v9894_v26, %v9895_v32  ;;  %v10846_v56 = vld [vmem:[#allocation4 + $0xa] sm:$0x1]  ;;  %v12207_v55 = vld [vmem:[%s19776_s7 + $0x40] sm:$0xff]  ;;  %v12211_v13 = vld [vmem:[%s19776_s7 + $0x58] sm:$0xff] }
 0x63e   :  { %v10013_v15 = vsel %vm7702_vm7, %v10005_v58, %v9981_v8  ;;  %v9934_v35 = vmax.f32 %v9902_v54, %v9918_v46  ;;  %v12231_v32 = vld [vmem:[%s19776_s7 + $0xc0] sm:$0xff] }
 0x63f   :  { %10022 = vst.msk [vmem:[#allocation4 + $0x14] sm:$0xf] %vm10016_vm14, %v10013_v15  ;;  %v9919_v31 = vrot.slane %v9903_v30, 1  ;;  %v10353_v26 = vld [vmem:[#allocation4 + $0x4] sm:$0x1]  ;;  %v12238_v15 = vld [vmem:[%s19776_s7 + $0xe8] sm:$0xff] }
 0x640   :  { %v9950_v39 = vrot.slane %v9934_v35, 1  ;;  %v9966_v34 = vrot.slane %v9934_v35, 2  ;;  %v9982_v3 = vrot.slane %v9934_v35, 3  ;;  %v11011_v8 = vld [vmem:[#allocation4 + $0xc] sm:$0x1] }
 0x641   :  { %v9935_v22 = vmax.f32 %v9903_v30, %v9919_v31 }
 0x642   :  { %v9998_v33 = vsel %vm7668_vm5, %v9934_v35, %v9950_v39  ;;  %v12210_v35 = vld [vmem:[%s19776_s7 + $0x50] sm:$0xff] }
 0x643   :  { %v9951_v36 = vrot.slane %v9935_v22, 1  ;;  %v9967_v60 = vrot.slane %v9935_v22, 2  ;;  %v10006_v29 = vsel %vm7685_vm6, %v9998_v33, %v9966_v34  ;;  %v10030_v19 = vld [vmem:[#allocation4 + $0x11] sm:$0x1]  ;;  %v10026_v16 = vld [vmem:[#allocation4 + $0x10] sm:$0x1] }
 0x644   :  { %v10014_v57 = vsel %vm7702_vm7, %v10006_v29, %v9982_v3  ;;  %v9983_v17 = vrot.slane %v9935_v22, 3  ;;  %v10036_v53 = vrot.slane %v10030_v19, 7  ;;  %v10114_v21 = vrot.slane %v10026_v16, 7  ;;  %v10189_v14 = vld [vmem:[#allocation4 + $0x12] sm:$0x1]  ;;  %v12237_v34 = vld [vmem:[%s19776_s7 + $0xe0] sm:$0xff] }
 0x645   :  { %v9999_v18 = vsel %vm7668_vm5, %v9935_v22, %v9951_v36  ;;  %10023 = vst.msk [vmem:[#allocation4 + $0x18] sm:$0xf] %vm10016_vm14, %v10014_v57  ;;  %v10195_v50 = vrot.slane %v10189_v14, 7  ;;  %v10271_v63 = vld [vmem:[#allocation4 + $0x13] sm:$0x1]  ;;  %v12214_v33 = vld [vmem:[%s19776_s7 + $0x68] sm:$0xff] }
 0x646   :  { %v10007_v2 = vsel %vm7685_vm6, %v9999_v18, %v9967_v60  ;;  %v10038_v27 = vsel %vm10037_vm15, %v10036_v53, %v10029_v24  ;;  %v10115_v0 = vsel %vm10037_vm15, %v10114_v21, %v10025_v45  ;;  %v10277_v12 = vrot.slane %v10271_v63, 7  ;;  %v10354_v59 = vld [vmem:[#allocation4 + $0x14] sm:$0x1]  ;;  %v10436_v28 = vld [vmem:[#allocation4 + $0x15] sm:$0x1]  ;;  %v12213_v16 = vld [vmem:[%s19776_s7 + $0x60] sm:$0xff] }
 0x647   :  { %v10015_v48 = vsel %vm7702_vm7, %v10007_v2, %v9983_v17  ;;  %14158 = vmatmul.mubr.msk.f32.vlgmr.msra.gmra.mxu1 %vm10039_vm0, %v10038_v27  ;;  %v10196_v49 = vsel %vm10037_vm15, %v10195_v50, %v10188_v52  ;;  %v10360_v43 = vrot.slane %v10354_v59, 7  ;;  %v10442_v31 = vrot.slane %v10436_v28, 7  ;;  %v10518_v22 = vld [vmem:[#allocation4 + $0x16] sm:$0x1]  ;;  %v10435_v3 = vld [vmem:[#allocation4 + $0x5] sm:$0x1] }
 0x648   :  { %10024 = vst.msk [vmem:[#allocation4 + $0x1c] sm:$0xf] %vm10016_vm14, %v10015_v48  ;;  %14161 = vmatpush3.msra.mxu1 %v10028_v61  ;;  %14164 = vmatprep.mubr.msk.f32.mxu1 %vm14307_vm13, %v20501_v51  ;;  %v10278_v9 = vsel %vm10037_vm15, %v10277_v12, %v10270_v42  ;;  %v11175_v36 = vld [vmem:[#allocation4 + $0xe] sm:$0x1]  ;;  %v10524_v19 = vrot.slane %v10518_v22, 7  ;;  %v12217_v18 = vld [vmem:[%s19776_s7 + $0x78] sm:$0xff] }
 0x649   :  { %14162 = vmatprep.subr.mxu1 %v20501_v51  ;;  %v10361_v46 = vsel %vm10037_vm15, %v10360_v43, %v10353_v26  ;;  %v10443_v60 = vsel %vm10037_vm15, %v10442_v31, %v10435_v3  ;;  %v10600_v57 = vld [vmem:[#allocation4 + $0x17] sm:$0x1]  ;;  %v10517_v17 = vld [vmem:[#allocation4 + $0x6] sm:$0x1]  ;;  %v10599_v48 = vld [vmem:[#allocation4 + $0x7] sm:$0x1] }
 0x64a   :  { %14163 = vmatpush3.msra.mxu1 %v10027_v4  ;;  %v10525_v53 = vsel %vm10037_vm15, %v10524_v19, %v10517_v17  ;;  %v10606_v2 = vrot.slane %v10600_v57, 7  ;;  %v12216_v24 = vld [vmem:[%s19776_s7 + $0x70] sm:$0xff]  ;;  %v12223_v27 = vld [vmem:[%s19776_s7 + $0x98] sm:$0xff]  ;;  %v11348_v59 = vld [vmem:[%s19778_s9 + $0x8] sm:$0xff] }
 0x64b   :  { %14167 = vmatprep.subr.mxu1 %v20501_v51  ;;  %14165 = vmatmul.mubr.msk.f32.vlgmr.msra.gmra.mxu1 %vm10039_vm0, %v10115_v0  ;;  %v12222_v14 = vld [vmem:[%s19776_s7 + $0x90] sm:$0xff]  ;;  %v12229_v0 = vld [vmem:[%s19776_s7 + $0xb8] sm:$0xff] }
 0x64c   :  { %14168 = vmatpush3.msra.mxu1 %v12202_v62  ;;  %14171 = vmatprep.mubr.msk.f32.mxu1 %vm14307_vm13, %v20501_v51  ;;  %v10683_v1 = vld [vmem:[#allocation4 + $0x18] sm:$0x1]  ;;  %v10847_v7 = vld [vmem:[#allocation4 + $0x1a] sm:$0x1]  ;;  %v10765_v61 = vld [vmem:[#allocation4 + $0x19] sm:$0x1]  ;;  %v10607_v21 = vsel %vm10037_vm15, %v10606_v2, %v10599_v48 }
 0x64d   :  { %14169 = vmatprep.subr.mxu1 %v20501_v51  ;;  %v10689_v40 = vrot.slane %v10683_v1, 7  ;;  %v10853_v44 = vrot.slane %v10847_v7, 7  ;;  %v10771_v4 = vrot.slane %v10765_v61, 7  ;;  %v10929_v45 = vld [vmem:[#allocation4 + $0x1b] sm:$0x1]  ;;  %v12228_v52 = vld [vmem:[%s19776_s7 + $0xb0] sm:$0xff] }
 0x64e   :  { %14170 = vmatpush3.msra.mxu1 %v12201_v20  ;;  %v10764_v62 = vld [vmem:[#allocation4 + $0x9] sm:$0x1]  ;;  %v10935_v20 = vrot.slane %v10929_v45, 7 }
 0x64f   :  { %14174 = vmatprep.subr.mxu1 %v20501_v51  ;;  %14172 = vmatmul.mubr.msk.f32.vlgmr.msra.gmra.mxu1 %vm10039_vm0, %v10196_v49  ;;  %v10690_v38 = vsel %vm10037_vm15, %v10689_v40, %v10682_v47  ;;  %v11012_v11 = vld [vmem:[#allocation4 + $0x1c] sm:$0x1]  ;;  %v10854_v5 = vsel %vm10037_vm15, %v10853_v44, %v10846_v56  ;;  %v11176_v58 = vld [vmem:[#allocation4 + $0x1e] sm:$0x1]  ;;  %v10772_v50 = vsel %vm10037_vm15, %v10771_v4, %v10764_v62  ;;  %v11094_v1 = vld [vmem:[#allocation4 + $0x1d] sm:$0x1] }
 0x650   :  { %14175 = vmatpush3.msra.mxu1 %v12205_v25  ;;  %14214 = vmatmul.mubr.msk.f32.vlgmr.msra.gmra.mxu0 %vm10039_vm0, %v10690_v38  ;;  %v11018_v54 = vrot.slane %v11012_v11, 7  ;;  %v11182_v39 = vrot.slane %v11176_v58, 7  ;;  %v10928_v25 = vld [vmem:[#allocation4 + $0xb] sm:$0x1]  ;;  %v12235_v40 = vld [vmem:[%s19776_s7 + $0xd8] sm:$0xff]  ;;  %v11100_v7 = vrot.slane %v11094_v1, 7 }
 0x651   :  { %14176 = vmatprep.subr.mxu1 %v20501_v51  ;;  %14224 = vmatpush3.msra.mxu0 %v12226_v41  ;;  %v10936_v63 = vsel %vm10037_vm15, %v10935_v20, %v10928_v25  ;;  %v12234_v49 = vld [vmem:[%s19776_s7 + $0xd0] sm:$0xff]  ;;  %v11258_v47 = vld [vmem:[#allocation4 + $0x1f] sm:$0x1]  ;;  %v11093_v41 = vld [vmem:[#allocation4 + $0xd] sm:$0x1] }
 0x652   :  { %14177 = vmatpush3.msra.mxu1 %v12204_v10  ;;  %14225 = vmatprep.subr.mxu0 %v20501_v51  ;;  %v11019_v30 = vsel %vm10037_vm15, %v11018_v54, %v11011_v8  ;;  %v11183_v29 = vsel %vm10037_vm15, %v11182_v39, %v11175_v36  ;;  %v12241_v38 = vld [vmem:[%s19776_s7 + $0xf8] sm:$0xff]  ;;  %v11101_v10 = vsel %vm10037_vm15, %v11100_v7, %v11093_v41  ;;  %v11264_v12 = vrot.slane %v11258_v47, 7  ;;  %v12240_v44 = vld [vmem:[%s19776_s7 + $0xf0] sm:$0xff]  ;;  %v11347_v11 = vld [vmem:[%s19778_s9] sm:$0xff] }
 0x653   :  { %14178 = vmatprep.mubr.msk.f32.mxu1 %vm14307_vm13, %v20501_v51  ;;  %14181 = vmatprep.subr.mxu1 %v20501_v51  ;;  %v11349_v56 = vld [vmem:[%s19778_s9 + $0x10] sm:$0xff] }
 0x654   :  { %14226 = vmatpush3.msra.mxu0 %v12225_v23  ;;  %14227 = vmatprep.mubr.msk.f32.mxu0 %vm14307_vm13, %v20501_v51  ;;  %v11257_v23 = vld [vmem:[#allocation4 + $0xf] sm:$0x1] }
 0x655   :  { %14179 = vmatmul.mubr.msk.f32.vlgmr.msra.gmra.mxu1 %vm10039_vm0, %v10278_v9  ;;  %14228 = vmatmul.mubr.msk.f32.vlgmr.msra.gmra.mxu0 %vm10039_vm0, %v10854_v5  ;;  %v11265_v42 = vsel %vm10037_vm15, %v11264_v12, %v11257_v23 }
 0x656   :  { %14182 = vmatpush3.msra.mxu1 %v12208_v37  ;;  %14237 = vmatprep.subr.mxu0 %v20501_v51  ;;  %v11350_v37 = vld [vmem:[%s19778_s9 + $0x18] sm:$0xff] }
 0x657   :  { %14183 = vmatprep.subr.mxu1 %v20501_v51  ;;  %14238 = vmatpush3.msra.mxu0 %v12232_v6 }
 0x658   :  { %14184 = vmatpush3.msra.mxu1 %v12207_v55  ;;  %14239 = vmatprep.subr.mxu0 %v20501_v51 }
 0x659   :  { %14185 = vmatprep.mubr.msk.f32.mxu1 %vm14307_vm13, %v20501_v51  ;;  %14188 = vmatprep.subr.mxu1 %v20501_v51 }
 0x65a   :  { %14240 = vmatpush3.msra.mxu0 %v12231_v32  ;;  %14241 = vmatprep.mubr.msk.f32.mxu0 %vm14307_vm13, %v20501_v51 }
 0x65b   :  { %14186 = vmatmul.mubr.msk.f32.vlgmr.msra.gmra.mxu1 %vm10039_vm0, %v10361_v46  ;;  %14242 = vmatmul.mubr.msk.f32.vlgmr.msra.gmra.mxu0 %vm10039_vm0, %v11019_v30 }
 0x65c   :  { %14189 = vmatpush3.msra.mxu1 %v12211_v13  ;;  %14251 = vmatprep.subr.mxu0 %v20501_v51 }
 0x65d   :  { %14190 = vmatprep.subr.mxu1 %v20501_v51  ;;  %14252 = vmatpush3.msra.mxu0 %v12238_v15 }
 0x65e   :  { %14191 = vmatpush3.msra.mxu1 %v12210_v35  ;;  %14253 = vmatprep.subr.mxu0 %v20501_v51 }
 0x65f   :  { %14192 = vmatprep.mubr.msk.f32.mxu1 %vm14307_vm13, %v20501_v51  ;;  %14195 = vmatprep.subr.mxu1 %v20501_v51 }
 0x660   :  { %14254 = vmatpush3.msra.mxu0 %v12237_v34  ;;  %14255 = vmatprep.mubr.msk.f32.mxu0 %vm14307_vm13, %v20501_v51 }
 0x661   :  { %14193 = vmatmul.mubr.msk.f32.vlgmr.msra.gmra.mxu1 %vm10039_vm0, %v10443_v60  ;;  %14256 = vmatmul.mubr.msk.f32.vlgmr.msra.gmra.mxu0 %vm10039_vm0, %v11183_v29 }
 0x662   :  { %14196 = vmatpush3.msra.mxu1 %v12214_v33  ;;  %14199 = vmatprep.mubr.msk.f32.mxu1 %vm14307_vm13, %v20501_v51 }
 0x663   :  { %14197 = vmatprep.subr.mxu1 %v20501_v51  ;;  %14265 = vmatprep.subr.mxu0 %v20501_v51 }
 0x664   :  { %14198 = vmatpush3.msra.mxu1 %v12213_v16  ;;  %14273 = vmatprep.mubr.msk.f32.mxu0 %vm14307_vm13, %v20501_v51 }
 0x665   :  { %14202 = vmatprep.subr.mxu1 %v20501_v51  ;;  %14200 = vmatmul.mubr.msk.f32.vlgmr.msra.gmra.mxu1 %vm10039_vm0, %v10525_v53 }
 0x666   :  { %14203 = vmatpush3.msra.mxu1 %v12217_v18  ;;  %14206 = vmatprep.mubr.msk.f32.mxu1 %vm14307_vm13, %v20501_v51 }
 0x667   :  { %14204 = vmatprep.subr.mxu1 %v20501_v51  ;;  %14266 = vmatpush3.msra.mxu0 %v11350_v37 }
 0x668   :  { %14205 = vmatpush3.msra.mxu1 %v12216_v24  ;;  %14267 = vmatprep.subr.mxu0 %v20501_v51 }
 0x669   :  { %14216 = vmatprep.subr.mxu1 %v20501_v51  ;;  %14207 = vmatmul.mubr.msk.f32.vlgmr.msra.gmra.mxu1 %vm10039_vm0, %v10607_v21 }
 0x66a   :  { %14217 = vmatpush3.msra.mxu1 %v12223_v27  ;;  %14220 = vmatprep.mubr.msk.f32.mxu1 %vm14307_vm13, %v20501_v51 }
 0x66b   :  { %14218 = vmatprep.subr.mxu1 %v20501_v51  ;;  %14268 = vmatpush3.msra.mxu0 %v11349_v56 }
 0x66c   :  { %14219 = vmatpush3.msra.mxu1 %v12222_v14  ;;  %14269 = vmatprep.subr.mxu0 %v20501_v51 }
 0x66d   :  { %14230 = vmatprep.subr.mxu1 %v20501_v51  ;;  %14221 = vmatmul.mubr.msk.f32.vlgmr.msra.gmra.mxu1 %vm10039_vm0, %v10772_v50 }
 0x66e   :  { %14231 = vmatpush3.msra.mxu1 %v12229_v0  ;;  %14234 = vmatprep.mubr.msk.f32.mxu1 %vm14307_vm13, %v20501_v51 }
 0x66f   :  { %14232 = vmatprep.subr.mxu1 %v20501_v51  ;;  %14270 = vmatpush3.msra.mxu0 %v11348_v59 }
 0x670   :  { %14233 = vmatpush3.msra.mxu1 %v12228_v52  ;;  %14271 = vmatprep.subr.mxu0 %v20501_v51  ;;  %v12243_v52 = vld [vmem:[%s19777_s8] ss:$0 sm:$0xff] }
 0x671   :  { %14244 = vmatprep.subr.mxu1 %v20501_v51  ;;  %14235 = vmatmul.mubr.msk.f32.vlgmr.msra.gmra.mxu1 %vm10039_vm0, %v10936_v63  ;;  %v12244_v63 = vld [vmem:[%s19779_s10] ss:$0 sm:$0xff] }
 0x672   :  { %14245 = vmatpush3.msra.mxu1 %v12235_v40  ;;  %14248 = vmatprep.mubr.msk.f32.mxu1 %vm14307_vm13, %v20501_v51 }
 0x673   :  { %14246 = vmatprep.subr.mxu1 %v20501_v51  ;;  %14272 = vmatpush3.msra.mxu0 %v11347_v11 }
 0x674   :  { %14247 = vmatpush3.msra.mxu1 %v12234_v49 }
 0x675   :  { %14258 = vmatprep.subr.mxu1 %v20501_v51  ;;  %14249 = vmatmul.mubr.msk.f32.vlgmr.msra.gmra.mxu1 %vm10039_vm0, %v11101_v10 }
 0x676   :  { %14259 = vmatpush3.msra.mxu1 %v12241_v38  ;;  %14262 = vmatprep.mubr.msk.f32.mxu1 %vm14307_vm13, %v20501_v51 }
 0x677   :  { %14260 = vmatprep.subr.mxu1 %v20501_v51 }
 0x678   :  { %14261 = vmatpush3.msra.mxu1 %v12240_v44 }
 0x679   :  { %14263 = vmatmul.mubr.msk.f32.vlgmr.msra.gmra.mxu1 %vm10039_vm0, %v11265_v42 }
 0x707   :  { %v10108_v9 = vpop.f32.mrf.mxu1 }
 0x709   :  { %v14159_v5 = vpop.f32.mrf.mxu1 }
 0x70b   :  { %v10184_v6 = vpop.f32.mrf.mxu1 }
 0x70c   :  { %v10185_v31 = vadd.f32 %v10184_v6, %v10108_v9 }
 0x70d   :  { %v14166_v55 = vpop.f32.mrf.mxu1 }
 0x70f   :  { %v10265_v43 = vpop.f32.mrf.mxu1 }
 0x710   :  { %v10759_v54 = vpop.f32.mrf.mxu0  ;;  %v10269_v39 = vadd.f32 %v10265_v43, %v10185_v31 }
 0x711   :  { %v14173_v32 = vpop.f32.mrf.mxu1 }
 0x712   :  { %v14215_v26 = vpop.f32.mrf.mxu0 }
 0x715   :  { %v10347_v13 = vpop.f32.mrf.mxu1  ;;  %v10923_v8 = vpop.f32.mrf.mxu0 }
 0x716   :  { %v10351_v22 = vadd.f32 %v10347_v13, %v10269_v39 }
 0x717   :  { %v14180_v28 = vpop.f32.mrf.mxu1  ;;  %v14229_v58 = vpop.f32.mrf.mxu0 }
 0x71b   :  { %v10430_v46 = vpop.f32.mrf.mxu1  ;;  %v11088_v30 = vpop.f32.mrf.mxu0 }
 0x71c   :  { %v10434_v36 = vadd.f32 %v10430_v46, %v10351_v22 }
 0x71d   :  { %v14187_v15 = vpop.f32.mrf.mxu1  ;;  %v14243_v35 = vpop.f32.mrf.mxu0 }
 0x721   :  { %v10512_v51 = vpop.f32.mrf.mxu1  ;;  %v11252_v34 = vpop.f32.mrf.mxu0 }
 0x722   :  { %v10516_v29 = vadd.f32 %v10512_v51, %v10434_v36 }
 0x723   :  { %v14194_v3 = vpop.f32.mrf.mxu1  ;;  %v14257_v33 = vpop.f32.mrf.mxu0 }
 0x725   :  { %v10594_v60 = vpop.f32.mrf.mxu1 }
 0x726   :  { %v10598_v16 = vadd.f32 %v10594_v60, %v10516_v29 }
 0x727   :  { %v14201_v19 = vpop.f32.mrf.mxu1 }
 0x729   :  { %v10676_v57 = vpop.f32.mrf.mxu1 }
 0x72a   :  { %v10680_v17 = vadd.f32 %v10676_v57, %v10598_v16 }
 0x72b   :  { %v14208_v18 = vpop.f32.mrf.mxu1 }
 0x72c   :  { %v10763_v53 = vadd.f32 %v10759_v54, %v10680_v17 }
 0x72d   :  { %v10841_v2 = vpop.f32.mrf.mxu1 }
 0x72e   :  { %v10845_v24 = vadd.f32 %v10841_v2, %v10763_v53 }
 0x72f   :  { %v14222_v61 = vpop.f32.mrf.mxu1 }
 0x730   :  { %v10927_v48 = vadd.f32 %v10923_v8, %v10845_v24 }
 0x731   :  { %v11005_v27 = vpop.f32.mrf.mxu1 }
 0x732   :  { %v11009_v21 = vadd.f32 %v11005_v27, %v10927_v48 }
 0x733   :  { %v14236_v4 = vpop.f32.mrf.mxu1 }
 0x734   :  { %v11092_v14 = vadd.f32 %v11088_v30, %v11009_v21 }
 0x735   :  { %v11170_v45 = vpop.f32.mrf.mxu1 }
 0x736   :  { %v11174_v62 = vadd.f32 %v11170_v45, %v11092_v14 }
 0x737   :  { %v14250_v0 = vpop.f32.mrf.mxu1 }
 0x738   :  { %v11256_v50 = vadd.f32 %v11252_v34, %v11174_v62 }
 0x739   :  { %v11334_v20 = vpop.f32.mrf.mxu1 }
 0x73a   :  { %v11338_v1 = vadd.f32 %v11334_v20, %v11256_v50 }
 0x73b   :  { %v14264_v25 = vpop.f32.mrf.mxu1 }
 0x73c   :  { %v11346_v40 = vadd.f32 %v12243_v52, %v11338_v1 }
 0x73e   :  { %14274 = vmatmul.mubr.msk.f32.vlgmr.msra.gmra.mxu0 %vm11358_vm1, %v11346_v40 }
 0x7fe   :  { %v11428_v7 = vpop.f32.mrf.mxu0 }
 0x7ff   :  { %v11429_v49 = vadd.f32 %v12244_v63, %v11428_v7 }
 0x800   :  { %v14275_v47 = vpop.f32.mrf.mxu0 }
 0x801   :  { %11433 = vst.msk [vmem:[#allocation5] sm:$0x3] %vm11432_vm2, %v11429_v49 }
 0x802   :  { %14295 = shalt.err (!%p14292_p4)
}
 0x803   :  { %11443 = dma.vmem_to_hbm [thread:$0]  %s11441_s29, 32, %s19780_s11, [#allocation6]  }
 0x804   :  { %14304 = dma.done.wait [#allocation6], 32  }
 0x805   :  { %14305 = vsyncadd [#allocation6], 4294967264 }
 0x806   :  { %11447 = vsyncpa [#allocation6], 1 }

</bundles_post_ra>
